<compile_context>
chip_gen: v6e
topology: v6e:2x2x1
jax: 0.10.0
libtpu: 0.0.40
codegen_flags: <defaults>
</compile_context>

<pallas_src>
import jax
import jax.numpy as jnp
from jax.experimental import pallas as pl
from jax.experimental.pallas import tpu as pltpu

MIN_LAG = -0.75
MAX_LAG = 0.75
BN_EPS = 1e-5
K1, K2, K3 = 21, 15, 11


# ----------------------------------------------------------------------------
# Fused conv stack: (conv1+ReLU+bn1+pool) -> (conv2+...) -> (conv3+...) in one
# kernel.  Channels-last (L on sublanes, C on lanes); all channel dims padded
# to 128 lanes.
#
# IMPORTANT invariant (tap-packing correctness): the lane-roll tap packing in
# stages 2/3 requires padded lanes of p1/p2 to be exactly zero.  That holds
# because the padded entries of the conv bias are 0, of the BN scale are 1 and
# of the BN shift are 0 (see init_params), so ReLU(0)*1+0 == 0.  Do not change
# those pad values without changing the packing.
# ----------------------------------------------------------------------------
def _conv_stack_kernel(xcol_ref, w1_ref, b1_ref, s1_ref, t1_ref,
                       w2_ref, b2_ref, s2_ref, t2_ref,
                       w3_ref, b3_ref, s3_ref, t3_ref,
                       o_ref, y_ref, p1_ref, p2_ref):
    # xcol_ref: (1, L, 21*C) bf16   stage-1 im2col (built in the wrapper)
    # w1/w2/w3: (21*C,128) / (16*32,128) / (12*64,128)  tap-major, bf16,
    #           zero-padded taps / out-channels
    # b,s,t:    (1, 128) conv bias / BN scale / BN shift (padded: 0 / 1 / 0)
    # o_ref:    (1, L//8, 128) bf16 stage-3 pooled output
    # y_ref:    (L, 128) f32 shared pre-pool scratch
    # p1_ref:   (L//2+16, 128) stage-2 input (data at rows [8, 8+L//2), pads 0)
    # p2_ref:   (L//4+14, 128) stage-3 input (data at rows [8, 8+L//4), pads 0)
    L = xcol_ref.shape[1]
    L2, L4, L8 = L // 2, L // 4, L // 8
    f32, bf16 = jnp.float32, jnp.bfloat16

    def bn_relu(acc, b, s, t):
        # conv bias + ReLU, then eval-mode BatchNorm as affine scale/shift
        return jnp.maximum(acc + b[...], 0.0) * s[...] + t[...]

    # Zero only the pad rows of p1/p2 (head 8 rows + tail rows); the data
    # region is fully overwritten every grid step.  Unconditional (no
    # program_id gate) so per-core scratch is valid under core-parallel grids.
    p1_tail = p1_ref.shape[0] - (8 + L2)
    p2_tail = p2_ref.shape[0] - (8 + L4)
    p1_ref[0:8, :] = jnp.zeros((8, 128), f32)
    p1_ref[8 + L2:, :] = jnp.zeros((p1_tail, 128), f32)
    p2_ref[0:8, :] = jnp.zeros((8, 128), f32)
    p2_ref[8 + L4:, :] = jnp.zeros((p2_tail, 128), f32)

    # ------------------- stage 1: conv1 (K=21), single im2col matmul ---------
    y1 = jnp.dot(xcol_ref[0], w1_ref[...], preferred_element_type=f32)  # (L,128)
    y_ref[...] = bn_relu(y1, b1_ref, s1_ref, t1_ref)
    # MaxPool1d(2,2) into the zero-padded, 8-aligned stage-2 input buffer
    p1_ref[8:8 + L2, :] = jnp.maximum(y_ref[pl.ds(0, L2, 2), :],
                                      y_ref[pl.ds(1, L2, 2), :])

    # ------------------- stage 2: conv2 (K=15), 8 taps / 256-deep matmul -----
    def tap_group4(base):
        # pack 4 consecutive taps (32 in-channels each) into 128 lanes
        blk = p1_ref[pl.ds(base, L2), :]
        for j in range(1, 4):
            blk = blk + pltpu.roll(p1_ref[pl.ds(base + j, L2), :],
                                   shift=32 * j, axis=1)
        return blk

    acc2 = jnp.zeros((L2, 128), f32)
    for m in range(2):                 # taps 8m..8m+7 (tap 15 = zero pad tap)
        wide = jnp.concatenate([tap_group4(1 + 8 * m),
                                tap_group4(5 + 8 * m)], axis=1)      # (L2, 256)
        acc2 = acc2 + jnp.dot(wide.astype(bf16),
                              w2_ref[256 * m:256 * (m + 1), :],
                              preferred_element_type=f32)
    y_ref[0:L2, :] = bn_relu(acc2, b2_ref, s2_ref, t2_ref)
    p2_ref[8:8 + L4, :] = jnp.maximum(y_ref[pl.ds(0, L4, 2), :],
                                      y_ref[pl.ds(1, L4, 2), :])

    # ------------------- stage 3: conv3 (K=11), 4 taps / 256-deep matmul -----
    def tap_group2(base):
        # pack 2 consecutive taps (64 in-channels each) into 128 lanes
        return p2_ref[pl.ds(base, L4), :] + pltpu.roll(
            p2_ref[pl.ds(base + 1, L4), :], shift=64, axis=1)

    acc3 = jnp.zeros((L4, 128), f32)
    for m in range(3):                 # taps 4m..4m+3 (tap 11 = zero pad tap)
        wide = jnp.concatenate([tap_group2(3 + 4 * m),
                                tap_group2(5 + 4 * m)], axis=1)      # (L4, 256)
        acc3 = acc3 + jnp.dot(wide.astype(bf16),
                              w3_ref[256 * m:256 * (m + 1), :],
                              preferred_element_type=f32)
    y_ref[0:L4, :] = bn_relu(acc3, b3_ref, s3_ref, t3_ref)
    o_ref[0] = jnp.maximum(y_ref[pl.ds(0, L8, 2), :],
                           y_ref[pl.ds(1, L8, 2), :]).astype(o_ref.dtype)


def conv_stack(xcol, p):
    B, L, KC = xcol.shape
    n_out = L // 8

    def vspec():
        return pl.BlockSpec((1, 128), lambda b: (0, 0))

    return pl.pallas_call(
        _conv_stack_kernel,
        out_shape=jax.ShapeDtypeStruct((B, n_out, 128), jnp.bfloat16),
        grid_spec=pltpu.PrefetchScalarGridSpec(
            num_scalar_prefetch=0,
            grid=(B,),
            in_specs=[
                pl.BlockSpec((1, L, KC), lambda b: (b, 0, 0)),
                pl.BlockSpec((KC, 128), lambda b: (0, 0)),
                vspec(), vspec(), vspec(),
                pl.BlockSpec((16 * 32, 128), lambda b: (0, 0)),
                vspec(), vspec(), vspec(),
                pl.BlockSpec((12 * 64, 128), lambda b: (0, 0)),
                vspec(), vspec(), vspec(),
            ],
            out_specs=pl.BlockSpec((1, n_out, 128), lambda b: (b, 0, 0)),
            scratch_shapes=[
                pltpu.VMEM((L, 128), jnp.float32),            # shared pre-pool
                pltpu.VMEM((L // 2 + 16, 128), jnp.float32),  # padded stage-2 in
                pltpu.VMEM((L // 4 + 14, 128), jnp.float32),  # padded stage-3 in
            ],
        ),
        # batch elements are independent -> v7x can shard them across cores
        compiler_params=pltpu.CompilerParams(
            dimension_semantics=("parallel",)),
    )(xcol, p["cw1"], p["cb1"], p["s1"], p["t1"],
      p["cw2"], p["cb2"], p["s2"], p["t2"],
      p["cw3"], p["cb3"], p["s3"], p["t3"])


# ----------------------------------------------------------------------------
# MLP head: fcn1 + ReLU + bn4 + fcn2 + ReLU + bn5 + fcn3 + Hardtanh.
# The 9600-wide fcn1 contraction is tiled over the grid (bf16 weight stream,
# f32 accumulation); the small epilogue runs at the last grid step.
# ----------------------------------------------------------------------------
def _mlp_kernel(x_ref, w1_ref, b1_ref, s4_ref, t4_ref,
                w2_ref, b2_ref, s5_ref, t5_ref, w3_ref, b3_ref,
                o_ref, acc_ref):
    k = pl.program_id(0)

    @pl.when(k == 0)
    def _():
        acc_ref[...] = jnp.zeros_like(acc_ref)

    # x and w1 are already bf16; accumulate in f32.
    acc_ref[...] += jnp.dot(x_ref[...], w1_ref[...],
                            preferred_element_type=jnp.float32)

    @pl.when(k == pl.num_programs(0) - 1)
    def _():
        h = jnp.maximum(acc_ref[...] + b1_ref[...], 0.0)            # fcn1 + ReLU
        h = h * s4_ref[...] + t4_ref[...]                           # bn4
        h = jnp.dot(h.astype(jnp.bfloat16), w2_ref[...],
                    preferred_element_type=jnp.float32) + b2_ref[...]   # fcn2
        h = jnp.maximum(h, 0.0) * s5_ref[...] + t5_ref[...]         # ReLU + bn5
        h = jnp.dot(h, w3_ref[...],
                    preferred_element_type=jnp.float32) + b3_ref[...]   # fcn3
        o_ref[...] = jnp.clip(h, MIN_LAG, MAX_LAG)                  # Hardtanh


def mlp_head(x, p, *, kc=3200):
    # NOTE(v5e): at kc=3200 the double-buffered bf16 fw1 blocks (~6.6 MB) plus
    # fw2 and scratch fit the 16 MiB default scoped-VMEM budget.  If kc is
    # retuned upward (>= ~4800), also set
    # pltpu.CompilerParams(vmem_limit_bytes=...) to avoid a scoped-VMEM fail.
    B, D = x.shape
    H = 512
    assert D % kc == 0
    nk = D // kc
    return pl.pallas_call(
        _mlp_kernel,
        out_shape=jax.ShapeDtypeStruct((B, 1), jnp.float32),
        grid_spec=pltpu.PrefetchScalarGridSpec(
            num_scalar_prefetch=0,
            grid=(nk,),
            in_specs=[
                pl.BlockSpec((B, kc), lambda k: (0, k)),
                pl.BlockSpec((kc, H), lambda k: (k, 0)),
                pl.BlockSpec((1, H), lambda k: (0, 0)),
                pl.BlockSpec((1, H), lambda k: (0, 0)),
                pl.BlockSpec((1, H), lambda k: (0, 0)),
                pl.BlockSpec((H, H), lambda k: (0, 0)),
                pl.BlockSpec((1, H), lambda k: (0, 0)),
                pl.BlockSpec((1, H), lambda k: (0, 0)),
                pl.BlockSpec((1, H), lambda k: (0, 0)),
                pl.BlockSpec((H, 1), lambda k: (0, 0)),
                pl.BlockSpec((1, 1), lambda k: (0, 0)),
            ],
            out_specs=pl.BlockSpec((B, 1), lambda k: (0, 0)),
            scratch_shapes=[pltpu.VMEM((B, H), jnp.float32)],
        ),
        compiler_params=pltpu.CompilerParams(
            dimension_semantics=("arbitrary",)),
    )(x, p["fw1"], p["fb1"], p["s4"], p["t4"],
      p["fw2"], p["fb2"], p["s5"], p["t5"], p["fw3"], p["fb3"])


# ----------------------------------------------------------------------------
# Deterministic synthetic parameters (PyTorch layouts generated, then packed).
# ----------------------------------------------------------------------------
def init_params(key, num_channels=3, length=600):
    ks = jax.random.split(key, 16)
    p = {}

    def w_init(k, shape, fan_in):
        return jax.random.normal(k, shape, jnp.float32) / jnp.sqrt(float(fan_in))

    def bn_affine(k, c):
        kg, kb, km, kv = jax.random.split(k, 4)
        gamma = 1.0 + 0.1 * jax.random.normal(kg, (c,), jnp.float32)
        beta = 0.1 * jax.random.normal(kb, (c,), jnp.float32)
        mean = 0.1 * jax.random.normal(km, (c,), jnp.float32)
        var = 1.0 + 0.5 * jax.random.uniform(kv, (c,), jnp.float32)
        scale = gamma / jnp.sqrt(var + BN_EPS)
        return scale, beta - mean * scale

    def pack_conv(w_oik, k_pad, c_out_pad):
        # PyTorch Conv1d weight (C_out, C_in, K) -> tap-major (k_pad*C_in, c_out_pad)
        # bf16; padded taps / out-channels are exactly zero.
        c_out, c_in, kk = w_oik.shape
        w = jnp.zeros((c_out_pad, c_in, k_pad), jnp.float32).at[:c_out, :, :kk].set(w_oik)
        return jnp.transpose(w, (2, 1, 0)).reshape(k_pad * c_in, c_out_pad).astype(jnp.bfloat16)

    def pad_row(v, c_pad, fill):
        # Pad values (bias 0 / BN scale 1 / BN shift 0) keep padded lanes of
        # every stage output exactly zero -- required by the tap-packing rolls.
        return jnp.full((c_pad,), fill, jnp.float32).at[:v.shape[0]].set(v).reshape(1, c_pad)

    # conv stages (out-channels padded to 128 lanes; pad scale=1, shift=0)
    cw1 = w_init(ks[0], (32, num_channels, K1), K1 * num_channels)
    cb1 = 0.1 * jax.random.normal(ks[1], (32,), jnp.float32)
    s1, t1 = bn_affine(ks[2], 32)
    p["cw1"] = pack_conv(cw1, K1, 128)
    p["cb1"], p["s1"], p["t1"] = pad_row(cb1, 128, 0.), pad_row(s1, 128, 1.), pad_row(t1, 128, 0.)

    cw2 = w_init(ks[3], (64, 32, K2), K2 * 32)
    cb2 = 0.1 * jax.random.normal(ks[4], (64,), jnp.float32)
    s2, t2 = bn_affine(ks[5], 64)
    p["cw2"] = pack_conv(cw2, 16, 128)          # 15 taps padded to 16 (2 groups of 8)
    p["cb2"], p["s2"], p["t2"] = pad_row(cb2, 128, 0.), pad_row(s2, 128, 1.), pad_row(t2, 128, 0.)

    cw3 = w_init(ks[6], (128, 64, K3), K3 * 64)
    cb3 = 0.1 * jax.random.normal(ks[7], (128,), jnp.float32)
    s3, t3 = bn_affine(ks[8], 128)
    p["cw3"] = pack_conv(cw3, 12, 128)          # 11 taps padded to 12 (3 groups of 4)
    p["cb3"], p["s3"], p["t3"] = pad_row(cb3, 128, 0.), pad_row(s3, 128, 1.), pad_row(t3, 128, 0.)

    # MLP head.  PyTorch fcn1 expects a channel-major flatten (c*75 + l); the
    # kernel produces a length-major flatten (l*128 + c), so permute fw1's rows
    # once here (and store bf16: the fw1 stream is the HBM-bound term).
    n_len = length // 8
    linear_shape = 128 * n_len                  # 9600 for length=600 (matches CNNNet)
    fw1_t = w_init(ks[9], (512, linear_shape), linear_shape)          # torch (out, in)
    fw1 = jnp.transpose(fw1_t.T.reshape(128, n_len, 512), (1, 0, 2)).reshape(linear_shape, 512)
    p["fw1"] = fw1.astype(jnp.bfloat16)
    p["fb1"] = (0.1 * jax.random.normal(ks[10], (512,), jnp.float32)).reshape(1, 512)
    s4, t4 = bn_affine(ks[11], 512)
    p["s4"], p["t4"] = s4.reshape(1, 512), t4.reshape(1, 512)

    fw2_t = w_init(ks[12], (512, 512), 512)
    p["fw2"] = fw2_t.T.astype(jnp.bfloat16)     # bf16: trims the MLP weight stream
    p["fb2"] = (0.1 * jax.random.normal(ks[13], (512,), jnp.float32)).reshape(1, 512)
    s5, t5 = bn_affine(ks[14], 512)
    p["s5"], p["t5"] = s5.reshape(1, 512), t5.reshape(1, 512)

    fw3_t = w_init(ks[15], (1, 512), 512)
    p["fw3"] = fw3_t.T                          # (512, 1) f32
    p["fb3"] = jnp.zeros((1, 1), jnp.float32)
    return p


# ----------------------------------------------------------------------------
# Full forward (input is PyTorch-style NCL: (B, num_channels, 600))
# ----------------------------------------------------------------------------
@jax.jit
def cnn_net_forward(x_ncl, params):
    B, C, L = x_ncl.shape
    x = jnp.transpose(x_ncl, (0, 2, 1))                        # (B, L, C)
    # 'same' pad for conv1; cast to bf16 once here (the matmul operand dtype),
    # halving the im2col HBM writeback and the stage-1 input DMA.
    xp = jnp.pad(x, ((0, 0), (K1 // 2, K1 // 2), (0, 0))).astype(jnp.bfloat16)
    # stage-1 im2col built once in XLA (tiny): lane index = C*k + ci
    cols = jnp.concatenate([xp[:, k:k + L, :] for k in range(K1)], axis=-1)
    feats = conv_stack(cols, params)                           # (B, L//8, 128) bf16
    flat = feats.reshape(B, -1)                                # length-major flatten (free)
    return mlp_head(flat, params)


if __name__ == "__main__":
    key = jax.random.PRNGKey(0)
    kx, kp = jax.random.split(key)

    # Architecture fixes L = 600 (3 maxpools -> 75, 128*75 = 9600). Small batch.
    B, C, L = 2, 3, 600
    x = jax.random.normal(kx, (B, C, L), jnp.float32)
    params = init_params(kp, num_channels=C, length=L)

    out = cnn_net_forward(x, params)
    out = jax.block_until_ready(out)

    assert out.shape == (B, 1), out.shape
    assert out.dtype == jnp.float32
    assert bool(jnp.all(out >= MIN_LAG)) and bool(jnp.all(out <= MAX_LAG))
    print("KERNEL_OK")
</pallas_src>

<mosaic_0001>
module attributes {stable_mosaic.version = 11 : i64} {
  func.func @_conv_stack_kernel(%arg0: i32, %arg1: memref<1x600x63xbf16, #tpu.memory_space<vmem>>, %arg2: memref<63x128xbf16, #tpu.memory_space<vmem>>, %arg3: memref<1x128xf32, #tpu.memory_space<vmem>>, %arg4: memref<1x128xf32, #tpu.memory_space<vmem>>, %arg5: memref<1x128xf32, #tpu.memory_space<vmem>>, %arg6: memref<512x128xbf16, #tpu.memory_space<vmem>>, %arg7: memref<1x128xf32, #tpu.memory_space<vmem>>, %arg8: memref<1x128xf32, #tpu.memory_space<vmem>>, %arg9: memref<1x128xf32, #tpu.memory_space<vmem>>, %arg10: memref<768x128xbf16, #tpu.memory_space<vmem>>, %arg11: memref<1x128xf32, #tpu.memory_space<vmem>>, %arg12: memref<1x128xf32, #tpu.memory_space<vmem>>, %arg13: memref<1x128xf32, #tpu.memory_space<vmem>>, %arg14: memref<1x75x128xbf16, #tpu.memory_space<vmem>>, %arg15: memref<600x128xf32, #tpu.memory_space<vmem>>, %arg16: memref<316x128xf32, #tpu.memory_space<vmem>>, %arg17: memref<164x128xf32, #tpu.memory_space<vmem>>) attributes {dimension_semantics = [#tpu.dimension_semantics<parallel>], iteration_bounds = array<i64: 2>, scalar_prefetch = 0 : i64, scratch_operands = 3 : i64, tpu.core_type = #tpu.core_type<tc>, window_params = [{transform_indices = @transform_0, window_bounds = array<i64: 1, 600, 63>}, {pipeline_mode = #tpu.pipeline_mode<synchronous>, transform_indices = @transform_1, window_bounds = array<i64: 63, 128>}, {pipeline_mode = #tpu.pipeline_mode<synchronous>, transform_indices = @transform_2, window_bounds = array<i64: 1, 128>}, {pipeline_mode = #tpu.pipeline_mode<synchronous>, transform_indices = @transform_3, window_bounds = array<i64: 1, 128>}, {pipeline_mode = #tpu.pipeline_mode<synchronous>, transform_indices = @transform_4, window_bounds = array<i64: 1, 128>}, {pipeline_mode = #tpu.pipeline_mode<synchronous>, transform_indices = @transform_5, window_bounds = array<i64: 512, 128>}, {pipeline_mode = #tpu.pipeline_mode<synchronous>, transform_indices = @transform_6, window_bounds = array<i64: 1, 128>}, {pipeline_mode = #tpu.pipeline_mode<synchronous>, transform_indices = @transform_7, window_bounds = array<i64: 1, 128>}, {pipeline_mode = #tpu.pipeline_mode<synchronous>, transform_indices = @transform_8, window_bounds = array<i64: 1, 128>}, {pipeline_mode = #tpu.pipeline_mode<synchronous>, transform_indices = @transform_9, window_bounds = array<i64: 768, 128>}, {pipeline_mode = #tpu.pipeline_mode<synchronous>, transform_indices = @transform_10, window_bounds = array<i64: 1, 128>}, {pipeline_mode = #tpu.pipeline_mode<synchronous>, transform_indices = @transform_11, window_bounds = array<i64: 1, 128>}, {pipeline_mode = #tpu.pipeline_mode<synchronous>, transform_indices = @transform_12, window_bounds = array<i64: 1, 128>}, {transform_indices = @transform_13, window_bounds = array<i64: 1, 75, 128>}]} {
    %cst = arith.constant 0.000000e+00 : f32
    %0 = vector.broadcast %cst : f32 to vector<8x128xf32>
    %c0 = arith.constant 0 : index
    %c0_0 = arith.constant 0 : index
    %1 = vector.load %arg16[%c0, %c0_0] : memref<316x128xf32, #tpu.memory_space<vmem>>, vector<8x128xf32>
    tpu.vector_store %arg16[%c0, %c0_0], %0 {strides = array<i32>} : memref<316x128xf32, #tpu.memory_space<vmem>>, vector<8x128xf32>,
    %cst_1 = arith.constant 0.000000e+00 : f32
    %2 = vector.broadcast %cst_1 : f32 to vector<8x128xf32>
    %c308 = arith.constant 308 : index
    %c0_2 = arith.constant 0 : index
    %3 = vector.load %arg16[%c308, %c0_2] : memref<316x128xf32, #tpu.memory_space<vmem>>, vector<8x128xf32>
    tpu.vector_store %arg16[%c308, %c0_2], %2 {strides = array<i32>} : memref<316x128xf32, #tpu.memory_space<vmem>>, vector<8x128xf32>,
    %cst_3 = arith.constant 0.000000e+00 : f32
    %4 = vector.broadcast %cst_3 : f32 to vector<8x128xf32>
    %c0_4 = arith.constant 0 : index
    %c0_5 = arith.constant 0 : index
    %5 = vector.load %arg17[%c0_4, %c0_5] : memref<164x128xf32, #tpu.memory_space<vmem>>, vector<8x128xf32>
    tpu.vector_store %arg17[%c0_4, %c0_5], %4 {strides = array<i32>} : memref<164x128xf32, #tpu.memory_space<vmem>>, vector<8x128xf32>,
    %cst_6 = arith.constant 0.000000e+00 : f32
    %6 = vector.broadcast %cst_6 : f32 to vector<6x128xf32>
    %c158 = arith.constant 158 : index
    %c0_7 = arith.constant 0 : index
    %7 = vector.load %arg17[%c158, %c0_7] : memref<164x128xf32, #tpu.memory_space<vmem>>, vector<6x128xf32>
    tpu.vector_store %arg17[%c158, %c0_7], %6 {strides = array<i32>} : memref<164x128xf32, #tpu.memory_space<vmem>>, vector<6x128xf32>,
    %c0_8 = arith.constant 0 : index
    %c0_9 = arith.constant 0 : index
    %c0_10 = arith.constant 0 : index
    %8 = vector.load %arg1[%c0_8, %c0_9, %c0_10] : memref<1x600x63xbf16, #tpu.memory_space<vmem>>, vector<1x600x63xbf16>
    %9 = vector.shape_cast %8 : vector<1x600x63xbf16> to vector<600x63xbf16>
    %c0_11 = arith.constant 0 : index
    %c0_12 = arith.constant 0 : index
    %10 = vector.load %arg2[%c0_11, %c0_12] : memref<63x128xbf16, #tpu.memory_space<vmem>>, vector<63x128xbf16>
    %cst_13 = arith.constant dense<0.000000e+00> : vector<600x128xf32>
    %11 = tpu.matmul %9, %10, %cst_13 {dimension_numbers = #tpu.dot_dimension_numbers<[1], [0], [0], [1], [0, 0, 1, 1], [], []>} : vector<600x63xbf16>, vector<63x128xbf16>, vector<600x128xf32> -> vector<600x128xf32>
    %c0_14 = arith.constant 0 : index
    %c0_15 = arith.constant 0 : index
    %12 = vector.load %arg3[%c0_14, %c0_15] : memref<1x128xf32, #tpu.memory_space<vmem>>, vector<1x128xf32>
    %13 = vector.broadcast %12 : vector<1x128xf32> to vector<600x128xf32>
    %14 = arith.addf %11, %13 : vector<600x128xf32>
    %cst_16 = arith.constant 0.000000e+00 : f32
    %15 = vector.broadcast %cst_16 : f32 to vector<600x128xf32>
    %16 = arith.maximumf %14, %15 : vector<600x128xf32>
    %c0_17 = arith.constant 0 : index
    %c0_18 = arith.constant 0 : index
    %17 = vector.load %arg4[%c0_17, %c0_18] : memref<1x128xf32, #tpu.memory_space<vmem>>, vector<1x128xf32>
    %18 = vector.broadcast %17 : vector<1x128xf32> to vector<600x128xf32>
    %19 = arith.mulf %16, %18 : vector<600x128xf32>
    %c0_19 = arith.constant 0 : index
    %c0_20 = arith.constant 0 : index
    %20 = vector.load %arg5[%c0_19, %c0_20] : memref<1x128xf32, #tpu.memory_space<vmem>>, vector<1x128xf32>
    %21 = vector.broadcast %20 : vector<1x128xf32> to vector<600x128xf32>
    %22 = arith.addf %19, %21 : vector<600x128xf32>
    %c0_21 = arith.constant 0 : index
    %c0_22 = arith.constant 0 : index
    %23 = vector.load %arg15[%c0_21, %c0_22] : memref<600x128xf32, #tpu.memory_space<vmem>>, vector<600x128xf32>
    tpu.vector_store %arg15[%c0_21, %c0_22], %22 {strides = array<i32>} : memref<600x128xf32, #tpu.memory_space<vmem>>, vector<600x128xf32>,
    %c0_23 = arith.constant 0 : index
    %c0_24 = arith.constant 0 : index
    %24 = tpu.strided_load %arg15[%c0_23, %c0_24] {strides = array<i32: 2, 1>} : memref<600x128xf32, #tpu.memory_space<vmem>>, vector<300x128xf32>
    %c1 = arith.constant 1 : index
    %c0_25 = arith.constant 0 : index
    %25 = tpu.strided_load %arg15[%c1, %c0_25] {strides = array<i32: 2, 1>} : memref<600x128xf32, #tpu.memory_space<vmem>>, vector<300x128xf32>
    %26 = arith.maximumf %24, %25 : vector<300x128xf32>
    %c8 = arith.constant 8 : index
    %c0_26 = arith.constant 0 : index
    %27 = vector.load %arg16[%c8, %c0_26] : memref<316x128xf32, #tpu.memory_space<vmem>>, vector<300x128xf32>
    tpu.vector_store %arg16[%c8, %c0_26], %26 {strides = array<i32>} : memref<316x128xf32, #tpu.memory_space<vmem>>, vector<300x128xf32>,
    %cst_27 = arith.constant 0.000000e+00 : f32
    %28 = vector.broadcast %cst_27 : f32 to vector<300x128xf32>
    %c1_28 = arith.constant 1 : index
    %c0_29 = arith.constant 0 : index
    %29 = vector.load %arg16[%c1_28, %c0_29] : memref<316x128xf32, #tpu.memory_space<vmem>>, vector<300x128xf32>
    %c2 = arith.constant 2 : index
    %c0_30 = arith.constant 0 : index
    %30 = vector.load %arg16[%c2, %c0_30] : memref<316x128xf32, #tpu.memory_space<vmem>>, vector<300x128xf32>
    %c32_i32 = arith.constant 32 : i32
    %31 = tpu.dynamic_rotate %30 by %c32_i32 dim 1 : vector<300x128xf32>, i32 -> vector<300x128xf32>
    %32 = arith.addf %29, %31 : vector<300x128xf32>
    %c3 = arith.constant 3 : index
    %c0_31 = arith.constant 0 : index
    %33 = vector.load %arg16[%c3, %c0_31] : memref<316x128xf32, #tpu.memory_space<vmem>>, vector<300x128xf32>
    %c64_i32 = arith.constant 64 : i32
    %34 = tpu.dynamic_rotate %33 by %c64_i32 dim 1 : vector<300x128xf32>, i32 -> vector<300x128xf32>
    %35 = arith.addf %32, %34 : vector<300x128xf32>
    %c4 = arith.constant 4 : index
    %c0_32 = arith.constant 0 : index
    %36 = vector.load %arg16[%c4, %c0_32] : memref<316x128xf32, #tpu.memory_space<vmem>>, vector<300x128xf32>
    %c96_i32 = arith.constant 96 : i32
    %37 = tpu.dynamic_rotate %36 by %c96_i32 dim 1 : vector<300x128xf32>, i32 -> vector<300x128xf32>
    %38 = arith.addf %35, %37 : vector<300x128xf32>
    %c5 = arith.constant 5 : index
    %c0_33 = arith.constant 0 : index
    %39 = vector.load %arg16[%c5, %c0_33] : memref<316x128xf32, #tpu.memory_space<vmem>>, vector<300x128xf32>
    %c6 = arith.constant 6 : index
    %c0_34 = arith.constant 0 : index
    %40 = vector.load %arg16[%c6, %c0_34] : memref<316x128xf32, #tpu.memory_space<vmem>>, vector<300x128xf32>
    %c32_i32_35 = arith.constant 32 : i32
    %41 = tpu.dynamic_rotate %40 by %c32_i32_35 dim 1 : vector<300x128xf32>, i32 -> vector<300x128xf32>
    %42 = arith.addf %39, %41 : vector<300x128xf32>
    %c7 = arith.constant 7 : index
    %c0_36 = arith.constant 0 : index
    %43 = vector.load %arg16[%c7, %c0_36] : memref<316x128xf32, #tpu.memory_space<vmem>>, vector<300x128xf32>
    %c64_i32_37 = arith.constant 64 : i32
    %44 = tpu.dynamic_rotate %43 by %c64_i32_37 dim 1 : vector<300x128xf32>, i32 -> vector<300x128xf32>
    %45 = arith.addf %42, %44 : vector<300x128xf32>
    %c8_38 = arith.constant 8 : index
    %c0_39 = arith.constant 0 : index
    %46 = vector.load %arg16[%c8_38, %c0_39] : memref<316x128xf32, #tpu.memory_space<vmem>>, vector<300x128xf32>
    %c96_i32_40 = arith.constant 96 : i32
    %47 = tpu.dynamic_rotate %46 by %c96_i32_40 dim 1 : vector<300x128xf32>, i32 -> vector<300x128xf32>
    %48 = arith.addf %45, %47 : vector<300x128xf32>
    %49 = tpu.concatenate %38, %48 in 1 : vector<300x128xf32>, vector<300x128xf32> -> vector<300x256xf32>
    %50 = arith.truncf %49 : vector<300x256xf32> to vector<300x256xbf16>
    %c0_41 = arith.constant 0 : index
    %c0_42 = arith.constant 0 : index
    %51 = vector.load %arg6[%c0_41, %c0_42] : memref<512x128xbf16, #tpu.memory_space<vmem>>, vector<256x128xbf16>
    %cst_43 = arith.constant dense<0.000000e+00> : vector<300x128xf32>
    %52 = tpu.matmul %50, %51, %cst_43 {dimension_numbers = #tpu.dot_dimension_numbers<[1], [0], [0], [1], [0, 0, 1, 1], [], []>} : vector<300x256xbf16>, vector<256x128xbf16>, vector<300x128xf32> -> vector<300x128xf32>
    %53 = arith.addf %28, %52 : vector<300x128xf32>
    %c9 = arith.constant 9 : index
    %c0_44 = arith.constant 0 : index
    %54 = vector.load %arg16[%c9, %c0_44] : memref<316x128xf32, #tpu.memory_space<vmem>>, vector<300x128xf32>
    %c10 = arith.constant 10 : index
    %c0_45 = arith.constant 0 : index
    %55 = vector.load %arg16[%c10, %c0_45] : memref<316x128xf32, #tpu.memory_space<vmem>>, vector<300x128xf32>
    %c32_i32_46 = arith.constant 32 : i32
    %56 = tpu.dynamic_rotate %55 by %c32_i32_46 dim 1 : vector<300x128xf32>, i32 -> vector<300x128xf32>
    %57 = arith.addf %54, %56 : vector<300x128xf32>
    %c11 = arith.constant 11 : index
    %c0_47 = arith.constant 0 : index
    %58 = vector.load %arg16[%c11, %c0_47] : memref<316x128xf32, #tpu.memory_space<vmem>>, vector<300x128xf32>
    %c64_i32_48 = arith.constant 64 : i32
    %59 = tpu.dynamic_rotate %58 by %c64_i32_48 dim 1 : vector<300x128xf32>, i32 -> vector<300x128xf32>
    %60 = arith.addf %57, %59 : vector<300x128xf32>
    %c12 = arith.constant 12 : index
    %c0_49 = arith.constant 0 : index
    %61 = vector.load %arg16[%c12, %c0_49] : memref<316x128xf32, #tpu.memory_space<vmem>>, vector<300x128xf32>
    %c96_i32_50 = arith.constant 96 : i32
    %62 = tpu.dynamic_rotate %61 by %c96_i32_50 dim 1 : vector<300x128xf32>, i32 -> vector<300x128xf32>
    %63 = arith.addf %60, %62 : vector<300x128xf32>
    %c13 = arith.constant 13 : index
    %c0_51 = arith.constant 0 : index
    %64 = vector.load %arg16[%c13, %c0_51] : memref<316x128xf32, #tpu.memory_space<vmem>>, vector<300x128xf32>
    %c14 = arith.constant 14 : index
    %c0_52 = arith.constant 0 : index
    %65 = vector.load %arg16[%c14, %c0_52] : memref<316x128xf32, #tpu.memory_space<vmem>>, vector<300x128xf32>
    %c32_i32_53 = arith.constant 32 : i32
    %66 = tpu.dynamic_rotate %65 by %c32_i32_53 dim 1 : vector<300x128xf32>, i32 -> vector<300x128xf32>
    %67 = arith.addf %64, %66 : vector<300x128xf32>
    %c15 = arith.constant 15 : index
    %c0_54 = arith.constant 0 : index
    %68 = vector.load %arg16[%c15, %c0_54] : memref<316x128xf32, #tpu.memory_space<vmem>>, vector<300x128xf32>
    %c64_i32_55 = arith.constant 64 : i32
    %69 = tpu.dynamic_rotate %68 by %c64_i32_55 dim 1 : vector<300x128xf32>, i32 -> vector<300x128xf32>
    %70 = arith.addf %67, %69 : vector<300x128xf32>
    %c16 = arith.constant 16 : index
    %c0_56 = arith.constant 0 : index
    %71 = vector.load %arg16[%c16, %c0_56] : memref<316x128xf32, #tpu.memory_space<vmem>>, vector<300x128xf32>
    %c96_i32_57 = arith.constant 96 : i32
    %72 = tpu.dynamic_rotate %71 by %c96_i32_57 dim 1 : vector<300x128xf32>, i32 -> vector<300x128xf32>
    %73 = arith.addf %70, %72 : vector<300x128xf32>
    %74 = tpu.concatenate %63, %73 in 1 : vector<300x128xf32>, vector<300x128xf32> -> vector<300x256xf32>
    %75 = arith.truncf %74 : vector<300x256xf32> to vector<300x256xbf16>
    %c256 = arith.constant 256 : index
    %c0_58 = arith.constant 0 : index
    %76 = vector.load %arg6[%c256, %c0_58] : memref<512x128xbf16, #tpu.memory_space<vmem>>, vector<256x128xbf16>
    %cst_59 = arith.constant dense<0.000000e+00> : vector<300x128xf32>
    %77 = tpu.matmul %75, %76, %cst_59 {dimension_numbers = #tpu.dot_dimension_numbers<[1], [0], [0], [1], [0, 0, 1, 1], [], []>} : vector<300x256xbf16>, vector<256x128xbf16>, vector<300x128xf32> -> vector<300x128xf32>
    %78 = arith.addf %53, %77 : vector<300x128xf32>
    %c0_60 = arith.constant 0 : index
    %c0_61 = arith.constant 0 : index
    %79 = vector.load %arg7[%c0_60, %c0_61] : memref<1x128xf32, #tpu.memory_space<vmem>>, vector<1x128xf32>
    %80 = vector.broadcast %79 : vector<1x128xf32> to vector<300x128xf32>
    %81 = arith.addf %78, %80 : vector<300x128xf32>
    %cst_62 = arith.constant 0.000000e+00 : f32
    %82 = vector.broadcast %cst_62 : f32 to vector<300x128xf32>
    %83 = arith.maximumf %81, %82 : vector<300x128xf32>
    %c0_63 = arith.constant 0 : index
    %c0_64 = arith.constant 0 : index
    %84 = vector.load %arg8[%c0_63, %c0_64] : memref<1x128xf32, #tpu.memory_space<vmem>>, vector<1x128xf32>
    %85 = vector.broadcast %84 : vector<1x128xf32> to vector<300x128xf32>
    %86 = arith.mulf %83, %85 : vector<300x128xf32>
    %c0_65 = arith.constant 0 : index
    %c0_66 = arith.constant 0 : index
    %87 = vector.load %arg9[%c0_65, %c0_66] : memref<1x128xf32, #tpu.memory_space<vmem>>, vector<1x128xf32>
    %88 = vector.broadcast %87 : vector<1x128xf32> to vector<300x128xf32>
    %89 = arith.addf %86, %88 : vector<300x128xf32>
    %c0_67 = arith.constant 0 : index
    %c0_68 = arith.constant 0 : index
    %90 = vector.load %arg15[%c0_67, %c0_68] : memref<600x128xf32, #tpu.memory_space<vmem>>, vector<300x128xf32>
    tpu.vector_store %arg15[%c0_67, %c0_68], %89 {strides = array<i32>} : memref<600x128xf32, #tpu.memory_space<vmem>>, vector<300x128xf32>,
    %c0_69 = arith.constant 0 : index
    %c0_70 = arith.constant 0 : index
    %91 = tpu.strided_load %arg15[%c0_69, %c0_70] {strides = array<i32: 2, 1>} : memref<600x128xf32, #tpu.memory_space<vmem>>, vector<150x128xf32>
    %c1_71 = arith.constant 1 : index
    %c0_72 = arith.constant 0 : index
    %92 = tpu.strided_load %arg15[%c1_71, %c0_72] {strides = array<i32: 2, 1>} : memref<600x128xf32, #tpu.memory_space<vmem>>, vector<150x128xf32>
    %93 = arith.maximumf %91, %92 : vector<150x128xf32>
    %c8_73 = arith.constant 8 : index
    %c0_74 = arith.constant 0 : index
    %94 = vector.load %arg17[%c8_73, %c0_74] : memref<164x128xf32, #tpu.memory_space<vmem>>, vector<150x128xf32>
    tpu.vector_store %arg17[%c8_73, %c0_74], %93 {strides = array<i32>} : memref<164x128xf32, #tpu.memory_space<vmem>>, vector<150x128xf32>,
    %cst_75 = arith.constant 0.000000e+00 : f32
    %95 = vector.broadcast %cst_75 : f32 to vector<150x128xf32>
    %c3_76 = arith.constant 3 : index
    %c0_77 = arith.constant 0 : index
    %96 = vector.load %arg17[%c3_76, %c0_77] : memref<164x128xf32, #tpu.memory_space<vmem>>, vector<150x128xf32>
    %c4_78 = arith.constant 4 : index
    %c0_79 = arith.constant 0 : index
    %97 = vector.load %arg17[%c4_78, %c0_79] : memref<164x128xf32, #tpu.memory_space<vmem>>, vector<150x128xf32>
    %c64_i32_80 = arith.constant 64 : i32
    %98 = tpu.dynamic_rotate %97 by %c64_i32_80 dim 1 : vector<150x128xf32>, i32 -> vector<150x128xf32>
    %99 = arith.addf %96, %98 : vector<150x128xf32>
    %c5_81 = arith.constant 5 : index
    %c0_82 = arith.constant 0 : index
    %100 = vector.load %arg17[%c5_81, %c0_82] : memref<164x128xf32, #tpu.memory_space<vmem>>, vector<150x128xf32>
    %c6_83 = arith.constant 6 : index
    %c0_84 = arith.constant 0 : index
    %101 = vector.load %arg17[%c6_83, %c0_84] : memref<164x128xf32, #tpu.memory_space<vmem>>, vector<150x128xf32>
    %c64_i32_85 = arith.constant 64 : i32
    %102 = tpu.dynamic_rotate %101 by %c64_i32_85 dim 1 : vector<150x128xf32>, i32 -> vector<150x128xf32>
    %103 = arith.addf %100, %102 : vector<150x128xf32>
    %104 = tpu.concatenate %99, %103 in 1 : vector<150x128xf32>, vector<150x128xf32> -> vector<150x256xf32>
    %105 = arith.truncf %104 : vector<150x256xf32> to vector<150x256xbf16>
    %c0_86 = arith.constant 0 : index
    %c0_87 = arith.constant 0 : index
    %106 = vector.load %arg10[%c0_86, %c0_87] : memref<768x128xbf16, #tpu.memory_space<vmem>>, vector<256x128xbf16>
    %cst_88 = arith.constant dense<0.000000e+00> : vector<150x128xf32>
    %107 = tpu.matmul %105, %106, %cst_88 {dimension_numbers = #tpu.dot_dimension_numbers<[1], [0], [0], [1], [0, 0, 1, 1], [], []>} : vector<150x256xbf16>, vector<256x128xbf16>, vector<150x128xf32> -> vector<150x128xf32>
    %108 = arith.addf %95, %107 : vector<150x128xf32>
    %c7_89 = arith.constant 7 : index
    %c0_90 = arith.constant 0 : index
    %109 = vector.load %arg17[%c7_89, %c0_90] : memref<164x128xf32, #tpu.memory_space<vmem>>, vector<150x128xf32>
    %c8_91 = arith.constant 8 : index
    %c0_92 = arith.constant 0 : index
    %110 = vector.load %arg17[%c8_91, %c0_92] : memref<164x128xf32, #tpu.memory_space<vmem>>, vector<150x128xf32>
    %c64_i32_93 = arith.constant 64 : i32
    %111 = tpu.dynamic_rotate %110 by %c64_i32_93 dim 1 : vector<150x128xf32>, i32 -> vector<150x128xf32>
    %112 = arith.addf %109, %111 : vector<150x128xf32>
    %c9_94 = arith.constant 9 : index
    %c0_95 = arith.constant 0 : index
    %113 = vector.load %arg17[%c9_94, %c0_95] : memref<164x128xf32, #tpu.memory_space<vmem>>, vector<150x128xf32>
    %c10_96 = arith.constant 10 : index
    %c0_97 = arith.constant 0 : index
    %114 = vector.load %arg17[%c10_96, %c0_97] : memref<164x128xf32, #tpu.memory_space<vmem>>, vector<150x128xf32>
    %c64_i32_98 = arith.constant 64 : i32
    %115 = tpu.dynamic_rotate %114 by %c64_i32_98 dim 1 : vector<150x128xf32>, i32 -> vector<150x128xf32>
    %116 = arith.addf %113, %115 : vector<150x128xf32>
    %117 = tpu.concatenate %112, %116 in 1 : vector<150x128xf32>, vector<150x128xf32> -> vector<150x256xf32>
    %118 = arith.truncf %117 : vector<150x256xf32> to vector<150x256xbf16>
    %c256_99 = arith.constant 256 : index
    %c0_100 = arith.constant 0 : index
    %119 = vector.load %arg10[%c256_99, %c0_100] : memref<768x128xbf16, #tpu.memory_space<vmem>>, vector<256x128xbf16>
    %cst_101 = arith.constant dense<0.000000e+00> : vector<150x128xf32>
    %120 = tpu.matmul %118, %119, %cst_101 {dimension_numbers = #tpu.dot_dimension_numbers<[1], [0], [0], [1], [0, 0, 1, 1], [], []>} : vector<150x256xbf16>, vector<256x128xbf16>, vector<150x128xf32> -> vector<150x128xf32>
    %121 = arith.addf %108, %120 : vector<150x128xf32>
    %c11_102 = arith.constant 11 : index
    %c0_103 = arith.constant 0 : index
    %122 = vector.load %arg17[%c11_102, %c0_103] : memref<164x128xf32, #tpu.memory_space<vmem>>, vector<150x128xf32>
    %c12_104 = arith.constant 12 : index
    %c0_105 = arith.constant 0 : index
    %123 = vector.load %arg17[%c12_104, %c0_105] : memref<164x128xf32, #tpu.memory_space<vmem>>, vector<150x128xf32>
    %c64_i32_106 = arith.constant 64 : i32
    %124 = tpu.dynamic_rotate %123 by %c64_i32_106 dim 1 : vector<150x128xf32>, i32 -> vector<150x128xf32>
    %125 = arith.addf %122, %124 : vector<150x128xf32>
    %c13_107 = arith.constant 13 : index
    %c0_108 = arith.constant 0 : index
    %126 = vector.load %arg17[%c13_107, %c0_108] : memref<164x128xf32, #tpu.memory_space<vmem>>, vector<150x128xf32>
    %c14_109 = arith.constant 14 : index
    %c0_110 = arith.constant 0 : index
    %127 = vector.load %arg17[%c14_109, %c0_110] : memref<164x128xf32, #tpu.memory_space<vmem>>, vector<150x128xf32>
    %c64_i32_111 = arith.constant 64 : i32
    %128 = tpu.dynamic_rotate %127 by %c64_i32_111 dim 1 : vector<150x128xf32>, i32 -> vector<150x128xf32>
    %129 = arith.addf %126, %128 : vector<150x128xf32>
    %130 = tpu.concatenate %125, %129 in 1 : vector<150x128xf32>, vector<150x128xf32> -> vector<150x256xf32>
    %131 = arith.truncf %130 : vector<150x256xf32> to vector<150x256xbf16>
    %c512 = arith.constant 512 : index
    %c0_112 = arith.constant 0 : index
    %132 = vector.load %arg10[%c512, %c0_112] : memref<768x128xbf16, #tpu.memory_space<vmem>>, vector<256x128xbf16>
    %cst_113 = arith.constant dense<0.000000e+00> : vector<150x128xf32>
    %133 = tpu.matmul %131, %132, %cst_113 {dimension_numbers = #tpu.dot_dimension_numbers<[1], [0], [0], [1], [0, 0, 1, 1], [], []>} : vector<150x256xbf16>, vector<256x128xbf16>, vector<150x128xf32> -> vector<150x128xf32>
    %134 = arith.addf %121, %133 : vector<150x128xf32>
    %c0_114 = arith.constant 0 : index
    %c0_115 = arith.constant 0 : index
    %135 = vector.load %arg11[%c0_114, %c0_115] : memref<1x128xf32, #tpu.memory_space<vmem>>, vector<1x128xf32>
    %136 = vector.broadcast %135 : vector<1x128xf32> to vector<150x128xf32>
    %137 = arith.addf %134, %136 : vector<150x128xf32>
    %cst_116 = arith.constant 0.000000e+00 : f32
    %138 = vector.broadcast %cst_116 : f32 to vector<150x128xf32>
    %139 = arith.maximumf %137, %138 : vector<150x128xf32>
    %c0_117 = arith.constant 0 : index
    %c0_118 = arith.constant 0 : index
    %140 = vector.load %arg12[%c0_117, %c0_118] : memref<1x128xf32, #tpu.memory_space<vmem>>, vector<1x128xf32>
    %141 = vector.broadcast %140 : vector<1x128xf32> to vector<150x128xf32>
    %142 = arith.mulf %139, %141 : vector<150x128xf32>
    %c0_119 = arith.constant 0 : index
    %c0_120 = arith.constant 0 : index
    %143 = vector.load %arg13[%c0_119, %c0_120] : memref<1x128xf32, #tpu.memory_space<vmem>>, vector<1x128xf32>
    %144 = vector.broadcast %143 : vector<1x128xf32> to vector<150x128xf32>
    %145 = arith.addf %142, %144 : vector<150x128xf32>
    %c0_121 = arith.constant 0 : index
    %c0_122 = arith.constant 0 : index
    %146 = vector.load %arg15[%c0_121, %c0_122] : memref<600x128xf32, #tpu.memory_space<vmem>>, vector<150x128xf32>
    tpu.vector_store %arg15[%c0_121, %c0_122], %145 {strides = array<i32>} : memref<600x128xf32, #tpu.memory_space<vmem>>, vector<150x128xf32>,
    %c0_123 = arith.constant 0 : index
    %c0_124 = arith.constant 0 : index
    %147 = tpu.strided_load %arg15[%c0_123, %c0_124] {strides = array<i32: 2, 1>} : memref<600x128xf32, #tpu.memory_space<vmem>>, vector<75x128xf32>
    %c1_125 = arith.constant 1 : index
    %c0_126 = arith.constant 0 : index
    %148 = tpu.strided_load %arg15[%c1_125, %c0_126] {strides = array<i32: 2, 1>} : memref<600x128xf32, #tpu.memory_space<vmem>>, vector<75x128xf32>
    %149 = arith.maximumf %147, %148 : vector<75x128xf32>
    %150 = arith.truncf %149 : vector<75x128xf32> to vector<75x128xbf16>
    %c0_127 = arith.constant 0 : index
    %c0_128 = arith.constant 0 : index
    %c0_129 = arith.constant 0 : index
    %151 = vector.load %arg14[%c0_127, %c0_128, %c0_129] : memref<1x75x128xbf16, #tpu.memory_space<vmem>>, vector<1x75x128xbf16>
    %152 = vector.shape_cast %151 : vector<1x75x128xbf16> to vector<75x128xbf16>
    %153 = vector.shape_cast %150 : vector<75x128xbf16> to vector<1x75x128xbf16>
    tpu.vector_store %arg14[%c0_127, %c0_128, %c0_129], %153 {strides = array<i32>} : memref<1x75x128xbf16, #tpu.memory_space<vmem>>, vector<1x75x128xbf16>,
    return
  }
  func.func @transform_0(%arg0: i32) -> (i32, i32, i32) {
    %c0_i32 = arith.constant 0 : i32
    %c0_i32_0 = arith.constant 0 : i32
    %c0_i32_1 = arith.constant 0 : i32
    return %arg0, %c0_i32, %c0_i32_0 : i32, i32, i32
  }
  func.func @transform_1(%arg0: i32) -> (i32, i32) {
    %c0_i32 = arith.constant 0 : i32
    %c0_i32_0 = arith.constant 0 : i32
    %c0_i32_1 = arith.constant 0 : i32
    return %c0_i32, %c0_i32_0 : i32, i32
  }
  func.func @transform_2(%arg0: i32) -> (i32, i32) {
    %c0_i32 = arith.constant 0 : i32
    %c0_i32_0 = arith.constant 0 : i32
    %c0_i32_1 = arith.constant 0 : i32
    return %c0_i32, %c0_i32_0 : i32, i32
  }
  func.func @transform_3(%arg0: i32) -> (i32, i32) {
    %c0_i32 = arith.constant 0 : i32
    %c0_i32_0 = arith.constant 0 : i32
    %c0_i32_1 = arith.constant 0 : i32
    return %c0_i32, %c0_i32_0 : i32, i32
  }
  func.func @transform_4(%arg0: i32) -> (i32, i32) {
    %c0_i32 = arith.constant 0 : i32
    %c0_i32_0 = arith.constant 0 : i32
    %c0_i32_1 = arith.constant 0 : i32
    return %c0_i32, %c0_i32_0 : i32, i32
  }
  func.func @transform_5(%arg0: i32) -> (i32, i32) {
    %c0_i32 = arith.constant 0 : i32
    %c0_i32_0 = arith.constant 0 : i32
    %c0_i32_1 = arith.constant 0 : i32
    return %c0_i32, %c0_i32_0 : i32, i32
  }
  func.func @transform_6(%arg0: i32) -> (i32, i32) {
    %c0_i32 = arith.constant 0 : i32
    %c0_i32_0 = arith.constant 0 : i32
    %c0_i32_1 = arith.constant 0 : i32
    return %c0_i32, %c0_i32_0 : i32, i32
  }
  func.func @transform_7(%arg0: i32) -> (i32, i32) {
    %c0_i32 = arith.constant 0 : i32
    %c0_i32_0 = arith.constant 0 : i32
    %c0_i32_1 = arith.constant 0 : i32
    return %c0_i32, %c0_i32_0 : i32, i32
  }
  func.func @transform_8(%arg0: i32) -> (i32, i32) {
    %c0_i32 = arith.constant 0 : i32
    %c0_i32_0 = arith.constant 0 : i32
    %c0_i32_1 = arith.constant 0 : i32
    return %c0_i32, %c0_i32_0 : i32, i32
  }
  func.func @transform_9(%arg0: i32) -> (i32, i32) {
    %c0_i32 = arith.constant 0 : i32
    %c0_i32_0 = arith.constant 0 : i32
    %c0_i32_1 = arith.constant 0 : i32
    return %c0_i32, %c0_i32_0 : i32, i32
  }
  func.func @transform_10(%arg0: i32) -> (i32, i32) {
    %c0_i32 = arith.constant 0 : i32
    %c0_i32_0 = arith.constant 0 : i32
    %c0_i32_1 = arith.constant 0 : i32
    return %c0_i32, %c0_i32_0 : i32, i32
  }
  func.func @transform_11(%arg0: i32) -> (i32, i32) {
    %c0_i32 = arith.constant 0 : i32
    %c0_i32_0 = arith.constant 0 : i32
    %c0_i32_1 = arith.constant 0 : i32
    return %c0_i32, %c0_i32_0 : i32, i32
  }
  func.func @transform_12(%arg0: i32) -> (i32, i32) {
    %c0_i32 = arith.constant 0 : i32
    %c0_i32_0 = arith.constant 0 : i32
    %c0_i32_1 = arith.constant 0 : i32
    return %c0_i32, %c0_i32_0 : i32, i32
  }
  func.func @transform_13(%arg0: i32) -> (i32, i32, i32) {
    %c0_i32 = arith.constant 0 : i32
    %c0_i32_0 = arith.constant 0 : i32
    %c0_i32_1 = arith.constant 0 : i32
    return %arg0, %c0_i32, %c0_i32_0 : i32, i32, i32
  }
}

module attributes {stable_mosaic.version = 11 : i64} {
  func.func @_mlp_kernel(%arg0: i32, %arg1: memref<2x3200xbf16, #tpu.memory_space<vmem>>, %arg2: memref<3200x512xbf16, #tpu.memory_space<vmem>>, %arg3: memref<1x512xf32, #tpu.memory_space<vmem>>, %arg4: memref<1x512xf32, #tpu.memory_space<vmem>>, %arg5: memref<1x512xf32, #tpu.memory_space<vmem>>, %arg6: memref<512x512xbf16, #tpu.memory_space<vmem>>, %arg7: memref<1x512xf32, #tpu.memory_space<vmem>>, %arg8: memref<1x512xf32, #tpu.memory_space<vmem>>, %arg9: memref<1x512xf32, #tpu.memory_space<vmem>>, %arg10: memref<512x1xf32, #tpu.memory_space<vmem>>, %arg11: memref<1x1xf32, #tpu.memory_space<vmem>>, %arg12: memref<2x1xf32, #tpu.memory_space<vmem>>, %arg13: memref<2x512xf32, #tpu.memory_space<vmem>>) attributes {dimension_semantics = [#tpu.dimension_semantics<arbitrary>], iteration_bounds = array<i64: 3>, scalar_prefetch = 0 : i64, scratch_operands = 1 : i64, tpu.core_type = #tpu.core_type<tc>, window_params = [{transform_indices = @transform_0, window_bounds = array<i64: 2, 3200>}, {transform_indices = @transform_1, window_bounds = array<i64: 3200, 512>}, {pipeline_mode = #tpu.pipeline_mode<synchronous>, transform_indices = @transform_2, window_bounds = array<i64: 1, 512>}, {pipeline_mode = #tpu.pipeline_mode<synchronous>, transform_indices = @transform_3, window_bounds = array<i64: 1, 512>}, {pipeline_mode = #tpu.pipeline_mode<synchronous>, transform_indices = @transform_4, window_bounds = array<i64: 1, 512>}, {pipeline_mode = #tpu.pipeline_mode<synchronous>, transform_indices = @transform_5, window_bounds = array<i64: 512, 512>}, {pipeline_mode = #tpu.pipeline_mode<synchronous>, transform_indices = @transform_6, window_bounds = array<i64: 1, 512>}, {pipeline_mode = #tpu.pipeline_mode<synchronous>, transform_indices = @transform_7, window_bounds = array<i64: 1, 512>}, {pipeline_mode = #tpu.pipeline_mode<synchronous>, transform_indices = @transform_8, window_bounds = array<i64: 1, 512>}, {pipeline_mode = #tpu.pipeline_mode<synchronous>, transform_indices = @transform_9, window_bounds = array<i64: 512, 1>}, {pipeline_mode = #tpu.pipeline_mode<synchronous>, transform_indices = @transform_10, window_bounds = array<i64: 1, 1>}, {pipeline_mode = #tpu.pipeline_mode<synchronous>, transform_indices = @transform_11, window_bounds = array<i64: 2, 1>}]} {
    %c0_i32 = arith.constant 0 : i32
    %0 = arith.cmpi eq, %arg0, %c0_i32 : i32
    %1 = arith.extui %0 : i1 to i32
    %c0_i32_0 = arith.constant 0 : i32
    %2 = arith.cmpi ne, %1, %c0_i32_0 : i32
    scf.if %2 {
      %cst_9 = arith.constant 0.000000e+00 : f32
      %12 = vector.broadcast %cst_9 : f32 to vector<2x512xf32>
      %c0_10 = arith.constant 0 : index
      %c0_11 = arith.constant 0 : index
      %13 = vector.load %arg13[%c0_10, %c0_11] : memref<2x512xf32, #tpu.memory_space<vmem>>, vector<2x512xf32>
      tpu.vector_store %arg13[%c0_10, %c0_11], %12 {strides = array<i32>} : memref<2x512xf32, #tpu.memory_space<vmem>>, vector<2x512xf32>,
    } else {
    }
    %c0 = arith.constant 0 : index
    %c0_1 = arith.constant 0 : index
    %3 = vector.load %arg13[%c0, %c0_1] : memref<2x512xf32, #tpu.memory_space<vmem>>, vector<2x512xf32>
    %c0_2 = arith.constant 0 : index
    %c0_3 = arith.constant 0 : index
    %4 = vector.load %arg1[%c0_2, %c0_3] : memref<2x3200xbf16, #tpu.memory_space<vmem>>, vector<2x3200xbf16>
    %c0_4 = arith.constant 0 : index
    %c0_5 = arith.constant 0 : index
    %5 = vector.load %arg2[%c0_4, %c0_5] : memref<3200x512xbf16, #tpu.memory_space<vmem>>, vector<3200x512xbf16>
    %cst = arith.constant dense<0.000000e+00> : vector<2x512xf32>
    %6 = tpu.matmul %4, %5, %cst {dimension_numbers = #tpu.dot_dimension_numbers<[1], [0], [0], [1], [0, 0, 1, 1], [], []>} : vector<2x3200xbf16>, vector<3200x512xbf16>, vector<2x512xf32> -> vector<2x512xf32>
    %7 = arith.addf %3, %6 : vector<2x512xf32>
    %c0_6 = arith.constant 0 : index
    %c0_7 = arith.constant 0 : index
    %8 = vector.load %arg13[%c0_6, %c0_7] : memref<2x512xf32, #tpu.memory_space<vmem>>, vector<2x512xf32>
    tpu.vector_store %arg13[%c0_6, %c0_7], %7 {strides = array<i32>} : memref<2x512xf32, #tpu.memory_space<vmem>>, vector<2x512xf32>,
    %c2_i32 = arith.constant 2 : i32
    %9 = arith.cmpi eq, %arg0, %c2_i32 : i32
    %10 = arith.extui %9 : i1 to i32
    %c0_i32_8 = arith.constant 0 : i32
    %11 = arith.cmpi ne, %10, %c0_i32_8 : i32
    scf.if %11 {
      %c0_9 = arith.constant 0 : index
      %c0_10 = arith.constant 0 : index
      %12 = vector.load %arg13[%c0_9, %c0_10] : memref<2x512xf32, #tpu.memory_space<vmem>>, vector<2x512xf32>
      %c0_11 = arith.constant 0 : index
      %c0_12 = arith.constant 0 : index
      %13 = vector.load %arg3[%c0_11, %c0_12] : memref<1x512xf32, #tpu.memory_space<vmem>>, vector<1x512xf32>
      %14 = vector.broadcast %13 : vector<1x512xf32> to vector<2x512xf32>
      %15 = arith.addf %12, %14 : vector<2x512xf32>
      %cst_13 = arith.constant 0.000000e+00 : f32
      %16 = vector.broadcast %cst_13 : f32 to vector<2x512xf32>
      %17 = arith.maximumf %15, %16 : vector<2x512xf32>
      %c0_14 = arith.constant 0 : index
      %c0_15 = arith.constant 0 : index
      %18 = vector.load %arg4[%c0_14, %c0_15] : memref<1x512xf32, #tpu.memory_space<vmem>>, vector<1x512xf32>
      %19 = vector.broadcast %18 : vector<1x512xf32> to vector<2x512xf32>
      %20 = arith.mulf %17, %19 : vector<2x512xf32>
      %c0_16 = arith.constant 0 : index
      %c0_17 = arith.constant 0 : index
      %21 = vector.load %arg5[%c0_16, %c0_17] : memref<1x512xf32, #tpu.memory_space<vmem>>, vector<1x512xf32>
      %22 = vector.broadcast %21 : vector<1x512xf32> to vector<2x512xf32>
      %23 = arith.addf %20, %22 : vector<2x512xf32>
      %24 = arith.truncf %23 : vector<2x512xf32> to vector<2x512xbf16>
      %c0_18 = arith.constant 0 : index
      %c0_19 = arith.constant 0 : index
      %25 = vector.load %arg6[%c0_18, %c0_19] : memref<512x512xbf16, #tpu.memory_space<vmem>>, vector<512x512xbf16>
      %cst_20 = arith.constant dense<0.000000e+00> : vector<2x512xf32>
      %26 = tpu.matmul %24, %25, %cst_20 {dimension_numbers = #tpu.dot_dimension_numbers<[1], [0], [0], [1], [0, 0, 1, 1], [], []>} : vector<2x512xbf16>, vector<512x512xbf16>, vector<2x512xf32> -> vector<2x512xf32>
      %c0_21 = arith.constant 0 : index
      %c0_22 = arith.constant 0 : index
      %27 = vector.load %arg7[%c0_21, %c0_22] : memref<1x512xf32, #tpu.memory_space<vmem>>, vector<1x512xf32>
      %28 = vector.broadcast %27 : vector<1x512xf32> to vector<2x512xf32>
      %29 = arith.addf %26, %28 : vector<2x512xf32>
      %cst_23 = arith.constant 0.000000e+00 : f32
      %30 = vector.broadcast %cst_23 : f32 to vector<2x512xf32>
      %31 = arith.maximumf %29, %30 : vector<2x512xf32>
      %c0_24 = arith.constant 0 : index
      %c0_25 = arith.constant 0 : index
      %32 = vector.load %arg8[%c0_24, %c0_25] : memref<1x512xf32, #tpu.memory_space<vmem>>, vector<1x512xf32>
      %33 = vector.broadcast %32 : vector<1x512xf32> to vector<2x512xf32>
      %34 = arith.mulf %31, %33 : vector<2x512xf32>
      %c0_26 = arith.constant 0 : index
      %c0_27 = arith.constant 0 : index
      %35 = vector.load %arg9[%c0_26, %c0_27] : memref<1x512xf32, #tpu.memory_space<vmem>>, vector<1x512xf32>
      %36 = vector.broadcast %35 : vector<1x512xf32> to vector<2x512xf32>
      %37 = arith.addf %34, %36 : vector<2x512xf32>
      %c0_28 = arith.constant 0 : index
      %c0_29 = arith.constant 0 : index
      %38 = vector.load %arg10[%c0_28, %c0_29] : memref<512x1xf32, #tpu.memory_space<vmem>>, vector<512x1xf32>
      %cst_30 = arith.constant dense<0.000000e+00> : vector<2x1xf32>
      %39 = tpu.matmul %37, %38, %cst_30 {dimension_numbers = #tpu.dot_dimension_numbers<[1], [0], [0], [1], [0, 0, 1, 1], [], []>} : vector<2x512xf32>, vector<512x1xf32>, vector<2x1xf32> -> vector<2x1xf32>
      %c0_31 = arith.constant 0 : index
      %c0_32 = arith.constant 0 : index
      %40 = vector.load %arg11[%c0_31, %c0_32] : memref<1x1xf32, #tpu.memory_space<vmem>>, vector<1x1xf32>
      %41 = vector.broadcast %40 : vector<1x1xf32> to vector<2x1xf32>
      %42 = arith.addf %39, %41 : vector<2x1xf32>
      %cst_33 = arith.constant -7.500000e-01 : f32
      %cst_34 = arith.constant 7.500000e-01 : f32
      %43 = vector.broadcast %cst_33 : f32 to vector<2x1xf32>
      %44 = arith.maximumf %43, %42 : vector<2x1xf32>
      %45 = vector.broadcast %cst_34 : f32 to vector<2x1xf32>
      %46 = arith.minimumf %45, %44 : vector<2x1xf32>
      %c0_35 = arith.constant 0 : index
      %c0_36 = arith.constant 0 : index
      %47 = vector.load %arg12[%c0_35, %c0_36] : memref<2x1xf32, #tpu.memory_space<vmem>>, vector<2x1xf32>
      tpu.vector_store %arg12[%c0_35, %c0_36], %46 {strides = array<i32>} : memref<2x1xf32, #tpu.memory_space<vmem>>, vector<2x1xf32>,
    } else {
    }
    return
  }
  func.func @transform_0(%arg0: i32) -> (i32, i32) {
    %c0_i32 = arith.constant 0 : i32
    %c0_i32_0 = arith.constant 0 : i32
    return %c0_i32, %arg0 : i32, i32
  }
  func.func @transform_1(%arg0: i32) -> (i32, i32) {
    %c0_i32 = arith.constant 0 : i32
    %c0_i32_0 = arith.constant 0 : i32
    return %arg0, %c0_i32 : i32, i32
  }
  func.func @transform_2(%arg0: i32) -> (i32, i32) {
    %c0_i32 = arith.constant 0 : i32
    %c0_i32_0 = arith.constant 0 : i32
    %c0_i32_1 = arith.constant 0 : i32
    return %c0_i32, %c0_i32_0 : i32, i32
  }
  func.func @transform_3(%arg0: i32) -> (i32, i32) {
    %c0_i32 = arith.constant 0 : i32
    %c0_i32_0 = arith.constant 0 : i32
    %c0_i32_1 = arith.constant 0 : i32
    return %c0_i32, %c0_i32_0 : i32, i32
  }
  func.func @transform_4(%arg0: i32) -> (i32, i32) {
    %c0_i32 = arith.constant 0 : i32
    %c0_i32_0 = arith.constant 0 : i32
    %c0_i32_1 = arith.constant 0 : i32
    return %c0_i32, %c0_i32_0 : i32, i32
  }
  func.func @transform_5(%arg0: i32) -> (i32, i32) {
    %c0_i32 = arith.constant 0 : i32
    %c0_i32_0 = arith.constant 0 : i32
    %c0_i32_1 = arith.constant 0 : i32
    return %c0_i32, %c0_i32_0 : i32, i32
  }
  func.func @transform_6(%arg0: i32) -> (i32, i32) {
    %c0_i32 = arith.constant 0 : i32
    %c0_i32_0 = arith.constant 0 : i32
    %c0_i32_1 = arith.constant 0 : i32
    return %c0_i32, %c0_i32_0 : i32, i32
  }
  func.func @transform_7(%arg0: i32) -> (i32, i32) {
    %c0_i32 = arith.constant 0 : i32
    %c0_i32_0 = arith.constant 0 : i32
    %c0_i32_1 = arith.constant 0 : i32
    return %c0_i32, %c0_i32_0 : i32, i32
  }
  func.func @transform_8(%arg0: i32) -> (i32, i32) {
    %c0_i32 = arith.constant 0 : i32
    %c0_i32_0 = arith.constant 0 : i32
    %c0_i32_1 = arith.constant 0 : i32
    return %c0_i32, %c0_i32_0 : i32, i32
  }
  func.func @transform_9(%arg0: i32) -> (i32, i32) {
    %c0_i32 = arith.constant 0 : i32
    %c0_i32_0 = arith.constant 0 : i32
    %c0_i32_1 = arith.constant 0 : i32
    return %c0_i32, %c0_i32_0 : i32, i32
  }
  func.func @transform_10(%arg0: i32) -> (i32, i32) {
    %c0_i32 = arith.constant 0 : i32
    %c0_i32_0 = arith.constant 0 : i32
    %c0_i32_1 = arith.constant 0 : i32
    return %c0_i32, %c0_i32_0 : i32, i32
  }
  func.func @transform_11(%arg0: i32) -> (i32, i32) {
    %c0_i32 = arith.constant 0 : i32
    %c0_i32_0 = arith.constant 0 : i32
    %c0_i32_1 = arith.constant 0 : i32
    return %c0_i32, %c0_i32_0 : i32, i32
  }
}

</mosaic_0001>

<bundles_post_ra>
// kernel: cnn_net_forward.2
= control target key start
LH: loop header
LB: loop body
LE: loop exit
PB: predicated region body
PF: predicated region fallthrough
CT: control target
= control target key end

     0   :  { %s6430_s25 = smov 0   ;;  %s8305_s0 = inlined_call_operand.vmem [shape: bf16[2,600,63], index: 0, kind: input, shape index: {}]   ;;  %s8306_s1 = inlined_call_operand.vmem [shape: bf16[63,128], index: 1, kind: input, shape index: {}]   ;;  %s8307_s2 = inlined_call_operand.vmem [shape: f32[1,128], index: 2, kind: input, shape index: {}]   ;;  %s8308_s3 = inlined_call_operand.vmem [shape: f32[1,128], index: 3, kind: input, shape index: {}]   ;;  %s8309_s4 = inlined_call_operand.vmem [shape: f32[1,128], index: 4, kind: input, shape index: {}]   ;;  %s8310_s5 = inlined_call_operand.vmem [shape: bf16[512,128], index: 5, kind: input, shape index: {}]   ;;  %s8311_s6 = inlined_call_operand.vmem [shape: f32[1,128], index: 6, kind: input, shape index: {}]   ;;  %s8312_s7 = inlined_call_operand.vmem [shape: f32[1,128], index: 7, kind: input, shape index: {}]   ;;  %s8313_s8 = inlined_call_operand.vmem [shape: f32[1,128], index: 8, kind: input, shape index: {}]   ;;  %s8314_s9 = inlined_call_operand.vmem [shape: bf16[768,128], index: 9, kind: input, shape index: {}]   ;;  %s8315_s10 = inlined_call_operand.vmem [shape: f32[1,128], index: 10, kind: input, shape index: {}]   ;;  %s8316_s11 = inlined_call_operand.vmem [shape: f32[1,128], index: 11, kind: input, shape index: {}]   ;;  %s8317_s12 = inlined_call_operand.vmem [shape: f32[1,128], index: 12, kind: input, shape index: {}]   ;;  %s8318_s13 = inlined_call_operand.vmem [shape: bf16[2,75,128], index: 13, kind: output, shape index: {}]  }
   0x1 LB: > { %s5562_s26 = sadd.s32 4294967295, %s6352_s25   ;;  %p5566_p0 = scmp.ge.s32.totalorder %s6352_s25, 1  ;;  %s6352_s25 = sphi %s6430_s25, %s23_s25  }
   0x2   : > { %p387_p1 = scmp.lt.s32.totalorder %s6352_s25, 3 }
   0x4   : > { %p388_p2 = pnand %p5566_p0, %p387_p1 }
   0x5   : > { %p431_p3 = scmp.lt.s32.totalorder (!%p388_p2), %s5562_s26, 1  ;;  %s6357_s20 = smov (!%p388_p2), 96  }
   0x6   : > { %391 = sbr.rel (%p388_p2) target bundleno = 1587 (0x633), region = 72  ;;  %s6358_s14 = smov (!%p388_p2), 32  }
   0x7   : > { %s6359_s15 = smov (!%p388_p2), 64  }
   0xb   : > { %v6174_v0 = vld [vmem:[%s8306_s1 + $0x18] sm:$0xff]   ;;  %vm862_vm0 = vcmask 1046528   ;;  %vm863_vm1 = vcmask 1047552   ;;  %v6354_v1 = vmov 65535   ;;  %v6175_v5 = vld [vmem:[%s8306_s1 + $0x10] sm:$0xff]   ;;  %v6176_v6 = vld [vmem:[%s8306_s1 + $0x8] sm:$0xff]  }
   0xc   : > { %v864_v2 = vsel %vm862_vm0, 4294967295, %v6354_v1  ;;  %s8320_s26 = smov (!%p431_p3, %s5562_s26), 1  ;;  %vm747_vm2 = vcmask 515072   ;;  %v6177_v8 = vld [vmem:[%s8306_s1] sm:$0xff]   ;;  %v6355_v28 = vmov 0.0   ;;  %v6204_v35 = vld [vmem:[%s8310_s5 + $0x38] sm:$0xff]  }
   0xd   : > { %v865_v3 = vsel %vm863_vm1, %v864_v2, 0  ;;  %s6153_s16 = smul.u32 300, %s8320_s26  ;;  %442 = vst [vmem:[#allocation3] sm:$0xff] %v6355_v28  ;;  %443 = vst [vmem:[#allocation3 + $0x134] sm:$0xff] %v6355_v28  ;;  %v6356_v36 = vmov 0   ;;  %v6205_v37 = vld [vmem:[%s8310_s5 + $0x30] sm:$0xff]  }
   0xe   : > { %v867_v4 = vand.u32 %v6174_v0, %v865_v3  ;;  %444 = vst [vmem:[#allocation4] sm:$0xff] %v6355_v28  ;;  %445 = vst [vmem:[#allocation4 + $0x9e] sm:$0x3f] %v6355_v28  ;;  %3166 = vmatprep.subr.bf16.mxu1 %v6356_v36  ;;  %v6207_v39 = vld [vmem:[%s8310_s5 + $0x28] sm:$0xff]   ;;  %v6209_v41 = vld [vmem:[%s8310_s5 + $0xb8] sm:$0xff]   ;;  %s6154_s22 = smul.u32 40, %s8320_s26 }
   0xf   : > { %s6453_s19 = scalar_lea.vmem %s8305_s0, %s6153_s16  ;;  %v6210_v42 = vld [vmem:[%s8310_s5 + $0x20] sm:$0xff]   ;;  %3167 = vmatpush1.bf16.msra.mxu1 %v6209_v41  ;;  %v6211_v44 = vld [vmem:[%s8310_s5 + $0xb0] sm:$0xff]   ;;  %v6212_v45 = vld [vmem:[%s8310_s5 + $0x18] sm:$0xff]   ;;  %vm5501_vm3 = vcmask 1041408   ;;  %vm5502_vm4 = vsmask.f32 1280 }
  0x10   : > { %6053 = vmatprep.subr.bf16.mxu0 %v867_v4  ;;  %v6178_v7 = vld [vmem:[%s6453_s19] sm:$0xff]   ;;  %v6179_v9 = vld [vmem:[%s6453_s19 + $0x8] sm:$0xff]   ;;  %v6180_v10 = vld [vmem:[%s6453_s19 + $0x10] sm:$0xff]   ;;  %3168 = vmatprep.subr.bf16.mxu1 %v6356_v36 }
  0x11   : > { %6054 = vmatpush3.bf16.msra.mxu0 %v867_v4  ;;  %6061 = vmatprep.mubr.msk.bf16.mxu0 %vm747_vm2, %v6178_v7  ;;  %v6181_v11 = vld [vmem:[%s6453_s19 + $0x18] sm:$0xff]   ;;  %v6182_v12 = vld [vmem:[%s6453_s19 + $0x20] sm:$0xff]   ;;  %v6183_v13 = vld [vmem:[%s6453_s19 + $0x28] sm:$0xff]  }
  0x12   : > { %6055 = vmatprep.subr.bf16.mxu0 %v6175_v5  ;;  %v6184_v14 = vld [vmem:[%s6453_s19 + $0x30] sm:$0xff]   ;;  %v6185_v15 = vld [vmem:[%s6453_s19 + $0x38] sm:$0xff]   ;;  %v6186_v16 = vld [vmem:[%s6453_s19 + $0x40] sm:$0xff]  }
  0x13   : > { %v6187_v17 = vld [vmem:[%s6453_s19 + $0x48] sm:$0xff]   ;;  %v6188_v18 = vld [vmem:[%s6453_s19 + $0x50] sm:$0xff]   ;;  %v6189_v19 = vld [vmem:[%s6453_s19 + $0x58] sm:$0xff]   ;;  %3169 = vmatpush1.bf16.msra.mxu1 %v6211_v44 }
  0x14   : > { %v6190_v20 = vld [vmem:[%s6453_s19 + $0x60] sm:$0xff]   ;;  %v6191_v21 = vld [vmem:[%s6453_s19 + $0x68] sm:$0xff]   ;;  %v6192_v22 = vld [vmem:[%s6453_s19 + $0x70] sm:$0xff]   ;;  %3170 = vmatprep.subr.bf16.mxu1 %v6356_v36 }
  0x15   : > { %6056 = vmatpush3.bf16.msra.mxu0 %v6175_v5  ;;  %v6193_v23 = vld [vmem:[%s6453_s19 + $0x78] sm:$0xff]   ;;  %v6194_v24 = vld [vmem:[%s6453_s19 + $0x80] sm:$0xff]   ;;  %v6195_v25 = vld [vmem:[%s6453_s19 + $0x88] sm:$0xff]  }
  0x16   : > { %6057 = vmatprep.subr.bf16.mxu0 %v6176_v6  ;;  %v6196_v26 = vld [vmem:[%s6453_s19 + $0x90] sm:$0xff]   ;;  %v6197_v27 = vld [vmem:[%s6453_s19 + $0x98] sm:$0xff]   ;;  %v6198_v29 = vld [vmem:[%s6453_s19 + $0xa0] sm:$0xff]  }
  0x17   : > { %v6199_v30 = vld [vmem:[%s6453_s19 + $0xa8] sm:$0xff]   ;;  %v6200_v31 = vld [vmem:[%s6453_s19 + $0xb0] sm:$0xff]   ;;  %v6201_v32 = vld [vmem:[%s6453_s19 + $0xb8] sm:$0xff]  }
  0x18   : > { %v6202_v33 = vld [vmem:[%s6453_s19 + $0xc0] sm:$0xff]   ;;  %v6203_v34 = vld [vmem:[%s6453_s19 + $0xc8] sm:$0xff]   ;;  %v6206_v38 = vld [vmem:[%s6453_s19 + $0xd0] sm:$0xff]  }
  0x19   : > { %6058 = vmatpush3.bf16.msra.mxu0 %v6176_v6  ;;  %v6208_v40 = vld [vmem:[%s6453_s19 + $0xd8] sm:$0xff]   ;;  %v6538_v43 = vld [vmem:[%s8307_s2] ss:$0 sm:$0xff]  ;;  %v6213_v50 = vld [vmem:[%s8310_s5 + $0xa8] sm:$0xff]  }
  0x1a   : > { %6059 = vmatprep.subr.bf16.mxu0 %v6177_v8  ;;  %v6552_v48 = vld [vmem:[%s8308_s3] ss:$0 sm:$0xff]  ;;  %v6214_v51 = vld [vmem:[%s8310_s5 + $0x10] sm:$0xff]   ;;  %3171 = vmatpush1.bf16.msra.mxu1 %v6213_v50  ;;  %v6216_v61 = vld [vmem:[%s6453_s19 + $0xe8] sm:$0xff]  }
  0x1b   : > { %v6565_v54 = vld [vmem:[%s8309_s4] ss:$0 sm:$0xff]  ;;  %3172 = vmatprep.subr.bf16.mxu1 %v6356_v36  ;;  %v6218_v3 = vld [vmem:[%s8310_s5 + $0x8] sm:$0xff]   ;;  %vm5503_vm5 = vmand %vm5501_vm3, %vm5502_vm4 }
  0x1c   : > { %v6215_v60 = vld [vmem:[%s6453_s19 + $0xe0] sm:$0xff]   ;;  %v6225_v50 = vld [vmem:[%s8310_s5 + $0x88] sm:$0xff]  }
  0x1d   : > { %6060 = vmatpush3.bf16.msra.mxu0 %v6177_v8  ;;  %v6217_v62 = vld [vmem:[%s8310_s5 + $0xa0] sm:$0xff]  }
  0x1e   : > { %3447 = vmatprep.subr.bf16.mxu0 %v6356_v36  ;;  %3173 = vmatpush1.bf16.msra.mxu1 %v6217_v62 }
  0x1f   : > { %3174 = vmatprep.subr.bf16.mxu1 %v6356_v36 }
  0x20   : > { %6062 = vmatmul.mubr.msk.bf16.vlgmr.msra.gmra.mxu0 %vm747_vm2, %v6179_v9 }
  0x21   : > { %6065 = vmatprep.mubr.msk.bf16.mxu0 %vm747_vm2, %v6180_v10  ;;  %3448 = vmatpush1.bf16.msra.mxu0 %v6204_v35  ;;  %v6219_v10 = vld [vmem:[%s8310_s5 + $0x98] sm:$0xff]  }
  0x22   : > { %3449 = vmatprep.subr.bf16.mxu0 %v6356_v36  ;;  %3175 = vmatpush1.bf16.msra.mxu1 %v6219_v10 }
  0x23   : > { %3176 = vmatprep.subr.bf16.mxu1 %v6356_v36 }
  0x25   : > { %3450 = vmatpush1.bf16.msra.mxu0 %v6205_v37 }
  0x26   : > { %3451 = vmatprep.subr.bf16.mxu0 %v6356_v36 }
  0x28   : > { %6066 = vmatmul.mubr.msk.bf16.gmra.mxu0 %vm747_vm2, %v6181_v11  ;;  %v6220_v11 = vld [vmem:[%s8310_s5] sm:$0xff]  }
  0x29   : > { %6069 = vmatprep.mubr.msk.bf16.mxu0 %vm747_vm2, %v6182_v12  ;;  %3452 = vmatpush1.bf16.msra.mxu0 %v6207_v39 }
  0x2a   : > { %3453 = vmatprep.subr.bf16.mxu0 %v6356_v36 }
  0x2d   : > { %3454 = vmatpush1.bf16.msra.mxu0 %v6210_v42 }
  0x2e   : > { %3455 = vmatprep.subr.bf16.mxu0 %v6356_v36 }
  0x30   : > { %6070 = vmatmul.mubr.msk.bf16.gmra.mxu0 %vm747_vm2, %v6183_v13 }
  0x31   : > { %6073 = vmatprep.mubr.msk.bf16.mxu0 %vm747_vm2, %v6184_v14  ;;  %3456 = vmatpush1.bf16.msra.mxu0 %v6212_v45 }
  0x32   : > { %3457 = vmatprep.subr.bf16.mxu0 %v6356_v36 }
  0x35   : > { %3458 = vmatpush1.bf16.msra.mxu0 %v6214_v51  ;;  %v6226_v51 = vld [vmem:[%s8310_s5 + $0x70] sm:$0xff]  }
  0x36   : > { %3459 = vmatprep.subr.bf16.mxu0 %v6356_v36 }
  0x38   : > { %6074 = vmatmul.mubr.msk.bf16.gmra.mxu0 %vm747_vm2, %v6185_v15 }
  0x39   : > { %6077 = vmatprep.mubr.msk.bf16.mxu0 %vm747_vm2, %v6186_v16  ;;  %3460 = vmatpush1.bf16.msra.mxu0 %v6218_v3 }
  0x3a   : > { %3461 = vmatprep.subr.bf16.mxu0 %v6356_v36 }
  0x3d   : > { %3462 = vmatpush1.bf16.msra.mxu0 %v6220_v11 }
  0x3e   : > { %3463 = vmatprep.subr.bf16.mxu0 %v6356_v36 }
  0x40   : > { %6078 = vmatmul.mubr.msk.bf16.gmra.mxu0 %vm747_vm2, %v6187_v17 }
  0x41   : > { %6081 = vmatprep.mubr.msk.bf16.mxu0 %vm747_vm2, %v6188_v18 }
  0x48   : > { %6082 = vmatmul.mubr.msk.bf16.gmra.mxu0 %vm747_vm2, %v6189_v19 }
  0x49   : > { %6085 = vmatprep.mubr.msk.bf16.mxu0 %vm747_vm2, %v6190_v20 }
  0x50   : > { %6086 = vmatmul.mubr.msk.bf16.gmra.mxu0 %vm747_vm2, %v6191_v21 }
  0x51   : > { %6089 = vmatprep.mubr.msk.bf16.mxu0 %vm747_vm2, %v6192_v22  ;;  %v6221_v22 = vld [vmem:[%s6453_s19 + $0xf0] sm:$0xff]  }
  0x58   : > { %6090 = vmatmul.mubr.msk.bf16.gmra.mxu0 %vm747_vm2, %v6193_v23  ;;  %v6222_v23 = vld [vmem:[%s6453_s19 + $0xf8] sm:$0xff]  }
  0x59   : > { %6093 = vmatprep.mubr.msk.bf16.mxu0 %vm747_vm2, %v6194_v24  ;;  %v6223_v24 = vld [vmem:[%s8310_s5 + $0x90] sm:$0xff]  }
  0x5a   : > { %3177 = vmatpush1.bf16.msra.mxu1 %v6223_v24 }
  0x5b   : > { %3178 = vmatprep.subr.bf16.mxu1 %v6356_v36 }
  0x5e   : > { %3179 = vmatpush1.bf16.msra.mxu1 %v6225_v50 }
  0x5f   : > { %3180 = vmatprep.subr.bf16.mxu1 %v6356_v36 }
  0x60   : > { %6094 = vmatmul.mubr.msk.bf16.gmra.mxu0 %vm747_vm2, %v6195_v25 }
  0x61   : > { %6097 = vmatprep.mubr.msk.bf16.mxu0 %vm747_vm2, %v6196_v26 }
  0x68   : > { %6098 = vmatmul.mubr.msk.bf16.gmra.mxu0 %vm747_vm2, %v6197_v27 }
  0x69   : > { %6101 = vmatprep.mubr.msk.bf16.mxu0 %vm747_vm2, %v6198_v29  ;;  %v6224_v29 = vld [vmem:[%s8310_s5 + $0x78] sm:$0xff]  }
  0x6a   : > { %3464 = vmatpush2.bf16.msra.mxu0 %v6224_v29  ;;  %v6232_v29 = vld [vmem:[%s8310_s5 + $0x60] sm:$0xff]  }
  0x6b   : > { %3465 = vmatprep.subr.bf16.mxu0 %v6356_v36 }
  0x6e   : > { %3466 = vmatpush2.bf16.msra.mxu0 %v6226_v51 }
  0x6f   : > { %3467 = vmatprep.subr.bf16.mxu0 %v6356_v36 }
  0x70   : > { %6102 = vmatmul.mubr.msk.bf16.gmra.mxu0 %vm747_vm2, %v6199_v30 }
  0x71   : > { %6105 = vmatprep.mubr.msk.bf16.mxu0 %vm747_vm2, %v6200_v31 }
  0x78   : > { %6106 = vmatmul.mubr.msk.bf16.gmra.mxu0 %vm747_vm2, %v6201_v32 }
  0x79   : > { %6109 = vmatprep.mubr.msk.bf16.mxu0 %vm747_vm2, %v6202_v33 }
  0x80   : > { %6110 = vmatmul.mubr.msk.bf16.gmra.mxu0 %vm747_vm2, %v6203_v34 }
  0x81   : > { %6113 = vmatprep.mubr.msk.bf16.mxu0 %vm747_vm2, %v6206_v38 }
  0x88   : > { %6114 = vmatmul.mubr.msk.bf16.gmra.mxu0 %vm747_vm2, %v6208_v40 }
  0x89   : > { %6117 = vmatprep.mubr.msk.bf16.mxu0 %vm747_vm2, %v6215_v60 }
  0x90   : > { %6118 = vmatmul.mubr.msk.bf16.gmra.mxu0 %vm747_vm2, %v6216_v61 }
  0x91   : > { %6121 = vmatprep.mubr.msk.bf16.mxu0 %vm747_vm2, %v6221_v22 }
  0x98   : > { %6122 = vmatmul.mubr.msk.bf16.gmra.mxu0 %vm747_vm2, %v6222_v23  ;;  %v6233_v23 = vld [vmem:[%s6453_s19 + $0x110] sm:$0xff]  }
  0xe0   : > { %v6063_v46 = vpop.f32.mrf.mxu0 }
  0xe1   : > { %v912_v47 = vadd.f32 %v6063_v46, %v6538_v43 }
  0xe2   : > { %v903_v49 = vpop.f32.mrf.mxu0 }
  0xe3   : > { %v1207_v52 = vmax.f32 %v912_v47, 0.0  ;;  %v904_v53 = vadd.f32 %v6538_v43, %v903_v49 }
  0xe4   : > { %v6064_v55 = vpop.f32.mrf.mxu0 }
  0xe5   : > { %v1289_v56 = vmul.f32 %v6552_v48, %v1207_v52  ;;  %v1205_v57 = vmax.f32 %v904_v53, 0.0  ;;  %v915_v58 = vadd.f32 %v6064_v55, %v6538_v43 }
  0xe6   : > { %v906_v59 = vpop.f32.mrf.mxu0 }
  0xe7   : > { %v1371_v63 = vadd.f32 %v6565_v54, %v1289_v56  ;;  %v1287_v0 = vmul.f32 %v6552_v48, %v1205_v57  ;;  %v1208_v1 = vmax.f32 %v915_v58, 0.0  ;;  %v907_v2 = vadd.f32 %v6538_v43, %v906_v59  ;;  %v6227_v57 = vld [vmem:[%s6453_s19 + $0x100] sm:$0xff]  }
  0xe8   : > { %v6067_v4 = vpop.f32.mrf.mxu0  ;;  %6125 = vmatprep.mubr.msk.bf16.mxu0 %vm747_vm2, %v6227_v57 }
  0xe9   : > { %1446 = vst [vmem:[#allocation2 + $0x10] sm:$0xff] %v1371_v63  ;;  %v1369_v5 = vadd.f32 %v6565_v54, %v1287_v0  ;;  %v1290_v6 = vmul.f32 %v6552_v48, %v1208_v1  ;;  %v1206_v7 = vmax.f32 %v907_v2, 0.0  ;;  %v928_v8 = vadd.f32 %v6067_v4, %v6538_v43 }
  0xea   : > { %v919_v9 = vpop.f32.mrf.mxu0 }
  0xeb   : > { %1444 = vst [vmem:[#allocation2] sm:$0xff] %v1369_v5  ;;  %v1372_v12 = vadd.f32 %v6565_v54, %v1290_v6  ;;  %v1288_v13 = vmul.f32 %v6552_v48, %v1206_v7  ;;  %v1211_v14 = vmax.f32 %v928_v8, 0.0  ;;  %v920_v15 = vadd.f32 %v6538_v43, %v919_v9  ;;  %v6228_v9 = vld [vmem:[%s6453_s19 + $0x108] sm:$0xff]  }
  0xec   : > { %v6068_v16 = vpop.f32.mrf.mxu0  ;;  %6126 = vmatmul.mubr.msk.bf16.gmra.mxu0 %vm747_vm2, %v6228_v9 }
  0xed   : > { %1447 = vst [vmem:[#allocation2 + $0x18] sm:$0xff] %v1372_v12  ;;  %v1370_v17 = vadd.f32 %v6565_v54, %v1288_v13  ;;  %v1293_v18 = vmul.f32 %v6552_v48, %v1211_v14  ;;  %v1209_v19 = vmax.f32 %v920_v15, 0.0  ;;  %v931_v20 = vadd.f32 %v6068_v16, %v6538_v43  ;;  %v6229_v13 = vld [vmem:[%s8310_s5 + $0x80] sm:$0xff]   ;;  %6129 = vmatprep.mubr.msk.bf16.mxu0 %vm747_vm2, %v6233_v23 }
  0xee   : > { %v922_v21 = vpop.f32.mrf.mxu0  ;;  %3181 = vmatpush1.bf16.msra.mxu1 %v6229_v13  ;;  %v6237_v13 = vld [vmem:[%s8310_s5 + $0xe8] sm:$0xff]  }
  0xef   : > { %1445 = vst [vmem:[#allocation2 + $0x8] sm:$0xff] %v1370_v17  ;;  %v1375_v25 = vadd.f32 %v6565_v54, %v1293_v18  ;;  %v1291_v26 = vmul.f32 %v6552_v48, %v1209_v19  ;;  %v1212_v27 = vmax.f32 %v931_v20, 0.0  ;;  %v923_v28 = vadd.f32 %v6538_v43, %v922_v21  ;;  %v6230_v18 = vld [vmem:[%s8310_s5 + $0x68] sm:$0xff]   ;;  %3182 = vmatprep.subr.bf16.mxu1 %v6356_v36 }
  0xf0   : > { %v6071_v30 = vpop.f32.mrf.mxu0  ;;  %3468 = vmatpush2.bf16.msra.mxu0 %v6230_v18 }
  0xf1   : > { %1450 = vst [vmem:[#allocation2 + $0x30] sm:$0xff] %v1375_v25  ;;  %v1373_v31 = vadd.f32 %v6565_v54, %v1291_v26  ;;  %v1294_v32 = vmul.f32 %v6552_v48, %v1212_v27  ;;  %v1210_v33 = vmax.f32 %v923_v28, 0.0  ;;  %v944_v34 = vadd.f32 %v6071_v30, %v6538_v43  ;;  %v6231_v28 = vld [vmem:[%s8310_s5 + $0xf8] sm:$0xff]   ;;  %3469 = vmatprep.subr.bf16.mxu0 %v6356_v36 }
  0xf2   : > { %v935_v35 = vpop.f32.mrf.mxu0  ;;  %3183 = vmatpush2.bf16.msra.mxu1 %v6231_v28 }
  0xf3   : > { %1448 = vst [vmem:[#allocation2 + $0x20] sm:$0xff] %v1373_v31  ;;  %v1376_v37 = vadd.f32 %v6565_v54, %v1294_v32  ;;  %v1292_v38 = vmul.f32 %v6552_v48, %v1210_v33  ;;  %v1215_v39 = vmax.f32 %v944_v34, 0.0  ;;  %v936_v40 = vadd.f32 %v6538_v43, %v935_v35  ;;  %3184 = vmatprep.subr.bf16.mxu1 %v6356_v36 }
  0xf4   : > { %v1521_v41 = vld [vmem:[#allocation2 + $0x10] ss:$2 sm:$0xff]  ;;  %v1597_v42 = vld [vmem:[#allocation2 + $0x11] ss:$2 sm:$0xff]  ;;  %v6072_v44 = vpop.f32.mrf.mxu0  ;;  %3470 = vmatpush2.bf16.msra.mxu0 %v6232_v29 }
  0xf5   : > { %1451 = vst [vmem:[#allocation2 + $0x38] sm:$0xff] %v1376_v37  ;;  %v1374_v45 = vadd.f32 %v6565_v54, %v1292_v38  ;;  %v1297_v46 = vmul.f32 %v6552_v48, %v1215_v39  ;;  %v1213_v47 = vmax.f32 %v936_v40, 0.0  ;;  %v947_v49 = vadd.f32 %v6072_v44, %v6538_v43  ;;  %3471 = vmatprep.subr.bf16.mxu0 %v6356_v36 }
  0xf6   : > { %v1519_v52 = vld [vmem:[#allocation2] ss:$2 sm:$0xff]  ;;  %v1595_v53 = vld [vmem:[#allocation2 + $0x1] ss:$2 sm:$0xff]  ;;  %v938_v55 = vpop.f32.mrf.mxu0  ;;  %v1671_v56 = vmax.f32 %v1521_v41, %v1597_v42 }
  0xf7   : > { %1449 = vst [vmem:[#allocation2 + $0x28] sm:$0xff] %v1374_v45  ;;  %v1379_v58 = vadd.f32 %v6565_v54, %v1297_v46  ;;  %v1295_v59 = vmul.f32 %v6552_v48, %v1213_v47  ;;  %v1216_v60 = vmax.f32 %v947_v49, 0.0  ;;  %v939_v61 = vadd.f32 %v6538_v43, %v938_v55 }
  0xf8   : > { %1709 = vst [vmem:[#allocation3 + $0x10] sm:$0xff] %v1671_v56  ;;  %2886 = vrot.lane.b32.xlu0 %v1671_v56, %s6357_s20  ;;  %2622 = vrot.lane.b32.xlu1 %v1671_v56, %s6357_s20  ;;  %v6639_v62 = vmax.f32 %v1519_v52, %v1595_v53  ;;  %v6075_v63 = vpop.f32.mrf.mxu0 }
  0xf9   : > { %1454 = vst [vmem:[#allocation2 + $0x50] sm:$0xff] %v1379_v58  ;;  %v1377_v0 = vadd.f32 %v6565_v54, %v1295_v59  ;;  %v1298_v1 = vmul.f32 %v6552_v48, %v1216_v60  ;;  %v1214_v2 = vmax.f32 %v939_v61, 0.0  ;;  %v960_v3 = vadd.f32 %v6075_v63, %v6538_v43 }
  0xfa   : > { %1708 = vst [vmem:[#allocation3 + $0x8] sm:$0xff] %v6639_v62  ;;  %v951_v4 = vpop.f32.mrf.mxu0 }
  0xfb   : > { %1452 = vst [vmem:[#allocation2 + $0x40] sm:$0xff] %v1377_v0  ;;  %v1380_v5 = vadd.f32 %v6565_v54, %v1298_v1  ;;  %v1296_v6 = vmul.f32 %v6552_v48, %v1214_v2  ;;  %v1219_v7 = vmax.f32 %v960_v3, 0.0  ;;  %v952_v8 = vadd.f32 %v6538_v43, %v951_v4  ;;  %v6234_v1 = vld [vmem:[%s6453_s19 + $0x118] sm:$0xff]   ;;  %v6235_v2 = vld [vmem:[%s8310_s5 + $0xf0] sm:$0xff]  }
  0xfc   : > { %v1525_v10 = vld [vmem:[#allocation2 + $0x30] ss:$2 sm:$0xff]  ;;  %v1601_v11 = vld [vmem:[#allocation2 + $0x31] ss:$2 sm:$0xff]  ;;  %v6076_v12 = vpop.f32.mrf.mxu0  ;;  %6130 = vmatmul.mubr.msk.bf16.gmra.mxu0 %vm747_vm2, %v6234_v1  ;;  %3185 = vmatpush2.bf16.msra.mxu1 %v6235_v2 }
  0xfd   : > { %1455 = vst [vmem:[#allocation2 + $0x58] sm:$0xff] %v1380_v5  ;;  %v1378_v14 = vadd.f32 %v6565_v54, %v1296_v6  ;;  %v1301_v15 = vmul.f32 %v6552_v48, %v1219_v7  ;;  %v1217_v16 = vmax.f32 %v952_v8, 0.0  ;;  %v963_v17 = vadd.f32 %v6076_v12, %v6538_v43  ;;  %v6236_v3 = vld [vmem:[%s8310_s5 + $0x58] sm:$0xff]   ;;  %v6239_v6 = vld [vmem:[%s6453_s19 + $0x120] sm:$0xff]   ;;  %3186 = vmatprep.subr.bf16.mxu1 %v6356_v36 }
  0xfe   : > { %v1523_v19 = vld [vmem:[#allocation2 + $0x20] ss:$2 sm:$0xff]  ;;  %v1599_v20 = vld [vmem:[#allocation2 + $0x21] ss:$2 sm:$0xff]  ;;  %v954_v21 = vpop.f32.mrf.mxu0  ;;  %v6662_v22 = vmax.f32 %v1525_v10, %v1601_v11  ;;  %3472 = vmatpush2.bf16.msra.mxu0 %v6236_v3  ;;  %6133 = vmatprep.mubr.msk.bf16.mxu0 %vm747_vm2, %v6239_v6 }
  0xff   : > { %1453 = vst [vmem:[#allocation2 + $0x48] sm:$0xff] %v1378_v14  ;;  %v1383_v24 = vadd.f32 %v6565_v54, %v1301_v15  ;;  %v1299_v25 = vmul.f32 %v6552_v48, %v1217_v16  ;;  %v1220_v26 = vmax.f32 %v963_v17, 0.0  ;;  %v955_v27 = vadd.f32 %v6538_v43, %v954_v21  ;;  %3473 = vmatprep.subr.bf16.mxu0 %v6356_v36 }
 0x100   : > { %1711 = vst [vmem:[#allocation3 + $0x20] sm:$0xff] %v6662_v22  ;;  %v6676_v30 = vmax.f32 %v1523_v19, %v1599_v20  ;;  %v6079_v31 = vpop.f32.mrf.mxu0  ;;  %v6238_v19 = vld [vmem:[%s8310_s5 + $0x50] sm:$0xff]   ;;  %3187 = vmatpush2.bf16.msra.mxu1 %v6237_v13 }
 0x101   : > { %v2278_v32 = vld [vmem:[#allocation3 + $0x6] sm:$0xff]  ;;  %1458 = vst [vmem:[#allocation2 + $0x70] sm:$0xff] %v1383_v24  ;;  %v1381_v34 = vadd.f32 %v6565_v54, %v1299_v25  ;;  %v1302_v35 = vmul.f32 %v6552_v48, %v1220_v26  ;;  %v1218_v37 = vmax.f32 %v955_v27, 0.0  ;;  %v976_v38 = vadd.f32 %v6079_v31, %v6538_v43  ;;  %v2279_v49 = vld [vmem:[#allocation3 + $0xe] sm:$0xff]  ;;  %3188 = vmatprep.subr.bf16.mxu1 %v6356_v36 }
 0x102   : > { %v1784_v33 = vld [vmem:[#allocation3 + $0x2] sm:$0xff]  ;;  %2316 = vrot.lane.b32.xlu0 %v2278_v32, %s6358_s14  ;;  %1710 = vst [vmem:[#allocation3 + $0x18] sm:$0xff] %v6676_v30  ;;  %v967_v39 = vpop.f32.mrf.mxu0  ;;  %v2431_v50 = vld [vmem:[#allocation3 + $0xf] sm:$0xff]  ;;  %3474 = vmatpush2.bf16.msra.mxu0 %v6238_v19 }
 0x103   : > { %1822 = vrot.lane.b32.xlu1 %v1784_v33, %s6358_s14  ;;  %1456 = vst [vmem:[#allocation2 + $0x60] sm:$0xff] %v1381_v34  ;;  %v1384_v40 = vadd.f32 %v6565_v54, %v1302_v35  ;;  %v1300_v41 = vmul.f32 %v6552_v48, %v1218_v37  ;;  %v1223_v42 = vmax.f32 %v976_v38, 0.0  ;;  %v968_v44 = vadd.f32 %v6538_v43, %v967_v39  ;;  %v1785_v7 = vld [vmem:[#allocation3 + $0xa] sm:$0xff] }
 0x104   : > { %v1529_v45 = vld [vmem:[#allocation2 + $0x50] ss:$2 sm:$0xff]  ;;  %v1605_v46 = vld [vmem:[#allocation2 + $0x51] ss:$2 sm:$0xff]  ;;  %v6080_v47 = vpop.f32.mrf.mxu0  ;;  %v2089_v25 = vld [vmem:[#allocation3 + $0xc] sm:$0xff]  ;;  %3475 = vmatprep.subr.bf16.mxu0 %v6356_v36 }
 0x105   : > { %1459 = vst [vmem:[#allocation2 + $0x78] sm:$0xff] %v1384_v40  ;;  %v1382_v51 = vadd.f32 %v6565_v54, %v1300_v41  ;;  %v1305_v52 = vmul.f32 %v6552_v48, %v1223_v42  ;;  %v1221_v53 = vmax.f32 %v968_v44, 0.0  ;;  %v979_v55 = vadd.f32 %v6080_v47, %v6538_v43  ;;  %v1936_v8 = vld [vmem:[#allocation3 + $0x3] sm:$0xff]  ;;  %v6240_v31 = vld [vmem:[%s6453_s19 + $0x128] ss:$0 sps:$4 sm:$0xff]  }
 0x106   : > { %v1527_v56 = vld [vmem:[#allocation2 + $0x40] ss:$2 sm:$0xff]  ;;  %v1603_v57 = vld [vmem:[#allocation2 + $0x41] ss:$2 sm:$0xff]  ;;  %2318 = vrot.lane.b32.xlu0 %v2279_v49, %s6358_s14  ;;  %v970_v58 = vpop.f32.mrf.mxu0  ;;  %v6696_v59 = vmax.f32 %v1529_v45, %v1605_v46  ;;  %6134 = vmatmul.mubr.msk.bf16.gmra.mxu0 %vm747_vm2, %v6240_v31 }
 0x107   : > { %2470 = vrot.lane.b32.xlu1 %v2431_v50, %s6359_s15  ;;  %1457 = vst [vmem:[#allocation2 + $0x68] sm:$0xff] %v1382_v51  ;;  %v1387_v60 = vadd.f32 %v6565_v54, %v1305_v52  ;;  %v1303_v61 = vmul.f32 %v6552_v48, %v1221_v53  ;;  %v1224_v63 = vmax.f32 %v979_v55, 0.0  ;;  %v971_v0 = vadd.f32 %v6538_v43, %v970_v58  ;;  %v2430_v23 = vld [vmem:[#allocation3 + $0x7] sm:$0xff]  ;;  %v6242_v42 = vld [vmem:[%s8310_s5 + $0x48] sm:$0xff]  }
 0x108   : > { %1713 = vst [vmem:[#allocation3 + $0x30] sm:$0xff] %v6696_v59  ;;  %v6709_v4 = vmax.f32 %v1527_v56, %v1603_v57  ;;  %v6083_v5 = vpop.f32.mrf.mxu0  ;;  %v6241_v32 = vld [vmem:[%s8310_s5 + $0xe0] sm:$0xff]   ;;  %v6243_v52 = vld [vmem:[%s8310_s5 + $0xd8] sm:$0xff]   ;;  %3476 = vmatpush2.bf16.msra.mxu0 %v6242_v42 }
 0x109   : > { %1462 = vst [vmem:[#allocation2 + $0x90] sm:$0xff] %v1387_v60  ;;  %v1385_v9 = vadd.f32 %v6565_v54, %v1303_v61  ;;  %v1306_v10 = vmul.f32 %v6552_v48, %v1224_v63  ;;  %v1222_v11 = vmax.f32 %v971_v0, 0.0  ;;  %v992_v12 = vadd.f32 %v6083_v5, %v6538_v43  ;;  %v1937_v46 = vld [vmem:[#allocation3 + $0xb] sm:$0xff]  ;;  %3189 = vmatpush2.bf16.msra.mxu1 %v6241_v32  ;;  %v2280_v1 = vld [vmem:[#allocation3 + $0x16] sm:$0xff] }
 0x10a   : > { %1824 = vrot.lane.b32.xlu0 %v1785_v7, %s6358_s14  ;;  %1712 = vst [vmem:[#allocation3 + $0x28] sm:$0xff] %v6709_v4  ;;  %v983_v14 = vpop.f32.mrf.mxu0  ;;  %3190 = vmatprep.subr.bf16.mxu1 %v6356_v36  ;;  %v6244_v60 = vld [vmem:[%s8310_s5 + $0x40] sm:$0xff]   ;;  %v6245_v7 = vld [vmem:[%s8310_s5 + $0xd0] sm:$0xff]  }
 0x10b   : > { %1974 = vrot.lane.b32.xlu1 %v1936_v8, %s6359_s15  ;;  %1460 = vst [vmem:[#allocation2 + $0x80] sm:$0xff] %v1385_v9  ;;  %v1388_v15 = vadd.f32 %v6565_v54, %v1306_v10  ;;  %v1304_v16 = vmul.f32 %v6552_v48, %v1222_v11  ;;  %v1227_v17 = vmax.f32 %v992_v12, 0.0  ;;  %v984_v18 = vadd.f32 %v6538_v43, %v983_v14 }
 0x10c   : > { %v1533_v20 = vld [vmem:[#allocation2 + $0x70] ss:$2 sm:$0xff]  ;;  %v1609_v21 = vld [vmem:[#allocation2 + $0x71] ss:$2 sm:$0xff]  ;;  %v6084_v24 = vpop.f32.mrf.mxu0  ;;  %3477 = vmatprep.subr.bf16.mxu0 %v6356_v36 }
 0x10d   : > { %1463 = vst [vmem:[#allocation2 + $0x98] sm:$0xff] %v1388_v15  ;;  %v1386_v26 = vadd.f32 %v6565_v54, %v1304_v16  ;;  %v1309_v27 = vmul.f32 %v6552_v48, %v1227_v17  ;;  %v1225_v28 = vmax.f32 %v984_v18, 0.0  ;;  %v995_v29 = vadd.f32 %v6084_v24, %v6538_v43  ;;  %3191 = vmatpush2.bf16.msra.mxu1 %v6243_v52  ;;  %v2088_v17 = vld [vmem:[#allocation3 + $0x4] sm:$0xff]  ;;  %v1786_v18 = vld [vmem:[#allocation3 + $0x12] sm:$0xff] }
 0x10e   : > { %v1531_v33 = vld [vmem:[#allocation2 + $0x60] ss:$2 sm:$0xff]  ;;  %v1607_v34 = vld [vmem:[#allocation2 + $0x61] ss:$2 sm:$0xff]  ;;  %2468 = vrot.lane.b32.xlu0 %v2430_v23, %s6359_s15  ;;  %v986_v35 = vpop.f32.mrf.mxu0  ;;  %v6740_v37 = vmax.f32 %v1533_v20, %v1609_v21  ;;  %3478 = vmatpush2.bf16.msra.mxu0 %v6244_v60 }
 0x10f   : > { %2128 = vrot.lane.b32.xlu1 %v2089_v25, %s6357_s20  ;;  %1461 = vst [vmem:[#allocation2 + $0x88] sm:$0xff] %v1386_v26  ;;  %v1391_v38 = vadd.f32 %v6565_v54, %v1309_v27  ;;  %v1307_v39 = vmul.f32 %v6552_v48, %v1225_v28  ;;  %v1228_v40 = vmax.f32 %v995_v29, 0.0  ;;  %v987_v41 = vadd.f32 %v6538_v43, %v986_v35  ;;  %v6246_v24 = vld [vmem:[%s8310_s5 + $0xc8] sm:$0xff]  }
 0x110   : > { %1715 = vst [vmem:[#allocation3 + $0x40] sm:$0xff] %v6740_v37  ;;  %v6750_v44 = vmax.f32 %v1531_v33, %v1607_v34  ;;  %v6087_v45 = vpop.f32.mrf.mxu0  ;;  %3192 = vmatprep.subr.bf16.mxu1 %v6356_v36  ;;  %v1938_v34 = vld [vmem:[#allocation3 + $0x13] sm:$0xff] }
 0x111   : > { %1466 = vst [vmem:[#allocation2 + $0xb0] sm:$0xff] %v1391_v38  ;;  %v1389_v47 = vadd.f32 %v6565_v54, %v1307_v39  ;;  %v1310_v49 = vmul.f32 %v6552_v48, %v1228_v40  ;;  %v1226_v50 = vmax.f32 %v987_v41, 0.0  ;;  %v1008_v51 = vadd.f32 %v6087_v45, %v6538_v43  ;;  %3193 = vmatpush2.bf16.msra.mxu1 %v6245_v7  ;;  %v6247_v41 = vld [vmem:[%s8310_s5 + $0xc0] sm:$0xff]   ;;  %v2281_v7 = vld [vmem:[#allocation3 + $0x1e] sm:$0xff] }
 0x112   : > { %1976 = vrot.lane.b32.xlu0 %v1937_v46, %s6359_s15  ;;  %1714 = vst [vmem:[#allocation3 + $0x38] sm:$0xff] %v6750_v44  ;;  %v999_v53 = vpop.f32.mrf.mxu0  ;;  %3194 = vmatprep.subr.bf16.mxu1 %v6356_v36 }
 0x113   : > { %2890 = vrot.lane.b32.xlu1 %v6662_v22, %s6357_s20  ;;  %1464 = vst [vmem:[#allocation2 + $0xa0] sm:$0xff] %v1389_v47  ;;  %v1392_v55 = vadd.f32 %v6565_v54, %v1310_v49  ;;  %v1308_v56 = vmul.f32 %v6552_v48, %v1226_v50  ;;  %v1231_v57 = vmax.f32 %v1008_v51, 0.0  ;;  %v1000_v58 = vadd.f32 %v6538_v43, %v999_v53 }
 0x114   : > { %v1537_v61 = vld [vmem:[#allocation2 + $0x90] ss:$2 sm:$0xff]  ;;  %v1613_v63 = vld [vmem:[#allocation2 + $0x91] ss:$2 sm:$0xff]  ;;  %v6088_v0 = vpop.f32.mrf.mxu0 }
 0x115   : > { %1467 = vst [vmem:[#allocation2 + $0xb8] sm:$0xff] %v1392_v55  ;;  %v1390_v2 = vadd.f32 %v6565_v54, %v1308_v56  ;;  %v1313_v3 = vmul.f32 %v6552_v48, %v1231_v57  ;;  %v1229_v5 = vmax.f32 %v1000_v58, 0.0  ;;  %v1011_v6 = vadd.f32 %v6088_v0, %v6538_v43  ;;  %3195 = vmatpush2.bf16.msra.mxu1 %v6246_v24  ;;  %v2432_v55 = vld [vmem:[#allocation3 + $0x17] sm:$0xff] }
 0x116   : > { %2620 = vrot.lane.b32.xlu0 %v6639_v62, %s6357_s20  ;;  %v1535_v8 = vld [vmem:[#allocation2 + $0x80] ss:$2 sm:$0xff]  ;;  %v1611_v9 = vld [vmem:[#allocation2 + $0x81] ss:$2 sm:$0xff]  ;;  %v1002_v10 = vpop.f32.mrf.mxu0  ;;  %v6781_v11 = vmax.f32 %v1537_v61, %v1613_v63  ;;  %3196 = vmatprep.subr.bf16.mxu1 %v6356_v36 }
 0x117   : > { %2320 = vrot.lane.b32.xlu1 %v2280_v1, %s6358_s14  ;;  %1465 = vst [vmem:[#allocation2 + $0xa8] sm:$0xff] %v1390_v2  ;;  %v1395_v12 = vadd.f32 %v6565_v54, %v1313_v3  ;;  %v1311_v13 = vmul.f32 %v6552_v48, %v1229_v5  ;;  %v1232_v14 = vmax.f32 %v1011_v6, 0.0  ;;  %v1003_v15 = vadd.f32 %v6538_v43, %v1002_v10  ;;  %v2090_v6 = vld [vmem:[#allocation3 + $0x14] sm:$0xff] }
 0x118   : > { %1717 = vst [vmem:[#allocation3 + $0x50] sm:$0xff] %v6781_v11  ;;  %v6788_v62 = vmax.f32 %v1535_v8, %v1611_v9  ;;  %v6091_v16 = vpop.f32.mrf.mxu0 }
 0x119   : > { %1470 = vst [vmem:[#allocation2 + $0xd0] sm:$0xff] %v1395_v12  ;;  %v1393_v19 = vadd.f32 %v6565_v54, %v1311_v13  ;;  %v1314_v20 = vmul.f32 %v6552_v48, %v1232_v14  ;;  %v1230_v21 = vmax.f32 %v1003_v15, 0.0  ;;  %v1024_v23 = vadd.f32 %v6091_v16, %v6538_v43  ;;  %3197 = vmatpush2.bf16.msra.mxu1 %v6247_v41 }
 0x11a   : > { %2126 = vrot.lane.b32.xlu0 %v2088_v17, %s6357_s20  ;;  %1716 = vst [vmem:[#allocation3 + $0x48] sm:$0xff] %v6788_v62  ;;  %v1015_v25 = vpop.f32.mrf.mxu0 }
 0x11b   : > { %1826 = vrot.lane.b32.xlu1 %v1786_v18, %s6358_s14  ;;  %1468 = vst [vmem:[#allocation2 + $0xc0] sm:$0xff] %v1393_v19  ;;  %v1396_v26 = vadd.f32 %v6565_v54, %v1314_v20  ;;  %v1312_v27 = vmul.f32 %v6552_v48, %v1230_v21  ;;  %v1235_v28 = vmax.f32 %v1024_v23, 0.0  ;;  %v1016_v29 = vadd.f32 %v6538_v43, %v1015_v25  ;;  %v1787_v23 = vld [vmem:[#allocation3 + $0x1a] sm:$0xff] }
 0x11c   : > { %v6092_v31 = vpop.f32.mrf.mxu0  ;;  %v1541_v32 = vld [vmem:[#allocation2 + $0xb0] ss:$2 sm:$0xff]  ;;  %v1617_v33 = vld [vmem:[#allocation2 + $0xb1] ss:$2 sm:$0xff] }
 0x11d   : > { %1471 = vst [vmem:[#allocation2 + $0xd8] sm:$0xff] %v1396_v26  ;;  %v1394_v35 = vadd.f32 %v6565_v54, %v1312_v27  ;;  %v1317_v38 = vmul.f32 %v6552_v48, %v1235_v28  ;;  %v1233_v39 = vmax.f32 %v1016_v29, 0.0  ;;  %v1027_v40 = vadd.f32 %v6092_v31, %v6538_v43  ;;  %v2282_v29 = vld [vmem:[#allocation3 + $0x26] sm:$0xff] }
 0x11e   : > { %2626 = vrot.lane.b32.xlu0 %v6662_v22, %s6357_s20  ;;  %v1018_v42 = vpop.f32.mrf.mxu0  ;;  %v6812_v45 = vmax.f32 %v1541_v32, %v1617_v33  ;;  %v1539_v46 = vld [vmem:[#allocation2 + $0xa0] ss:$2 sm:$0xff]  ;;  %v1615_v47 = vld [vmem:[#allocation2 + $0xa1] ss:$2 sm:$0xff]  ;;  %v2433_v31 = vld [vmem:[#allocation3 + $0x1f] sm:$0xff] }
 0x11f   : > { %1978 = vrot.lane.b32.xlu1 %v1938_v34, %s6359_s15  ;;  %1469 = vst [vmem:[#allocation2 + $0xc8] sm:$0xff] %v1394_v35  ;;  %v1399_v49 = vadd.f32 %v6565_v54, %v1317_v38  ;;  %v1315_v50 = vmul.f32 %v6552_v48, %v1233_v39  ;;  %v1236_v51 = vmax.f32 %v1027_v40, 0.0  ;;  %v1019_v52 = vadd.f32 %v6538_v43, %v1018_v42 }
 0x120   : > { %1719 = vst [vmem:[#allocation3 + $0x60] sm:$0xff] %v6812_v45  ;;  %v6819_v22 = vmax.f32 %v1539_v46, %v1615_v47  ;;  %v6095_v53 = vpop.f32.mrf.mxu0  ;;  %v1788_v46 = vld [vmem:[#allocation3 + $0x22] sm:$0xff] }
 0x121   : > { %1474 = vst [vmem:[#allocation2 + $0xf0] sm:$0xff] %v1399_v49  ;;  %v1397_v56 = vadd.f32 %v6565_v54, %v1315_v50  ;;  %v1318_v57 = vmul.f32 %v6552_v48, %v1236_v51  ;;  %v1234_v58 = vmax.f32 %v1019_v52, 0.0  ;;  %v1040_v60 = vadd.f32 %v6095_v53, %v6538_v43  ;;  %v1939_v47 = vld [vmem:[#allocation3 + $0x1b] sm:$0xff] }
 0x122   : > { %2472 = vrot.lane.b32.xlu0 %v2432_v55, %s6359_s15  ;;  %1718 = vst [vmem:[#allocation3 + $0x58] sm:$0xff] %v6819_v22  ;;  %v1031_v36 = vpop.f32.mrf.mxu0 }
 0x123   : > { %2888 = vrot.lane.b32.xlu1 %v6676_v30, %s6357_s20  ;;  %1472 = vst [vmem:[#allocation2 + $0xe0] sm:$0xff] %v1397_v56  ;;  %v1400_v61 = vadd.f32 %v6565_v54, %v1318_v57  ;;  %v1316_v63 = vmul.f32 %v6552_v48, %v1234_v58  ;;  %v1239_v0 = vmax.f32 %v1040_v60, 0.0  ;;  %v1032_v1 = vadd.f32 %v6538_v43, %v1031_v36  ;;  %v2434_v57 = vld [vmem:[#allocation3 + $0x27] sm:$0xff] }
 0x124   : > { %v6096_v2 = vpop.f32.mrf.mxu0  ;;  %v1545_v3 = vld [vmem:[#allocation2 + $0xd0] ss:$2 sm:$0xff]  ;;  %v1621_v5 = vld [vmem:[#allocation2 + $0xd1] ss:$2 sm:$0xff] }
 0x125   : > { %1475 = vst [vmem:[#allocation2 + $0xf8] sm:$0xff] %v1400_v61  ;;  %v1398_v8 = vadd.f32 %v6565_v54, %v1316_v63  ;;  %v1321_v9 = vmul.f32 %v6552_v48, %v1239_v0  ;;  %v1237_v10 = vmax.f32 %v1032_v1, 0.0  ;;  %v1043_v12 = vadd.f32 %v6096_v2, %v6538_v43 }
 0x126   : > { %2130 = vrot.lane.b32.xlu0 %v2090_v6, %s6357_s20  ;;  %v1034_v13 = vpop.f32.mrf.mxu0  ;;  %v6836_v14 = vmax.f32 %v1545_v3, %v1621_v5  ;;  %v1543_v15 = vld [vmem:[#allocation2 + $0xc0] ss:$2 sm:$0xff]  ;;  %v1619_v16 = vld [vmem:[#allocation2 + $0xc1] ss:$2 sm:$0xff] }
 0x127   : > { %2322 = vrot.lane.b32.xlu1 %v2281_v7, %s6358_s14  ;;  %1473 = vst [vmem:[#allocation2 + $0xe8] sm:$0xff] %v1398_v8  ;;  %v1403_v17 = vadd.f32 %v6565_v54, %v1321_v9  ;;  %v1319_v18 = vmul.f32 %v6552_v48, %v1237_v10  ;;  %v1240_v19 = vmax.f32 %v1043_v12, 0.0  ;;  %v1035_v20 = vadd.f32 %v6538_v43, %v1034_v13  ;;  %v1940_v7 = vld [vmem:[#allocation3 + $0x23] sm:$0xff]  ;;  %v2283_v13 = vld [vmem:[#allocation3 + $0x2e] sm:$0xff] }
 0x128   : > { %1721 = vst [vmem:[#allocation3 + $0x70] sm:$0xff] %v6836_v14  ;;  %v6842_v21 = vmax.f32 %v1543_v15, %v1619_v16  ;;  %v6099_v35 = vpop.f32.mrf.mxu0  ;;  %v2091_v8 = vld [vmem:[#allocation3 + $0x1c] sm:$0xff]  ;;  %v2092_v12 = vld [vmem:[#allocation3 + $0x24] sm:$0xff]  ;;  %v2435_v16 = vld [vmem:[#allocation3 + $0x2f] sm:$0xff] }
 0x129   : > { %1478 = vst [vmem:[#allocation2 + $0x110] sm:$0xff] %v1403_v17  ;;  %v1401_v24 = vadd.f32 %v6565_v54, %v1319_v18  ;;  %v1322_v25 = vmul.f32 %v6552_v48, %v1240_v19  ;;  %v1238_v26 = vmax.f32 %v1035_v20, 0.0  ;;  %v1056_v41 = vadd.f32 %v6099_v35, %v6538_v43  ;;  %v1789_v15 = vld [vmem:[#allocation3 + $0x2a] sm:$0xff]  ;;  %v2284_v17 = vld [vmem:[#allocation3 + $0x36] sm:$0xff] }
 0x12a   : > { %2630 = vrot.lane.b32.xlu0 %v6696_v59, %s6357_s20  ;;  %1720 = vst [vmem:[#allocation3 + $0x68] sm:$0xff] %v6842_v21  ;;  %v1047_v49 = vpop.f32.mrf.mxu0 }
 0x12b   : > { %1828 = vrot.lane.b32.xlu1 %v1787_v23, %s6358_s14  ;;  %1476 = vst [vmem:[#allocation2 + $0x100] sm:$0xff] %v1401_v24  ;;  %v1404_v27 = vadd.f32 %v6565_v54, %v1322_v25  ;;  %v1320_v28 = vmul.f32 %v6552_v48, %v1238_v26  ;;  %v1243_v50 = vmax.f32 %v1056_v41, 0.0  ;;  %v1048_v51 = vadd.f32 %v6538_v43, %v1047_v49  ;;  %v1790_v26 = vld [vmem:[#allocation3 + $0x32] sm:$0xff] }
 0x12c   : > { %v1549_v38 = vld [vmem:[#allocation2 + $0xf0] ss:$2 sm:$0xff]  ;;  %v1625_v39 = vld [vmem:[#allocation2 + $0xf1] ss:$2 sm:$0xff]  ;;  %v6100_v52 = vpop.f32.mrf.mxu0 }
 0x12d   : > { %1479 = vst [vmem:[#allocation2 + $0x118] sm:$0xff] %v1404_v27  ;;  %v1402_v32 = vadd.f32 %v6565_v54, %v1320_v28  ;;  %v6858_v42 = vmax.f32 %v1549_v38, %v1625_v39  ;;  %v1325_v53 = vmul.f32 %v6552_v48, %v1243_v50  ;;  %v1241_v55 = vmax.f32 %v1048_v51, 0.0  ;;  %v1941_v27 = vld [vmem:[#allocation3 + $0x2b] sm:$0xff]  ;;  %v1942_v51 = vld [vmem:[#allocation3 + $0x33] sm:$0xff] }
 0x12e   : > { %2324 = vrot.lane.b32.xlu0 %v2282_v29, %s6358_s14  ;;  %v1547_v33 = vld [vmem:[#allocation2 + $0xe0] ss:$2 sm:$0xff]  ;;  %v1623_v34 = vld [vmem:[#allocation2 + $0xe1] ss:$2 sm:$0xff]  ;;  %v1059_v56 = vadd.f32 %v6100_v52, %v6538_v43  ;;  %v1050_v58 = vpop.f32.mrf.mxu0 }
 0x12f   : > { %2474 = vrot.lane.b32.xlu1 %v2433_v31, %s6359_s15  ;;  %1477 = vst [vmem:[#allocation2 + $0x108] sm:$0xff] %v1402_v32  ;;  %v6855_v40 = vmax.f32 %v1547_v33, %v1623_v34  ;;  %1723 = vst [vmem:[#allocation3 + $0x80] sm:$0xff] %v6858_v42  ;;  %v1407_v60 = vadd.f32 %v6565_v54, %v1325_v53  ;;  %v1323_v36 = vmul.f32 %v6552_v48, %v1241_v55  ;;  %v2436_v34 = vld [vmem:[#allocation3 + $0x37] sm:$0xff]  ;;  %v2093_v52 = vld [vmem:[#allocation3 + $0x2c] sm:$0xff] }
 0x130   : > { %v1244_v61 = vmax.f32 %v1059_v56, 0.0  ;;  %v1051_v63 = vadd.f32 %v6538_v43, %v1050_v58  ;;  %v6103_v23 = vpop.f32.mrf.mxu0 }
 0x131   : > { %1722 = vst [vmem:[#allocation3 + $0x78] sm:$0xff] %v6855_v40  ;;  %1482 = vst [vmem:[#allocation2 + $0x130] sm:$0xff] %v1407_v60  ;;  %v1405_v3 = vadd.f32 %v6565_v54, %v1323_v36  ;;  %v1072_v28 = vadd.f32 %v6103_v23, %v6538_v43  ;;  %v2285_v60 = vld [vmem:[#allocation3 + $0x3e] sm:$0xff] }
 0x132   : > { %1830 = vrot.lane.b32.xlu0 %v1788_v46, %s6358_s14  ;;  %v1326_v5 = vmul.f32 %v6552_v48, %v1244_v61  ;;  %v1242_v6 = vmax.f32 %v1051_v63, 0.0  ;;  %v1063_v29 = vpop.f32.mrf.mxu0  ;;  %v1791_v36 = vld [vmem:[#allocation3 + $0x3a] sm:$0xff] }
 0x133   : > { %1980 = vrot.lane.b32.xlu1 %v1939_v47, %s6359_s15  ;;  %1480 = vst [vmem:[#allocation2 + $0x120] sm:$0xff] %v1405_v3  ;;  %v1247_v31 = vmax.f32 %v1072_v28, 0.0  ;;  %v1064_v32 = vadd.f32 %v6538_v43, %v1063_v29  ;;  %v2437_v61 = vld [vmem:[#allocation3 + $0x3f] sm:$0xff] }
 0x134   : > { %v1324_v9 = vmul.f32 %v6552_v48, %v1242_v6  ;;  %v1553_v18 = vld [vmem:[#allocation2 + $0x110] ss:$2 sm:$0xff]  ;;  %v1629_v19 = vld [vmem:[#allocation2 + $0x111] ss:$2 sm:$0xff]  ;;  %v6104_v33 = vpop.f32.mrf.mxu0 }
 0x135   : > { %v6891_v24 = vmax.f32 %v1553_v18, %v1629_v19  ;;  %v1329_v35 = vmul.f32 %v6552_v48, %v1247_v31  ;;  %v1245_v38 = vmax.f32 %v1064_v32, 0.0  ;;  %v1075_v39 = vadd.f32 %v6104_v33, %v6538_v43  ;;  %v2438_v18 = vld [vmem:[#allocation3 + $0x47] sm:$0xff]  ;;  %v2095_v33 = vld [vmem:[#allocation3 + $0x3c] sm:$0xff] }
 0x136   : > { %2476 = vrot.lane.b32.xlu0 %v2434_v57, %s6359_s15  ;;  %v1551_v0 = vld [vmem:[#allocation2 + $0x100] ss:$2 sm:$0xff]  ;;  %v1627_v1 = vld [vmem:[#allocation2 + $0x101] ss:$2 sm:$0xff]  ;;  %v1406_v10 = vadd.f32 %v6565_v54, %v1324_v9  ;;  %v1066_v41 = vpop.f32.mrf.mxu0 }
 0x137   : > { %2624 = vrot.lane.b32.xlu1 %v6676_v30, %s6357_s20  ;;  %v1686_v2 = vmax.f32 %v1551_v0, %v1627_v1  ;;  %v1408_v30 = vadd.f32 %v6565_v54, %v1326_v5  ;;  %1725 = vst [vmem:[#allocation3 + $0x90] sm:$0xff] %v6891_v24  ;;  %v1411_v46 = vadd.f32 %v6565_v54, %v1329_v35  ;;  %v1248_v49 = vmax.f32 %v1075_v39, 0.0  ;;  %v6914_v57 = vld [vmem:[%s8308_s3] ss:$0 sm:$0xff] }
 0x138   : > { %1481 = vst [vmem:[#allocation2 + $0x128] sm:$0xff] %v1406_v10  ;;  %v1327_v47 = vmul.f32 %v6552_v48, %v1245_v38  ;;  %v1067_v50 = vadd.f32 %v6538_v43, %v1066_v41  ;;  %v1944_v32 = vld [vmem:[#allocation3 + $0x43] sm:$0xff] }
 0x139   : > { %1724 = vst [vmem:[#allocation3 + $0x88] sm:$0xff] %v1686_v2  ;;  %1483 = vst [vmem:[#allocation2 + $0x138] sm:$0xff] %v1408_v30  ;;  %v1330_v55 = vmul.f32 %v6552_v48, %v1248_v49  ;;  %v2094_v48 = vld [vmem:[#allocation3 + $0x34] sm:$0xff]  ;;  %v6932_v2 = vld [vmem:[%s8307_s2] ss:$0 sm:$0xff] }
 0x13a   : > { %1982 = vrot.lane.b32.xlu0 %v1940_v7, %s6359_s15  ;;  %1486 = vst [vmem:[#allocation2 + $0x150] sm:$0xff] %v1411_v46  ;;  %v1409_v53 = vadd.f32 %v6565_v54, %v1327_v47  ;;  %v1246_v56 = vmax.f32 %v1067_v50, 0.0  ;;  %v1792_v7 = vld [vmem:[#allocation3 + $0x42] sm:$0xff]  ;;  %v2287_v50 = vld [vmem:[#allocation3 + $0x4e] sm:$0xff] }
 0x13b   : > { %2132 = vrot.lane.b32.xlu1 %v2091_v8, %s6357_s20  ;;  %v1943_v8 = vld [vmem:[#allocation3 + $0x3b] sm:$0xff]  ;;  %v2096_v49 = vld [vmem:[#allocation3 + $0x44] sm:$0xff] }
 0x13c   : > { %1484 = vst [vmem:[#allocation2 + $0x140] sm:$0xff] %v1409_v53  ;;  %v1328_v43 = vmul.f32 %v6914_v57, %v1246_v56  ;;  %v1793_v53 = vld [vmem:[#allocation3 + $0x4a] sm:$0xff] }
 0x13e   : > { %2892 = vrot.lane.b32.xlu0 %v6709_v4, %s6357_s20  ;;  %v1410_v58 = vadd.f32 %v6565_v54, %v1328_v43  ;;  %v2288_v43 = vld [vmem:[#allocation3 + $0x56] sm:$0xff] }
 0x13f   : > { %2894 = vrot.lane.b32.xlu1 %v6696_v59, %s6357_s20  ;;  %v1555_v59 = vld [vmem:[#allocation2 + $0x120] ss:$2 sm:$0xff]  ;;  %v1631_v20 = vld [vmem:[#allocation2 + $0x121] ss:$2 sm:$0xff] }
 0x140   : > { %v1688_v25 = vmax.f32 %v1555_v59, %v1631_v20  ;;  %1485 = vst [vmem:[#allocation2 + $0x148] sm:$0xff] %v1410_v58  ;;  %v1557_v63 = vld [vmem:[#allocation2 + $0x130] ss:$2 sm:$0xff]  ;;  %v1633_v0 = vld [vmem:[#allocation2 + $0x131] ss:$2 sm:$0xff]  ;;  %v2439_v58 = vld [vmem:[#allocation3 + $0x4f] sm:$0xff] }
 0x141   : > { %v6935_v5 = vmax.f32 %v1557_v63, %v1633_v0  ;;  %v6949_v59 = vld [vmem:[%s8309_s4] ss:$0 sm:$0xff] }
 0x142   : > { %2134 = vrot.lane.b32.xlu0 %v2092_v12, %s6357_s20  ;;  %1726 = vst [vmem:[#allocation3 + $0x98] sm:$0xff] %v1688_v25 }
 0x143   : > { %2326 = vrot.lane.b32.xlu1 %v2283_v13, %s6358_s14  ;;  %1727 = vst [vmem:[#allocation3 + $0xa0] sm:$0xff] %v6935_v5 }
 0x146   : > { %2634 = vrot.lane.b32.xlu0 %v6740_v37, %s6357_s20 }
 0x147   : > { %1832 = vrot.lane.b32.xlu1 %v1789_v15, %s6358_s14  ;;  %v1559_v1 = vld [vmem:[#allocation2 + $0x140] ss:$2 sm:$0xff]  ;;  %v1635_v6 = vld [vmem:[#allocation2 + $0x141] ss:$2 sm:$0xff] }
 0x148   : > { %v1690_v9 = vmax.f32 %v1559_v1, %v1635_v6 }
 0x14a   : > { %2328 = vrot.lane.b32.xlu0 %v2284_v17, %s6358_s14  ;;  %1728 = vst [vmem:[#allocation3 + $0xa8] sm:$0xff] %v1690_v9 }
 0x14b   : > { %2478 = vrot.lane.b32.xlu1 %v2435_v16, %s6359_s15 }
 0x14e   : > { %1834 = vrot.lane.b32.xlu0 %v1790_v26, %s6358_s14 }
 0x14f   : > { %1984 = vrot.lane.b32.xlu1 %v1941_v27, %s6359_s15 }
 0x152   : > { %2480 = vrot.lane.b32.xlu0 %v2436_v34, %s6359_s15 }
 0x153   : > { %2628 = vrot.lane.b32.xlu1 %v6709_v4, %s6357_s20  ;;  %v1412_v4 = vadd.f32 %v6565_v54, %v1330_v55  ;;  %v2286_v54 = vld [vmem:[#allocation3 + $0x46] sm:$0xff] }
 0x154   : > { %v2241_v55 = vld [vmem:[#allocation3 + $0xd] sm:$0xff] }
 0x155   : > { %1487 = vst [vmem:[#allocation2 + $0x158] sm:$0xff] %v1412_v4 }
 0x156   : > { %1986 = vrot.lane.b32.xlu0 %v1942_v51, %s6359_s15 }
 0x157   : > { %2136 = vrot.lane.b32.xlu1 %v2093_v52, %s6357_s20 }
 0x15a   : > { %2896 = vrot.lane.b32.xlu0 %v6750_v44, %s6357_s20 }
 0x15b   : > { %2898 = vrot.lane.b32.xlu1 %v6740_v37, %s6357_s20  ;;  %v6107_v37 = vpop.f32.mrf.mxu0 }
 0x15c   : > { %v1088_v3 = vadd.f32 %v6932_v2, %v6107_v37 }
 0x15d   : > { %v1079_v30 = vpop.f32.mrf.mxu0 }
 0x15e   : > { %2138 = vrot.lane.b32.xlu0 %v2094_v48, %s6357_s20  ;;  %v1251_v10 = vmax.f32 %v1088_v3, 0.0  ;;  %v1080_v12 = vadd.f32 %v6932_v2, %v1079_v30  ;;  %v1945_v30 = vld [vmem:[#allocation3 + $0x4b] sm:$0xff] }
 0x15f   : > { %2330 = vrot.lane.b32.xlu1 %v2285_v60, %s6358_s14  ;;  %v6108_v13 = vpop.f32.mrf.mxu0  ;;  %v1561_v60 = vld [vmem:[#allocation2 + $0x150] ss:$2 sm:$0xff] }
 0x160   : > { %v1333_v15 = vmul.f32 %v6914_v57, %v1251_v10  ;;  %v1249_v16 = vmax.f32 %v1080_v12, 0.0  ;;  %v1091_v17 = vadd.f32 %v6932_v2, %v6108_v13  ;;  %v1747_v12 = vld [vmem:[#allocation3 + $0x9] sm:$0xff] }
 0x161   : > { %v1082_v19 = vpop.f32.mrf.mxu0 }
 0x162   : > { %2638 = vrot.lane.b32.xlu0 %v6781_v11, %s6357_s20  ;;  %v1415_v20 = vadd.f32 %v6949_v59, %v1333_v15  ;;  %v1331_v23 = vmul.f32 %v6914_v57, %v1249_v16  ;;  %v1252_v25 = vmax.f32 %v1091_v17, 0.0  ;;  %v1083_v26 = vadd.f32 %v6932_v2, %v1082_v19  ;;  %v1746_v19 = vld [vmem:[#allocation3 + $0x1] sm:$0xff] }
 0x163   : > { %1836 = vrot.lane.b32.xlu1 %v1791_v36, %s6358_s14  ;;  %v6111_v48 = vpop.f32.mrf.mxu0  ;;  %v1637_v36 = vld [vmem:[#allocation2 + $0x151] ss:$2 sm:$0xff] }
 0x164   : > { %1490 = vst [vmem:[#allocation2 + $0x170] sm:$0xff] %v1415_v20  ;;  %v1413_v29 = vadd.f32 %v6949_v59, %v1331_v23  ;;  %v1250_v31 = vmax.f32 %v1083_v26, 0.0  ;;  %v1104_v0 = vadd.f32 %v6932_v2, %v6111_v48  ;;  %v6979_v1 = vmax.f32 %v1561_v60, %v1637_v36 }
 0x165   : > { %v1095_v9 = vpop.f32.mrf.mxu0 }
 0x166   : > { %2332 = vrot.lane.b32.xlu0 %v2286_v54, %s6358_s14  ;;  %1488 = vst [vmem:[#allocation2 + $0x160] sm:$0xff] %v1413_v29  ;;  %v1332_v35 = vmul.f32 %v6914_v57, %v1250_v31  ;;  %v1255_v13 = vmax.f32 %v1104_v0, 0.0  ;;  %v1096_v15 = vadd.f32 %v6932_v2, %v1095_v9  ;;  %1729 = vst [vmem:[#allocation3 + $0xb0] sm:$0xff] %v6979_v1  ;;  %v2289_v9 = vld [vmem:[#allocation3 + $0x5e] sm:$0xff] }
 0x167   : > { %2482 = vrot.lane.b32.xlu1 %v2437_v61, %s6359_s15  ;;  %v2240_v61 = vld [vmem:[#allocation3 + $0x5] sm:$0xff] }
 0x168   : > { %v1414_v41 = vadd.f32 %v6949_v59, %v1332_v35  ;;  %v1253_v26 = vmax.f32 %v1096_v15, 0.0 }
 0x16a   : > { %1838 = vrot.lane.b32.xlu0 %v1792_v7, %s6358_s14  ;;  %v6954_v27 = vpop.permute.xlu0 %2886  ;;  %v6956_v28 = vpop.permute.xlu1 %2622  ;;  %1489 = vst [vmem:[#allocation2 + $0x168] sm:$0xff] %v1414_v41  ;;  %v1335_v41 = vmul.f32 %v6914_v57, %v1253_v26 }
 0x16b   : > { %1988 = vrot.lane.b32.xlu1 %v1943_v8, %s6359_s15  ;;  %v1794_v8 = vld [vmem:[#allocation3 + $0x52] sm:$0xff] }
 0x16e   : > { %2484 = vrot.lane.b32.xlu0 %v2438_v18, %s6359_s15  ;;  %v6112_v18 = vpop.f32.mrf.mxu0 }
 0x16f   : > { %2632 = vrot.lane.b32.xlu1 %v6750_v44, %s6357_s20  ;;  %v1334_v44 = vmul.f32 %v6914_v57, %v1252_v25  ;;  %v1337_v25 = vmul.f32 %v6914_v57, %v1255_v13  ;;  %v1107_v29 = vadd.f32 %v6932_v2, %v6112_v18 }
 0x170   : > { %v1098_v35 = vpop.f32.mrf.mxu0 }
 0x171   : > { %v1416_v34 = vadd.f32 %v6949_v59, %v1334_v44  ;;  %v1563_v54 = vld [vmem:[#allocation2 + $0x160] ss:$2 sm:$0xff]  ;;  %v1639_v3 = vld [vmem:[#allocation2 + $0x161] ss:$2 sm:$0xff] }
 0x172   : > { %1990 = vrot.lane.b32.xlu0 %v1944_v32, %s6359_s15  ;;  %v1692_v10 = vmax.f32 %v1563_v54, %v1639_v3  ;;  %v2242_v54 = vld [vmem:[#allocation3 + $0x15] sm:$0xff] }
 0x173   : > { %2140 = vrot.lane.b32.xlu1 %v2095_v33, %s6357_s20  ;;  %1491 = vst [vmem:[#allocation2 + $0x178] sm:$0xff] %v1416_v34  ;;  %v2440_v34 = vld [vmem:[#allocation3 + $0x57] sm:$0xff] }
 0x174   : > { %v2317_v38 = vpop.permute.xlu0 %2316  ;;  %1730 = vst [vmem:[#allocation3 + $0xb8] sm:$0xff] %v1692_v10 }
 0x175   : > { %v1823_v39 = vpop.permute.xlu1 %1822  ;;  %v2392_v6 = vadd.f32 %v2317_v38, %v2240_v61  ;;  %v1419_v38 = vadd.f32 %v6949_v59, %v1337_v25  ;;  %v2290_v25 = vld [vmem:[#allocation3 + $0x66] sm:$0xff] }
 0x176   : > { %2900 = vrot.lane.b32.xlu0 %v6788_v62, %s6357_s20  ;;  %v1898_v44 = vadd.f32 %v1823_v39, %v1746_v19 }
 0x177   : > { %2902 = vrot.lane.b32.xlu1 %v6781_v11, %s6357_s20  ;;  %1494 = vst [vmem:[#allocation2 + $0x190] sm:$0xff] %v1419_v38 }
 0x178   : > { %v2319_v46 = vpop.permute.xlu0 %2318 }
 0x179   : > { %v2471_v47 = vpop.permute.xlu1 %2470  ;;  %v2393_v4 = vadd.f32 %v2319_v46, %v2241_v55  ;;  %v1256_v46 = vmax.f32 %v1107_v29, 0.0 }
 0x17a   : > { %2142 = vrot.lane.b32.xlu0 %v2096_v49, %s6357_s20 }
 0x17b   : > { %2334 = vrot.lane.b32.xlu1 %v2287_v50, %s6358_s14  ;;  %v6981_v7 = vadd.f32 %v2471_v47, %v2393_v4  ;;  %v1099_v47 = vadd.f32 %v6932_v2, %v1098_v35 }
 0x17c   : > { %v1825_v51 = vpop.permute.xlu0 %1824 }
 0x17d   : > { %v1975_v52 = vpop.permute.xlu1 %1974  ;;  %v1899_v16 = vadd.f32 %v1825_v51, %v1747_v12  ;;  %v2697_v31 = vadd.f32 %v6956_v28, %v6981_v7  ;;  %v1417_v51 = vadd.f32 %v6949_v59, %v1335_v41  ;;  %v1254_v55 = vmax.f32 %v1099_v47, 0.0  ;;  %v1796_v47 = vld [vmem:[#allocation3 + $0x62] sm:$0xff] }
 0x17e   : > { %2642 = vrot.lane.b32.xlu0 %v6812_v45, %s6357_s20  ;;  %v2050_v39 = vadd.f32 %v1975_v52, %v1898_v44  ;;  %v1565_v44 = vld [vmem:[#allocation2 + $0x170] ss:$2 sm:$0xff] }
 0x17f   : > { %1840 = vrot.lane.b32.xlu1 %v1793_v53, %s6358_s14  ;;  %v1338_v53 = vmul.f32 %v6914_v57, %v1256_v46  ;;  %1492 = vst [vmem:[#allocation2 + $0x180] sm:$0xff] %v1417_v51 }
 0x180   : > { %v2469_v56 = vpop.permute.xlu0 %2468 }
 0x181   : > { %v2129_v11 = vpop.permute.xlu1 %2128  ;;  %v2544_v17 = vadd.f32 %v2469_v56, %v2392_v6  ;;  %v1420_v52 = vadd.f32 %v6949_v59, %v1338_v53 }
 0x182   : > { %2336 = vrot.lane.b32.xlu0 %v2288_v43, %s6358_s14  ;;  %v2097_v43 = vld [vmem:[#allocation3 + $0x4c] sm:$0xff] }
 0x183   : > { %2486 = vrot.lane.b32.xlu1 %v2439_v58, %s6359_s15  ;;  %v1336_v58 = vmul.f32 %v6914_v57, %v1254_v55  ;;  %1495 = vst [vmem:[#allocation2 + $0x198] sm:$0xff] %v1420_v52 }
 0x184   : > { %v1977_v37 = vpop.permute.xlu0 %1976 }
 0x185   : > { %v6976_v63 = vpop.permute.xlu1 %2890  ;;  %v2051_v32 = vadd.f32 %v1977_v37, %v1899_v16  ;;  %v1748_v37 = vld [vmem:[#allocation3 + $0x11] sm:$0xff] }
 0x186   : > { %1842 = vrot.lane.b32.xlu0 %v1794_v8, %s6358_s14 }
 0x187   : > { %1992 = vrot.lane.b32.xlu1 %v1945_v30, %s6359_s15  ;;  %v2203_v56 = vadd.f32 %v2129_v11, %v2051_v32  ;;  %v1418_v11 = vadd.f32 %v6949_v59, %v1336_v58  ;;  %v2098_v30 = vld [vmem:[#allocation3 + $0x54] sm:$0xff] }
 0x188   : > { %v2621_v20 = vpop.permute.xlu0 %2620 }
 0x189   : > { %v2321_v23 = vpop.permute.xlu1 %2320  ;;  %v2696_v33 = vadd.f32 %v2621_v20, %v2544_v17  ;;  %1493 = vst [vmem:[#allocation2 + $0x188] sm:$0xff] %v1418_v11  ;;  %v1795_v17 = vld [vmem:[#allocation3 + $0x5a] sm:$0xff] }
 0x18a   : > { %2488 = vrot.lane.b32.xlu0 %v2440_v34, %s6359_s15  ;;  %v2394_v61 = vadd.f32 %v2321_v23, %v2242_v54  ;;  %v2442_v54 = vld [vmem:[#allocation3 + $0x67] sm:$0xff] }
 0x18b   : > { %2636 = vrot.lane.b32.xlu1 %v6788_v62, %s6357_s20  ;;  %v2735_v49 = vpack.c.bf16 %v2697_v31, %v2696_v33  ;;  %v1946_v62 = vld [vmem:[#allocation3 + $0x53] sm:$0xff] }
 0x18c   : > { %v2127_v50 = vpop.permute.xlu0 %2126  ;;  %v1641_v31 = vld [vmem:[#allocation2 + $0x171] ss:$2 sm:$0xff] }
 0x18d   : > { %v1827_v28 = vpop.permute.xlu1 %1826  ;;  %v2202_v4 = vadd.f32 %v2127_v50, %v2050_v39  ;;  %3479 = vmatprep.mubr.bf16.mxu0 %v2735_v49  ;;  %v7029_v41 = vmax.f32 %v1565_v44, %v1641_v31  ;;  %v1947_v39 = vld [vmem:[#allocation3 + $0x5b] sm:$0xff] }
 0x18e   : > { %1994 = vrot.lane.b32.xlu0 %v1946_v62, %s6359_s15  ;;  %v1900_v6 = vadd.f32 %v1827_v28, %v1748_v37  ;;  %v2243_v28 = vld [vmem:[#allocation3 + $0x1d] sm:$0xff] }
 0x18f   : > { %2144 = vrot.lane.b32.xlu1 %v2097_v43, %s6357_s20  ;;  %v2734_v48 = vpack.c.bf16 %v2203_v56, %v2202_v4  ;;  %1731 = vst [vmem:[#allocation3 + $0xc0] sm:$0xff] %v7029_v41 }
 0x190   : > { %v7003_v60 = vpop.permute.xlu0 %2626  ;;  %v1567_v32 = vld [vmem:[#allocation2 + $0x180] ss:$2 sm:$0xff]  ;;  %v1643_v46 = vld [vmem:[#allocation2 + $0x181] ss:$2 sm:$0xff] }
 0x191   : > { %v1979_v36 = vpop.permute.xlu1 %1978  ;;  %3480 = vmatmul.mubr.bf16.vlgmr.msra.gmra.mxu0 %v2734_v48  ;;  %v1694_v50 = vmax.f32 %v1567_v32, %v1643_v46 }
 0x192   : > { %2904 = vrot.lane.b32.xlu0 %v6819_v22, %s6357_s20  ;;  %v2052_v10 = vadd.f32 %v1979_v36, %v1900_v6 }
 0x193   : > { %2906 = vrot.lane.b32.xlu1 %v6812_v45, %s6357_s20  ;;  %v2962_v45 = vadd.f32 %v6954_v27, %v6981_v7  ;;  %v2441_v27 = vld [vmem:[#allocation3 + $0x5f] sm:$0xff]  ;;  %v6115_v7 = vpop.f32.mrf.mxu0  ;;  %1732 = vst [vmem:[#allocation3 + $0xc8] sm:$0xff] %v1694_v50 }
 0x194   : > { %v2473_v0 = vpop.permute.xlu0 %2472  ;;  %v1120_v26 = vadd.f32 %v6932_v2, %v6115_v7 }
 0x195   : > { %v2889_v3 = vpop.permute.xlu1 %2888  ;;  %v7010_v8 = vadd.f32 %v2473_v0, %v2394_v61  ;;  %v1111_v29 = vpop.f32.mrf.mxu0 }
 0x196   : > { %2146 = vrot.lane.b32.xlu0 %v2098_v30, %s6357_s20  ;;  %v1259_v35 = vmax.f32 %v1120_v26, 0.0  ;;  %v1112_v38 = vadd.f32 %v6932_v2, %v1111_v29 }
 0x197   : > { %2338 = vrot.lane.b32.xlu1 %v2289_v9, %s6358_s14  ;;  %v2963_v12 = vadd.f32 %v2889_v3, %v7010_v8  ;;  %v6116_v49 = vpop.f32.mrf.mxu0  ;;  %v1749_v3 = vld [vmem:[#allocation3 + $0x19] sm:$0xff] }
 0x198   : > { %v2131_v13 = vpop.permute.xlu0 %2130  ;;  %v1341_v51 = vmul.f32 %v6914_v57, %v1259_v35  ;;  %v1257_v53 = vmax.f32 %v1112_v38, 0.0  ;;  %v1123_v55 = vadd.f32 %v6932_v2, %v6116_v49 }
 0x199   : > { %v2323_v15 = vpop.permute.xlu1 %2322  ;;  %v7017_v16 = vadd.f32 %v2131_v13, %v2052_v10  ;;  %v3001_v18 = vpack.c.bf16 %v2963_v12, %v2962_v45  ;;  %v1114_v4 = vpop.f32.mrf.mxu0 }
 0x19a   : > { %2646 = vrot.lane.b32.xlu0 %v6836_v14, %s6357_s20  ;;  %v1423_v52 = vadd.f32 %v6949_v59, %v1341_v51  ;;  %v1339_v58 = vmul.f32 %v6914_v57, %v1257_v53  ;;  %v1260_v48 = vmax.f32 %v1123_v55, 0.0  ;;  %v1115_v36 = vadd.f32 %v6932_v2, %v1114_v4  ;;  %v2100_v55 = vld [vmem:[#allocation3 + $0x64] sm:$0xff] }
 0x19b   : > { %1844 = vrot.lane.b32.xlu1 %v1795_v17, %s6358_s14  ;;  %v3000_v19 = vpack.c.bf16 %v7017_v16, %v2203_v56  ;;  %3198 = vmatprep.mubr.bf16.mxu1 %v3001_v18  ;;  %v2395_v56 = vadd.f32 %v2323_v15, %v2243_v28  ;;  %v2099_v15 = vld [vmem:[#allocation3 + $0x5c] sm:$0xff]  ;;  %v6119_v17 = vpop.f32.mrf.mxu0 }
 0x19c   : > { %v7023_v20 = vpop.permute.xlu0 %2630  ;;  %1498 = vst [vmem:[#allocation2 + $0x1b0] sm:$0xff] %v1423_v52  ;;  %v1421_v61 = vadd.f32 %v6949_v59, %v1339_v58  ;;  %v1342_v37 = vmul.f32 %v6914_v57, %v1260_v48  ;;  %v1258_v0 = vmax.f32 %v1115_v36, 0.0 }
 0x19d   : > { %v1829_v23 = vpop.permute.xlu1 %1828  ;;  %3199 = vmatmul.mubr.bf16.vlgmr.msra.gmra.mxu1 %v3000_v19  ;;  %v1136_v19 = vadd.f32 %v6932_v2, %v6119_v17  ;;  %v1127_v7 = vpop.f32.mrf.mxu0 }
 0x19e   : > { %2340 = vrot.lane.b32.xlu0 %v2290_v25, %s6358_s14  ;;  %1496 = vst [vmem:[#allocation2 + $0x1a0] sm:$0xff] %v1421_v61  ;;  %v1424_v9 = vadd.f32 %v6949_v59, %v1342_v37  ;;  %v1340_v10 = vmul.f32 %v6914_v57, %v1258_v0  ;;  %v1901_v12 = vadd.f32 %v1829_v23, %v1749_v3  ;;  %v2244_v23 = vld [vmem:[#allocation3 + $0x25] sm:$0xff] }
 0x19f   : > { %2490 = vrot.lane.b32.xlu1 %v2441_v27, %s6359_s15  ;;  %v1128_v29 = vadd.f32 %v6932_v2, %v1127_v7  ;;  %v6120_v46 = vpop.f32.mrf.mxu0  ;;  %v1797_v0 = vld [vmem:[#allocation3 + $0x6a] sm:$0xff] }
 0x1a0   : > { %v2325_v33 = vpop.permute.xlu0 %2324  ;;  %1499 = vst [vmem:[#allocation2 + $0x1b8] sm:$0xff] %v1424_v9  ;;  %v1422_v18 = vadd.f32 %v6949_v59, %v1340_v10  ;;  %v1139_v28 = vadd.f32 %v6932_v2, %v6120_v46 }
 0x1a1   : > { %v2475_v34 = vpop.permute.xlu1 %2474  ;;  %v2396_v44 = vadd.f32 %v2325_v33, %v2244_v23 }
 0x1a2   : > { %1846 = vrot.lane.b32.xlu0 %v1796_v47, %s6358_s14  ;;  %v2547_v11 = vadd.f32 %v2475_v34, %v2395_v56  ;;  %1497 = vst [vmem:[#allocation2 + $0x1a8] sm:$0xff] %v1422_v18  ;;  %v1261_v34 = vmax.f32 %v1128_v29, 0.0  ;;  %v1750_v47 = vld [vmem:[#allocation3 + $0x21] sm:$0xff]  ;;  %v2291_v56 = vld [vmem:[#allocation3 + $0x6e] sm:$0xff] }
 0x1a3   : > { %1996 = vrot.lane.b32.xlu1 %v1947_v39, %s6359_s15 }
 0x1a4   : > { %v1831_v62 = vpop.permute.xlu0 %1830  ;;  %v2699_v45 = vadd.f32 %v7003_v60, %v2547_v11  ;;  %v1343_v50 = vmul.f32 %v6914_v57, %v1261_v34 }
 0x1a5   : > { %v1981_v43 = vpop.permute.xlu1 %1980  ;;  %v1902_v51 = vadd.f32 %v1831_v62, %v1750_v47 }
 0x1a6   : > { %2492 = vrot.lane.b32.xlu0 %v2442_v54, %s6359_s15  ;;  %v2053_v25 = vadd.f32 %v1981_v43, %v1901_v12  ;;  %v1425_v4 = vadd.f32 %v6949_v59, %v1343_v50  ;;  %v1264_v43 = vmax.f32 %v1139_v28, 0.0  ;;  %v1798_v28 = vld [vmem:[#allocation3 + $0x72] sm:$0xff] }
 0x1a7   : > { %2640 = vrot.lane.b32.xlu1 %v6819_v22, %s6357_s20  ;;  %v1948_v22 = vld [vmem:[#allocation3 + $0x63] sm:$0xff] }
 0x1a8   : > { %v2477_v6 = vpop.permute.xlu0 %2476  ;;  %1500 = vst [vmem:[#allocation2 + $0x1c0] sm:$0xff] %v1425_v4 }
 0x1a9   : > { %v2625_v30 = vpop.permute.xlu1 %2624  ;;  %v7058_v35 = vadd.f32 %v2477_v6, %v2396_v44  ;;  %v1647_v23 = vld [vmem:[#allocation2 + $0x1a1] ss:$2 sm:$0xff] }
 0x1aa   : > { %v2698_v13 = vadd.f32 %v2625_v30, %v7010_v8  ;;  %1998 = vrot.lane.b32.xlu0 %v1948_v22, %s6359_s15  ;;  %v1263_v8 = vmax.f32 %v1136_v19, 0.0  ;;  %v1645_v22 = vld [vmem:[#allocation2 + $0x191] ss:$2 sm:$0xff] }
 0x1ab   : > { %2148 = vrot.lane.b32.xlu1 %v2099_v15, %s6357_s20  ;;  %v1571_v15 = vld [vmem:[#allocation2 + $0x1a0] ss:$2 sm:$0xff] }
 0x1ac   : > { %v2737_v27 = vpack.c.bf16 %v2699_v45, %v2698_v13  ;;  %v1983_v26 = vpop.permute.xlu0 %1982  ;;  %v1345_v32 = vmul.f32 %v6914_v57, %v1263_v8  ;;  %v1569_v13 = vld [vmem:[#allocation2 + $0x190] ss:$2 sm:$0xff]  ;;  %v1696_v44 = vmax.f32 %v1571_v15, %v1647_v23 }
 0x1ad   : > { %v2133_v60 = vpop.permute.xlu1 %2132  ;;  %v2054_v58 = vadd.f32 %v1983_v26, %v1902_v51  ;;  %v2292_v26 = vld [vmem:[#allocation3 + $0x76] sm:$0xff]  ;;  %v1695_v29 = vmax.f32 %v1569_v13, %v1645_v22 }
 0x1ae   : > { %v2205_v31 = vadd.f32 %v2133_v60, %v2053_v25  ;;  %3487 = vmatprep.mubr.bf16.mxu0 %v2737_v27  ;;  %2908 = vrot.lane.b32.xlu0 %v6842_v21, %s6357_s20  ;;  %v1427_v33 = vadd.f32 %v6949_v59, %v1345_v32  ;;  %v2443_v60 = vld [vmem:[#allocation3 + $0x6f] sm:$0xff]  ;;  %1734 = vst [vmem:[#allocation3 + $0xd8] sm:$0xff] %v1696_v44 }
 0x1af   : > { %2910 = vrot.lane.b32.xlu1 %v6836_v14, %s6357_s20  ;;  %v2964_v14 = vadd.f32 %v6976_v63, %v2547_v11  ;;  %v1346_v11 = vmul.f32 %v6914_v57, %v1264_v43  ;;  %1733 = vst [vmem:[#allocation3 + $0xd0] sm:$0xff] %v1695_v29  ;;  %v2246_v29 = vld [vmem:[#allocation3 + $0x35] sm:$0xff] }
 0x1b0   : > { %v2736_v38 = vpack.c.bf16 %v2205_v31, %v7017_v16  ;;  %v2893_v39 = vpop.permute.xlu0 %2892  ;;  %v1130_v16 = vpop.f32.mrf.mxu0  ;;  %1502 = vst [vmem:[#allocation2 + $0x1d0] sm:$0xff] %v1427_v33 }
 0x1b1   : > { %v7061_v49 = vpop.permute.xlu1 %2894  ;;  %v2965_v53 = vadd.f32 %v2893_v39, %v7058_v35  ;;  %v1131_v52 = vadd.f32 %v6932_v2, %v1130_v16  ;;  %v1428_v6 = vadd.f32 %v6949_v59, %v1346_v11 }
 0x1b2   : > { %3488 = vmatmul.mubr.bf16.gmra.mxu0 %v2736_v38  ;;  %2150 = vrot.lane.b32.xlu0 %v2100_v55, %s6357_s20  ;;  %v6123_v63 = vpop.f32.mrf.mxu0 }
 0x1b3   : > { %2342 = vrot.lane.b32.xlu1 %v2291_v56, %s6358_s14  ;;  %v3003_v48 = vpack.c.bf16 %v2965_v53, %v2964_v14  ;;  %v1262_v54 = vmax.f32 %v1131_v52, 0.0  ;;  %v1152_v61 = vadd.f32 %v6932_v2, %v6123_v63  ;;  %1503 = vst [vmem:[#allocation2 + $0x1d8] sm:$0xff] %v1428_v6  ;;  %v1949_v14 = vld [vmem:[#allocation3 + $0x6b] sm:$0xff] }
 0x1b4   : > { %v2135_v62 = vpop.permute.xlu0 %2134  ;;  %v1143_v3 = vpop.f32.mrf.mxu0  ;;  %v2245_v53 = vld [vmem:[#allocation3 + $0x2d] sm:$0xff] }
 0x1b5   : > { %v2327_v36 = vpop.permute.xlu1 %2326  ;;  %v7074_v37 = vadd.f32 %v2135_v62, %v2054_v58  ;;  %3206 = vmatprep.mubr.bf16.mxu1 %v3003_v48  ;;  %v1344_v30 = vmul.f32 %v6914_v57, %v1262_v54  ;;  %v1267_v9 = vmax.f32 %v1152_v61, 0.0  ;;  %v1144_v10 = vadd.f32 %v6932_v2, %v1143_v3  ;;  %v2444_v54 = vld [vmem:[#allocation3 + $0x77] sm:$0xff] }
 0x1b6   : > { %2650 = vrot.lane.b32.xlu0 %v6858_v42, %s6357_s20  ;;  %v6124_v45 = vpop.f32.mrf.mxu0  ;;  %v2397_v4 = vadd.f32 %v2327_v36, %v2245_v53 }
 0x1b7   : > { %1848 = vrot.lane.b32.xlu1 %v1797_v0, %s6358_s14  ;;  %v3002_v12 = vpack.c.bf16 %v7074_v37, %v2205_v31  ;;  %v1426_v19 = vadd.f32 %v6949_v59, %v1344_v30  ;;  %v1349_v25 = vmul.f32 %v6914_v57, %v1267_v9  ;;  %v1265_v27 = vmax.f32 %v1144_v10, 0.0  ;;  %v1751_v30 = vld [vmem:[#allocation3 + $0x29] sm:$0xff] }
 0x1b8   : > { %v7083_v17 = vpop.permute.xlu0 %2634  ;;  %v1155_v7 = vadd.f32 %v6932_v2, %v6124_v45  ;;  %v1146_v8 = vpop.f32.mrf.mxu0 }
 0x1b9   : > { %v7085_v18 = vpop.permute.xlu1 %1832  ;;  %3207 = vmatmul.mubr.bf16.gmra.mxu1 %v3002_v12  ;;  %1501 = vst [vmem:[#allocation2 + $0x1c8] sm:$0xff] %v1426_v19  ;;  %v1431_v31 = vadd.f32 %v6949_v59, %v1349_v25  ;;  %v1347_v32 = vmul.f32 %v6914_v57, %v1265_v27  ;;  %v1147_v38 = vadd.f32 %v6932_v2, %v1146_v8  ;;  %v1950_v25 = vld [vmem:[#allocation3 + $0x73] sm:$0xff] }
 0x1ba   : > { %2344 = vrot.lane.b32.xlu0 %v2292_v26, %s6358_s14  ;;  %v1268_v34 = vmax.f32 %v1155_v7, 0.0  ;;  %v6127_v51 = vpop.f32.mrf.mxu0  ;;  %v1903_v15 = vadd.f32 %v7085_v18, %v1751_v30  ;;  %v2101_v27 = vld [vmem:[#allocation3 + $0x6c] sm:$0xff] }
 0x1bb   : > { %2494 = vrot.lane.b32.xlu1 %v2443_v60, %s6359_s15  ;;  %1506 = vst [vmem:[#allocation2 + $0x1f0] sm:$0xff] %v1431_v31  ;;  %v1429_v39 = vadd.f32 %v6949_v59, %v1347_v32  ;;  %v1266_v50 = vmax.f32 %v1147_v38, 0.0  ;;  %v1168_v16 = vadd.f32 %v6932_v2, %v6127_v51 }
 0x1bc   : > { %v2329_v46 = vpop.permute.xlu0 %2328  ;;  %v1350_v33 = vmul.f32 %v6914_v57, %v1268_v34  ;;  %v1159_v43 = vpop.f32.mrf.mxu0 }
 0x1bd   : > { %v2479_v47 = vpop.permute.xlu1 %2478  ;;  %1504 = vst [vmem:[#allocation2 + $0x1e0] sm:$0xff] %v1429_v39  ;;  %v1348_v56 = vmul.f32 %v6914_v57, %v1266_v50  ;;  %v1271_v63 = vmax.f32 %v1168_v16, 0.0  ;;  %v1160_v62 = vadd.f32 %v6932_v2, %v1159_v43  ;;  %v2398_v31 = vadd.f32 %v2329_v46, %v2246_v29  ;;  %v1752_v50 = vld [vmem:[#allocation3 + $0x31] sm:$0xff]  ;;  %v2293_v16 = vld [vmem:[#allocation3 + $0x7e] sm:$0xff]  ;;  %v2294_v29 = vld [vmem:[#allocation3 + $0x86] sm:$0xff] }
 0x1be   : > { %1850 = vrot.lane.b32.xlu0 %v1798_v28, %s6358_s14  ;;  %v1432_v55 = vadd.f32 %v6949_v59, %v1350_v33  ;;  %v2549_v11 = vadd.f32 %v2479_v47, %v2397_v4  ;;  %v6128_v61 = vpop.f32.mrf.mxu0 }
 0x1bf   : > { %2000 = vrot.lane.b32.xlu1 %v1949_v14, %s6359_s15  ;;  %v1430_v48 = vadd.f32 %v6949_v59, %v1348_v56  ;;  %v1353_v36 = vmul.f32 %v6914_v57, %v1271_v63  ;;  %v1269_v0 = vmax.f32 %v1160_v62, 0.0  ;;  %v1171_v3 = vadd.f32 %v6932_v2, %v6128_v61  ;;  %v2102_v56 = vld [vmem:[#allocation3 + $0x74] sm:$0xff] }
 0x1c0   : > { %v1835_v52 = vpop.permute.xlu0 %1834  ;;  %1507 = vst [vmem:[#allocation2 + $0x1f8] sm:$0xff] %v1432_v55  ;;  %v1162_v6 = vpop.f32.mrf.mxu0  ;;  %v1651_v30 = vld [vmem:[#allocation2 + $0x1c1] ss:$2 sm:$0xff] }
 0x1c1   : > { %v1985_v58 = vpop.permute.xlu1 %1984  ;;  %1505 = vst [vmem:[#allocation2 + $0x1e8] sm:$0xff] %v1430_v48  ;;  %v1435_v12 = vadd.f32 %v6949_v59, %v1353_v36  ;;  %v1351_v45 = vmul.f32 %v6914_v57, %v1269_v0  ;;  %v1272_v13 = vmax.f32 %v1171_v3, 0.0  ;;  %v1163_v22 = vadd.f32 %v6932_v2, %v1162_v6 }
 0x1c2   : > { %2496 = vrot.lane.b32.xlu0 %v2444_v54, %s6359_s15  ;;  %v2055_v60 = vadd.f32 %v1985_v58, %v1903_v15  ;;  %v6131_v34 = vpop.f32.mrf.mxu0  ;;  %v1904_v53 = vadd.f32 %v1835_v52, %v1752_v50  ;;  %v1649_v52 = vld [vmem:[#allocation2 + $0x1b1] ss:$2 sm:$0xff] }
 0x1c3   : > { %2644 = vrot.lane.b32.xlu1 %v6842_v21, %s6357_s20  ;;  %v2701_v21 = vadd.f32 %v7023_v20, %v2549_v11  ;;  %1510 = vst [vmem:[#allocation2 + $0x210] sm:$0xff] %v1435_v12  ;;  %v1433_v7 = vadd.f32 %v6949_v59, %v1351_v45  ;;  %v1354_v23 = vmul.f32 %v6914_v57, %v1272_v13  ;;  %v1270_v26 = vmax.f32 %v1163_v22, 0.0  ;;  %v1800_v50 = vld [vmem:[#allocation3 + $0x82] sm:$0xff] }
 0x1c4   : > { %v2481_v9 = vpop.permute.xlu0 %2480  ;;  %v1184_v47 = vadd.f32 %v6932_v2, %v6131_v34  ;;  %v1175_v33 = vpop.f32.mrf.mxu0 }
 0x1c5   : > { %v2629_v10 = vpop.permute.xlu1 %2628  ;;  %1508 = vst [vmem:[#allocation2 + $0x200] sm:$0xff] %v1433_v7  ;;  %v1436_v20 = vadd.f32 %v6949_v59, %v1354_v23  ;;  %v7129_v39 = vadd.f32 %v2481_v9, %v2398_v31  ;;  %v1176_v51 = vadd.f32 %v6932_v2, %v1175_v33 }
 0x1c6   : > { %v2700_v19 = vadd.f32 %v2629_v10, %v7058_v35  ;;  %2002 = vrot.lane.b32.xlu0 %v1950_v25, %s6359_s15  ;;  %v1352_v35 = vmul.f32 %v6914_v57, %v1270_v26  ;;  %v6132_v4 = vpop.f32.mrf.mxu0  ;;  %v1799_v10 = vld [vmem:[#allocation3 + $0x7a] sm:$0xff] }
 0x1c7   : > { %2152 = vrot.lane.b32.xlu1 %v2101_v27, %s6357_s20  ;;  %1511 = vst [vmem:[#allocation2 + $0x218] sm:$0xff] %v1436_v20  ;;  %v1273_v43 = vmax.f32 %v1176_v51, 0.0  ;;  %v1187_v58 = vadd.f32 %v6932_v2, %v6132_v4 }
 0x1c8   : > { %v2739_v8 = vpack.c.bf16 %v2701_v21, %v2700_v19  ;;  %v1987_v18 = vpop.permute.xlu0 %1986  ;;  %v1434_v38 = vadd.f32 %v6949_v59, %v1352_v35  ;;  %v1178_v62 = vpop.f32.mrf.mxu0 }
 0x1c9   : > { %v2137_v44 = vpop.permute.xlu1 %2136  ;;  %v2056_v48 = vadd.f32 %v1987_v18, %v1904_v53  ;;  %v1355_v0 = vmul.f32 %v6914_v57, %v1273_v43  ;;  %v1276_v3 = vmax.f32 %v1187_v58, 0.0  ;;  %v1179_v6 = vadd.f32 %v6932_v2, %v1178_v62  ;;  %v2445_v18 = vld [vmem:[#allocation3 + $0x7f] sm:$0xff] }
 0x1ca   : > { %v7121_v32 = vadd.f32 %v2137_v44, %v2055_v60  ;;  %3495 = vmatprep.mubr.bf16.mxu0 %v2739_v8  ;;  %2912 = vrot.lane.b32.xlu0 %v6855_v40, %s6357_s20  ;;  %1509 = vst [vmem:[#allocation2 + $0x208] sm:$0xff] %v1434_v38  ;;  %v1275_v40 = vmax.f32 %v1184_v47, 0.0  ;;  %v6135_v12 = vpop.f32.mrf.mxu0  ;;  %v1753_v58 = vld [vmem:[#allocation3 + $0x39] sm:$0xff] }
 0x1cb   : > { %2914 = vrot.lane.b32.xlu1 %v6858_v42, %s6357_s20  ;;  %v2966_v42 = vadd.f32 %v7061_v49, %v2549_v11  ;;  %v1573_v49 = vld [vmem:[#allocation2 + $0x1b0] ss:$2 sm:$0xff]  ;;  %v1575_v11 = vld [vmem:[#allocation2 + $0x1c0] ss:$2 sm:$0xff]  ;;  %v1437_v22 = vadd.f32 %v6949_v59, %v1355_v0  ;;  %v1358_v15 = vmul.f32 %v6914_v57, %v1276_v3  ;;  %v1274_v21 = vmax.f32 %v1179_v6, 0.0 }
 0x1cc   : > { %v2738_v46 = vpack.c.bf16 %v7121_v32, %v7074_v37  ;;  %v2897_v28 = vpop.permute.xlu0 %2896  ;;  %v1357_v37 = vmul.f32 %v6914_v57, %v1275_v40  ;;  %v7147_v45 = vmax.f32 %v1573_v49, %v1649_v52  ;;  %v1698_v13 = vmax.f32 %v1575_v11, %v1651_v30  ;;  %v1191_v27 = vpop.f32.mrf.mxu0  ;;  %v2247_v40 = vld [vmem:[#allocation3 + $0x3d] sm:$0xff]  ;;  %v6300_v30 = vld [vmem:[#allocation3 + $0x88] sm:$0xff] }
 0x1cd   : > { %v7133_v14 = vpop.permute.xlu1 %2898  ;;  %v2967_v55 = vadd.f32 %v2897_v28, %v7129_v39  ;;  %v1200_v19 = vadd.f32 %v6932_v2, %v6135_v12  ;;  %1512 = vst [vmem:[#allocation2 + $0x220] sm:$0xff] %v1437_v22  ;;  %v1440_v23 = vadd.f32 %v6949_v59, %v1358_v15  ;;  %v1356_v26 = vmul.f32 %v6914_v57, %v1274_v21  ;;  %v1951_v28 = vld [vmem:[#allocation3 + $0x7b] sm:$0xff]  ;;  %v1952_v11 = vld [vmem:[#allocation3 + $0x83] sm:$0xff] }
 0x1ce   : > { %3496 = vmatmul.mubr.bf16.gmra.mxu0 %v2738_v46  ;;  %2154 = vrot.lane.b32.xlu0 %v2102_v56, %s6357_s20  ;;  %v1439_v36 = vadd.f32 %v6949_v59, %v1357_v37  ;;  %1735 = vst [vmem:[#allocation3 + $0xe0] sm:$0xff] %v7147_v45  ;;  %1736 = vst [vmem:[#allocation3 + $0xe8] sm:$0xff] %v1698_v13  ;;  %v1192_v8 = vadd.f32 %v6932_v2, %v1191_v27  ;;  %v6136_v44 = vpop.f32.mrf.mxu0  ;;  %v2446_v37 = vld [vmem:[#allocation3 + $0x87] sm:$0xff] }
 0x1cf   : > { %2346 = vrot.lane.b32.xlu1 %v2293_v16, %s6358_s14  ;;  %v3005_v63 = vpack.c.bf16 %v2967_v55, %v2966_v42  ;;  %v1279_v60 = vmax.f32 %v1200_v19, 0.0  ;;  %1515 = vst [vmem:[#allocation2 + $0x238] sm:$0xff] %v1440_v23  ;;  %v1438_v20 = vadd.f32 %v6949_v59, %v1356_v26  ;;  %v1754_v12 = vld [vmem:[#allocation3 + $0x41] sm:$0xff]  ;;  %v2295_v27 = vld [vmem:[#allocation3 + $0x8e] sm:$0xff] }
 0x1d0   : > { %v2139_v54 = vpop.permute.xlu0 %2138  ;;  %1514 = vst [vmem:[#allocation2 + $0x230] sm:$0xff] %v1439_v36  ;;  %v1277_v31 = vmax.f32 %v1192_v8, 0.0  ;;  %v2248_v36 = vld [vmem:[#allocation3 + $0x45] sm:$0xff] }
 0x1d1   : > { %v2331_v61 = vpop.permute.xlu1 %2330  ;;  %v7145_v9 = vadd.f32 %v2139_v54, %v2056_v48  ;;  %3214 = vmatprep.mubr.bf16.mxu1 %v3005_v63  ;;  %v1361_v35 = vmul.f32 %v6914_v57, %v1279_v60  ;;  %1513 = vst [vmem:[#allocation2 + $0x228] sm:$0xff] %v1438_v20  ;;  %v1577_v26 = vld [vmem:[#allocation2 + $0x1d0] ss:$2 sm:$0xff]  ;;  %v1653_v60 = vld [vmem:[#allocation2 + $0x1d1] ss:$2 sm:$0xff]  ;;  %v1801_v20 = vld [vmem:[#allocation3 + $0x8a] sm:$0xff] }
 0x1d2   : > { %2654 = vrot.lane.b32.xlu0 %v6891_v24, %s6357_s20  ;;  %v1359_v46 = vmul.f32 %v6914_v57, %v1277_v31  ;;  %v2399_v53 = vadd.f32 %v2331_v61, %v2247_v40  ;;  %v1655_v44 = vld [vmem:[#allocation2 + $0x1e1] ss:$2 sm:$0xff] }
 0x1d3   : > { %1852 = vrot.lane.b32.xlu1 %v1799_v10, %s6358_s14  ;;  %v3004_v25 = vpack.c.bf16 %v7145_v9, %v7121_v32  ;;  %v1194_v32 = vpop.f32.mrf.mxu0  ;;  %v1443_v47 = vadd.f32 %v6949_v59, %v1361_v35 }
 0x1d4   : > { %v7158_v7 = vpop.permute.xlu0 %2638  ;;  %v1195_v33 = vadd.f32 %v6932_v2, %v1194_v32  ;;  %v1441_v51 = vadd.f32 %v6949_v59, %v1359_v46  ;;  %v6299_v2 = vld [vmem:[#allocation3 + $0x78] sm:$0xff] }
 0x1d5   : > { %v1837_v24 = vpop.permute.xlu1 %1836  ;;  %3215 = vmatmul.mubr.bf16.gmra.mxu1 %v3004_v25  ;;  %1518 = vst [vmem:[#allocation2 + $0x250] sm:$0xff] %v1443_v47  ;;  %v2104_v25 = vld [vmem:[#allocation3 + $0x84] sm:$0xff]  ;;  %v2447_v47 = vld [vmem:[#allocation3 + $0x8f] sm:$0xff] }
 0x1d6   : > { %2348 = vrot.lane.b32.xlu0 %v2294_v29, %s6358_s14  ;;  %v1278_v42 = vmax.f32 %v1195_v33, 0.0  ;;  %1516 = vst [vmem:[#allocation2 + $0x240] sm:$0xff] %v1441_v51  ;;  %v1905_v62 = vadd.f32 %v1837_v24, %v1753_v58  ;;  %v1954_v58 = vld [vmem:[#allocation3 + $0x93] sm:$0xff] }
 0x1d7   : > { %2498 = vrot.lane.b32.xlu1 %v2445_v18, %s6359_s15  ;;  %v7189_v18 = vmax.f32 %v1577_v26, %v1653_v60  ;;  %v1659_v26 = vld [vmem:[#allocation2 + $0x201] ss:$2 sm:$0xff] }
 0x1d8   : > { %v2333_v34 = vpop.permute.xlu0 %2332  ;;  %v1360_v16 = vmul.f32 %v6914_v57, %v1278_v42  ;;  %v2103_v57 = vld [vmem:[#allocation3 + $0x7c] sm:$0xff] }
 0x1d9   : > { %v2483_v38 = vpop.permute.xlu1 %2482  ;;  %v2400_v3 = vadd.f32 %v2333_v34, %v2248_v36  ;;  %1737 = vst [vmem:[#allocation3 + $0xf0] sm:$0xff] %v7189_v18  ;;  %v6303_v36 = vld [vmem:[#allocation3 + $0xa0] sm:$0xff] }
 0x1da   : > { %1854 = vrot.lane.b32.xlu0 %v1800_v50, %s6358_s14  ;;  %v2551_v4 = vadd.f32 %v2483_v38, %v2399_v53  ;;  %v1442_v43 = vadd.f32 %v6949_v59, %v1360_v16  ;;  %v2296_v38 = vld [vmem:[#allocation3 + $0x96] sm:$0xff] }
 0x1db   : > { %2004 = vrot.lane.b32.xlu1 %v1951_v28, %s6359_s15  ;;  %v1802_v50 = vld [vmem:[#allocation3 + $0x92] sm:$0xff] }
 0x1dc   : > { %v1839_v55 = vpop.permute.xlu0 %1838  ;;  %1517 = vst [vmem:[#allocation2 + $0x248] sm:$0xff] %v1442_v43  ;;  %v2703_v49 = vadd.f32 %v7083_v17, %v2551_v4  ;;  %v6301_v17 = vld [vmem:[#allocation3 + $0x90] sm:$0xff]  ;;  %v2968_v15 = vadd.f32 %v7133_v14, %v2551_v4 }
 0x1dd   : > { %v1989_v56 = vpop.permute.xlu1 %1988  ;;  %v1906_v21 = vadd.f32 %v1839_v55, %v1754_v12  ;;  %v2249_v28 = vld [vmem:[#allocation3 + $0x4d] sm:$0xff]  ;;  %v2448_v55 = vld [vmem:[#allocation3 + $0x97] sm:$0xff] }
 0x1de   : > { %2500 = vrot.lane.b32.xlu0 %v2446_v37, %s6359_s15  ;;  %v2057_v54 = vadd.f32 %v1989_v56, %v1905_v62  ;;  %v1755_v56 = vld [vmem:[#allocation3 + $0x49] sm:$0xff]  ;;  %v2297_v12 = vld [vmem:[#allocation3 + $0x9e] sm:$0xff] }
 0x1df   : > { %2648 = vrot.lane.b32.xlu1 %v6299_v2, %s6357_s20 }
 0x1e0   : > { %v2485_v48 = vpop.permute.xlu0 %2484 }
 0x1e1   : > { %v2633_v63 = vpop.permute.xlu1 %2632 }
 0x1e2   : > { %v2702_v52 = vadd.f32 %v2633_v63, %v7129_v39  ;;  %2006 = vrot.lane.b32.xlu0 %v1952_v11, %s6359_s15  ;;  %v2552_v39 = vadd.f32 %v2485_v48, %v2400_v3  ;;  %v2105_v48 = vld [vmem:[#allocation3 + $0x8c] sm:$0xff] }
 0x1e3   : > { %2156 = vrot.lane.b32.xlu1 %v2103_v57, %s6357_s20 }
 0x1e4   : > { %v2741_v61 = vpack.c.bf16 %v2703_v49, %v2702_v52  ;;  %v1991_v0 = vpop.permute.xlu0 %1990  ;;  %v2250_v49 = vld [vmem:[#allocation3 + $0x55] sm:$0xff] }
 0x1e5   : > { %v2141_v59 = vpop.permute.xlu1 %2140  ;;  %v2058_v24 = vadd.f32 %v1991_v0, %v1906_v21  ;;  %v1581_v21 = vld [vmem:[#allocation2 + $0x1f0] ss:$2 sm:$0xff] }
 0x1e6   : > { %v2209_v6 = vadd.f32 %v2141_v59, %v2057_v54  ;;  %3503 = vmatprep.mubr.bf16.mxu0 %v2741_v61  ;;  %2916 = vrot.lane.b32.xlu0 %v6300_v30, %s6357_s20  ;;  %v6302_v61 = vld [vmem:[#allocation3 + $0x98] sm:$0xff] }
 0x1e7   : > { %2918 = vrot.lane.b32.xlu1 %v6301_v17, %s6357_s20  ;;  %v1756_v59 = vld [vmem:[#allocation3 + $0x51] sm:$0xff] }
 0x1e8   : > { %v2740_v10 = vpack.c.bf16 %v2209_v6, %v7145_v9  ;;  %v2901_v13 = vpop.permute.xlu0 %2900  ;;  %v1579_v9 = vld [vmem:[#allocation2 + $0x1e0] ss:$2 sm:$0xff] }
 0x1e9   : > { %v7184_v22 = vpop.permute.xlu1 %2902  ;;  %v2969_v19 = vadd.f32 %v2901_v13, %v2552_v39  ;;  %v1700_v35 = vmax.f32 %v1579_v9, %v1655_v44 }
 0x1ea   : > { %3504 = vmatmul.mubr.bf16.gmra.mxu0 %v2740_v10  ;;  %2158 = vrot.lane.b32.xlu0 %v2104_v25, %s6357_s20  ;;  %v2106_v10 = vld [vmem:[#allocation3 + $0x94] sm:$0xff] }
 0x1eb   : > { %2350 = vrot.lane.b32.xlu1 %v2295_v27, %s6358_s14  ;;  %v3007_v23 = vpack.c.bf16 %v2969_v19, %v2968_v15  ;;  %1738 = vst [vmem:[#allocation3 + $0xf8] sm:$0xff] %v1700_v35  ;;  %v1657_v19 = vld [vmem:[#allocation2 + $0x1f1] ss:$2 sm:$0xff]  ;;  %v1583_v25 = vld [vmem:[#allocation2 + $0x200] ss:$2 sm:$0xff] }
 0x1ec   : > { %v2143_v8 = vpop.permute.xlu0 %2142  ;;  %v1702_v9 = vmax.f32 %v1583_v25, %v1659_v26  ;;  %v2300_v26 = vld [vmem:[#allocation3 + $0xb6] sm:$0xff] }
 0x1ed   : > { %v2335_v29 = vpop.permute.xlu1 %2334  ;;  %v2210_v14 = vadd.f32 %v2143_v8, %v2058_v24  ;;  %3222 = vmatprep.mubr.bf16.mxu1 %v3007_v23  ;;  %v1701_v23 = vmax.f32 %v1581_v21, %v1657_v19  ;;  %v1663_v21 = vld [vmem:[#allocation2 + $0x221] ss:$2 sm:$0xff] }
 0x1ee   : > { %2658 = vrot.lane.b32.xlu0 %v6935_v5, %s6357_s20  ;;  %v1953_v5 = vld [vmem:[#allocation3 + $0x8b] sm:$0xff]  ;;  %v2401_v40 = vadd.f32 %v2335_v29, %v2249_v28  ;;  %1740 = vst [vmem:[#allocation3 + $0x108] sm:$0xff] %v1702_v9  ;;  %v1757_v28 = vld [vmem:[#allocation3 + $0x59] sm:$0xff] }
 0x1ef   : > { %1856 = vrot.lane.b32.xlu1 %v1801_v20, %s6358_s14  ;;  %v3006_v31 = vpack.c.bf16 %v2210_v14, %v2209_v6  ;;  %1739 = vst [vmem:[#allocation3 + $0x100] sm:$0xff] %v1701_v23  ;;  %v2449_v20 = vld [vmem:[#allocation3 + $0x9f] sm:$0xff] }
 0x1f0   : > { %v7195_v32 = vpop.permute.xlu0 %2642 }
 0x1f1   : > { %v1841_v34 = vpop.permute.xlu1 %1840  ;;  %3223 = vmatmul.mubr.bf16.gmra.mxu1 %v3006_v31 }
 0x1f2   : > { %2352 = vrot.lane.b32.xlu0 %v2296_v38, %s6358_s14  ;;  %v1907_v37 = vadd.f32 %v1841_v34, %v1755_v56  ;;  %v1804_v34 = vld [vmem:[#allocation3 + $0xa2] sm:$0xff] }
 0x1f3   : > { %2502 = vrot.lane.b32.xlu1 %v2447_v47, %s6359_s15  ;;  %v1955_v38 = vld [vmem:[#allocation3 + $0x9b] sm:$0xff]  ;;  %v1956_v56 = vld [vmem:[#allocation3 + $0xa3] sm:$0xff] }
 0x1f4   : > { %v2337_v46 = vpop.permute.xlu0 %2336 }
 0x1f5   : > { %v2487_v33 = vpop.permute.xlu1 %2486  ;;  %v2402_v57 = vadd.f32 %v2337_v46, %v2250_v49  ;;  %v6305_v49 = vld [vmem:[#allocation3 + $0xb0] sm:$0xff] }
 0x1f6   : > { %1858 = vrot.lane.b32.xlu0 %v1802_v50, %s6358_s14  ;;  %v2553_v53 = vadd.f32 %v2487_v33, %v2401_v40 }
 0x1f7   : > { %2008 = vrot.lane.b32.xlu1 %v1953_v5, %s6359_s15  ;;  %v2450_v5 = vld [vmem:[#allocation3 + $0xa7] sm:$0xff] }
 0x1f8   : > { %v1843_v51 = vpop.permute.xlu0 %1842  ;;  %v2705_v2 = vadd.f32 %v7158_v7, %v2553_v53 }
 0x1f9   : > { %v1993_v42 = vpop.permute.xlu1 %1992  ;;  %v1908_v17 = vadd.f32 %v1843_v51, %v1756_v59  ;;  %v2299_v59 = vld [vmem:[#allocation3 + $0xae] sm:$0xff] }
 0x1fa   : > { %2504 = vrot.lane.b32.xlu0 %v2448_v55, %s6359_s15  ;;  %v2059_v63 = vadd.f32 %v1993_v42, %v1907_v37 }
 0x1fb   : > { %2652 = vrot.lane.b32.xlu1 %v6300_v30, %s6357_s20  ;;  %v2970_v30 = vadd.f32 %v7184_v22, %v2553_v53  ;;  %v1803_v22 = vld [vmem:[#allocation3 + $0x9a] sm:$0xff] }
 0x1fc   : > { %v2489_v16 = vpop.permute.xlu0 %2488 }
 0x1fd   : > { %v2637_v4 = vpop.permute.xlu1 %2636  ;;  %v2554_v7 = vadd.f32 %v2489_v16, %v2402_v57  ;;  %v2107_v16 = vld [vmem:[#allocation3 + $0x9c] sm:$0xff] }
 0x1fe   : > { %v2704_v43 = vadd.f32 %v2637_v4, %v2552_v39  ;;  %2010 = vrot.lane.b32.xlu0 %v1954_v58, %s6359_s15 }
 0x1ff   : > { %2160 = vrot.lane.b32.xlu1 %v2105_v48, %s6357_s20 }
 0x200   : > { %v2743_v62 = vpack.c.bf16 %v2705_v2, %v2704_v43  ;;  %v1995_v52 = vpop.permute.xlu0 %1994  ;;  %v2252_v2 = vld [vmem:[#allocation3 + $0x65] sm:$0xff] }
 0x201   : > { %v2145_v11 = vpop.permute.xlu1 %2144  ;;  %v2060_v13 = vadd.f32 %v1995_v52, %v1908_v17  ;;  %v1585_v17 = vld [vmem:[#allocation2 + $0x210] ss:$2 sm:$0xff] }
 0x202   : > { %v2211_v54 = vadd.f32 %v2145_v11, %v2059_v63  ;;  %3511 = vmatprep.mubr.bf16.mxu0 %v2743_v62  ;;  %2920 = vrot.lane.b32.xlu0 %v6302_v61, %s6357_s20  ;;  %v6304_v62 = vld [vmem:[#allocation3 + $0xa8] sm:$0xff] }
 0x203   : > { %2922 = vrot.lane.b32.xlu1 %v6303_v36, %s6357_s20  ;;  %v1758_v11 = vld [vmem:[#allocation3 + $0x61] sm:$0xff] }
 0x204   : > { %v2742_v0 = vpack.c.bf16 %v2211_v54, %v2210_v14  ;;  %v2905_v3 = vpop.permute.xlu0 %2904  ;;  %v2298_v14 = vld [vmem:[#allocation3 + $0xa6] sm:$0xff] }
 0x205   : > { %v7208_v6 = vpop.permute.xlu1 %2906  ;;  %v2971_v39 = vadd.f32 %v2905_v3, %v2554_v7 }
 0x206   : > { %3512 = vmatmul.mubr.bf16.gmra.mxu0 %v2742_v0  ;;  %2162 = vrot.lane.b32.xlu0 %v2106_v10, %s6357_s20  ;;  %v2108_v0 = vld [vmem:[#allocation3 + $0xa4] sm:$0xff] }
 0x207   : > { %2354 = vrot.lane.b32.xlu1 %v2297_v12, %s6358_s14  ;;  %v3009_v15 = vpack.c.bf16 %v2971_v39, %v2970_v30  ;;  %v1661_v39 = vld [vmem:[#allocation2 + $0x211] ss:$2 sm:$0xff]  ;;  %v1587_v10 = vld [vmem:[#allocation2 + $0x220] ss:$2 sm:$0xff] }
 0x208   : > { %v2147_v27 = vpop.permute.xlu0 %2146  ;;  %v1704_v25 = vmax.f32 %v1587_v10, %v1663_v21  ;;  %v1808_v21 = vld [vmem:[#allocation3 + $0xc2] sm:$0xff] }
 0x209   : > { %v2339_v24 = vpop.permute.xlu1 %2338  ;;  %v2212_v60 = vadd.f32 %v2147_v27, %v2060_v13  ;;  %3230 = vmatprep.mubr.bf16.mxu1 %v3009_v15  ;;  %v1703_v15 = vmax.f32 %v1585_v17, %v1661_v39  ;;  %v2453_v39 = vld [vmem:[#allocation3 + $0xbf] sm:$0xff] }
 0x20a   : > { %2662 = vrot.lane.b32.xlu0 %v6979_v1, %s6357_s20  ;;  %v2251_v1 = vld [vmem:[#allocation3 + $0x5d] sm:$0xff]  ;;  %1742 = vst [vmem:[#allocation3 + $0x118] sm:$0xff] %v1704_v25 }
 0x20b   : > { %1860 = vrot.lane.b32.xlu1 %v1803_v22, %s6358_s14  ;;  %v3008_v8 = vpack.c.bf16 %v2212_v60, %v2211_v54  ;;  %v2403_v47 = vadd.f32 %v2339_v24, %v2251_v1  ;;  %1741 = vst [vmem:[#allocation3 + $0x110] sm:$0xff] %v1703_v15 }
 0x20c   : > { %v7216_v29 = vpop.permute.xlu0 %2646 }
 0x20d   : > { %v1845_v44 = vpop.permute.xlu1 %1844  ;;  %3231 = vmatmul.mubr.bf16.gmra.mxu1 %v3008_v8  ;;  %v1806_v8 = vld [vmem:[#allocation3 + $0xb2] sm:$0xff] }
 0x20e   : > { %2356 = vrot.lane.b32.xlu0 %v2298_v14, %s6358_s14  ;;  %v1909_v42 = vadd.f32 %v1845_v44, %v1757_v28  ;;  %v1957_v44 = vld [vmem:[#allocation3 + $0xab] sm:$0xff] }
 0x20f   : > { %2506 = vrot.lane.b32.xlu1 %v2449_v20, %s6359_s15  ;;  %v2109_v28 = vld [vmem:[#allocation3 + $0xac] sm:$0xff] }
 0x210   : > { %v2341_v35 = vpop.permute.xlu0 %2340 }
 0x211   : > { %v2491_v31 = vpop.permute.xlu1 %2490  ;;  %v2404_v48 = vadd.f32 %v2341_v35, %v2252_v2 }
 0x212   : > { %1862 = vrot.lane.b32.xlu0 %v1804_v34, %s6358_s14  ;;  %v2555_v50 = vadd.f32 %v2491_v31, %v2403_v47  ;;  %v2452_v34 = vld [vmem:[#allocation3 + $0xb7] sm:$0xff] }
 0x213   : > { %2012 = vrot.lane.b32.xlu1 %v1955_v38, %s6359_s15  ;;  %v1759_v38 = vld [vmem:[#allocation3 + $0x69] sm:$0xff] }
 0x214   : > { %v1847_v46 = vpop.permute.xlu0 %1846  ;;  %v2707_v53 = vadd.f32 %v7195_v32, %v2555_v50 }
 0x215   : > { %v1997_v33 = vpop.permute.xlu1 %1996  ;;  %v1910_v36 = vadd.f32 %v1847_v46, %v1758_v11 }
 0x216   : > { %2508 = vrot.lane.b32.xlu0 %v2450_v5, %s6359_s15  ;;  %v2061_v4 = vadd.f32 %v1997_v33, %v1909_v42  ;;  %v1958_v5 = vld [vmem:[#allocation3 + $0xb3] sm:$0xff] }
 0x217   : > { %2656 = vrot.lane.b32.xlu1 %v6302_v61, %s6357_s20  ;;  %v2972_v61 = vadd.f32 %v7208_v6, %v2555_v50  ;;  %v1805_v6 = vld [vmem:[#allocation3 + $0xaa] sm:$0xff]  ;;  %v2254_v42 = vld [vmem:[#allocation3 + $0x75] sm:$0xff] }
 0x218   : > { %v2493_v40 = vpop.permute.xlu0 %2492 }
 0x219   : > { %v2641_v51 = vpop.permute.xlu1 %2640  ;;  %v2556_v32 = vadd.f32 %v2493_v40, %v2404_v48 }
 0x21a   : > { %v2706_v55 = vadd.f32 %v2641_v51, %v2554_v7  ;;  %2014 = vrot.lane.b32.xlu0 %v1956_v56, %s6359_s15 }
 0x21b   : > { %2164 = vrot.lane.b32.xlu1 %v2107_v16, %s6357_s20 }
 0x21c   : > { %v2745_v37 = vpack.c.bf16 %v2707_v53, %v2706_v55  ;;  %v1999_v43 = vpop.permute.xlu0 %1998 }
 0x21d   : > { %v2149_v58 = vpop.permute.xlu1 %2148  ;;  %v2062_v3 = vadd.f32 %v1999_v43, %v1910_v36  ;;  %v1760_v43 = vld [vmem:[#allocation3 + $0x71] sm:$0xff]  ;;  %v1665_v36 = vld [vmem:[#allocation2 + $0x231] ss:$2 sm:$0xff] }
 0x21e   : > { %v2213_v63 = vadd.f32 %v2149_v58, %v2061_v4  ;;  %3519 = vmatprep.mubr.bf16.mxu0 %v2745_v37  ;;  %2924 = vrot.lane.b32.xlu0 %v6304_v62, %s6357_s20  ;;  %v2301_v4 = vld [vmem:[#allocation3 + $0xbe] sm:$0xff] }
 0x21f   : > { %2926 = vrot.lane.b32.xlu1 %v6305_v49, %s6357_s20  ;;  %v6306_v37 = vld [vmem:[#allocation3 + $0xb8] sm:$0xff] }
 0x220   : > { %v2744_v52 = vpack.c.bf16 %v2213_v63, %v2212_v60  ;;  %v2909_v57 = vpop.permute.xlu0 %2908  ;;  %v2451_v60 = vld [vmem:[#allocation3 + $0xaf] sm:$0xff] }
 0x221   : > { %v7229_v54 = vpop.permute.xlu1 %2910  ;;  %v2973_v7 = vadd.f32 %v2909_v57, %v2556_v32 }
 0x222   : > { %3520 = vmatmul.mubr.bf16.gmra.mxu0 %v2744_v52  ;;  %2166 = vrot.lane.b32.xlu0 %v2108_v0, %s6357_s20  ;;  %v1807_v52 = vld [vmem:[#allocation3 + $0xba] sm:$0xff] }
 0x223   : > { %2358 = vrot.lane.b32.xlu1 %v2299_v59, %s6358_s14  ;;  %v3011_v30 = vpack.c.bf16 %v2973_v7, %v2972_v61  ;;  %v1589_v61 = vld [vmem:[#allocation2 + $0x230] ss:$2 sm:$0xff]  ;;  %v1591_v7 = vld [vmem:[#allocation2 + $0x240] ss:$2 sm:$0xff] }
 0x224   : > { %v2151_v12 = vpop.permute.xlu0 %2150 }
 0x225   : > { %v2343_v13 = vpop.permute.xlu1 %2342  ;;  %v2214_v19 = vadd.f32 %v2151_v12, %v2062_v3  ;;  %3238 = vmatprep.mubr.bf16.mxu1 %v3011_v30  ;;  %v1705_v3 = vmax.f32 %v1589_v61, %v1665_v36  ;;  %v1667_v30 = vld [vmem:[#allocation2 + $0x241] ss:$2 sm:$0xff] }
 0x226   : > { %2666 = vrot.lane.b32.xlu0 %v7029_v41, %s6357_s20  ;;  %v2253_v41 = vld [vmem:[#allocation3 + $0x6d] sm:$0xff]  ;;  %v1706_v10 = vmax.f32 %v1591_v7, %v1667_v30 }
 0x227   : > { %1864 = vrot.lane.b32.xlu1 %v1805_v6, %s6358_s14  ;;  %v3010_v27 = vpack.c.bf16 %v2214_v19, %v2213_v63  ;;  %v2405_v14 = vadd.f32 %v2343_v13, %v2253_v41  ;;  %1743 = vst [vmem:[#allocation3 + $0x120] sm:$0xff] %v1705_v3  ;;  %v1761_v41 = vld [vmem:[#allocation3 + $0x79] sm:$0xff]  ;;  %v2455_v30 = vld [vmem:[#allocation3 + $0xcf] sm:$0xff] }
 0x228   : > { %v7237_v24 = vpop.permute.xlu0 %2650  ;;  %1744 = vst [vmem:[#allocation3 + $0x128] sm:$0xff] %v1706_v10  ;;  %v1810_v3 = vld [vmem:[#allocation3 + $0xd2] sm:$0xff] }
 0x229   : > { %v1849_v23 = vpop.permute.xlu1 %1848  ;;  %3239 = vmatmul.mubr.bf16.gmra.mxu1 %v3010_v27  ;;  %v2454_v27 = vld [vmem:[#allocation3 + $0xc7] sm:$0xff] }
 0x22a   : > { %2360 = vrot.lane.b32.xlu0 %v2300_v26, %s6358_s14  ;;  %v1911_v46 = vadd.f32 %v1849_v23, %v1759_v38  ;;  %v2255_v23 = vld [vmem:[#allocation3 + $0x7d] sm:$0xff] }
 0x22b   : > { %2510 = vrot.lane.b32.xlu1 %v2451_v60, %s6359_s15 }
 0x22c   : > { %v2345_v22 = vpop.permute.xlu0 %2344 }
 0x22d   : > { %v2495_v9 = vpop.permute.xlu1 %2494  ;;  %v2406_v56 = vadd.f32 %v2345_v22, %v2254_v42 }
 0x22e   : > { %1866 = vrot.lane.b32.xlu0 %v1806_v8, %s6358_s14  ;;  %v2557_v31 = vadd.f32 %v2495_v9, %v2405_v14  ;;  %v1960_v8 = vld [vmem:[#allocation3 + $0xc3] sm:$0xff] }
 0x22f   : > { %2016 = vrot.lane.b32.xlu1 %v1957_v44, %s6359_s15  ;;  %v6307_v44 = vld [vmem:[#allocation3 + $0xc0] sm:$0xff] }
 0x230   : > { %v1851_v20 = vpop.permute.xlu0 %1850  ;;  %v2709_v33 = vadd.f32 %v7216_v29, %v2557_v31  ;;  %v2974_v63 = vadd.f32 %v7229_v54, %v2557_v31  ;;  %v2302_v54 = vld [vmem:[#allocation3 + $0xc6] sm:$0xff] }
 0x231   : > { %v2001_v35 = vpop.permute.xlu1 %2000 }
 0x232   : > { %2512 = vrot.lane.b32.xlu0 %v2452_v34, %s6359_s15  ;;  %v2063_v40 = vadd.f32 %v2001_v35, %v1911_v46 }
 0x233   : > { %2660 = vrot.lane.b32.xlu1 %v6304_v62, %s6357_s20  ;;  %v1912_v62 = vadd.f32 %v1851_v20, %v1760_v43 }
 0x234   : > { %v2497_v1 = vpop.permute.xlu0 %2496 }
 0x235   : > { %v2645_v47 = vpop.permute.xlu1 %2644  ;;  %v2558_v29 = vadd.f32 %v2497_v1, %v2406_v56  ;;  %v2111_v1 = vld [vmem:[#allocation3 + $0xbc] sm:$0xff] }
 0x236   : > { %v2708_v50 = vadd.f32 %v2645_v47, %v2556_v32  ;;  %2018 = vrot.lane.b32.xlu0 %v1958_v5, %s6359_s15  ;;  %v2110_v32 = vld [vmem:[#allocation3 + $0xb4] sm:$0xff]  ;;  %v7269_v47 = vld [vmem:[#allocation3 + $0xc8] sm:$0xff] }
 0x237   : > { %2168 = vrot.lane.b32.xlu1 %v2109_v28, %s6357_s20  ;;  %v2256_v5 = vld [vmem:[#allocation3 + $0x85] sm:$0xff] }
 0x238   : > { %v2747_v51 = vpack.c.bf16 %v2709_v33, %v2708_v50  ;;  %v2003_v53 = vpop.permute.xlu0 %2002 }
 0x239   : > { %v2153_v55 = vpop.permute.xlu1 %2152  ;;  %v2064_v11 = vadd.f32 %v2003_v53, %v1912_v62  ;;  %v2304_v62 = vld [vmem:[#allocation3 + $0xd6] sm:$0xff] }
 0x23a   : > { %v2215_v16 = vadd.f32 %v2153_v55, %v2063_v40  ;;  %3527 = vmatprep.mubr.bf16.mxu0 %v2747_v51  ;;  %2928 = vrot.lane.b32.xlu0 %v6306_v37, %s6357_s20  ;;  %v2303_v55 = vld [vmem:[#allocation3 + $0xce] sm:$0xff] }
 0x23b   : > { %2362 = vrot.lane.b32.xlu1 %v2301_v4, %s6358_s14 }
 0x23c   : > { %v2746_v2 = vpack.c.bf16 %v2215_v16, %v2214_v19  ;;  %v2913_v58 = vpop.permute.xlu0 %2912  ;;  %v1959_v19 = vld [vmem:[#allocation3 + $0xbb] sm:$0xff] }
 0x23d   : > { %v7250_v48 = vpop.permute.xlu1 %2914  ;;  %v2975_v49 = vadd.f32 %v2913_v58, %v2558_v29 }
 0x23e   : > { %3528 = vmatmul.mubr.bf16.gmra.mxu0 %v2746_v2  ;;  %2170 = vrot.lane.b32.xlu0 %v2110_v32, %s6357_s20 }
 0x23f   : > { %1868 = vrot.lane.b32.xlu1 %v1807_v52, %s6358_s14  ;;  %v3013_v57 = vpack.c.bf16 %v2975_v49, %v2974_v63  ;;  %v1809_v49 = vld [vmem:[#allocation3 + $0xca] sm:$0xff] }
 0x240   : > { %v2155_v0 = vpop.permute.xlu0 %2154 }
 0x241   : > { %v2347_v59 = vpop.permute.xlu1 %2346  ;;  %v7255_v17 = vadd.f32 %v2155_v0, %v2064_v11  ;;  %3246 = vmatprep.mubr.bf16.mxu1 %v3013_v57  ;;  %v1593_v11 = vld [vmem:[#allocation2 + $0x250] ss:$2 sm:$0xf]  ;;  %v1669_v57 = vld [vmem:[#allocation2 + $0x251] ss:$2 sm:$0xf] }
 0x242   : > { %2364 = vrot.lane.b32.xlu0 %v2302_v54, %s6358_s14  ;;  %v2407_v26 = vadd.f32 %v2347_v59, %v2255_v23  ;;  %v1707_v7 = vmax.f32 %v1593_v11, %v1669_v57  ;;  %v7290_v59 = vld [vmem:[%s8311_s6] ss:$0 sm:$0xff]  ;;  %v1764_v57 = vld [vmem:[#allocation3 + $0x91] sm:$0xff] }
 0x243   : > { %2514 = vrot.lane.b32.xlu1 %v2453_v39, %s6359_s15  ;;  %v3012_v12 = vpack.c.bf16 %v7255_v17, %v2215_v16 }
 0x244   : > { %v7260_v13 = vpop.permute.xlu0 %2654  ;;  %1745 = vst [vmem:[#allocation3 + $0x130] sm:$0xf] %v1707_v7 }
 0x245   : > { %v1853_v15 = vpop.permute.xlu1 %1852  ;;  %3247 = vmatmul.mubr.bf16.gmra.mxu1 %v3012_v12 }
 0x246   : > { %1870 = vrot.lane.b32.xlu0 %v1808_v21, %s6358_s14  ;;  %v1913_v35 = vadd.f32 %v1853_v15, %v1761_v41  ;;  %v7301_v21 = vld [vmem:[%s8312_s7] ss:$0 sm:$0xff]  ;;  %v1962_v41 = vld [vmem:[#allocation3 + $0xd3] sm:$0xff] }
 0x247   : > { %2020 = vrot.lane.b32.xlu1 %v1959_v19, %s6359_s15 }
 0x248   : > { %v2349_v6 = vpop.permute.xlu0 %2348 }
 0x249   : > { %v2499_v25 = vpop.permute.xlu1 %2498  ;;  %v2408_v51 = vadd.f32 %v2349_v6, %v2256_v5  ;;  %v2456_v6 = vld [vmem:[#allocation3 + $0xd7] sm:$0xff]  ;;  %v1763_v5 = vld [vmem:[#allocation3 + $0x89] sm:$0xff] }
 0x24a   : > { %2516 = vrot.lane.b32.xlu0 %v2454_v27, %s6359_s15  ;;  %v2559_v9 = vadd.f32 %v2499_v25, %v2407_v26  ;;  %v1961_v25 = vld [vmem:[#allocation3 + $0xcb] sm:$0xff]  ;;  %v7308_v26 = vld [vmem:[%s8313_s8] ss:$0 sm:$0xff] }
 0x24b   : > { %2664 = vrot.lane.b32.xlu1 %v6306_v37, %s6357_s20  ;;  %v1762_v37 = vld [vmem:[#allocation3 + $0x81] sm:$0xff] }
 0x24c   : > { %v1855_v60 = vpop.permute.xlu0 %1854  ;;  %v2711_v31 = vadd.f32 %v7237_v24, %v2559_v9  ;;  %v2112_v24 = vld [vmem:[#allocation3 + $0xc4] sm:$0xff]  ;;  %v2976_v43 = vadd.f32 %v7250_v48, %v2559_v9 }
 0x24d   : > { %v2005_v22 = vpop.permute.xlu1 %2004  ;;  %v1914_v58 = vadd.f32 %v1855_v60, %v1762_v37 }
 0x24e   : > { %2022 = vrot.lane.b32.xlu0 %v1960_v8, %s6359_s15  ;;  %v2065_v46 = vadd.f32 %v2005_v22, %v1913_v35 }
 0x24f   : > { %2930 = vrot.lane.b32.xlu1 %v6307_v44, %s6357_s20 }
 0x250   : > { %v2501_v14 = vpop.permute.xlu0 %2500 }
 0x251   : > { %v2649_v20 = vpop.permute.xlu1 %2648  ;;  %v3481_v38 = vpop.f32.mrf.mxu0  ;;  %v7276_v56 = vadd.f32 %v2501_v14, %v2408_v51  ;;  %v2257_v14 = vld [vmem:[#allocation3 + $0x8d] sm:$0xff] }
 0x252   : > { %v2710_v34 = vadd.f32 %v2649_v20, %v2558_v29  ;;  %2932 = vrot.lane.b32.xlu0 %v7269_v47, %s6357_s20 }
 0x253   : > { %2172 = vrot.lane.b32.xlu1 %v2111_v1, %s6357_s20  ;;  %v3483_v50 = vpop.f32.mrf.mxu0 }
 0x254   : > { %v2749_v33 = vpack.c.bf16 %v2711_v31, %v2710_v34  ;;  %v2007_v28 = vpop.permute.xlu0 %2006  ;;  %v6309_v50 = vld [vmem:[#allocation3 + $0xd0] sm:$0xff] }
 0x255   : > { %v2157_v40 = vpop.permute.xlu1 %2156  ;;  %v3484_v53 = vpop.f32.mrf.mxu0  ;;  %v2066_v32 = vadd.f32 %v2007_v28, %v1914_v58 }
 0x256   : > { %v2217_v42 = vadd.f32 %v2157_v40, %v2065_v46  ;;  %3535 = vmatprep.mubr.bf16.mxu0 %v2749_v33  ;;  %2174 = vrot.lane.b32.xlu0 %v2112_v24, %s6357_s20  ;;  %v7322_v24 = vld [vmem:[#allocation3 + $0xd8] sm:$0xff] }
 0x257   : > { %2366 = vrot.lane.b32.xlu1 %v2303_v55, %s6358_s14  ;;  %v3486_v4 = vpop.f32.mrf.mxu0 }
 0x258   : > { %v2748_v16 = vpack.c.bf16 %v2217_v42, %v7255_v17  ;;  %v2917_v29 = vpop.permute.xlu0 %2916  ;;  %v2258_v4 = vld [vmem:[#allocation3 + $0x95] sm:$0xff] }
 0x259   : > { %v7279_v2 = vpop.permute.xlu1 %2918  ;;  %v2977_v63 = vadd.f32 %v2917_v29, %v7276_v56 }
 0x25a   : > { %3536 = vmatmul.mubr.bf16.gmra.mxu0 %v2748_v16  ;;  %2368 = vrot.lane.b32.xlu0 %v2304_v62, %s6358_s14  ;;  %v2305_v62 = vld [vmem:[#allocation3 + $0xde] sm:$0xff] }
 0x25b   : > { %1872 = vrot.lane.b32.xlu1 %v1809_v49, %s6358_s14  ;;  %v3015_v52 = vpack.c.bf16 %v2977_v63, %v2976_v43 }
 0x25c   : > { %v2159_v61 = vpop.permute.xlu0 %2158 }
 0x25d   : > { %v2351_v36 = vpop.permute.xlu1 %2350  ;;  %v7285_v0 = vadd.f32 %v2159_v61, %v2066_v32  ;;  %v3200_v48 = vpop.f32.mrf.mxu1  ;;  %3254 = vmatprep.mubr.bf16.mxu1 %v3015_v52 }
 0x25e   : > { %v3482_v17 = vadd.f32 %v3481_v38, %v3200_v48  ;;  %1874 = vrot.lane.b32.xlu0 %v1810_v3, %s6358_s14  ;;  %v2409_v31 = vadd.f32 %v2351_v36, %v2257_v14 }
 0x25f   : > { %2518 = vrot.lane.b32.xlu1 %v2455_v30, %s6359_s15  ;;  %v3014_v54 = vpack.c.bf16 %v7285_v0, %v2217_v42  ;;  %v3202_v39 = vpop.f32.mrf.mxu1 }
 0x260   : > { %v3639_v10 = vadd.f32 %v7290_v59, %v3482_v17  ;;  %v7296_v12 = vpop.permute.xlu0 %2658  ;;  %v1811_v39 = vld [vmem:[#allocation3 + $0xda] sm:$0xff] }
 0x261   : > { %v1857_v15 = vpop.permute.xlu1 %1856  ;;  %v3203_v19 = vpop.f32.mrf.mxu1  ;;  %3255 = vmatmul.mubr.bf16.gmra.mxu1 %v3014_v54  ;;  %v2306_v54 = vld [vmem:[#allocation3 + $0xe6] sm:$0xff] }
 0x262   : > { %v3677_v27 = vmax.f32 %v3639_v10, 0.0  ;;  %v3485_v23 = vadd.f32 %v3484_v53, %v3203_v19  ;;  %2520 = vrot.lane.b32.xlu0 %v2456_v6, %s6359_s15  ;;  %v1915_v51 = vadd.f32 %v1857_v15, %v1763_v5  ;;  %v2113_v53 = vld [vmem:[#allocation3 + $0xcc] sm:$0xff]  ;;  %v1964_v5 = vld [vmem:[#allocation3 + $0xe3] sm:$0xff] }
 0x263   : > { %2024 = vrot.lane.b32.xlu1 %v1961_v25, %s6359_s15  ;;  %v3205_v60 = vpop.f32.mrf.mxu1 }
 0x264   : > { %v3722_v22 = vmul.f32 %v7301_v21, %v3677_v27  ;;  %v3640_v9 = vadd.f32 %v7290_v59, %v3485_v23  ;;  %v2353_v8 = vpop.permute.xlu0 %2352  ;;  %v1812_v27 = vld [vmem:[#allocation3 + $0xe2] sm:$0xff] }
 0x265   : > { %v2503_v44 = vpop.permute.xlu1 %2502  ;;  %v2410_v43 = vadd.f32 %v2353_v8, %v2258_v4  ;;  %v2457_v23 = vld [vmem:[#allocation3 + $0xdf] sm:$0xff] }
 0x266   : > { %v3767_v20 = vadd.f32 %v7308_v26, %v3722_v22  ;;  %v3678_v35 = vmax.f32 %v3640_v9, 0.0  ;;  %2026 = vrot.lane.b32.xlu0 %v1962_v41, %s6359_s15  ;;  %v2561_v46 = vadd.f32 %v2503_v44, %v2409_v31 }
 0x267   : > { %2668 = vrot.lane.b32.xlu1 %v7269_v47, %s6357_s20 }
 0x268   : > { %3805 = vst [vmem:[#allocation2] sm:$0xff] %v3767_v20  ;;  %v3723_v34 = vmul.f32 %v7301_v21, %v3678_v35  ;;  %v1859_v38 = vpop.permute.xlu0 %1858  ;;  %v2713_v47 = vadd.f32 %v7260_v13, %v2561_v46  ;;  %v2114_v13 = vld [vmem:[#allocation3 + $0xd4] sm:$0xff]  ;;  %v2978_v48 = vadd.f32 %v7279_v2, %v2561_v46  ;;  %v2458_v20 = vld [vmem:[#allocation3 + $0xe7] sm:$0xff] }
 0x269   : > { %v2009_v1 = vpop.permute.xlu1 %2008  ;;  %v1916_v3 = vadd.f32 %v1859_v38, %v1764_v57  ;;  %v1963_v35 = vld [vmem:[#allocation3 + $0xdb] sm:$0xff] }
 0x26a   : > { %v3768_v33 = vadd.f32 %v7308_v26, %v3723_v34  ;;  %2670 = vrot.lane.b32.xlu0 %v6309_v50, %s6357_s20  ;;  %v2067_v55 = vadd.f32 %v2009_v1, %v1915_v51 }
 0x26b   : > { %2934 = vrot.lane.b32.xlu1 %v6309_v50, %s6357_s20 }
 0x26c   : > { %3806 = vst [vmem:[#allocation2 + $0x8] sm:$0xff] %v3768_v33  ;;  %v2505_v28 = vpop.permute.xlu0 %2504 }
 0x26d   : > { %v2653_v40 = vpop.permute.xlu1 %2652 }
 0x26e   : > { %v2712_v42 = vadd.f32 %v2653_v40, %v7276_v56  ;;  %2936 = vrot.lane.b32.xlu0 %v7322_v24, %s6357_s20  ;;  %v7329_v56 = vadd.f32 %v2505_v28, %v2410_v43  ;;  %v2259_v28 = vld [vmem:[#allocation3 + $0x9d] sm:$0xff] }
 0x26f   : > { %2176 = vrot.lane.b32.xlu1 %v2113_v53, %s6357_s20 }
 0x270   : > { %v2751_v16 = vpack.c.bf16 %v2713_v47, %v2712_v42  ;;  %v2011_v37 = vpop.permute.xlu0 %2010 }
 0x271   : > { %v2161_v29 = vpop.permute.xlu1 %2160 }
 0x272   : > { %v2219_v58 = vadd.f32 %v2161_v29, %v2067_v55  ;;  %v3489_v63 = vpop.f32.mrf.mxu0  ;;  %3543 = vmatprep.mubr.bf16.mxu0 %v2751_v16  ;;  %2178 = vrot.lane.b32.xlu0 %v2114_v13, %s6357_s20  ;;  %v2115_v13 = vld [vmem:[#allocation3 + $0xdc] sm:$0xff] }
 0x273   : > { %2370 = vrot.lane.b32.xlu1 %v2305_v62, %s6358_s14  ;;  %v3843_v52 = vld [vmem:[#allocation2] ss:$2 sm:$0xff]  ;;  %v3880_v11 = vld [vmem:[#allocation2 + $0x1] ss:$2 sm:$0xff] }
 0x274   : > { %v2750_v49 = vpack.c.bf16 %v2219_v58, %v7285_v0  ;;  %v3491_v32 = vpop.f32.mrf.mxu0  ;;  %v2921_v61 = vpop.permute.xlu0 %2920  ;;  %v3899_v7 = vmax.f32 %v3843_v52, %v3880_v11  ;;  %v2068_v0 = vadd.f32 %v2011_v37, %v1916_v3  ;;  %v1765_v37 = vld [vmem:[#allocation3 + $0x99] sm:$0xff]  ;;  %v7362_v62 = vld [vmem:[#allocation3 + $0xe8] sm:$0xff] }
 0x275   : > { %v7332_v36 = vpop.permute.xlu1 %2922  ;;  %v2979_v30 = vadd.f32 %v2921_v61, %v7329_v56 }
 0x276   : > { %v3492_v17 = vpop.f32.mrf.mxu0  ;;  %3544 = vmatmul.mubr.bf16.gmra.mxu0 %v2750_v49  ;;  %2372 = vrot.lane.b32.xlu0 %v2306_v54, %s6358_s14  ;;  %3918 = vst [vmem:[#allocation4 + $0x8] sm:$0xff] %v3899_v7 }
 0x277   : > { %1876 = vrot.lane.b32.xlu1 %v1811_v39, %s6358_s14  ;;  %v3017_v10 = vpack.c.bf16 %v2979_v30, %v2978_v48  ;;  %v2307_v48 = vld [vmem:[#allocation3 + $0xee] sm:$0xff]  ;;  %v1766_v39 = vld [vmem:[#allocation3 + $0xa1] sm:$0xff] }
 0x278   : > { %v3494_v15 = vpop.f32.mrf.mxu0  ;;  %v2163_v19 = vpop.permute.xlu0 %2162 }
 0x279   : > { %v2355_v6 = vpop.permute.xlu1 %2354  ;;  %v7338_v25 = vadd.f32 %v2163_v19, %v2068_v0  ;;  %v3208_v2 = vpop.f32.mrf.mxu1  ;;  %3262 = vmatprep.mubr.bf16.mxu1 %v3017_v10 }
 0x27a   : > { %v3490_v60 = vadd.f32 %v3489_v63, %v3208_v2  ;;  %1878 = vrot.lane.b32.xlu0 %v1812_v27, %s6358_s14  ;;  %v2411_v47 = vadd.f32 %v2355_v6, %v2259_v28  ;;  %v1965_v28 = vld [vmem:[#allocation3 + $0xeb] sm:$0xff] }
 0x27b   : > { %2522 = vrot.lane.b32.xlu1 %v2457_v23, %s6359_s15  ;;  %v3016_v22 = vpack.c.bf16 %v7338_v25, %v2219_v58  ;;  %v3210_v9 = vpop.f32.mrf.mxu1  ;;  %v2308_v23 = vld [vmem:[#allocation3 + $0xf6] sm:$0xff] }
 0x27c   : > { %v3641_v8 = vadd.f32 %v7290_v59, %v3490_v60  ;;  %v7344_v44 = vpop.permute.xlu0 %2662  ;;  %v1813_v60 = vld [vmem:[#allocation3 + $0xea] sm:$0xff] }
 0x27d   : > { %v1861_v41 = vpop.permute.xlu1 %1860  ;;  %v3211_v14 = vpop.f32.mrf.mxu1  ;;  %3263 = vmatmul.mubr.bf16.gmra.mxu1 %v3016_v22 }
 0x27e   : > { %v3679_v31 = vmax.f32 %v3641_v8, 0.0  ;;  %v3493_v34 = vadd.f32 %v3492_v17, %v3211_v14  ;;  %2524 = vrot.lane.b32.xlu0 %v2458_v20, %s6359_s15  ;;  %v1814_v20 = vld [vmem:[#allocation3 + $0xf2] sm:$0xff] }
 0x27f   : > { %2028 = vrot.lane.b32.xlu1 %v1963_v35, %s6359_s15  ;;  %v3213_v38 = vpop.f32.mrf.mxu1  ;;  %v2459_v35 = vld [vmem:[#allocation3 + $0xef] sm:$0xff] }
 0x280   : > { %v3724_v1 = vmul.f32 %v7301_v21, %v3679_v31  ;;  %v3642_v46 = vadd.f32 %v7290_v59, %v3493_v34  ;;  %v2357_v33 = vpop.permute.xlu0 %2356 }
 0x281   : > { %v2507_v50 = vpop.permute.xlu1 %2506 }
 0x282   : > { %v3769_v40 = vadd.f32 %v7308_v26, %v3724_v1  ;;  %v3680_v51 = vmax.f32 %v3642_v46, 0.0  ;;  %2030 = vrot.lane.b32.xlu0 %v1964_v5, %s6359_s15  ;;  %v2563_v16 = vadd.f32 %v2507_v50, %v2411_v47  ;;  %v2460_v5 = vld [vmem:[#allocation3 + $0xf7] sm:$0xff] }
 0x283   : > { %2672 = vrot.lane.b32.xlu1 %v7322_v24, %s6357_s20  ;;  %v1917_v24 = vadd.f32 %v1861_v41, %v1765_v37  ;;  %v2261_v37 = vld [vmem:[#allocation3 + $0xad] sm:$0xff] }
 0x284   : > { %3807 = vst [vmem:[#allocation2 + $0x10] sm:$0xff] %v3769_v40  ;;  %v3725_v42 = vmul.f32 %v7301_v21, %v3680_v51  ;;  %v1863_v53 = vpop.permute.xlu0 %1862  ;;  %v2715_v58 = vadd.f32 %v7296_v12, %v2563_v16  ;;  %v2116_v12 = vld [vmem:[#allocation3 + $0xe4] sm:$0xff]  ;;  %v2980_v19 = vadd.f32 %v7332_v36, %v2563_v16 }
 0x285   : > { %v2013_v55 = vpop.permute.xlu1 %2012  ;;  %v1918_v6 = vadd.f32 %v1863_v53, %v1766_v39 }
 0x286   : > { %v3770_v4 = vadd.f32 %v7308_v26, %v3725_v42  ;;  %2674 = vrot.lane.b32.xlu0 %v7147_v45, %s6357_s20  ;;  %v2069_v49 = vadd.f32 %v2013_v55, %v1917_v24 }
 0x287   : > { %2938 = vrot.lane.b32.xlu1 %v7147_v45, %s6357_s20  ;;  %v2260_v45 = vld [vmem:[#allocation3 + $0xa5] sm:$0xff] }
 0x288   : > { %3808 = vst [vmem:[#allocation2 + $0x18] sm:$0xff] %v3770_v4  ;;  %v2509_v29 = vpop.permute.xlu0 %2508  ;;  %v2412_v57 = vadd.f32 %v2357_v33, %v2260_v45  ;;  %v1966_v4 = vld [vmem:[#allocation3 + $0xf3] sm:$0xff]  ;;  %v1767_v45 = vld [vmem:[#allocation3 + $0xa9] sm:$0xff] }
 0x289   : > { %v2657_v43 = vpop.permute.xlu1 %2656 }
 0x28a   : > { %v2714_v63 = vadd.f32 %v2657_v43, %v7329_v56  ;;  %2940 = vrot.lane.b32.xlu0 %v7362_v62, %s6357_s20  ;;  %v7369_v56 = vadd.f32 %v2509_v29, %v2412_v57 }
 0x28b   : > { %2180 = vrot.lane.b32.xlu1 %v2115_v13, %s6357_s20 }
 0x28c   : > { %v2753_v32 = vpack.c.bf16 %v2715_v58, %v2714_v63  ;;  %v2015_v52 = vpop.permute.xlu0 %2014 }
 0x28d   : > { %v2165_v11 = vpop.permute.xlu1 %2164 }
 0x28e   : > { %v2221_v61 = vadd.f32 %v2165_v11, %v2069_v49  ;;  %v3497_v7 = vpop.f32.mrf.mxu0  ;;  %3551 = vmatprep.mubr.bf16.mxu0 %v2753_v32  ;;  %2182 = vrot.lane.b32.xlu0 %v2116_v12, %s6357_s20  ;;  %v7405_v12 = vld [vmem:[#allocation3 + $0xf8] sm:$0xff] }
 0x28f   : > { %2374 = vrot.lane.b32.xlu1 %v2307_v48, %s6358_s14  ;;  %v3845_v17 = vld [vmem:[#allocation2 + $0x10] ss:$2 sm:$0xff]  ;;  %v3881_v54 = vld [vmem:[#allocation2 + $0x11] ss:$2 sm:$0xff] }
 0x290   : > { %v2752_v3 = vpack.c.bf16 %v2221_v61, %v7338_v25  ;;  %v3499_v30 = vpop.f32.mrf.mxu0  ;;  %v2925_v0 = vpop.permute.xlu0 %2924  ;;  %v7374_v15 = vmax.f32 %v3845_v17, %v3881_v54  ;;  %v2070_v25 = vadd.f32 %v2015_v52, %v1918_v6 }
 0x291   : > { %v7372_v10 = vpop.permute.xlu1 %2926  ;;  %v2981_v2 = vadd.f32 %v2925_v0, %v7369_v56 }
 0x292   : > { %v3500_v27 = vpop.f32.mrf.mxu0  ;;  %3552 = vmatmul.mubr.bf16.gmra.mxu0 %v2752_v3  ;;  %2376 = vrot.lane.b32.xlu0 %v2308_v23, %s6358_s14  ;;  %3919 = vst [vmem:[#allocation4 + $0x10] sm:$0xff] %v7374_v15 }
 0x293   : > { %1880 = vrot.lane.b32.xlu1 %v1813_v60, %s6358_s14  ;;  %v3019_v22 = vpack.c.bf16 %v2981_v2, %v2980_v19  ;;  %v2309_v19 = vld [vmem:[#allocation3 + $0xfe] sm:$0xff]  ;;  %v1768_v60 = vld [vmem:[#allocation3 + $0xb1] sm:$0xff] }
 0x294   : > { %v3502_v9 = vpop.f32.mrf.mxu0  ;;  %v2167_v8 = vpop.permute.xlu0 %2166 }
 0x295   : > { %v2359_v41 = vpop.permute.xlu1 %2358  ;;  %v7381_v14 = vadd.f32 %v2167_v8, %v2070_v25  ;;  %v3216_v36 = vpop.f32.mrf.mxu1  ;;  %3270 = vmatprep.mubr.bf16.mxu1 %v3019_v22 }
 0x296   : > { %v3498_v31 = vadd.f32 %v3497_v7, %v3216_v36  ;;  %1882 = vrot.lane.b32.xlu0 %v1814_v20, %s6358_s14  ;;  %v2413_v24 = vadd.f32 %v2359_v41, %v2261_v37  ;;  %v2117_v7 = vld [vmem:[#allocation3 + $0xec] sm:$0xff]  ;;  %v1967_v37 = vld [vmem:[#allocation3 + $0xfb] sm:$0xff] }
 0x297   : > { %2526 = vrot.lane.b32.xlu1 %v2459_v35, %s6359_s15  ;;  %v3018_v34 = vpack.c.bf16 %v7381_v14, %v2221_v61  ;;  %v3218_v38 = vpop.f32.mrf.mxu1  ;;  %v2310_v35 = vld [vmem:[#allocation3 + $0x106] sm:$0xff] }
 0x298   : > { %v3643_v1 = vadd.f32 %v7290_v59, %v3498_v31  ;;  %v7387_v46 = vpop.permute.xlu0 %2666  ;;  %v1815_v31 = vld [vmem:[#allocation3 + $0xfa] sm:$0xff] }
 0x299   : > { %v1865_v33 = vpop.permute.xlu1 %1864  ;;  %v3219_v50 = vpop.f32.mrf.mxu1  ;;  %3271 = vmatmul.mubr.bf16.gmra.mxu1 %v3018_v34 }
 0x29a   : > { %v3681_v40 = vmax.f32 %v3643_v1, 0.0  ;;  %v3501_v51 = vadd.f32 %v3500_v27, %v3219_v50  ;;  %2528 = vrot.lane.b32.xlu0 %v2460_v5, %s6359_s15  ;;  %v1816_v5 = vld [vmem:[#allocation3 + $0x102] sm:$0xff] }
 0x29b   : > { %2032 = vrot.lane.b32.xlu1 %v1965_v28, %s6359_s15  ;;  %v3221_v47 = vpop.f32.mrf.mxu1  ;;  %v2461_v28 = vld [vmem:[#allocation3 + $0xff] sm:$0xff] }
 0x29c   : > { %v3726_v42 = vmul.f32 %v7301_v21, %v3681_v40  ;;  %v3644_v53 = vadd.f32 %v7290_v59, %v3501_v51  ;;  %v2361_v55 = vpop.permute.xlu0 %2360 }
 0x29d   : > { %v2511_v16 = vpop.permute.xlu1 %2510 }
 0x29e   : > { %v3771_v29 = vadd.f32 %v7308_v26, %v3726_v42  ;;  %v3682_v43 = vmax.f32 %v3644_v53, 0.0  ;;  %2034 = vrot.lane.b32.xlu0 %v1966_v4, %s6359_s15  ;;  %v2565_v49 = vadd.f32 %v2511_v16, %v2413_v24  ;;  %v2462_v4 = vld [vmem:[#allocation3 + $0x107] sm:$0xff] }
 0x29f   : > { %2676 = vrot.lane.b32.xlu1 %v7362_v62, %s6357_s20  ;;  %v1919_v62 = vadd.f32 %v1865_v33, %v1767_v45 }
 0x2a0   : > { %3809 = vst [vmem:[#allocation2 + $0x20] sm:$0xff] %v3771_v29  ;;  %v3727_v58 = vmul.f32 %v7301_v21, %v3682_v43  ;;  %v1867_v63 = vpop.permute.xlu0 %1866  ;;  %v2717_v57 = vadd.f32 %v7344_v44, %v2565_v49  ;;  %v2118_v44 = vld [vmem:[#allocation3 + $0xf4] sm:$0xff]  ;;  %v2982_v8 = vadd.f32 %v7372_v10, %v2565_v49  ;;  %v2263_v29 = vld [vmem:[#allocation3 + $0xbd] sm:$0xff] }
 0x2a1   : > { %v2017_v13 = vpop.permute.xlu1 %2016  ;;  %v1920_v41 = vadd.f32 %v1867_v63, %v1768_v60 }
 0x2a2   : > { %v3772_v32 = vadd.f32 %v7308_v26, %v3727_v58  ;;  %2678 = vrot.lane.b32.xlu0 %v7189_v18, %s6357_s20  ;;  %v2071_v48 = vadd.f32 %v2017_v13, %v1919_v62 }
 0x2a3   : > { %2942 = vrot.lane.b32.xlu1 %v7189_v18, %s6357_s20  ;;  %v2262_v18 = vld [vmem:[#allocation3 + $0xb5] sm:$0xff] }
 0x2a4   : > { %3810 = vst [vmem:[#allocation2 + $0x28] sm:$0xff] %v3772_v32  ;;  %v2513_v52 = vpop.permute.xlu0 %2512  ;;  %v2414_v54 = vadd.f32 %v2361_v55, %v2262_v18 }
 0x2a5   : > { %v2661_v11 = vpop.permute.xlu1 %2660 }
 0x2a6   : > { %v2716_v61 = vadd.f32 %v2661_v11, %v7369_v56  ;;  %2944 = vrot.lane.b32.xlu0 %v7405_v12, %s6357_s20  ;;  %v7412_v56 = vadd.f32 %v2513_v52, %v2414_v54  ;;  %v1968_v11 = vld [vmem:[#allocation3 + $0x103] sm:$0xff] }
 0x2a7   : > { %2184 = vrot.lane.b32.xlu1 %v2117_v7, %s6357_s20 }
 0x2a8   : > { %v2755_v3 = vpack.c.bf16 %v2717_v57, %v2716_v61  ;;  %v2019_v30 = vpop.permute.xlu0 %2018 }
 0x2a9   : > { %v2169_v17 = vpop.permute.xlu1 %2168 }
 0x2aa   : > { %v2223_v39 = vadd.f32 %v2169_v17, %v2071_v48  ;;  %v3505_v0 = vpop.f32.mrf.mxu0  ;;  %3559 = vmatprep.mubr.bf16.mxu0 %v2755_v3  ;;  %2186 = vrot.lane.b32.xlu0 %v2118_v44, %s6357_s20  ;;  %v6313_v17 = vld [vmem:[#allocation3 + $0x100] sm:$0xff] }
 0x2ab   : > { %2378 = vrot.lane.b32.xlu1 %v2309_v19, %s6358_s14  ;;  %v3847_v27 = vld [vmem:[#allocation2 + $0x20] ss:$2 sm:$0xff]  ;;  %v3882_v23 = vld [vmem:[#allocation2 + $0x21] ss:$2 sm:$0xff] }
 0x2ac   : > { %v2754_v6 = vpack.c.bf16 %v2223_v39, %v7381_v14  ;;  %v3507_v2 = vpop.f32.mrf.mxu0  ;;  %v2929_v25 = vpop.permute.xlu0 %2928  ;;  %v7415_v9 = vmax.f32 %v3847_v27, %v3882_v23  ;;  %v2072_v14 = vadd.f32 %v2019_v30, %v1920_v41  ;;  %v1770_v23 = vld [vmem:[#allocation3 + $0xc1] sm:$0xff] }
 0x2ad   : > { %v2363_v22 = vpop.permute.xlu1 %2362  ;;  %v2983_v36 = vadd.f32 %v2929_v25, %v7412_v56  ;;  %v2119_v2 = vld [vmem:[#allocation3 + $0xfc] sm:$0xff] }
 0x2ae   : > { %v3508_v20 = vpop.f32.mrf.mxu0  ;;  %3560 = vmatmul.mubr.bf16.gmra.mxu0 %v2754_v6  ;;  %2380 = vrot.lane.b32.xlu0 %v2310_v35, %s6358_s14  ;;  %3920 = vst [vmem:[#allocation4 + $0x18] sm:$0xff] %v7415_v9  ;;  %v2415_v58 = vadd.f32 %v2363_v22, %v2263_v29  ;;  %v2120_v35 = vld [vmem:[#allocation3 + $0x104] sm:$0xff]  ;;  %v1818_v29 = vld [vmem:[#allocation3 + $0x112] sm:$0xff] }
 0x2af   : > { %1884 = vrot.lane.b32.xlu1 %v1815_v31, %s6358_s14  ;;  %v3021_v34 = vpack.c.bf16 %v2983_v36, %v2982_v8  ;;  %v2311_v31 = vld [vmem:[#allocation3 + $0x10e] sm:$0xff] }
 0x2b0   : > { %v3510_v38 = vpop.f32.mrf.mxu0  ;;  %v2171_v1 = vpop.permute.xlu0 %2170 }
 0x2b1   : > { %v1869_v33 = vpop.permute.xlu1 %1868  ;;  %v7422_v50 = vadd.f32 %v2171_v1, %v2072_v14  ;;  %v3224_v10 = vpop.f32.mrf.mxu1  ;;  %3278 = vmatprep.mubr.bf16.mxu1 %v3021_v34 }
 0x2b2   : > { %v3506_v40 = vadd.f32 %v3505_v0, %v3224_v10  ;;  %1886 = vrot.lane.b32.xlu0 %v1816_v5, %s6358_s14  ;;  %v2264_v0 = vld [vmem:[#allocation3 + $0xc5] sm:$0xff] }
 0x2b3   : > { %2530 = vrot.lane.b32.xlu1 %v2461_v28, %s6359_s15  ;;  %v3020_v51 = vpack.c.bf16 %v7422_v50, %v2223_v39  ;;  %v3226_v47 = vpop.f32.mrf.mxu1  ;;  %v1769_v39 = vld [vmem:[#allocation3 + $0xb9] sm:$0xff] }
 0x2b4   : > { %v3645_v42 = vadd.f32 %v7290_v59, %v3506_v40  ;;  %v2365_v53 = vpop.permute.xlu0 %2364  ;;  %v1921_v19 = vadd.f32 %v1869_v33, %v1769_v39 }
 0x2b5   : > { %v2515_v55 = vpop.permute.xlu1 %2514  ;;  %v3227_v16 = vpop.f32.mrf.mxu1  ;;  %3279 = vmatmul.mubr.bf16.gmra.mxu1 %v3020_v51  ;;  %v2416_v6 = vadd.f32 %v2365_v53, %v2264_v0  ;;  %v1817_v53 = vld [vmem:[#allocation3 + $0x10a] sm:$0xff] }
 0x2b6   : > { %v3683_v43 = vmax.f32 %v3645_v42, 0.0  ;;  %v3509_v24 = vadd.f32 %v3508_v20, %v3227_v16  ;;  %2532 = vrot.lane.b32.xlu0 %v2462_v4, %s6359_s15  ;;  %v2567_v52 = vadd.f32 %v2515_v55, %v2415_v58  ;;  %v2312_v42 = vld [vmem:[#allocation3 + $0x116] sm:$0xff] }
 0x2b7   : > { %2036 = vrot.lane.b32.xlu1 %v1967_v37, %s6359_s15  ;;  %v3229_v63 = vpop.f32.mrf.mxu1 }
 0x2b8   : > { %v3728_v13 = vmul.f32 %v7301_v21, %v3683_v43  ;;  %v3646_v49 = vadd.f32 %v7290_v59, %v3509_v24  ;;  %v1871_v32 = vpop.permute.xlu0 %1870  ;;  %v2719_v3 = vadd.f32 %v7387_v46, %v2567_v52  ;;  %v7442_v46 = vld [vmem:[#allocation3 + $0x108] sm:$0xff] }
 0x2b9   : > { %v2021_v45 = vpop.permute.xlu1 %2020  ;;  %v1922_v22 = vadd.f32 %v1871_v32, %v1770_v23  ;;  %v2463_v43 = vld [vmem:[#allocation3 + $0x10f] sm:$0xff] }
 0x2ba   : > { %v3773_v62 = vadd.f32 %v7308_v26, %v3728_v13  ;;  %v3684_v57 = vmax.f32 %v3646_v49, 0.0  ;;  %2038 = vrot.lane.b32.xlu0 %v1968_v11, %s6359_s15  ;;  %v1771_v23 = vld [vmem:[#allocation3 + $0xc9] sm:$0xff] }
 0x2bb   : > { %2680 = vrot.lane.b32.xlu1 %v7405_v12, %s6357_s20 }
 0x2bc   : > { %3811 = vst [vmem:[#allocation2 + $0x30] sm:$0xff] %v3773_v62  ;;  %v3729_v61 = vmul.f32 %v7301_v21, %v3684_v57  ;;  %v2517_v7 = vpop.permute.xlu0 %2516 }
 0x2bd   : > { %v2665_v48 = vpop.permute.xlu1 %2664  ;;  %v7447_v27 = vadd.f32 %v2517_v7, %v2416_v6  ;;  %v6315_v6 = vld [vmem:[#allocation3 + $0x110] sm:$0xff] }
 0x2be   : > { %v2718_v18 = vadd.f32 %v2665_v48, %v7412_v56  ;;  %v3774_v30 = vadd.f32 %v7308_v26, %v3729_v61  ;;  %2682 = vrot.lane.b32.xlu0 %v6313_v17, %s6357_s20  ;;  %v2073_v56 = vadd.f32 %v2021_v45, %v1921_v19  ;;  %v2464_v45 = vld [vmem:[#allocation3 + $0x117] sm:$0xff] }
 0x2bf   : > { %2946 = vrot.lane.b32.xlu1 %v6313_v17, %s6357_s20 }
 0x2c0   : > { %v2757_v54 = vpack.c.bf16 %v2719_v3, %v2718_v18  ;;  %3812 = vst [vmem:[#allocation2 + $0x38] sm:$0xff] %v3774_v30  ;;  %v2023_v12 = vpop.permute.xlu0 %2022  ;;  %v1970_v18 = vld [vmem:[#allocation3 + $0x113] sm:$0xff] }
 0x2c1   : > { %v2931_v44 = vpop.permute.xlu1 %2930  ;;  %v2074_v14 = vadd.f32 %v2023_v12, %v1922_v22 }
 0x2c2   : > { %3567 = vmatprep.mubr.bf16.mxu0 %v2757_v54  ;;  %2948 = vrot.lane.b32.xlu0 %v7442_v46, %s6357_s20  ;;  %v2984_v8 = vadd.f32 %v2931_v44, %v2567_v52  ;;  %v1969_v52 = vld [vmem:[#allocation3 + $0x10b] sm:$0xff] }
 0x2c3   : > { %2188 = vrot.lane.b32.xlu1 %v2119_v2, %s6357_s20  ;;  %v2265_v54 = vld [vmem:[#allocation3 + $0xcd] sm:$0xff] }
 0x2c4   : > { %v2933_v60 = vpop.permute.xlu0 %2932 }
 0x2c5   : > { %v2173_v25 = vpop.permute.xlu1 %2172  ;;  %v2985_v41 = vadd.f32 %v2933_v60, %v7447_v27 }
 0x2c6   : > { %v2225_v36 = vadd.f32 %v2173_v25, %v2073_v56  ;;  %v3513_v20 = vpop.f32.mrf.mxu0  ;;  %2190 = vrot.lane.b32.xlu0 %v2120_v35, %s6357_s20  ;;  %v2266_v56 = vld [vmem:[#allocation3 + $0xd5] sm:$0xff] }
 0x2c7   : > { %2382 = vrot.lane.b32.xlu1 %v2311_v31, %s6358_s14  ;;  %v3023_v34 = vpack.c.bf16 %v2985_v41, %v2984_v8  ;;  %v3849_v33 = vld [vmem:[#allocation2 + $0x30] ss:$2 sm:$0xff]  ;;  %v3883_v10 = vld [vmem:[#allocation2 + $0x31] ss:$2 sm:$0xff] }
 0x2c8   : > { %v2756_v38 = vpack.c.bf16 %v2225_v36, %v7422_v50  ;;  %v3515_v1 = vpop.f32.mrf.mxu0  ;;  %v2175_v5 = vpop.permute.xlu0 %2174  ;;  %v7453_v40 = vmax.f32 %v3849_v33, %v3883_v10 }
 0x2c9   : > { %v2367_v28 = vpop.permute.xlu1 %2366  ;;  %v7455_v51 = vadd.f32 %v2175_v5, %v2074_v14  ;;  %3286 = vmatprep.mubr.bf16.mxu1 %v3023_v34  ;;  %v1772_v34 = vld [vmem:[#allocation3 + $0xd1] sm:$0xff] }
 0x2ca   : > { %v3516_v47 = vpop.f32.mrf.mxu0  ;;  %3568 = vmatmul.mubr.bf16.gmra.mxu0 %v2756_v38  ;;  %2384 = vrot.lane.b32.xlu0 %v2312_v42, %s6358_s14  ;;  %3921 = vst [vmem:[#allocation4 + $0x20] sm:$0xff] %v7453_v40  ;;  %v2417_v44 = vadd.f32 %v2367_v28, %v2265_v54  ;;  %v2313_v42 = vld [vmem:[#allocation3 + $0x11e] sm:$0xff] }
 0x2cb   : > { %1888 = vrot.lane.b32.xlu1 %v1817_v53, %s6358_s14  ;;  %v3022_v50 = vpack.c.bf16 %v7455_v51, %v2225_v36  ;;  %v2121_v36 = vld [vmem:[#allocation3 + $0x10c] sm:$0xff]  ;;  %v1971_v54 = vld [vmem:[#allocation3 + $0x11b] sm:$0xff] }
 0x2cc   : > { %v3518_v55 = vpop.f32.mrf.mxu0  ;;  %v2369_v16 = vpop.permute.xlu0 %2368 }
 0x2cd   : > { %v1873_v4 = vpop.permute.xlu1 %1872  ;;  %v3232_v37 = vpop.f32.mrf.mxu1  ;;  %3287 = vmatmul.mubr.bf16.gmra.mxu1 %v3022_v50  ;;  %v2418_v25 = vadd.f32 %v2369_v16, %v2266_v56  ;;  %v1972_v56 = vld [vmem:[#allocation3 + $0x123] sm:$0xff] }
 0x2ce   : > { %v3514_v24 = vadd.f32 %v3513_v20, %v3232_v37  ;;  %1890 = vrot.lane.b32.xlu0 %v1818_v29, %s6358_s14  ;;  %v1923_v22 = vadd.f32 %v1873_v4, %v1771_v23  ;;  %v7477_v20 = vld [vmem:[#allocation3 + $0x118] sm:$0xff] }
 0x2cf   : > { %2534 = vrot.lane.b32.xlu1 %v2463_v43, %s6359_s15  ;;  %v3234_v58 = vpop.f32.mrf.mxu1 }
 0x2d0   : > { %v3647_v63 = vadd.f32 %v7290_v59, %v3514_v24  ;;  %v1875_v13 = vpop.permute.xlu0 %1874 }
 0x2d1   : > { %v2519_v49 = vpop.permute.xlu1 %2518  ;;  %v3235_v32 = vpop.f32.mrf.mxu1  ;;  %v1924_v33 = vadd.f32 %v1875_v13, %v1772_v34  ;;  %v2314_v13 = vld [vmem:[#allocation3 + $0x126] sm:$0xff]  ;;  %v1773_v34 = vld [vmem:[#allocation3 + $0xd9] sm:$0xff] }
 0x2d2   : > { %v3685_v11 = vmax.f32 %v3647_v63, 0.0  ;;  %v3517_v62 = vadd.f32 %v3516_v47, %v3235_v32  ;;  %2536 = vrot.lane.b32.xlu0 %v2464_v45, %s6359_s15  ;;  %v2569_v2 = vadd.f32 %v2519_v49, %v2417_v44  ;;  %v2122_v47 = vld [vmem:[#allocation3 + $0x114] sm:$0xff] }
 0x2d3   : > { %2040 = vrot.lane.b32.xlu1 %v1969_v52, %s6359_s15  ;;  %v3237_v57 = vpop.f32.mrf.mxu1  ;;  %v1819_v49 = vld [vmem:[#allocation3 + $0x11a] sm:$0xff] }
 0x2d4   : > { %v3730_v61 = vmul.f32 %v7301_v21, %v3685_v11  ;;  %v3648_v7 = vadd.f32 %v7290_v59, %v3517_v62  ;;  %v2521_v48 = vpop.permute.xlu0 %2520  ;;  %v1820_v62 = vld [vmem:[#allocation3 + $0x122] sm:$0xff] }
 0x2d5   : > { %v2025_v3 = vpop.permute.xlu1 %2024  ;;  %v7482_v35 = vadd.f32 %v2521_v48, %v2418_v25  ;;  %v2465_v57 = vld [vmem:[#allocation3 + $0x11f] sm:$0xff] }
 0x2d6   : > { %v3775_v30 = vadd.f32 %v7308_v26, %v3730_v61  ;;  %v3686_v17 = vmax.f32 %v3648_v7, 0.0  ;;  %2042 = vrot.lane.b32.xlu0 %v1970_v18, %s6359_s15  ;;  %v2075_v31 = vadd.f32 %v2025_v3, %v1923_v22 }
 0x2d7   : > { %2684 = vrot.lane.b32.xlu1 %v7442_v46, %s6357_s20 }
 0x2d8   : > { %3813 = vst [vmem:[#allocation2 + $0x40] sm:$0xff] %v3775_v30  ;;  %v3731_v39 = vmul.f32 %v7301_v21, %v3686_v17  ;;  %v2027_v0 = vpop.permute.xlu0 %2026  ;;  %v2466_v17 = vld [vmem:[#allocation3 + $0x127] sm:$0xff] }
 0x2d9   : > { %v2669_v12 = vpop.permute.xlu1 %2668  ;;  %v2076_v53 = vadd.f32 %v2027_v0, %v1924_v33 }
 0x2da   : > { %v3776_v19 = vadd.f32 %v7308_v26, %v3731_v39  ;;  %2686 = vrot.lane.b32.xlu0 %v6315_v6, %s6357_s20  ;;  %v2720_v8 = vadd.f32 %v2669_v12, %v7447_v27 }
 0x2db   : > { %2950 = vrot.lane.b32.xlu1 %v6315_v6, %s6357_s20 }
 0x2dc   : > { %3814 = vst [vmem:[#allocation2 + $0x48] sm:$0xff] %v3776_v19  ;;  %v2671_v60 = vpop.permute.xlu0 %2670 }
 0x2dd   : > { %v2935_v46 = vpop.permute.xlu1 %2934  ;;  %v2721_v41 = vadd.f32 %v2671_v60, %v2569_v2 }
 0x2de   : > { %2952 = vrot.lane.b32.xlu0 %v7477_v20, %s6357_s20  ;;  %v2986_v10 = vadd.f32 %v2935_v46, %v2569_v2  ;;  %v2267_v46 = vld [vmem:[#allocation3 + $0xdd] sm:$0xff] }
 0x2df   : > { %2192 = vrot.lane.b32.xlu1 %v2121_v36, %s6357_s20  ;;  %v2759_v14 = vpack.c.bf16 %v2721_v41, %v2720_v8  ;;  %v6317_v36 = vld [vmem:[#allocation3 + $0x120] sm:$0xff] }
 0x2e0   : > { %v2937_v38 = vpop.permute.xlu0 %2936 }
 0x2e1   : > { %v2177_v1 = vpop.permute.xlu1 %2176  ;;  %v2987_v27 = vadd.f32 %v2937_v38, %v7482_v35  ;;  %3575 = vmatprep.mubr.bf16.mxu0 %v2759_v14  ;;  %v2268_v14 = vld [vmem:[#allocation3 + $0xe5] sm:$0xff] }
 0x2e2   : > { %v2227_v5 = vadd.f32 %v2177_v1, %v2075_v31  ;;  %v3521_v28 = vpop.f32.mrf.mxu0  ;;  %2194 = vrot.lane.b32.xlu0 %v2122_v47, %s6357_s20 }
 0x2e3   : > { %2386 = vrot.lane.b32.xlu1 %v2313_v42, %s6358_s14  ;;  %v3025_v50 = vpack.c.bf16 %v2987_v27, %v2986_v10  ;;  %v3851_v4 = vld [vmem:[#allocation2 + $0x40] ss:$2 sm:$0xff]  ;;  %v3884_v37 = vld [vmem:[#allocation2 + $0x41] ss:$2 sm:$0xff]  ;;  %v2123_v27 = vld [vmem:[#allocation3 + $0x11c] sm:$0xff] }
 0x2e4   : > { %v2758_v55 = vpack.c.bf16 %v2227_v5, %v7455_v51  ;;  %v3523_v16 = vpop.f32.mrf.mxu0  ;;  %v2179_v29 = vpop.permute.xlu0 %2178  ;;  %v7488_v24 = vmax.f32 %v3851_v4, %v3884_v37  ;;  %v1774_v42 = vld [vmem:[#allocation3 + $0xe1] sm:$0xff] }
 0x2e5   : > { %v2371_v43 = vpop.permute.xlu1 %2370  ;;  %v7490_v58 = vadd.f32 %v2179_v29, %v2076_v53  ;;  %3294 = vmatprep.mubr.bf16.mxu1 %v3025_v50  ;;  %v2124_v29 = vld [vmem:[#allocation3 + $0x124] sm:$0xff] }
 0x2e6   : > { %v3524_v63 = vpop.f32.mrf.mxu0  ;;  %3576 = vmatmul.mubr.bf16.gmra.mxu0 %v2758_v55  ;;  %2388 = vrot.lane.b32.xlu0 %v2314_v13, %s6358_s14  ;;  %3922 = vst [vmem:[#allocation4 + $0x28] sm:$0xff] %v7488_v24  ;;  %v2419_v41 = vadd.f32 %v2371_v43, %v2267_v46  ;;  %v2315_v43 = vld [vmem:[#allocation3 + $0x12e] sm:$0xf] }
 0x2e7   : > { %1892 = vrot.lane.b32.xlu1 %v1819_v49, %s6358_s14  ;;  %v3024_v51 = vpack.c.bf16 %v7490_v58, %v2227_v5  ;;  %v7512_v5 = vld [vmem:[#allocation3 + $0x128] sm:$0xff] }
 0x2e8   : > { %v3526_v32 = vpop.f32.mrf.mxu0  ;;  %v2373_v45 = vpop.permute.xlu0 %2372 }
 0x2e9   : > { %v1877_v52 = vpop.permute.xlu1 %1876  ;;  %v3240_v11 = vpop.f32.mrf.mxu1  ;;  %3295 = vmatmul.mubr.bf16.gmra.mxu1 %v3024_v51  ;;  %v2420_v1 = vadd.f32 %v2373_v45, %v2268_v14  ;;  %v2833_v32 = vld [vmem:[#allocation3 + $0x136] sm:$0xf] }
 0x2ea   : > { %v3522_v61 = vadd.f32 %v3521_v28, %v3240_v11  ;;  %1894 = vrot.lane.b32.xlu0 %v1820_v62, %s6358_s14  ;;  %v1925_v33 = vadd.f32 %v1877_v52, %v1773_v34 }
 0x2eb   : > { %2538 = vrot.lane.b32.xlu1 %v2465_v57, %s6359_s15  ;;  %v3242_v7 = vpop.f32.mrf.mxu1 }
 0x2ec   : > { %v3649_v48 = vadd.f32 %v7290_v59, %v3522_v61  ;;  %v1879_v3 = vpop.permute.xlu0 %1878 }
 0x2ed   : > { %v2523_v18 = vpop.permute.xlu1 %2522  ;;  %v3243_v30 = vpop.f32.mrf.mxu1  ;;  %v1926_v55 = vadd.f32 %v1879_v3, %v1774_v42 }
 0x2ee   : > { %v3687_v39 = vmax.f32 %v3649_v48, 0.0  ;;  %v3525_v0 = vadd.f32 %v3524_v63, %v3243_v30  ;;  %2540 = vrot.lane.b32.xlu0 %v2466_v17, %s6359_s15  ;;  %v2571_v31 = vadd.f32 %v2523_v18, %v2419_v41  ;;  %v2832_v48 = vld [vmem:[#allocation3 + $0x12e] sm:$0xff]  ;;  %v2841_v41 = vld [vmem:[#allocation3 + $0x137] sm:$0xf] }
 0x2ef   : > { %2044 = vrot.lane.b32.xlu1 %v1971_v54, %s6359_s15  ;;  %v3245_v12 = vpop.f32.mrf.mxu1  ;;  %v1821_v54 = vld [vmem:[#allocation3 + $0x12a] sm:$0xf] }
 0x2f0   : > { %v3732_v44 = vmul.f32 %v7301_v21, %v3687_v39  ;;  %v3650_v19 = vadd.f32 %v7290_v59, %v3525_v0  ;;  %v2525_v6 = vpop.permute.xlu0 %2524  ;;  %v2806_v39 = vld [vmem:[#allocation3 + $0x12a] sm:$0xff] }
 0x2f1   : > { %v2029_v2 = vpop.permute.xlu1 %2028 }
 0x2f2   : > { %v3777_v23 = vadd.f32 %v7308_v26, %v3732_v44  ;;  %v3688_v60 = vmax.f32 %v3650_v19, 0.0  ;;  %2046 = vrot.lane.b32.xlu0 %v1972_v56, %s6359_s15  ;;  %v2077_v28 = vadd.f32 %v2029_v2, %v1925_v33  ;;  %v7536_v44 = vld [vmem:[%s8311_s6] ss:$0 sm:$0xff] }
 0x2f3   : > { %2688 = vrot.lane.b32.xlu1 %v7477_v20, %s6357_s20 }
 0x2f4   : > { %3815 = vst [vmem:[#allocation2 + $0x50] sm:$0xff] %v3777_v23  ;;  %v3733_v25 = vmul.f32 %v7301_v21, %v3688_v60  ;;  %v2031_v22 = vpop.permute.xlu0 %2030  ;;  %v2807_v23 = vld [vmem:[#allocation3 + $0x132] sm:$0xf] }
 0x2f5   : > { %v2673_v8 = vpop.permute.xlu1 %2672  ;;  %v2078_v63 = vadd.f32 %v2031_v22, %v1926_v55  ;;  %v2467_v60 = vld [vmem:[#allocation3 + $0x12f] sm:$0xf]  ;;  %v6248_v22 = vld [vmem:[%s8314_s9 + $0xf8] sm:$0xff]  }
 0x2f6   : > { %v3778_v59 = vadd.f32 %v7308_v26, %v3733_v25  ;;  %2690 = vrot.lane.b32.xlu0 %v6317_v36, %s6357_s20  ;;  %v2722_v21 = vadd.f32 %v2673_v8, %v7482_v35  ;;  %v7517_v26 = vadd.f32 %v2525_v6, %v2420_v1  ;;  %5825 = vmatprep.subr.bf16.mxu1 %v6248_v22  ;;  %v7559_v1 = vld [vmem:[%s8313_s8] ss:$0 sm:$0xff] }
 0x2f7   : > { %2954 = vrot.lane.b32.xlu1 %v6317_v36, %s6357_s20  ;;  %v7552_v36 = vld [vmem:[%s8312_s7] ss:$0 sm:$0xff] }
 0x2f8   : > { %3816 = vst [vmem:[#allocation2 + $0x58] sm:$0xff] %v3778_v59  ;;  %v2675_v38 = vpop.permute.xlu0 %2674  ;;  %v6249_v59 = vld [vmem:[%s8314_s9 + $0xb8] sm:$0xff]  }
 0x2f9   : > { %v2939_v20 = vpop.permute.xlu1 %2938  ;;  %v2723_v10 = vadd.f32 %v2675_v38, %v2571_v31  ;;  %5826 = vmatpush3.bf16.msra.mxu1 %v6249_v59 }
 0x2fa   : > { %2956 = vrot.lane.b32.xlu0 %v7512_v5, %s6357_s20  ;;  %v2988_v16 = vadd.f32 %v2939_v20, %v2571_v31  ;;  %v2840_v20 = vld [vmem:[#allocation3 + $0x12f] sm:$0xff] }
 0x2fb   : > { %2196 = vrot.lane.b32.xlu1 %v2123_v27, %s6357_s20  ;;  %v2761_v47 = vpack.c.bf16 %v2723_v10, %v2722_v21  ;;  %v2269_v10 = vld [vmem:[#allocation3 + $0xed] sm:$0xff] }
 0x2fc   : > { %v2941_v53 = vpop.permute.xlu0 %2940 }
 0x2fd   : > { %v2181_v50 = vpop.permute.xlu1 %2180  ;;  %v2989_v35 = vadd.f32 %v2941_v53, %v7517_v26  ;;  %3583 = vmatprep.mubr.bf16.mxu0 %v2761_v47  ;;  %v1973_v53 = vld [vmem:[#allocation3 + $0x12b] sm:$0xf] }
 0x2fe   : > { %v2229_v4 = vadd.f32 %v2181_v50, %v2077_v28  ;;  %v3529_v37 = vpop.f32.mrf.mxu0  ;;  %2198 = vrot.lane.b32.xlu0 %v2124_v29, %s6357_s20  ;;  %v2814_v50 = vld [vmem:[#allocation3 + $0x12b] sm:$0xff] }
 0x2ff   : > { %2390 = vrot.lane.b32.xlu1 %v2315_v43, %s6358_s14  ;;  %v3027_v13 = vpack.c.bf16 %v2989_v35, %v2988_v16  ;;  %v3853_v45 = vld [vmem:[#allocation2 + $0x50] ss:$2 sm:$0xff]  ;;  %v3885_v52 = vld [vmem:[#allocation2 + $0x51] ss:$2 sm:$0xff]  ;;  %v1775_v29 = vld [vmem:[#allocation3 + $0xe9] sm:$0xff] }
 0x300   : > { %v2760_v49 = vpack.c.bf16 %v2229_v4, %v7490_v58  ;;  %v3531_v51 = vpop.f32.mrf.mxu0  ;;  %v2183_v11 = vpop.permute.xlu0 %2182  ;;  %v7523_v57 = vmax.f32 %v3853_v45, %v3885_v52  ;;  %v6250_v16 = vld [vmem:[%s8314_s9 + $0xf0] sm:$0xff]   ;;  %v2815_v45 = vld [vmem:[#allocation3 + $0x133] sm:$0xf]  ;;  %v6252_v52 = vld [vmem:[%s8314_s9 + $0x178] sm:$0xff]  }
 0x301   : > { %v2375_v62 = vpop.permute.xlu1 %2374  ;;  %v7525_v61 = vadd.f32 %v2183_v11, %v2078_v63  ;;  %3302 = vmatprep.mubr.bf16.mxu1 %v3027_v13  ;;  %5827 = vmatprep.subr.bf16.mxu1 %v6250_v16  ;;  %v1776_v11 = vld [vmem:[#allocation3 + $0xf1] sm:$0xff] }
 0x302   : > { %v3532_v7 = vpop.f32.mrf.mxu0  ;;  %3584 = vmatmul.mubr.bf16.gmra.mxu0 %v2760_v49  ;;  %2834 = vrot.lane.b32.xlu0 %v2832_v48, %s6358_s14  ;;  %3923 = vst [vmem:[#allocation4 + $0x30] sm:$0xff] %v7523_v57  ;;  %v2421_v42 = vadd.f32 %v2375_v62, %v2269_v10  ;;  %v6253_v62 = vld [vmem:[%s8314_s9 + $0xe8] sm:$0xff]  }
 0x303   : > { %2836 = vrot.lane.b32.xlu1 %v2833_v32, %s6358_s14  ;;  %v3026_v58 = vpack.c.bf16 %v7525_v61, %v2229_v4  ;;  %v6251_v4 = vld [vmem:[%s8314_s9 + $0xb0] sm:$0xff]   ;;  %5977 = vmatprep.subr.bf16.mxu0 %v6252_v52 }
 0x304   : > { %v3534_v3 = vpop.f32.mrf.mxu0  ;;  %v2377_v18 = vpop.permute.xlu0 %2376  ;;  %5828 = vmatpush3.bf16.msra.mxu1 %v6251_v4  ;;  %v6266_v4 = vld [vmem:[%s8314_s9 + $0x120] sm:$0xff]  }
 0x305   : > { %v1881_v30 = vpop.permute.xlu1 %1880  ;;  %v3248_v17 = vpop.f32.mrf.mxu1  ;;  %3303 = vmatmul.mubr.bf16.gmra.mxu1 %v3026_v58  ;;  %v2823_v3 = vld [vmem:[#allocation3 + $0x134] sm:$0xf]  ;;  %5829 = vmatprep.subr.bf16.mxu1 %v6253_v62  ;;  %v6270_v62 = vld [vmem:[%s8314_s9 + $0x118] sm:$0xff]  }
 0x306   : > { %v3530_v0 = vadd.f32 %v3529_v37, %v3248_v17  ;;  %1896 = vrot.lane.b32.xlu0 %v1821_v54, %s6358_s14  ;;  %v2270_v37 = vld [vmem:[#allocation3 + $0xf5] sm:$0xff]  ;;  %v1927_v49 = vadd.f32 %v1881_v30, %v1775_v29  ;;  %v2822_v29 = vld [vmem:[#allocation3 + $0x12c] sm:$0xff] }
 0x307   : > { %2808 = vrot.lane.b32.xlu1 %v2806_v39, %s6358_s14  ;;  %v3250_v12 = vpop.f32.mrf.mxu1  ;;  %v2422_v13 = vadd.f32 %v2377_v18, %v2270_v37  ;;  %v2885_v18 = vld [vmem:[#allocation3 + $0x138] sm:$0xf]  ;;  %v6255_v30 = vld [vmem:[%s8314_s9 + $0xa8] sm:$0xff]  }
 0x308   : > { %v3651_v19 = vadd.f32 %v7536_v44, %v3530_v0  ;;  %v7539_v6 = vpop.permute.xlu0 %1882  ;;  %5830 = vmatpush3.bf16.msra.mxu1 %v6255_v30  ;;  %v6271_v30 = vld [vmem:[%s8314_s9 + $0x88] sm:$0xff]  }
 0x309   : > { %v2527_v2 = vpop.permute.xlu1 %2526  ;;  %v3251_v56 = vpop.f32.mrf.mxu1 }
 0x30a   : > { %v3689_v46 = vmax.f32 %v3651_v19, 0.0  ;;  %v3533_v25 = vadd.f32 %v3532_v7, %v3251_v56  ;;  %2810 = vrot.lane.b32.xlu0 %v2807_v23, %s6358_s14  ;;  %v2573_v35 = vadd.f32 %v2527_v2, %v2421_v42  ;;  %v2619_v2 = vld [vmem:[#allocation3 + $0x130] sm:$0xf]  ;;  %v6256_v23 = vld [vmem:[%s8314_s9 + $0x170] sm:$0xff]   ;;  %s8247_s14 = scalar_lea.vmem %s8318_s13, %s6154_s22 }
 0x30b   : > { %2542 = vrot.lane.b32.xlu1 %v2467_v60, %s6359_s15  ;;  %v3253_v8 = vpop.f32.mrf.mxu1  ;;  %v2884_v56 = vld [vmem:[#allocation3 + $0x130] sm:$0xff]  ;;  %v6257_v60 = vld [vmem:[%s8314_s9 + $0xe0] sm:$0xff]  }
 0x30c   : > { %v3734_v31 = vmul.f32 %v7552_v36, %v3689_v46  ;;  %v3652_v14 = vadd.f32 %v7536_v44, %v3533_v25  ;;  %v2529_v34 = vpop.permute.xlu0 %2528  ;;  %v6258_v46 = vld [vmem:[%s8314_s9 + $0x130] sm:$0xff]   ;;  %5831 = vmatprep.subr.bf16.mxu1 %v6257_v60 }
 0x30d   : > { %v2033_v38 = vpop.permute.xlu1 %2032  ;;  %v7587_v7 = vadd.f32 %v2529_v34, %v2422_v13  ;;  %v2271_v60 = vld [vmem:[#allocation3 + $0xfd] sm:$0xff] }
 0x30e   : > { %v3779_v33 = vadd.f32 %v7559_v1, %v3734_v31  ;;  %v3690_v21 = vmax.f32 %v3652_v14, 0.0  ;;  %2842 = vrot.lane.b32.xlu0 %v2840_v20, %s6359_s15  ;;  %v2079_v48 = vadd.f32 %v2033_v38, %v1927_v49  ;;  %v6259_v14 = vld [vmem:[%s8314_s9 + $0xa0] sm:$0xff]   ;;  %v6267_v49 = vld [vmem:[%s8314_s9 + $0x90] sm:$0xff]  }
 0x30f   : > { %2844 = vrot.lane.b32.xlu1 %v2841_v41, %s6359_s15  ;;  %5832 = vmatpush3.bf16.msra.mxu1 %v6259_v14 }
 0x310   : > { %3817 = vst [vmem:[#allocation2 + $0x60] sm:$0xff] %v3779_v33  ;;  %v3735_v27 = vmul.f32 %v7552_v36, %v3690_v21  ;;  %v2035_v28 = vpop.permute.xlu0 %2034  ;;  %v6260_v33 = vld [vmem:[%s8314_s9 + $0x168] sm:$0xff]  }
 0x311   : > { %v2677_v47 = vpop.permute.xlu1 %2676  ;;  %v6262_v21 = vld [vmem:[%s8314_s9 + $0x128] sm:$0xff]  }
 0x312   : > { %v3780_v55 = vadd.f32 %v7559_v1, %v3735_v27  ;;  %2048 = vrot.lane.b32.xlu0 %v1973_v53, %s6359_s15  ;;  %v2724_v51 = vadd.f32 %v2677_v47, %v7517_v26  ;;  %v6254_v26 = vld [vmem:[%s8314_s9 + $0x138] sm:$0xff]  }
 0x313   : > { %2816 = vrot.lane.b32.xlu1 %v2814_v50, %s6359_s15  ;;  %5978 = vmatpush3.bf16.msra.mxu0 %v6254_v26  ;;  %v6263_v53 = vld [vmem:[%s8314_s9 + $0x98] sm:$0xff]   ;;  %v6264_v50 = vld [vmem:[%s8314_s9 + $0x160] sm:$0xff]  }
 0x314   : > { %3818 = vst [vmem:[#allocation2 + $0x68] sm:$0xff] %v3780_v55  ;;  %v2679_v43 = vpop.permute.xlu0 %2678  ;;  %5979 = vmatprep.subr.bf16.mxu0 %v6256_v23 }
 0x315   : > { %v2943_v63 = vpop.permute.xlu1 %2942  ;;  %v2725_v32 = vadd.f32 %v2679_v43, %v2573_v35 }
 0x316   : > { %2818 = vrot.lane.b32.xlu0 %v2815_v45, %s6359_s15  ;;  %v2990_v39 = vadd.f32 %v2943_v63, %v2573_v35  ;;  %v6265_v35 = vld [vmem:[%s8314_s9 + $0xd0] sm:$0xff]   ;;  %v6322_v63 = vld [vmem:[#allocation4 + $0x8] sm:$0xff] }
 0x317   : > { %2692 = vrot.lane.b32.xlu1 %v7512_v5, %s6357_s20  ;;  %v2763_v58 = vpack.c.bf16 %v2725_v32, %v2724_v51  ;;  %v1928_v5 = vadd.f32 %v7539_v6, %v1776_v11  ;;  %v6169_v6 = vpack.i.bf16 %v2823_v3, %v2885_v18  ;;  %5980 = vmatpush3.bf16.msra.mxu0 %v6258_v46  ;;  %v6268_v51 = vld [vmem:[%s8314_s9 + $0x158] sm:$0xff]   ;;  %v6269_v11 = vld [vmem:[%s8314_s9 + $0xc8] sm:$0xff]  }
 0x318   : > { %v2945_v17 = vpop.permute.xlu0 %2944  ;;  %5981 = vmatprep.subr.bf16.mxu0 %v6260_v33 }
 0x319   : > { %v2185_v54 = vpop.permute.xlu1 %2184  ;;  %v2991_v0 = vadd.f32 %v2945_v17, %v7587_v7  ;;  %3591 = vmatprep.mubr.bf16.mxu0 %v2763_v58  ;;  %v2080_v25 = vadd.f32 %v2035_v28, %v1928_v5  ;;  %v2125_v28 = vld [vmem:[#allocation3 + $0x12c] sm:$0xf]  ;;  %v6272_v5 = vld [vmem:[%s8314_s9 + $0x150] sm:$0xff]  }
 0x31a   : > { %v2231_v12 = vadd.f32 %v2185_v54, %v2079_v48  ;;  %v3537_v19 = vpop.f32.mrf.mxu0  ;;  %2694 = vrot.lane.b32.xlu0 %v2619_v2, %s6357_s20  ;;  %v4051_v48 = vld [vmem:[#allocation4 + $0x6] sm:$0xff] }
 0x31b   : > { %2958 = vrot.lane.b32.xlu1 %v2884_v56, %s6357_s20  ;;  %v3029_v22 = vpack.c.bf16 %v2991_v0, %v2990_v39  ;;  %v3855_v59 = vld [vmem:[#allocation2 + $0x60] ss:$2 sm:$0xff]  ;;  %v3886_v31 = vld [vmem:[#allocation2 + $0x61] ss:$2 sm:$0xff]  ;;  %5982 = vmatpush3.bf16.msra.mxu0 %v6262_v21 }
 0x31c   : > { %v2762_v8 = vpack.c.bf16 %v2231_v12, %v7525_v61  ;;  %v3539_v41 = vpop.f32.mrf.mxu0  ;;  %v2187_v34 = vpop.permute.xlu0 %2186  ;;  %v7611_v20 = vmax.f32 %v3855_v59, %v3886_v31  ;;  %v6261_v61 = vld [vmem:[%s8314_s9 + $0xd8] sm:$0xff]   ;;  %5983 = vmatprep.subr.bf16.mxu0 %v6264_v50  ;;  %v4293_v59 = vld [vmem:[#allocation4 + $0xa] sm:$0xff]  ;;  %v4294_v50 = vld [vmem:[#allocation4 + $0x12] sm:$0xff] }
 0x31d   : > { %v7609_v38 = vpop.permute.xlu1 %2378  ;;  %v7622_v10 = vadd.f32 %v2187_v34, %v2080_v25  ;;  %3310 = vmatprep.mubr.bf16.mxu1 %v3029_v22  ;;  %5833 = vmatprep.subr.bf16.mxu1 %v6261_v61  ;;  %v3956_v2 = vld [vmem:[#allocation4 + $0x4] sm:$0xff]  ;;  %v3957_v41 = vld [vmem:[#allocation4 + $0xc] sm:$0xff]  ;;  %v1777_v61 = vld [vmem:[#allocation3 + $0xf9] sm:$0xff] }
 0x31e   : > { %v3540_v27 = vpop.f32.mrf.mxu0  ;;  %3592 = vmatmul.mubr.bf16.gmra.mxu0 %v2762_v8  ;;  %6170 = vrot.lane.b32.xlu0 %v6169_v6, %s6357_s20  ;;  %3924 = vst [vmem:[#allocation4 + $0x38] sm:$0xff] %v7611_v20  ;;  %v6275_v6 = vld [vmem:[%s8314_s9 + $0x80] sm:$0xff]   ;;  %v2423_v8 = vadd.f32 %v7609_v38, %v2271_v60  ;;  %v6276_v31 = vld [vmem:[%s8314_s9 + $0x148] sm:$0xff]   ;;  %v4054_v60 = vld [vmem:[#allocation4 + $0x1e] sm:$0xff] }
 0x31f   : > { %2200 = vrot.lane.b32.xlu1 %v2125_v28, %s6357_s20  ;;  %v3028_v47 = vpack.c.bf16 %v7622_v10, %v2231_v12  ;;  %5834 = vmatpush3.bf16.msra.mxu1 %v6263_v53  ;;  %v6274_v12 = vld [vmem:[%s8314_s9 + $0x110] sm:$0xff]   ;;  %v6277_v34 = vld [vmem:[%s8314_s9 + $0x108] sm:$0xff]   ;;  %v2272_v38 = vld [vmem:[#allocation3 + $0x105] sm:$0xff] }
 0x320   : > { %v3542_v42 = vpop.f32.mrf.mxu0  ;;  %v7634_v55 = vpop.permute.xlu0 %2380  ;;  %5835 = vmatprep.subr.bf16.mxu1 %v6265_v35  ;;  %5984 = vmatpush3.bf16.msra.mxu0 %v6266_v4  ;;  %v6278_v35 = vld [vmem:[%s8314_s9 + $0x140] sm:$0xff]  }
 0x321   : > { %v7636_v16 = vpop.permute.xlu1 %1884  ;;  %v3256_v37 = vpop.f32.mrf.mxu1  ;;  %3311 = vmatmul.mubr.bf16.gmra.mxu1 %v3028_v47  ;;  %5985 = vmatprep.subr.bf16.mxu0 %v6268_v51  ;;  %v2424_v28 = vadd.f32 %v7634_v55, %v2272_v38  ;;  %v6279_v4 = vld [vmem:[%s8314_s9 + $0x100] sm:$0xff]  }
 0x322   : > { %v3538_v43 = vadd.f32 %v3537_v19, %v3256_v37  ;;  %2824 = vrot.lane.b32.xlu0 %v2822_v29, %s6357_s20  ;;  %v4052_v19 = vld [vmem:[#allocation4 + $0xe] sm:$0xff]  ;;  %v1929_v47 = vadd.f32 %v7636_v16, %v1777_v61 }
 0x323   : > { %4217 = vrot.lane.b32.xlu1 %v6322_v63, %s6359_s15  ;;  %v3258_v13 = vpop.f32.mrf.mxu1  ;;  %5836 = vmatpush3.bf16.msra.mxu1 %v6267_v49  ;;  %v2273_v38 = vld [vmem:[#allocation3 + $0x10d] sm:$0xff] }
 0x324   : > { %v3653_v32 = vadd.f32 %v7536_v44, %v3538_v43  ;;  %v7653_v45 = vpop.permute.xlu0 %1886  ;;  %5837 = vmatprep.subr.bf16.mxu1 %v6269_v11  ;;  %5986 = vmatpush3.bf16.msra.mxu0 %v6270_v62 }
 0x325   : > { %v2531_v52 = vpop.permute.xlu1 %2530  ;;  %v3259_v26 = vpop.f32.mrf.mxu1  ;;  %5987 = vmatprep.subr.bf16.mxu0 %v6272_v5 }
 0x326   : > { %v3691_v58 = vmax.f32 %v3653_v32, 0.0  ;;  %v3541_v3 = vadd.f32 %v3540_v27, %v3259_v26  ;;  %4219 = vrot.lane.b32.xlu0 %v7374_v15, %s6359_s15  ;;  %v6273_v15 = vld [vmem:[%s8314_s9 + $0xc0] sm:$0xff]   ;;  %v2575_v33 = vadd.f32 %v2531_v52, %v2423_v8  ;;  %v4952_v52 = vld [vmem:[#allocation4 + $0x16] sm:$0xff] }
 0x327   : > { %4070 = vrot.lane.b32.xlu1 %v4051_v48, %s6359_s15  ;;  %v3261_v18 = vpop.f32.mrf.mxu1  ;;  %5838 = vmatpush3.bf16.msra.mxu1 %v6271_v30 }
 0x328   : > { %v3736_v17 = vmul.f32 %v7552_v36, %v3691_v58  ;;  %v3654_v54 = vadd.f32 %v7536_v44, %v3541_v3  ;;  %v2533_v39 = vpop.permute.xlu0 %2532  ;;  %5839 = vmatprep.subr.bf16.mxu1 %v6273_v15  ;;  %5988 = vmatpush3.bf16.msra.mxu0 %v6274_v12 }
 0x329   : > { %v2037_v0 = vpop.permute.xlu1 %2036  ;;  %5989 = vmatprep.subr.bf16.mxu0 %v6276_v31  ;;  %v7706_v37 = vadd.f32 %v2533_v39, %v2424_v28  ;;  %v3959_v31 = vld [vmem:[#allocation4 + $0x1c] sm:$0xff] }
 0x32a   : > { %v3781_v56 = vadd.f32 %v7559_v1, %v3736_v17  ;;  %v3692_v23 = vmax.f32 %v3654_v54, 0.0  ;;  %4072 = vrot.lane.b32.xlu0 %v4052_v19, %s6359_s15  ;;  %v2081_v55 = vadd.f32 %v2037_v0, %v1929_v47  ;;  %v4857_v54 = vld [vmem:[#allocation4 + $0x14] sm:$0xff]  ;;  %v4296_v47 = vld [vmem:[#allocation4 + $0x22] sm:$0xff] }
 0x32b   : > { %3975 = vrot.lane.b32.xlu1 %v3956_v2, %s6359_s15  ;;  %5840 = vmatpush3.bf16.msra.mxu1 %v6275_v6 }
 0x32c   : > { %3819 = vst [vmem:[#allocation2 + $0x70] sm:$0xff] %v3781_v56  ;;  %v3737_v46 = vmul.f32 %v7552_v36, %v3692_v23  ;;  %v2039_v25 = vpop.permute.xlu0 %2038  ;;  %5990 = vmatpush3.bf16.msra.mxu0 %v6277_v34 }
 0x32d   : > { %v2681_v22 = vpop.permute.xlu1 %2680  ;;  %5991 = vmatprep.subr.bf16.mxu0 %v6278_v35  ;;  %v1779_v35 = vld [vmem:[#allocation3 + $0x109] sm:$0xff] }
 0x32e   : > { %v3782_v14 = vadd.f32 %v7559_v1, %v3737_v46  ;;  %3977 = vrot.lane.b32.xlu0 %v3957_v41, %s6359_s15  ;;  %v2726_v42 = vadd.f32 %v2681_v22, %v7587_v7  ;;  %v1778_v7 = vld [vmem:[#allocation3 + $0x101] sm:$0xff] }
 0x32f   : > { %4312 = vrot.lane.b32.xlu1 %v4293_v59, %s6359_s15  ;;  %v1930_v63 = vadd.f32 %v7653_v45, %v1778_v7 }
 0x330   : > { %3820 = vst [vmem:[#allocation2 + $0x78] sm:$0xff] %v3782_v14  ;;  %v2683_v21 = vpop.permute.xlu0 %2682  ;;  %5992 = vmatpush3.bf16.msra.mxu0 %v6279_v4  ;;  %v4295_v14 = vld [vmem:[#allocation4 + $0x1a] sm:$0xff] }
 0x331   : > { %v2947_v27 = vpop.permute.xlu1 %2946  ;;  %v2727_v53 = vadd.f32 %v2683_v21, %v2575_v33  ;;  %v2082_v11 = vadd.f32 %v2039_v25, %v1930_v63  ;;  %v4954_v63 = vld [vmem:[#allocation4 + $0x26] sm:$0xff] }
 0x332   : > { %4314 = vrot.lane.b32.xlu0 %v4294_v50, %s6359_s15  ;;  %v2992_v13 = vadd.f32 %v2947_v27, %v2575_v33  ;;  %v2274_v50 = vld [vmem:[#allocation3 + $0x115] sm:$0xff] }
 0x333   : > { %4970 = vrot.lane.b32.xlu1 %v4052_v19, %s6359_s15  ;;  %v2765_v16 = vpack.c.bf16 %v2727_v53, %v2726_v42 }
 0x334   : > { %v2949_v29 = vpop.permute.xlu0 %2948 }
 0x335   : > { %v2189_v43 = vpop.permute.xlu1 %2188  ;;  %v2993_v49 = vadd.f32 %v2949_v29, %v7706_v37  ;;  %3599 = vmatprep.mubr.bf16.mxu0 %v2765_v16 }
 0x336   : > { %v2233_v51 = vadd.f32 %v2189_v43, %v2081_v55  ;;  %v3545_v32 = vpop.f32.mrf.mxu0  ;;  %4972 = vrot.lane.b32.xlu0 %v4952_v52, %s6359_s15 }
 0x337   : > { %4875 = vrot.lane.b32.xlu1 %v3957_v41, %s6359_s15  ;;  %v3031_v62 = vpack.c.bf16 %v2993_v49, %v2992_v13  ;;  %v3857_v58 = vld [vmem:[#allocation2 + $0x70] ss:$2 sm:$0xff]  ;;  %v3887_v3 = vld [vmem:[#allocation2 + $0x71] ss:$2 sm:$0xff] }
 0x338   : > { %v2764_v26 = vpack.c.bf16 %v2233_v51, %v7622_v10  ;;  %v3547_v48 = vpop.f32.mrf.mxu0  ;;  %v2191_v18 = vpop.permute.xlu0 %2190  ;;  %v7713_v30 = vmax.f32 %v3857_v58, %v3887_v3 }
 0x339   : > { %v2383_v45 = vpop.permute.xlu1 %2382  ;;  %v7715_v5 = vadd.f32 %v2191_v18, %v2082_v11  ;;  %3318 = vmatprep.mubr.bf16.mxu1 %v3031_v62 }
 0x33a   : > { %v3548_v17 = vpop.f32.mrf.mxu0  ;;  %3600 = vmatmul.mubr.bf16.gmra.mxu0 %v2764_v26  ;;  %4877 = vrot.lane.b32.xlu0 %v4857_v54, %s6359_s15  ;;  %3925 = vst [vmem:[#allocation4 + $0x40] sm:$0xff] %v7713_v30  ;;  %v2425_v28 = vadd.f32 %v2383_v45, %v2273_v38 }
 0x33b   : > { %4221 = vrot.lane.b32.xlu1 %v7415_v9, %s6359_s15  ;;  %v3030_v10 = vpack.c.bf16 %v7715_v5, %v2233_v51 }
 0x33c   : > { %v3550_v39 = vpop.f32.mrf.mxu0  ;;  %v2385_v0 = vpop.permute.xlu0 %2384 }
 0x33d   : > { %v1889_v15 = vpop.permute.xlu1 %1888  ;;  %v3264_v12 = vpop.f32.mrf.mxu1  ;;  %3319 = vmatmul.mubr.bf16.gmra.mxu1 %v3030_v10  ;;  %v2426_v16 = vadd.f32 %v2385_v0, %v2274_v50 }
 0x33e   : > { %v3546_v19 = vadd.f32 %v3545_v32, %v3264_v12  ;;  %4223 = vrot.lane.b32.xlu0 %v7453_v40, %s6359_s15  ;;  %v1931_v7 = vadd.f32 %v1889_v15, %v1779_v35  ;;  %v1780_v32 = vld [vmem:[#allocation3 + $0x111] sm:$0xff] }
 0x33f   : > { %4074 = vrot.lane.b32.xlu1 %v4952_v52, %s6359_s15  ;;  %v3266_v2 = vpop.f32.mrf.mxu1 }
 0x340   : > { %v3655_v56 = vadd.f32 %v7536_v44, %v3546_v19  ;;  %v1891_v23 = vpop.permute.xlu0 %1890 }
 0x341   : > { %v2535_v9 = vpop.permute.xlu1 %2534  ;;  %v3267_v6 = vpop.f32.mrf.mxu1  ;;  %v1932_v62 = vadd.f32 %v1891_v23, %v1780_v32 }
 0x342   : > { %v3693_v46 = vmax.f32 %v3655_v56, 0.0  ;;  %v3549_v25 = vadd.f32 %v3548_v17, %v3267_v6  ;;  %4076 = vrot.lane.b32.xlu0 %v4054_v60, %s6359_s15  ;;  %v2577_v53 = vadd.f32 %v2535_v9, %v2425_v28  ;;  %v4056_v6 = vld [vmem:[#allocation4 + $0x2e] sm:$0xff] }
 0x343   : > { %3979 = vrot.lane.b32.xlu1 %v4857_v54, %s6359_s15  ;;  %v3269_v22 = vpop.f32.mrf.mxu1 }
 0x344   : > { %v3738_v8 = vmul.f32 %v7552_v36, %v3693_v46  ;;  %v3656_v40 = vadd.f32 %v7536_v44, %v3549_v25  ;;  %v2537_v41 = vpop.permute.xlu0 %2536 }
 0x345   : > { %v2041_v59 = vpop.permute.xlu1 %2040  ;;  %v7740_v13 = vadd.f32 %v2537_v41, %v2426_v16  ;;  %v4297_v41 = vld [vmem:[#allocation4 + $0x2a] sm:$0xff] }
 0x346   : > { %v3783_v34 = vadd.f32 %v7559_v1, %v3738_v8  ;;  %v3694_v33 = vmax.f32 %v3656_v40, 0.0  ;;  %3981 = vrot.lane.b32.xlu0 %v3959_v31, %s6359_s15  ;;  %v2083_v49 = vadd.f32 %v2041_v59, %v1931_v7  ;;  %v3961_v40 = vld [vmem:[#allocation4 + $0x2c] sm:$0xff] }
 0x347   : > { %4316 = vrot.lane.b32.xlu1 %v4295_v14, %s6359_s15  ;;  %v2276_v7 = vld [vmem:[#allocation3 + $0x125] sm:$0xff] }
 0x348   : > { %3821 = vst [vmem:[#allocation2 + $0x80] sm:$0xff] %v3783_v34  ;;  %v3739_v61 = vmul.f32 %v7552_v36, %v3694_v33  ;;  %v2043_v21 = vpop.permute.xlu0 %2042 }
 0x349   : > { %v2685_v27 = vpop.permute.xlu1 %2684  ;;  %v2084_v18 = vadd.f32 %v2043_v21, %v1932_v62  ;;  %v4298_v21 = vld [vmem:[#allocation4 + $0x32] sm:$0xff] }
 0x34a   : > { %v3784_v42 = vadd.f32 %v7559_v1, %v3739_v61  ;;  %4318 = vrot.lane.b32.xlu0 %v4296_v47, %s6359_s15  ;;  %v2728_v29 = vadd.f32 %v2685_v27, %v7706_v37  ;;  %v4859_v37 = vld [vmem:[#allocation4 + $0x24] sm:$0xff] }
 0x34b   : > { %4974 = vrot.lane.b32.xlu1 %v4054_v60, %s6359_s15  ;;  %v2275_v47 = vld [vmem:[#allocation3 + $0x11d] sm:$0xff] }
 0x34c   : > { %3822 = vst [vmem:[#allocation2 + $0x88] sm:$0xff] %v3784_v42  ;;  %v2687_v4 = vpop.permute.xlu0 %2686 }
 0x34d   : > { %v2951_v55 = vpop.permute.xlu1 %2950  ;;  %v2729_v43 = vadd.f32 %v2687_v4, %v2577_v53  ;;  %v4956_v4 = vld [vmem:[#allocation4 + $0x36] sm:$0xff] }
 0x34e   : > { %4976 = vrot.lane.b32.xlu0 %v4954_v63, %s6359_s15  ;;  %v2994_v26 = vadd.f32 %v2951_v55, %v2577_v53 }
 0x34f   : > { %4879 = vrot.lane.b32.xlu1 %v3959_v31, %s6359_s15  ;;  %v2767_v51 = vpack.c.bf16 %v2729_v43, %v2728_v29  ;;  %v1781_v29 = vld [vmem:[#allocation3 + $0x119] sm:$0xff] }
 0x350   : > { %v2953_v52 = vpop.permute.xlu0 %2952 }
 0x351   : > { %v2193_v11 = vpop.permute.xlu1 %2192  ;;  %v2995_v48 = vadd.f32 %v2953_v52, %v7740_v13  ;;  %3607 = vmatprep.mubr.bf16.mxu0 %v2767_v51 }
 0x352   : > { %v2235_v58 = vadd.f32 %v2193_v11, %v2083_v49  ;;  %v3553_v3 = vpop.f32.mrf.mxu0  ;;  %4881 = vrot.lane.b32.xlu0 %v4859_v37, %s6359_s15  ;;  %v4861_v11 = vld [vmem:[#allocation4 + $0x34] sm:$0xff] }
 0x353   : > { %4225 = vrot.lane.b32.xlu1 %v7488_v24, %s6359_s15  ;;  %v3033_v45 = vpack.c.bf16 %v2995_v48, %v2994_v26  ;;  %v3859_v10 = vld [vmem:[#allocation2 + $0x80] ss:$2 sm:$0xff]  ;;  %v3888_v39 = vld [vmem:[#allocation2 + $0x81] ss:$2 sm:$0xff] }
 0x354   : > { %v2766_v17 = vpack.c.bf16 %v2235_v58, %v7715_v5  ;;  %v3555_v54 = vpop.f32.mrf.mxu0  ;;  %v2195_v0 = vpop.permute.xlu0 %2194  ;;  %v7747_v12 = vmax.f32 %v3859_v10, %v3888_v39 }
 0x355   : > { %v2387_v15 = vpop.permute.xlu1 %2386  ;;  %v7749_v19 = vadd.f32 %v2195_v0, %v2084_v18  ;;  %3326 = vmatprep.mubr.bf16.mxu1 %v3033_v45 }
 0x356   : > { %v3556_v2 = vpop.f32.mrf.mxu0  ;;  %3608 = vmatmul.mubr.bf16.gmra.mxu0 %v2766_v17  ;;  %4227 = vrot.lane.b32.xlu0 %v7523_v57, %s6359_s15  ;;  %3926 = vst [vmem:[#allocation4 + $0x48] sm:$0xff] %v7747_v12  ;;  %v2427_v35 = vadd.f32 %v2387_v15, %v2275_v47 }
 0x357   : > { %4078 = vrot.lane.b32.xlu1 %v4954_v63, %s6359_s15  ;;  %v3032_v24 = vpack.c.bf16 %v7749_v19, %v2235_v58  ;;  %v1782_v58 = vld [vmem:[#allocation3 + $0x121] sm:$0xff] }
 0x358   : > { %v3558_v5 = vpop.f32.mrf.mxu0  ;;  %v2389_v56 = vpop.permute.xlu0 %2388 }
 0x359   : > { %v1893_v23 = vpop.permute.xlu1 %1892  ;;  %v3272_v9 = vpop.f32.mrf.mxu1  ;;  %3327 = vmatmul.mubr.bf16.gmra.mxu1 %v3032_v24  ;;  %v2428_v49 = vadd.f32 %v2389_v56, %v2276_v7 }
 0x35a   : > { %v3554_v60 = vadd.f32 %v3553_v3, %v3272_v9  ;;  %4080 = vrot.lane.b32.xlu0 %v4056_v6, %s6359_s15  ;;  %v1933_v51 = vadd.f32 %v1893_v23, %v1781_v29 }
 0x35b   : > { %3983 = vrot.lane.b32.xlu1 %v4859_v37, %s6359_s15  ;;  %v3274_v46 = vpop.f32.mrf.mxu1 }
 0x35c   : > { %v3657_v57 = vadd.f32 %v7536_v44, %v3554_v60  ;;  %v1895_v25 = vpop.permute.xlu0 %1894 }
 0x35d   : > { %v2539_v22 = vpop.permute.xlu1 %2538  ;;  %v3275_v8 = vpop.f32.mrf.mxu1  ;;  %v1934_v18 = vadd.f32 %v1895_v25, %v1782_v58  ;;  %v3963_v25 = vld [vmem:[#allocation4 + $0x3c] sm:$0xff]  ;;  %v2831_v58 = vld [vmem:[#allocation3 + $0x135] sm:$0xf] }
 0x35e   : > { %v3695_v59 = vmax.f32 %v3657_v57, 0.0  ;;  %v3557_v31 = vadd.f32 %v3556_v2, %v3275_v8  ;;  %3985 = vrot.lane.b32.xlu0 %v3961_v40, %s6359_s15  ;;  %v2579_v16 = vadd.f32 %v2539_v22, %v2427_v35  ;;  %v4299_v22 = vld [vmem:[#allocation4 + $0x3a] sm:$0xff] }
 0x35f   : > { %4320 = vrot.lane.b32.xlu1 %v4297_v41, %s6359_s15  ;;  %v3277_v14 = vpop.f32.mrf.mxu1 }
 0x360   : > { %v3740_v34 = vmul.f32 %v7552_v36, %v3695_v59  ;;  %v3658_v33 = vadd.f32 %v7536_v44, %v3557_v31  ;;  %v2541_v38 = vpop.permute.xlu0 %2540 }
 0x361   : > { %v2045_v61 = vpop.permute.xlu1 %2044  ;;  %v7774_v62 = vadd.f32 %v2541_v38, %v2428_v49 }
 0x362   : > { %v3785_v27 = vadd.f32 %v7559_v1, %v3740_v34  ;;  %v3696_v28 = vmax.f32 %v3658_v33, 0.0  ;;  %4322 = vrot.lane.b32.xlu0 %v4298_v21, %s6359_s15  ;;  %v2085_v26 = vadd.f32 %v2045_v61, %v1933_v51  ;;  %v4300_v34 = vld [vmem:[#allocation4 + $0x42] sm:$0xff] }
 0x363   : > { %4978 = vrot.lane.b32.xlu1 %v4056_v6, %s6359_s15  ;;  %v4058_v6 = vld [vmem:[#allocation4 + $0x3e] sm:$0xff] }
 0x364   : > { %3823 = vst [vmem:[#allocation2 + $0x90] sm:$0xff] %v3785_v27  ;;  %v3741_v42 = vmul.f32 %v7552_v36, %v3696_v28  ;;  %v2047_v53 = vpop.permute.xlu0 %2046 }
 0x365   : > { %v2689_v50 = vpop.permute.xlu1 %2688 }
 0x366   : > { %v3786_v55 = vadd.f32 %v7559_v1, %v3741_v42  ;;  %4980 = vrot.lane.b32.xlu0 %v4956_v4, %s6359_s15  ;;  %v2730_v32 = vadd.f32 %v2689_v50, %v7740_v13  ;;  %v4059_v42 = vld [vmem:[#allocation4 + $0x46] sm:$0xff] }
 0x367   : > { %4883 = vrot.lane.b32.xlu1 %v3961_v40, %s6359_s15 }
 0x368   : > { %3824 = vst [vmem:[#allocation2 + $0x98] sm:$0xff] %v3786_v55  ;;  %v2691_v43 = vpop.permute.xlu0 %2690 }
 0x369   : > { %v2955_v63 = vpop.permute.xlu1 %2954  ;;  %v2731_v52 = vadd.f32 %v2691_v43, %v2579_v16  ;;  %v2277_v43 = vld [vmem:[#allocation3 + $0x12d] sm:$0xf] }
 0x36a   : > { %4885 = vrot.lane.b32.xlu0 %v4861_v11, %s6359_s15  ;;  %v2996_v45 = vadd.f32 %v2955_v63, %v2579_v16 }
 0x36b   : > { %4229 = vrot.lane.b32.xlu1 %v7611_v20, %s6359_s15  ;;  %v2769_v48 = vpack.c.bf16 %v2731_v52, %v2730_v32  ;;  %v2086_v20 = vadd.f32 %v2047_v53, %v1934_v18 }
 0x36c   : > { %v2957_v3 = vpop.permute.xlu0 %2956 }
 0x36d   : > { %v2197_v37 = vpop.permute.xlu1 %2196  ;;  %v2997_v17 = vadd.f32 %v2957_v3, %v7774_v62  ;;  %3615 = vmatprep.mubr.bf16.mxu0 %v2769_v48  ;;  %v1783_v3 = vld [vmem:[#allocation3 + $0x129] sm:$0xf] }
 0x36e   : > { %v2237_v54 = vadd.f32 %v2197_v37, %v2085_v26  ;;  %v3561_v13 = vpop.f32.mrf.mxu0  ;;  %4231 = vrot.lane.b32.xlu0 %v7713_v30, %s6359_s15 }
 0x36f   : > { %4082 = vrot.lane.b32.xlu1 %v4956_v4, %s6359_s15  ;;  %v3035_v10 = vpack.c.bf16 %v2997_v17, %v2996_v45  ;;  %v3861_v15 = vld [vmem:[#allocation2 + $0x90] ss:$2 sm:$0xff]  ;;  %v3889_v2 = vld [vmem:[#allocation2 + $0x91] ss:$2 sm:$0xff]  ;;  %v2830_v17 = vld [vmem:[#allocation3 + $0x12d] sm:$0xff] }
 0x370   : > { %v2768_v39 = vpack.c.bf16 %v2237_v54, %v7749_v19  ;;  %v3563_v0 = vpop.f32.mrf.mxu0  ;;  %v2199_v24 = vpop.permute.xlu0 %2198  ;;  %v3908_v56 = vmax.f32 %v3861_v15, %v3889_v2 }
 0x371   : > { %v2391_v5 = vpop.permute.xlu1 %2390  ;;  %v7781_v23 = vadd.f32 %v2199_v24, %v2086_v20  ;;  %3334 = vmatprep.mubr.bf16.mxu1 %v3035_v10  ;;  %v2804_v24 = vld [vmem:[#allocation3 + $0x129] sm:$0xff] }
 0x372   : > { %v3564_v9 = vpop.f32.mrf.mxu0  ;;  %3616 = vmatmul.mubr.bf16.gmra.mxu0 %v2768_v39  ;;  %4084 = vrot.lane.b32.xlu0 %v4058_v6, %s6359_s15  ;;  %3927 = vst [vmem:[#allocation4 + $0x50] sm:$0xff] %v3908_v56  ;;  %v2429_v51 = vadd.f32 %v2391_v5, %v2277_v43  ;;  %v2805_v5 = vld [vmem:[#allocation3 + $0x131] sm:$0xf] }
 0x373   : > { %3987 = vrot.lane.b32.xlu1 %v4861_v11, %s6359_s15  ;;  %v3034_v30 = vpack.c.bf16 %v7781_v23, %v2237_v54 }
 0x374   : > { %v3566_v19 = vpop.f32.mrf.mxu0  ;;  %v2835_v60 = vpop.permute.xlu0 %2834 }
 0x375   : > { %v2837_v46 = vpop.permute.xlu1 %2836  ;;  %v3280_v57 = vpop.f32.mrf.mxu1  ;;  %3335 = vmatmul.mubr.bf16.gmra.mxu1 %v3034_v30  ;;  %v2838_v0 = vadd.f32 %v2835_v60, %v2830_v17 }
 0x376   : > { %v3562_v8 = vadd.f32 %v3561_v13, %v3280_v57  ;;  %3989 = vrot.lane.b32.xlu0 %v3963_v25, %s6359_s15  ;;  %v2839_v2 = vadd.f32 %v2837_v46, %v2831_v58 }
 0x377   : > { %4324 = vrot.lane.b32.xlu1 %v4299_v22, %s6359_s15  ;;  %v3282_v40 = vpop.f32.mrf.mxu1 }
 0x378   : > { %v3659_v41 = vadd.f32 %v7536_v44, %v3562_v8  ;;  %v1897_v59 = vpop.permute.xlu0 %1896 }
 0x379   : > { %v2809_v31 = vpop.permute.xlu1 %2808  ;;  %v3283_v14 = vpop.f32.mrf.mxu1  ;;  %v4301_v55 = vld [vmem:[#allocation4 + $0x4a] sm:$0xff]  ;;  %v1935_v54 = vadd.f32 %v1897_v59, %v1783_v3 }
 0x37a   : > { %v3697_v33 = vmax.f32 %v3659_v41, 0.0  ;;  %v3565_v38 = vadd.f32 %v3564_v9, %v3283_v14  ;;  %4326 = vrot.lane.b32.xlu0 %v4300_v34, %s6359_s15  ;;  %v2812_v19 = vadd.f32 %v2809_v31, %v2804_v24 }
 0x37b   : > { %4233 = vrot.lane.b32.xlu1 %v7747_v12, %s6359_s15  ;;  %v3285_v61 = vpop.f32.mrf.mxu1 }
 0x37c   : > { %v3742_v21 = vmul.f32 %v7552_v36, %v3697_v33  ;;  %v3660_v27 = vadd.f32 %v7536_v44, %v3565_v38  ;;  %v2811_v28 = vpop.permute.xlu0 %2810 }
 0x37d   : > { %v2543_v47 = vpop.permute.xlu1 %2542  ;;  %v2813_v57 = vadd.f32 %v2811_v28, %v2805_v5 }
 0x37e   : > { %v3787_v53 = vadd.f32 %v7559_v1, %v3742_v21  ;;  %v3698_v50 = vmax.f32 %v3660_v27, 0.0  ;;  %4235 = vrot.lane.b32.xlu0 %v3908_v56, %s6359_s15  ;;  %v2581_v52 = vadd.f32 %v2543_v47, %v2429_v51  ;;  %v4180_v51 = vld [vmem:[#allocation4 + $0xf] sm:$0xff] }
 0x37f   : > { %4086 = vrot.lane.b32.xlu1 %v4059_v42, %s6359_s15 }
 0x380   : > { %3825 = vst [vmem:[#allocation2 + $0xa0] sm:$0xff] %v3787_v53  ;;  %v3743_v35 = vmul.f32 %v7552_v36, %v3698_v50  ;;  %v2843_v4 = vpop.permute.xlu0 %2842 }
 0x381   : > { %v2845_v12 = vpop.permute.xlu1 %2844  ;;  %v2846_v25 = vadd.f32 %v2843_v4, %v2838_v0 }
 0x382   : > { %v3788_v16 = vadd.f32 %v7559_v1, %v3743_v35  ;;  %v2847_v40 = vadd.f32 %v2845_v12, %v2839_v2 }
 0x383   : > { %4328 = vrot.lane.b32.xlu1 %v4301_v55, %s6359_s15 }
 0x384   : > { %3826 = vst [vmem:[#allocation2 + $0xa8] sm:$0xff] %v3788_v16  ;;  %v2049_v7 = vpop.permute.xlu0 %2048 }
 0x385   : > { %v2817_v29 = vpop.permute.xlu1 %2816  ;;  %v2087_v56 = vadd.f32 %v2049_v7, %v1935_v54 }
 0x386   : > { %v2820_v59 = vadd.f32 %v2817_v29, %v2812_v19 }
 0x388   : > { %v2819_v63 = vpop.permute.xlu0 %2818 }
 0x389   : > { %v2693_v49 = vpop.permute.xlu1 %2692  ;;  %v2821_v34 = vadd.f32 %v2819_v63, %v2813_v57  ;;  %v3938_v57 = vld [vmem:[#allocation4 + $0xb] sm:$0xff] }
 0x38a   : > { %v3569_v32 = vpop.f32.mrf.mxu0  ;;  %v2732_v13 = vadd.f32 %v2693_v49, %v7774_v62 }
 0x38b   : > { %v3863_v26 = vld [vmem:[#allocation2 + $0xa0] ss:$2 sm:$0xff]  ;;  %v3890_v48 = vld [vmem:[#allocation2 + $0xa1] ss:$2 sm:$0xff] }
 0x38c   : > { %v3571_v11 = vpop.f32.mrf.mxu0  ;;  %v2695_v37 = vpop.permute.xlu0 %2694  ;;  %v3909_v45 = vmax.f32 %v3863_v26, %v3890_v48  ;;  %v4274_v26 = vld [vmem:[#allocation4 + $0x9] sm:$0xff] }
 0x38d   : > { %v2959_v18 = vpop.permute.xlu1 %2958  ;;  %v2733_v20 = vadd.f32 %v2695_v37, %v2581_v52  ;;  %v3288_v10 = vpop.f32.mrf.mxu1  ;;  %v4179_v37 = vld [vmem:[#allocation4 + $0x7] sm:$0xff] }
 0x38e   : > { %v3572_v39 = vpop.f32.mrf.mxu0  ;;  %v3570_v15 = vadd.f32 %v3569_v32, %v3288_v10  ;;  %3928 = vst [vmem:[#allocation4 + $0x58] sm:$0xff] %v3909_v45  ;;  %4237 = vrot.lane.b32.xlu1 %v3909_v45, %s6359_s15  ;;  %v2998_v33 = vadd.f32 %v2959_v18, %v2846_v25  ;;  %v4033_v10 = vld [vmem:[#allocation4 + $0xd] sm:$0xff]  ;;  %v7822_v25 = vld [vmem:[%s8311_s6] ss:$0 sm:$0xff] }
 0x38f   : > { %v2771_v9 = vpack.c.bf16 %v2733_v20, %v2732_v13  ;;  %v3290_v6 = vpop.f32.mrf.mxu1 }
 0x390   : > { %v3574_v30 = vpop.f32.mrf.mxu0  ;;  %v3661_v62 = vadd.f32 %v7536_v44, %v3570_v15  ;;  %v6171_v22 = vpop.permute.xlu0 %6170 }
 0x391   : > { %v2201_v8 = vpop.permute.xlu1 %2200  ;;  %v3291_v41 = vpop.f32.mrf.mxu1  ;;  %3623 = vmatprep.mubr.bf16.mxu0 %v2771_v9  ;;  %v6344_v38 = vadd.low.f32.bf16 %v2847_v40, %v6171_v22  ;;  %v6345_v42 = vadd.high.f32.bf16 %v2821_v34, %v6171_v22  ;;  %v4838_v22 = vld [vmem:[#allocation4 + $0x13] sm:$0xff] }
 0x392   : > { %v2239_v60 = vadd.f32 %v2201_v8, %v2087_v56  ;;  %v3699_v14 = vmax.f32 %v3661_v62, 0.0  ;;  %v3573_v46 = vadd.f32 %v3572_v39, %v3291_v41  ;;  %v4933_v39 = vld [vmem:[#allocation4 + $0x15] sm:$0xff] }
 0x393   : > { %v3293_v21 = vpop.f32.mrf.mxu1  ;;  %v3037_v35 = vpack.c.bf16 %v6344_v38, %v2998_v33 }
 0x394   : > { %v2770_v61 = vpack.c.bf16 %v2239_v60, %v7781_v23  ;;  %v3744_v31 = vmul.f32 %v7552_v36, %v3699_v14  ;;  %v3662_v27 = vadd.f32 %v7536_v44, %v3573_v46  ;;  %v2825_v28 = vpop.permute.xlu0 %2824 }
 0x395   : > { %v4218_v47 = vpop.permute.xlu1 %4217  ;;  %v2828_v53 = vadd.f32 %v2825_v28, %v2820_v59  ;;  %v4302_v50 = vld [vmem:[#allocation4 + $0x52] sm:$0xff]  ;;  %3342 = vmatprep.mubr.bf16.mxu1 %v3037_v35  ;;  %v4035_v35 = vld [vmem:[#allocation4 + $0x1d] sm:$0xff] }
 0x396   : > { %3624 = vmatmul.mubr.bf16.gmra.mxu0 %v2770_v61  ;;  %v3789_v4 = vadd.f32 %v7559_v1, %v3744_v31  ;;  %v3700_v12 = vmax.f32 %v3662_v27, 0.0  ;;  %4330 = vrot.lane.b32.xlu0 %v4302_v50, %s6359_s15  ;;  %v4255_v17 = vadd.f32 %v4218_v47, %v4179_v37  ;;  %v7829_v61 = vld [vmem:[%s8312_s7] ss:$0 sm:$0xff] }
 0x397   : > { %v3036_v55 = vpack.c.bf16 %v6345_v42, %v2828_v53  ;;  %v7836_v47 = vld [vmem:[%s8313_s8] ss:$0 sm:$0xff] }
 0x398   : > { %3827 = vst [vmem:[#allocation2 + $0xb0] sm:$0xff] %v3789_v4  ;;  %v3745_v23 = vmul.f32 %v7552_v36, %v3700_v12  ;;  %v4220_v16 = vpop.permute.xlu0 %4219  ;;  %v4275_v36 = vld [vmem:[#allocation4 + $0x11] sm:$0xff] }
 0x399   : > { %v7809_v7 = vpop.permute.xlu1 %4070  ;;  %3343 = vmatmul.mubr.bf16.gmra.mxu1 %v3036_v55  ;;  %v4256_v11 = vadd.f32 %v4220_v16, %v4180_v51  ;;  %v3940_v51 = vld [vmem:[#allocation4 + $0x1b] sm:$0xff] }
 0x39a   : > { %v3790_v44 = vadd.f32 %v7559_v1, %v3745_v23 }
 0x39b   : > { %v4369_v20 = vpack.c.bf16 %v4256_v11, %v4255_v17 }
 0x39c   : > { %3828 = vst [vmem:[#allocation2 + $0xb8] sm:$0xff] %v3790_v44  ;;  %v7812_v29 = vpop.permute.xlu0 %4072 }
 0x39d   : > { %v7814_v43 = vpop.permute.xlu1 %3975 }
 0x3a0   : > { %v7816_v63 = vpop.permute.xlu0 %3977 }
 0x3a1   : > { %v4313_v49 = vpop.permute.xlu1 %4312 }
 0x3a2   : > { %v4350_v18 = vadd.f32 %v4313_v49, %v4274_v26  ;;  %v4182_v26 = vld [vmem:[#allocation4 + $0x1f] sm:$0xff] }
 0x3a3   : > { %v3865_v32 = vld [vmem:[#allocation2 + $0xb0] ss:$2 sm:$0xff]  ;;  %v3891_v52 = vld [vmem:[#allocation2 + $0xb1] ss:$2 sm:$0xff] }
 0x3a4   : > { %v4315_v48 = vpop.permute.xlu0 %4314  ;;  %v3910_v3 = vmax.f32 %v3865_v32, %v3891_v52 }
 0x3a5   : > { %v4971_v58 = vpop.permute.xlu1 %4970  ;;  %v4351_v1 = vadd.f32 %v4315_v48, %v4275_v36 }
 0x3a6   : > { %v3577_v45 = vpop.f32.mrf.mxu0  ;;  %3929 = vst [vmem:[#allocation4 + $0x60] sm:$0xff] %v3910_v3  ;;  %4239 = vrot.lane.b32.xlu0 %v3910_v3, %s6359_s15  ;;  %v5008_v2 = vadd.f32 %v4971_v58, %v4033_v10  ;;  %v4276_v58 = vld [vmem:[#allocation4 + $0x19] sm:$0xff]  ;;  %v4277_v3 = vld [vmem:[#allocation4 + $0x21] sm:$0xff] }
 0x3a7   : > { %v4370_v54 = vpack.c.bf16 %v4351_v1, %v4350_v18  ;;  %v4181_v1 = vld [vmem:[#allocation4 + $0x17] sm:$0xff] }
 0x3a8   : > { %v3579_v13 = vpop.f32.mrf.mxu0  ;;  %v4973_v0 = vpop.permute.xlu0 %4972 }
 0x3a9   : > { %v4876_v15 = vpop.permute.xlu1 %4875  ;;  %v5009_v24 = vadd.f32 %v4973_v0, %v4933_v39  ;;  %v3296_v5 = vpop.f32.mrf.mxu1  ;;  %4549 = vmatprep.mubr.bf16.mxu1 %v4370_v54  ;;  %v4935_v0 = vld [vmem:[#allocation4 + $0x25] sm:$0xff] }
 0x3aa   : > { %v3580_v56 = vpop.f32.mrf.mxu0  ;;  %v3578_v9 = vadd.f32 %v3577_v45, %v3296_v5  ;;  %4550 = vmatmul.mubr.bf16.vlgmr.msra.gmra.mxu1 %v4369_v20  ;;  %v4913_v60 = vadd.f32 %v4876_v15, %v3938_v57 }
 0x3ab   : > { %v5028_v6 = vpack.c.bf16 %v5009_v24, %v5008_v2  ;;  %v3298_v30 = vpop.f32.mrf.mxu1 }
 0x3ac   : > { %v3582_v19 = vpop.f32.mrf.mxu0  ;;  %v3663_v62 = vadd.f32 %v7822_v25, %v3578_v9  ;;  %v4878_v8 = vpop.permute.xlu0 %4877 }
 0x3ad   : > { %v4222_v40 = vpop.permute.xlu1 %4221  ;;  %v4914_v41 = vadd.f32 %v4878_v8, %v4838_v22  ;;  %v3299_v59 = vpop.f32.mrf.mxu1  ;;  %5207 = vmatprep.mubr.bf16.mxu0 %v5028_v6  ;;  %v4303_v14 = vld [vmem:[#allocation4 + $0x5a] sm:$0xff]  ;;  %v4840_v19 = vld [vmem:[#allocation4 + $0x23] sm:$0xff] }
 0x3ae   : > { %v3701_v46 = vmax.f32 %v3663_v62, 0.0  ;;  %v3581_v34 = vadd.f32 %v3580_v56, %v3299_v59  ;;  %4332 = vrot.lane.b32.xlu1 %v4303_v14, %s6359_s15  ;;  %v4257_v54 = vadd.f32 %v4222_v40, %v4181_v1 }
 0x3af   : > { %v5027_v33 = vpack.c.bf16 %v4914_v41, %v4913_v60  ;;  %v3301_v38 = vpop.f32.mrf.mxu1 }
 0x3b0   : > { %v3746_v21 = vmul.f32 %v7829_v61, %v3701_v46  ;;  %v3664_v31 = vadd.f32 %v7822_v25, %v3581_v34  ;;  %v4224_v27 = vpop.permute.xlu0 %4223 }
 0x3b1   : > { %v4075_v28 = vpop.permute.xlu1 %4074  ;;  %5208 = vmatmul.mubr.bf16.vlgmr.msra.gmra.mxu0 %v5027_v33  ;;  %v4258_v48 = vadd.f32 %v4224_v27, %v4182_v26 }
 0x3b2   : > { %v3791_v42 = vadd.f32 %v7836_v47, %v3746_v21  ;;  %v3702_v53 = vmax.f32 %v3664_v31, 0.0  ;;  %v7840_v55 = vadd.f32 %v4933_v39, %v4075_v28 }
 0x3b3   : > { %v4371_v39 = vpack.c.bf16 %v4258_v48, %v4257_v54 }
 0x3b4   : > { %3829 = vst [vmem:[#allocation2 + $0xc0] sm:$0xff] %v3791_v42  ;;  %v3747_v50 = vmul.f32 %v7829_v61, %v3702_v53  ;;  %v4077_v4 = vpop.permute.xlu0 %4076 }
 0x3b5   : > { %v3980_v12 = vpop.permute.xlu1 %3979  ;;  %v7842_v23 = vadd.f32 %v4077_v4, %v4035_v35  ;;  %v4037_v4 = vld [vmem:[#allocation4 + $0x2d] sm:$0xff] }
 0x3b6   : > { %v7844_v16 = vadd.f32 %v4838_v22, %v3980_v12  ;;  %v3792_v44 = vadd.f32 %v7836_v47, %v3747_v50 }
 0x3b7   : > { %v4130_v49 = vpack.c.bf16 %v7842_v23, %v7840_v55  ;;  %v6332_v55 = vld [vmem:[%s8314_s9 + $0x168] sm:$0xff]  }
 0x3b8   : > { %3830 = vst [vmem:[#allocation2 + $0xc8] sm:$0xff] %v3792_v44  ;;  %v3982_v32 = vpop.permute.xlu0 %3981  ;;  %v4041_v23 = vld [vmem:[#allocation4 + $0x4d] sm:$0xff] }
 0x3b9   : > { %v4317_v52 = vpop.permute.xlu1 %4316  ;;  %v7849_v11 = vadd.f32 %v3982_v32, %v3940_v51 }
 0x3ba   : > { %v4352_v45 = vadd.f32 %v4317_v52, %v4276_v58 }
 0x3bb   : > { %v4129_v36 = vpack.c.bf16 %v7849_v11, %v7844_v16 }
 0x3bc   : > { %v4319_v37 = vpop.permute.xlu0 %4318 }
 0x3bd   : > { %v4975_v18 = vpop.permute.xlu1 %4974  ;;  %v4353_v17 = vadd.f32 %v4319_v37, %v4277_v3  ;;  %v3942_v3 = vld [vmem:[#allocation4 + $0x2b] sm:$0xff] }
 0x3be   : > { %v5010_v5 = vadd.f32 %v4975_v18, %v4035_v35 }
 0x3bf   : > { %v4372_v13 = vpack.c.bf16 %v4353_v17, %v4352_v45  ;;  %v3867_v20 = vld [vmem:[#allocation2 + $0xc0] ss:$2 sm:$0xff]  ;;  %v3892_v10 = vld [vmem:[#allocation2 + $0xc1] ss:$2 sm:$0xff] }
 0x3c0   : > { %v4977_v15 = vpop.permute.xlu0 %4976  ;;  %v3911_v24 = vmax.f32 %v3867_v20, %v3892_v10  ;;  %v4184_v17 = vld [vmem:[#allocation4 + $0x2f] sm:$0xff] }
 0x3c1   : > { %v4880_v2 = vpop.permute.xlu1 %4879  ;;  %v5011_v56 = vadd.f32 %v4977_v15, %v4935_v0  ;;  %4557 = vmatprep.mubr.bf16.mxu1 %v4372_v13  ;;  %v4278_v20 = vld [vmem:[#allocation4 + $0x29] sm:$0xff]  ;;  %v4279_v10 = vld [vmem:[#allocation4 + $0x31] sm:$0xff] }
 0x3c2   : > { %v3585_v9 = vpop.f32.mrf.mxu0  ;;  %4558 = vmatmul.mubr.bf16.gmra.mxu1 %v4371_v39  ;;  %3930 = vst [vmem:[#allocation4 + $0x68] sm:$0xff] %v3911_v24  ;;  %4241 = vrot.lane.b32.xlu1 %v3911_v24, %s6359_s15  ;;  %v4915_v22 = vadd.f32 %v4880_v2, %v3940_v51  ;;  %v4183_v15 = vld [vmem:[#allocation4 + $0x27] sm:$0xff] }
 0x3c3   : > { %v5030_v6 = vpack.c.bf16 %v5011_v56, %v5010_v5 }
 0x3c4   : > { %v3587_v30 = vpop.f32.mrf.mxu0  ;;  %v4882_v57 = vpop.permute.xlu0 %4881 }
 0x3c5   : > { %v4226_v62 = vpop.permute.xlu1 %4225  ;;  %v4916_v8 = vadd.f32 %v4882_v57, %v4840_v19  ;;  %v3304_v40 = vpop.f32.mrf.mxu1  ;;  %5215 = vmatprep.mubr.bf16.mxu0 %v5030_v6  ;;  %v4937_v6 = vld [vmem:[#allocation4 + $0x35] sm:$0xff] }
 0x3c6   : > { %v3588_v60 = vpop.f32.mrf.mxu0  ;;  %v3586_v41 = vadd.f32 %v3585_v9, %v3304_v40  ;;  %v4259_v5 = vadd.f32 %v4226_v62, %v4183_v15  ;;  %v7889_v15 = vld [vmem:[#allocation4 + $0x3b] sm:$0xff] }
 0x3c7   : > { %v5029_v59 = vpack.c.bf16 %v4916_v8, %v4915_v22  ;;  %v3306_v14 = vpop.f32.mrf.mxu1 }
 0x3c8   : > { %v3590_v46 = vpop.f32.mrf.mxu0  ;;  %v3665_v34 = vadd.f32 %v7822_v25, %v3586_v41  ;;  %v4228_v33 = vpop.permute.xlu0 %4227  ;;  %v4842_v41 = vld [vmem:[#allocation4 + $0x33] sm:$0xff] }
 0x3c9   : > { %v4079_v38 = vpop.permute.xlu1 %4078  ;;  %v3307_v31 = vpop.f32.mrf.mxu1  ;;  %5216 = vmatmul.mubr.bf16.gmra.mxu0 %v5029_v59  ;;  %v4304_v27 = vld [vmem:[#allocation4 + $0x62] sm:$0xff]  ;;  %v4260_v13 = vadd.f32 %v4228_v33, %v4184_v17 }
 0x3ca   : > { %v7855_v21 = vadd.f32 %v4935_v0, %v4079_v38  ;;  %v3703_v28 = vmax.f32 %v3665_v34, 0.0  ;;  %v3589_v42 = vadd.f32 %v3588_v60, %v3307_v31  ;;  %4334 = vrot.lane.b32.xlu0 %v4304_v27, %s6359_s15 }
 0x3cb   : > { %v3309_v53 = vpop.f32.mrf.mxu1  ;;  %v4373_v9 = vpack.c.bf16 %v4260_v13, %v4259_v5 }
 0x3cc   : > { %v3748_v50 = vmul.f32 %v7829_v61, %v3703_v28  ;;  %v3666_v35 = vadd.f32 %v7822_v25, %v3589_v42  ;;  %v4081_v12 = vpop.permute.xlu0 %4080 }
 0x3cd   : > { %v3984_v44 = vpop.permute.xlu1 %3983  ;;  %v7860_v51 = vadd.f32 %v4081_v12, %v4037_v4 }
 0x3ce   : > { %v7862_v32 = vadd.f32 %v4840_v19, %v3984_v44  ;;  %v3793_v52 = vadd.f32 %v7836_v47, %v3748_v50  ;;  %v3704_v26 = vmax.f32 %v3666_v35, 0.0 }
 0x3cf   : > { %v4132_v48 = vpack.c.bf16 %v7860_v51, %v7855_v21  ;;  %v6335_v51 = vld [vmem:[%s8314_s9 + $0x120] sm:$0xff]  }
 0x3d0   : > { %3831 = vst [vmem:[#allocation2 + $0xd0] sm:$0xff] %v3793_v52  ;;  %v3749_v58 = vmul.f32 %v7829_v61, %v3704_v26  ;;  %v3986_v37 = vpop.permute.xlu0 %3985  ;;  %v7877_v52 = vld [vmem:[#allocation4 + $0x3d] sm:$0xff] }
 0x3d1   : > { %v4321_v18 = vpop.permute.xlu1 %4320  ;;  %v7868_v1 = vadd.f32 %v3986_v37, %v3942_v3 }
 0x3d2   : > { %v3794_v45 = vadd.f32 %v7836_v47, %v3749_v58  ;;  %v4354_v2 = vadd.f32 %v4321_v18, %v4278_v20 }
 0x3d3   : > { %v4131_v54 = vpack.c.bf16 %v7868_v1, %v7862_v32 }
 0x3d4   : > { %3832 = vst [vmem:[#allocation2 + $0xd8] sm:$0xff] %v3794_v45  ;;  %v4323_v39 = vpop.permute.xlu0 %4322 }
 0x3d5   : > { %v4979_v0 = vpop.permute.xlu1 %4978  ;;  %v4355_v24 = vadd.f32 %v4323_v39, %v4279_v10 }
 0x3d6   : > { %v5012_v57 = vadd.f32 %v4979_v0, %v4037_v4 }
 0x3d7   : > { %v4374_v56 = vpack.c.bf16 %v4355_v24, %v4354_v2 }
 0x3d8   : > { %v4981_v30 = vpop.permute.xlu0 %4980 }
 0x3d9   : > { %v4884_v19 = vpop.permute.xlu1 %4883  ;;  %v5013_v22 = vadd.f32 %v4981_v30, %v4937_v6  ;;  %4565 = vmatprep.mubr.bf16.mxu1 %v4374_v56 }
 0x3da   : > { %4566 = vmatmul.mubr.bf16.gmra.mxu1 %v4373_v9  ;;  %v4917_v34 = vadd.f32 %v4884_v19, %v3942_v3 }
 0x3db   : > { %v5032_v8 = vpack.c.bf16 %v5013_v22, %v5012_v57  ;;  %v3869_v40 = vld [vmem:[#allocation2 + $0xd0] ss:$2 sm:$0xff]  ;;  %v3893_v60 = vld [vmem:[#allocation2 + $0xd1] ss:$2 sm:$0xff] }
 0x3dc   : > { %v4886_v59 = vpop.permute.xlu0 %4885  ;;  %v3912_v46 = vmax.f32 %v3869_v40, %v3893_v60  ;;  %v4280_v22 = vld [vmem:[#allocation4 + $0x39] sm:$0xff] }
 0x3dd   : > { %v4230_v14 = vpop.permute.xlu1 %4229  ;;  %v4918_v33 = vadd.f32 %v4886_v59, %v4842_v41  ;;  %5223 = vmatprep.mubr.bf16.mxu0 %v5032_v8  ;;  %v4281_v8 = vld [vmem:[#allocation4 + $0x41] sm:$0xff]  ;;  %v4185_v60 = vld [vmem:[#allocation4 + $0x37] sm:$0xff] }
 0x3de   : > { %v3593_v38 = vpop.f32.mrf.mxu0  ;;  %3931 = vst [vmem:[#allocation4 + $0x70] sm:$0xff] %v3912_v46  ;;  %4243 = vrot.lane.b32.xlu0 %v3912_v46, %s6359_s15  ;;  %v4261_v46 = vadd.f32 %v4230_v14, %v4185_v60  ;;  %v4187_v60 = vld [vmem:[#allocation4 + $0x47] sm:$0xff] }
 0x3df   : > { %v5031_v62 = vpack.c.bf16 %v4918_v33, %v4917_v34 }
 0x3e0   : > { %v3595_v31 = vpop.f32.mrf.mxu0  ;;  %v4232_v27 = vpop.permute.xlu0 %4231 }
 0x3e1   : > { %v4083_v28 = vpop.permute.xlu1 %4082  ;;  %v3312_v53 = vpop.f32.mrf.mxu1  ;;  %5224 = vmatmul.mubr.bf16.gmra.mxu0 %v5031_v62 }
 0x3e2   : > { %v7874_v42 = vadd.f32 %v4937_v6, %v4083_v28  ;;  %v3596_v50 = vpop.f32.mrf.mxu0  ;;  %v3594_v35 = vadd.f32 %v3593_v38, %v3312_v53  ;;  %v4186_v6 = vld [vmem:[#allocation4 + $0x3f] sm:$0xff] }
 0x3e3   : > { %v3314_v4 = vpop.f32.mrf.mxu1  ;;  %v4262_v19 = vadd.f32 %v4232_v27, %v4186_v6  ;;  %v4188_v6 = vld [vmem:[#allocation4 + $0x4f] sm:$0xff] }
 0x3e4   : > { %v3598_v12 = vpop.f32.mrf.mxu0  ;;  %v3667_v44 = vadd.f32 %v7822_v25, %v3594_v35  ;;  %v4085_v26 = vpop.permute.xlu0 %4084 }
 0x3e5   : > { %v3988_v58 = vpop.permute.xlu1 %3987  ;;  %v7880_v3 = vadd.f32 %v4085_v26, %v7877_v52  ;;  %v3315_v18 = vpop.f32.mrf.mxu1  ;;  %v4305_v45 = vld [vmem:[#allocation4 + $0x6a] sm:$0xff]  ;;  %v4375_v38 = vpack.c.bf16 %v4262_v19, %v4261_v46 }
 0x3e6   : > { %v7882_v37 = vadd.f32 %v4842_v41, %v3988_v58  ;;  %v3705_v17 = vmax.f32 %v3667_v44, 0.0  ;;  %v3597_v13 = vadd.f32 %v3596_v50, %v3315_v18  ;;  %4336 = vrot.lane.b32.xlu1 %v4305_v45, %s6359_s15 }
 0x3e7   : > { %v4134_v20 = vpack.c.bf16 %v7880_v3, %v7874_v42  ;;  %v3317_v10 = vpop.f32.mrf.mxu1  ;;  %v6340_v42 = vld [vmem:[%s8314_s9 + $0x148] sm:$0xff]  }
 0x3e8   : > { %v3750_v39 = vmul.f32 %v7829_v61, %v3705_v17  ;;  %v3668_v0 = vadd.f32 %v7822_v25, %v3597_v13  ;;  %v3990_v2 = vpop.permute.xlu0 %3989 }
 0x3e9   : > { %v7892_v24 = vadd.f32 %v3990_v2, %v7889_v15  ;;  %v4325_v9 = vpop.permute.xlu1 %4324 }
 0x3ea   : > { %v3795_v5 = vadd.f32 %v7836_v47, %v3750_v39  ;;  %v3706_v56 = vmax.f32 %v3668_v0, 0.0  ;;  %v4356_v41 = vadd.f32 %v4325_v9, %v4280_v22 }
 0x3eb   : > { %v4133_v30 = vpack.c.bf16 %v7892_v24, %v7882_v37 }
 0x3ec   : > { %3833 = vst [vmem:[#allocation2 + $0xe0] sm:$0xff] %v3795_v5  ;;  %v3751_v57 = vmul.f32 %v7829_v61, %v3706_v56  ;;  %v4327_v40 = vpop.permute.xlu0 %4326 }
 0x3ed   : > { %v4357_v59 = vadd.f32 %v4327_v40, %v4281_v8  ;;  %v4234_v53 = vpop.permute.xlu1 %4233  ;;  %v4283_v8 = vld [vmem:[#allocation4 + $0x51] sm:$0xff] }
 0x3ee   : > { %v3796_v34 = vadd.f32 %v7836_v47, %v3751_v57  ;;  %v4282_v57 = vld [vmem:[#allocation4 + $0x49] sm:$0xff]  ;;  %v4263_v46 = vadd.f32 %v4234_v53, %v4187_v60  ;;  %v6280_v60 = vld [vmem:[%s8314_s9 + $0x78] sm:$0xff]  }
 0x3ef   : > { %v4376_v33 = vpack.c.bf16 %v4357_v59, %v4356_v41  ;;  %5901 = vmatprep.subr.bf16.mxu1 %v6280_v60 }
 0x3f0   : > { %3834 = vst [vmem:[#allocation2 + $0xe8] sm:$0xff] %v3796_v34  ;;  %v4236_v39 = vpop.permute.xlu0 %4235 }
 0x3f1   : > { %4573 = vmatprep.mubr.bf16.mxu1 %v4376_v33  ;;  %v7900_v26 = vpop.permute.xlu1 %4086  ;;  %v4264_v19 = vadd.f32 %v4236_v39, %v4188_v6 }
 0x3f2   : > { %4574 = vmatmul.mubr.bf16.gmra.mxu1 %v4375_v38 }
 0x3f3   : > { %v4377_v38 = vpack.c.bf16 %v4264_v19, %v4263_v46 }
 0x3f5   : > { %v4329_v5 = vpop.permute.xlu1 %4328 }
 0x3f6   : > { %v4358_v41 = vadd.f32 %v4329_v5, %v4282_v57 }
 0x3f7   : > { %v3871_v62 = vld [vmem:[#allocation2 + $0xe0] ss:$2 sm:$0xff]  ;;  %v3894_v31 = vld [vmem:[#allocation2 + $0xe1] ss:$2 sm:$0xff] }
 0x3f8   : > { %v3913_v27 = vmax.f32 %v3871_v62, %v3894_v31 }
 0x3fa   : > { %v3601_v28 = vpop.f32.mrf.mxu0  ;;  %3932 = vst [vmem:[#allocation4 + $0x78] sm:$0xff] %v3913_v27  ;;  %4245 = vrot.lane.b32.xlu1 %v3913_v27, %s6359_s15 }
 0x3fc   : > { %v3603_v50 = vpop.f32.mrf.mxu0 }
 0x3fd   : > { %v3320_v35 = vpop.f32.mrf.mxu1 }
 0x3fe   : > { %v3604_v4 = vpop.f32.mrf.mxu0  ;;  %v3602_v12 = vadd.f32 %v3601_v28, %v3320_v35 }
 0x3ff   : > { %v3322_v14 = vpop.f32.mrf.mxu1 }
 0x400   : > { %v3606_v44 = vpop.f32.mrf.mxu0  ;;  %v3669_v58 = vadd.f32 %v7822_v25, %v3602_v12 }
 0x401   : > { %v3323_v18 = vpop.f32.mrf.mxu1  ;;  %v4306_v45 = vld [vmem:[#allocation4 + $0x72] sm:$0xff] }
 0x402   : > { %v3707_v17 = vmax.f32 %v3669_v58, 0.0  ;;  %v3605_v13 = vadd.f32 %v3604_v4, %v3323_v18  ;;  %4338 = vrot.lane.b32.xlu0 %v4306_v45, %s6359_s15 }
 0x403   : > { %v3325_v10 = vpop.f32.mrf.mxu1 }
 0x404   : > { %v3752_v0 = vmul.f32 %v7829_v61, %v3707_v17  ;;  %v3670_v2 = vadd.f32 %v7822_v25, %v3605_v13 }
 0x406   : > { %v3797_v56 = vadd.f32 %v7836_v47, %v3752_v0  ;;  %v3708_v9 = vmax.f32 %v3670_v2, 0.0 }
 0x408   : > { %3835 = vst [vmem:[#allocation2 + $0xf0] sm:$0xff] %v3797_v56  ;;  %v3753_v22 = vmul.f32 %v7829_v61, %v3708_v9  ;;  %v4331_v40 = vpop.permute.xlu0 %4330 }
 0x409   : > { %v4359_v59 = vadd.f32 %v4331_v40, %v4283_v8 }
 0x40a   : > { %v3798_v34 = vadd.f32 %v7836_v47, %v3753_v22 }
 0x40b   : > { %v4378_v33 = vpack.c.bf16 %v4359_v59, %v4358_v41  ;;  %v6281_v41 = vld [vmem:[%s8314_s9 + $0x38] sm:$0xff]   ;;  %v4238_v59 = vpop.permute.xlu1 %4237 }
 0x40c   : > { %3836 = vst [vmem:[#allocation2 + $0xf8] sm:$0xff] %v3798_v34  ;;  %5902 = vmatpush3.bf16.msra.mxu1 %v6281_v41 }
 0x40d   : > { %4581 = vmatprep.mubr.bf16.mxu1 %v4378_v33 }
 0x40e   : > { %4582 = vmatmul.mubr.bf16.gmra.mxu1 %v4377_v38 }
 0x413   : > { %v3873_v62 = vld [vmem:[#allocation2 + $0xf0] ss:$2 sm:$0xff]  ;;  %v3895_v31 = vld [vmem:[#allocation2 + $0xf1] ss:$2 sm:$0xff] }
 0x414   : > { %v3914_v27 = vmax.f32 %v3873_v62, %v3895_v31 }
 0x416   : > { %v3609_v28 = vpop.f32.mrf.mxu0  ;;  %3933 = vst [vmem:[#allocation4 + $0x80] sm:$0xff] %v3914_v27  ;;  %4247 = vrot.lane.b32.xlu0 %v3914_v27, %s6359_s15 }
 0x418   : > { %v3611_v50 = vpop.f32.mrf.mxu0  ;;  %v4240_v38 = vpop.permute.xlu0 %4239 }
 0x419   : > { %v3328_v35 = vpop.f32.mrf.mxu1 }
 0x41a   : > { %v3612_v4 = vpop.f32.mrf.mxu0  ;;  %v3610_v12 = vadd.f32 %v3609_v28, %v3328_v35 }
 0x41b   : > { %v3330_v14 = vpop.f32.mrf.mxu1 }
 0x41c   : > { %v3614_v53 = vpop.f32.mrf.mxu0  ;;  %v3671_v44 = vadd.f32 %v7822_v25, %v3610_v12 }
 0x41d   : > { %v3331_v58 = vpop.f32.mrf.mxu1  ;;  %v4307_v18 = vld [vmem:[#allocation4 + $0x7a] sm:$0xff] }
 0x41e   : > { %v3709_v45 = vmax.f32 %v3671_v44, 0.0  ;;  %v3613_v17 = vadd.f32 %v3612_v4, %v3331_v58  ;;  %4340 = vrot.lane.b32.xlu1 %v4307_v18, %s6359_s15  ;;  %v4190_v4 = vld [vmem:[#allocation4 + $0x5f] sm:$0xff] }
 0x41f   : > { %v3333_v13 = vpop.f32.mrf.mxu1  ;;  %v4266_v14 = vadd.f32 %v4240_v38, %v4190_v4  ;;  %v4284_v53 = vld [vmem:[#allocation4 + $0x59] sm:$0xff]  ;;  %v4285_v18 = vld [vmem:[#allocation4 + $0x61] sm:$0xff] }
 0x420   : > { %v3754_v10 = vmul.f32 %v7829_v61, %v3709_v45  ;;  %v3672_v39 = vadd.f32 %v7822_v25, %v3613_v17  ;;  %v4333_v28 = vpop.permute.xlu1 %4332  ;;  %v4189_v17 = vld [vmem:[#allocation4 + $0x57] sm:$0xff] }
 0x421   : > { %v4360_v13 = vadd.f32 %v4333_v28, %v4284_v53 }
 0x422   : > { %v3799_v0 = vadd.f32 %v7836_v47, %v3754_v10  ;;  %v3710_v2 = vmax.f32 %v3672_v39, 0.0  ;;  %v4265_v39 = vadd.f32 %v4238_v59, %v4189_v17  ;;  %v6286_v59 = vld [vmem:[%s8314_s9 + $0x60] sm:$0xff]  }
 0x424   : > { %3837 = vst [vmem:[#allocation2 + $0x100] sm:$0xff] %v3799_v0  ;;  %v3755_v5 = vmul.f32 %v7829_v61, %v3710_v2 }
 0x426   : > { %v3800_v56 = vadd.f32 %v7836_v47, %v3755_v5  ;;  %v6282_v5 = vld [vmem:[%s8314_s9 + $0x70] sm:$0xff]  }
 0x427   : > { %5903 = vmatprep.subr.bf16.mxu1 %v6282_v5 }
 0x428   : > { %3838 = vst [vmem:[#allocation2 + $0x108] sm:$0xff] %v3800_v56  ;;  %v6283_v56 = vld [vmem:[%s8314_s9 + $0x30] sm:$0xff]  }
 0x429   : > { %5904 = vmatpush3.bf16.msra.mxu1 %v6283_v56 }
 0x42f   : > { %v3875_v9 = vld [vmem:[#allocation2 + $0x100] ss:$2 sm:$0xff]  ;;  %v3896_v6 = vld [vmem:[#allocation2 + $0x101] ss:$2 sm:$0xff] }
 0x430   : > { %v3915_v19 = vmax.f32 %v3875_v9, %v3896_v6  ;;  %v4379_v6 = vpack.c.bf16 %v4266_v14, %v4265_v39 }
 0x432   : > { %v3617_v57 = vpop.f32.mrf.mxu0  ;;  %3934 = vst [vmem:[#allocation4 + $0x88] sm:$0xff] %v3915_v19  ;;  %4249 = vrot.lane.b32.xlu1 %v3915_v19, %s6359_s15 }
 0x434   : > { %v3619_v22 = vpop.f32.mrf.mxu0 }
 0x435   : > { %v3336_v8 = vpop.f32.mrf.mxu1  ;;  %v6284_v22 = vld [vmem:[%s8314_s9 + $0x68] sm:$0xff]  }
 0x436   : > { %v3620_v40 = vpop.f32.mrf.mxu0  ;;  %v3618_v46 = vadd.f32 %v3617_v57, %v3336_v8  ;;  %5905 = vmatprep.subr.bf16.mxu1 %v6284_v22  ;;  %v6285_v8 = vld [vmem:[%s8314_s9 + $0x28] sm:$0xff]  }
 0x437   : > { %v3338_v34 = vpop.f32.mrf.mxu1  ;;  %5906 = vmatpush3.bf16.msra.mxu1 %v6285_v8 }
 0x438   : > { %v3622_v33 = vpop.f32.mrf.mxu0  ;;  %v3673_v62 = vadd.f32 %v7822_v25, %v3618_v46  ;;  %v6287_v46 = vld [vmem:[%s8314_s9 + $0x20] sm:$0xff]   ;;  %5907 = vmatprep.subr.bf16.mxu1 %v6286_v59 }
 0x439   : > { %v3339_v31 = vpop.f32.mrf.mxu1  ;;  %v4308_v27 = vld [vmem:[#allocation4 + $0x82] sm:$0xff] }
 0x43a   : > { %v3711_v50 = vmax.f32 %v3673_v62, 0.0  ;;  %v3621_v35 = vadd.f32 %v3620_v40, %v3339_v31  ;;  %4342 = vrot.lane.b32.xlu0 %v4308_v27, %s6359_s15  ;;  %v7951_v27 = vld [vmem:[#allocation4 + $0x44] sm:$0xff] }
 0x43b   : > { %v3341_v12 = vpop.f32.mrf.mxu1  ;;  %5908 = vmatpush3.bf16.msra.mxu1 %v6287_v46  ;;  %v4192_v46 = vld [vmem:[#allocation4 + $0x6f] sm:$0xff] }
 0x43c   : > { %v3756_v44 = vmul.f32 %v7829_v61, %v3711_v50  ;;  %v3674_v58 = vadd.f32 %v7822_v25, %v3621_v35  ;;  %v4335_v45 = vpop.permute.xlu0 %4334  ;;  %v6288_v50 = vld [vmem:[%s8314_s9 + $0x58] sm:$0xff]  }
 0x43d   : > { %v4361_v10 = vadd.f32 %v4335_v45, %v4285_v18  ;;  %v6289_v35 = vld [vmem:[%s8314_s9 + $0x18] sm:$0xff]   ;;  %5909 = vmatprep.subr.bf16.mxu1 %v6288_v50  ;;  %v6290_v18 = vld [vmem:[%s8314_s9 + $0x50] sm:$0xff]  }
 0x43e   : > { %v3801_v0 = vadd.f32 %v7836_v47, %v3756_v44  ;;  %v3712_v2 = vmax.f32 %v3674_v58, 0.0  ;;  %v6291_v45 = vld [vmem:[%s8314_s9 + $0x10] sm:$0xff]   ;;  %v4191_v50 = vld [vmem:[#allocation4 + $0x67] sm:$0xff] }
 0x43f   : > { %v4380_v9 = vpack.c.bf16 %v4361_v10, %v4360_v13  ;;  %5910 = vmatpush3.bf16.msra.mxu1 %v6289_v35 }
 0x440   : > { %3839 = vst [vmem:[#allocation2 + $0x110] sm:$0xff] %v3801_v0  ;;  %v3757_v19 = vmul.f32 %v7829_v61, %v3712_v2  ;;  %5911 = vmatprep.subr.bf16.mxu1 %v6290_v18  ;;  %v4957_v18 = vld [vmem:[#allocation4 + $0x3e] sm:$0xff] }
 0x441   : > { %4589 = vmatprep.mubr.bf16.mxu1 %v4380_v9 }
 0x442   : > { %v3802_v57 = vadd.f32 %v7836_v47, %v3757_v19  ;;  %4590 = vmatmul.mubr.bf16.gmra.mxu1 %v4379_v6  ;;  %v4242_v19 = vpop.permute.xlu1 %4241 }
 0x443   : > { %5912 = vmatpush3.bf16.msra.mxu1 %v6291_v45  ;;  %v4267_v35 = vadd.f32 %v4242_v19, %v4191_v50  ;;  %v6295_v45 = vld [vmem:[%s8314_s9] sm:$0xff]  }
 0x444   : > { %3840 = vst [vmem:[#allocation2 + $0x118] sm:$0xff] %v3802_v57 }
 0x44b   : > { %v3877_v40 = vld [vmem:[#allocation2 + $0x110] ss:$2 sm:$0xff]  ;;  %v3897_v60 = vld [vmem:[#allocation2 + $0x111] ss:$2 sm:$0xff] }
 0x44c   : > { %v3916_v41 = vmax.f32 %v3877_v40, %v3897_v60 }
 0x44e   : > { %3935 = vst [vmem:[#allocation4 + $0x90] sm:$0xff] %v3916_v41  ;;  %4251 = vrot.lane.b32.xlu0 %v3916_v41, %s6359_s15 }
 0x455   : > { %v4309_v33 = vld [vmem:[#allocation4 + $0x8a] sm:$0xff] }
 0x456   : > { %v3625_v34 = vpop.f32.mrf.mxu0  ;;  %4344 = vrot.lane.b32.xlu1 %v4309_v33, %s6359_s15  ;;  %v4287_v33 = vld [vmem:[#allocation4 + $0x71] sm:$0xff] }
 0x458   : > { %v3627_v38 = vpop.f32.mrf.mxu0  ;;  %v4337_v59 = vpop.permute.xlu1 %4336 }
 0x459   : > { %v3344_v62 = vpop.f32.mrf.mxu1 }
 0x45a   : > { %v3628_v31 = vpop.f32.mrf.mxu0  ;;  %v3626_v28 = vadd.f32 %v3625_v34, %v3344_v62  ;;  %3991 = vrot.lane.b32.xlu1 %v7951_v27, %s6359_s15  ;;  %v4286_v34 = vld [vmem:[#allocation4 + $0x69] sm:$0xff] }
 0x45b   : > { %v3346_v4 = vpop.f32.mrf.mxu1 }
 0x45c   : > { %v3630_v12 = vpop.f32.mrf.mxu0  ;;  %v3675_v14 = vadd.f32 %v7822_v25, %v3626_v28 }
 0x45d   : > { %v3347_v53 = vpop.f32.mrf.mxu1 }
 0x45e   : > { %v3713_v44 = vmax.f32 %v3675_v14, 0.0  ;;  %v3629_v58 = vadd.f32 %v3628_v31, %v3347_v53  ;;  %v4362_v31 = vadd.f32 %v4337_v59, %v4286_v34  ;;  %v3968_v59 = vld [vmem:[#allocation4 + $0x64] sm:$0xff] }
 0x45f   : > { %v3349_v17 = vpop.f32.mrf.mxu1 }
 0x460   : > { %v3758_v13 = vmul.f32 %v7829_v61, %v3713_v44  ;;  %v3676_v10 = vadd.f32 %v7822_v25, %v3629_v58  ;;  %v4244_v25 = vpop.permute.xlu0 %4243  ;;  %v6294_v44 = vld [vmem:[%s8314_s9 + $0x40] sm:$0xff]  }
 0x461   : > { %v4268_v62 = vadd.f32 %v4244_v25, %v4192_v46  ;;  %v4060_v58 = vld [vmem:[#allocation4 + $0x4e] sm:$0xff]  ;;  %v4062_v25 = vld [vmem:[#allocation4 + $0x5e] sm:$0xff] }
 0x462   : > { %v3803_v39 = vadd.f32 %v7836_v47, %v3758_v13  ;;  %v3714_v0 = vmax.f32 %v3676_v10, 0.0  ;;  %v3965_v17 = vld [vmem:[#allocation4 + $0x4c] sm:$0xff]  ;;  %v4862_v13 = vld [vmem:[#allocation4 + $0x3c] sm:$0xff] }
 0x463   : > { %v4381_v12 = vpack.c.bf16 %v4268_v62, %v4267_v35  ;;  %v6326_v10 = vld [vmem:[%s8314_s9 + $0x178] sm:$0xff]   ;;  %v3969_v62 = vld [vmem:[#allocation4 + $0x6c] sm:$0xff]  ;;  %v3970_v35 = vld [vmem:[#allocation4 + $0x74] sm:$0xff] }
 0x464   : > { %3841 = vst [vmem:[#allocation2 + $0x120] sm:$0xff] %v3803_v39  ;;  %v3759_v2 = vmul.f32 %v7829_v61, %v3714_v0  ;;  %v6292_v61 = vld [vmem:[%s8314_s9 + $0x48] sm:$0xff]  }
 0x465   : > { %5913 = vmatprep.subr.bf16.mxu1 %v6292_v61 }
 0x466   : > { %v3804_v5 = vadd.f32 %v7836_v47, %v3759_v2  ;;  %v6293_v47 = vld [vmem:[%s8314_s9 + $0x8] sm:$0xff]  }
 0x467   : > { %5914 = vmatpush3.bf16.msra.mxu1 %v6293_v47 }
 0x468   : > { %3842 = vst [vmem:[#allocation2 + $0x128] sm:$0xf] %v3804_v5  ;;  %5915 = vmatprep.subr.bf16.mxu1 %v6294_v44 }
 0x46a   : > { %v5841_v56 = vpop.f32.mrf.mxu1 }
 0x46b   : > { %5916 = vmatpush3.bf16.msra.mxu1 %v6295_v45 }
 0x46c   : > { %v5842_v9 = vpop.f32.mrf.mxu1  ;;  %6137 = vmatprep.subr.bf16.mxu1 %v6326_v10 }
 0x46d   : > { %v7973_v6 = vadd.f32 %v5842_v9, %v5841_v56  ;;  %v4061_v56 = vld [vmem:[#allocation4 + $0x56] sm:$0xff] }
 0x46e   : > { %v5844_v57 = vpop.f32.mrf.mxu1 }
 0x46f   : > { %v3879_v22 = vld [vmem:[#allocation2 + $0x120] ss:$2 sm:$0x3f]  ;;  %v3898_v8 = vld [vmem:[#allocation2 + $0x121] ss:$2 sm:$0x3f] }
 0x470   : > { %v5845_v40 = vpop.f32.mrf.mxu1  ;;  %v3917_v60 = vmax.f32 %v3879_v22, %v3898_v8  ;;  %v4958_v22 = vld [vmem:[#allocation4 + $0x46] sm:$0xff]  ;;  %v3966_v8 = vld [vmem:[#allocation4 + $0x54] sm:$0xff] }
 0x471   : > { %v7975_v41 = vadd.f32 %v5845_v40, %v5844_v57  ;;  %v3967_v40 = vld [vmem:[#allocation4 + $0x5c] sm:$0xff] }
 0x472   : > { %3936 = vst [vmem:[#allocation4 + $0x98] sm:$0x3f] %v3917_v60  ;;  %v4063_v60 = vld [vmem:[#allocation4 + $0x66] sm:$0xff] }
 0x474   : > { %v4339_v38 = vpop.permute.xlu0 %4338 }
 0x475   : > { %v4363_v28 = vadd.f32 %v4339_v38, %v4287_v33  ;;  %v4064_v38 = vld [vmem:[#allocation4 + $0x6e] sm:$0xff] }
 0x477   : > { %v4382_v4 = vpack.c.bf16 %v4363_v28, %v4362_v31  ;;  %v4065_v31 = vld [vmem:[#allocation4 + $0x76] sm:$0xff]  ;;  %v4246_v28 = vpop.permute.xlu1 %4245 }
 0x479   : > { %4597 = vmatprep.mubr.bf16.mxu1 %v4382_v4  ;;  %v4310_v14 = vld [vmem:[#allocation4 + $0x92] sm:$0xff]  ;;  %v4311_v53 = vld [vmem:[#allocation4 + $0x9a] sm:$0x3f] }
 0x47a   : > { %4346 = vrot.lane.b32.xlu0 %v4310_v14, %s6359_s15  ;;  %4348 = vrot.lane.b32.xlu1 %v4311_v53, %s6359_s15  ;;  %v4216_v5 = vld [vmem:[#allocation4 + $0x98] sm:$0x3f]  ;;  %v4289_v53 = vld [vmem:[#allocation4 + $0x81] sm:$0xff] }
 0x47b   : > { %4598 = vmatmul.mubr.bf16.gmra.mxu1 %v4381_v12  ;;  %v4194_v12 = vld [vmem:[#allocation4 + $0x7f] sm:$0xff] }
 0x47c   : > { %v4288_v14 = vld [vmem:[#allocation4 + $0x79] sm:$0xff] }
 0x47e   : > { %4088 = vrot.lane.b32.xlu0 %v4060_v58, %s6359_s15  ;;  %4982 = vrot.lane.b32.xlu1 %v4957_v18, %s6359_s15 }
 0x482   : > { %3993 = vrot.lane.b32.xlu0 %v3965_v17, %s6359_s15  ;;  %4887 = vrot.lane.b32.xlu1 %v4862_v13, %s6359_s15  ;;  %v5847_v39 = vpop.f32.mrf.mxu1 }
 0x484   : > { %v5848_v0 = vpop.f32.mrf.mxu1 }
 0x485   : > { %v7998_v2 = vadd.f32 %v5848_v0, %v5847_v39  ;;  %v4066_v0 = vld [vmem:[#allocation4 + $0x7e] sm:$0xff] }
 0x486   : > { %4253 = vrot.lane.b32.xlu0 %v4216_v5, %s6359_s15  ;;  %4090 = vrot.lane.b32.xlu1 %v4061_v56, %s6359_s15  ;;  %v5850_v9 = vpop.f32.mrf.mxu1 }
 0x488   : > { %v5851_v19 = vpop.f32.mrf.mxu1  ;;  %v4248_v50 = vpop.permute.xlu0 %4247 }
 0x489   : > { %v8002_v57 = vadd.f32 %v5851_v19, %v5850_v9  ;;  %v3971_v19 = vld [vmem:[#allocation4 + $0x7c] sm:$0xff] }
 0x48a   : > { %4984 = vrot.lane.b32.xlu0 %v4958_v22, %s6359_s15  ;;  %3995 = vrot.lane.b32.xlu1 %v3966_v8, %s6359_s15  ;;  %v4067_v22 = vld [vmem:[#allocation4 + $0x86] sm:$0xff] }
 0x48e   : > { %4889 = vrot.lane.b32.xlu0 %v7951_v27, %s6359_s15  ;;  %4986 = vrot.lane.b32.xlu1 %v4060_v58, %s6359_s15  ;;  %v4270_v58 = vadd.f32 %v4248_v50, %v4194_v12  ;;  %v4873_v12 = vld [vmem:[#allocation4 + $0x94] sm:$0xff] }
 0x490   : > { %v4341_v4 = vpop.permute.xlu1 %4340 }
 0x491   : > { %v4364_v18 = vadd.f32 %v4341_v4, %v4288_v14  ;;  %v4968_v4 = vld [vmem:[#allocation4 + $0x96] sm:$0xff] }
 0x492   : > { %4092 = vrot.lane.b32.xlu0 %v4062_v25, %s6359_s15  ;;  %4891 = vrot.lane.b32.xlu1 %v3965_v17, %s6359_s15  ;;  %v4193_v17 = vld [vmem:[#allocation4 + $0x77] sm:$0xff] }
 0x493   : > { %v4269_v13 = vadd.f32 %v4246_v28, %v4193_v17  ;;  %v4874_v14 = vld [vmem:[#allocation4 + $0x9c] sm:$0x3f] }
 0x495   : > { %v4383_v39 = vpack.c.bf16 %v4270_v58, %v4269_v13  ;;  %v4290_v13 = vld [vmem:[#allocation4 + $0x89] sm:$0xff] }
 0x496   : > { %3997 = vrot.lane.b32.xlu0 %v3967_v40, %s6359_s15  ;;  %4094 = vrot.lane.b32.xlu1 %v4063_v60, %s6359_s15 }
 0x49a   : > { %4988 = vrot.lane.b32.xlu0 %v4061_v56, %s6359_s15  ;;  %3999 = vrot.lane.b32.xlu1 %v3968_v59, %s6359_s15  ;;  %v5853_v61 = vpop.f32.mrf.mxu1 }
 0x49c   : > { %v5854_v27 = vpop.f32.mrf.mxu1 }
 0x49d   : > { %v8015_v47 = vadd.f32 %v5854_v27, %v5853_v61  ;;  %v3973_v61 = vld [vmem:[#allocation4 + $0x8c] sm:$0xff]  ;;  %v4069_v27 = vld [vmem:[#allocation4 + $0x96] sm:$0x3f] }
 0x49e   : > { %4893 = vrot.lane.b32.xlu0 %v3966_v8, %s6359_s15  ;;  %4990 = vrot.lane.b32.xlu1 %v4062_v25, %s6359_s15  ;;  %v5856_v46 = vpop.f32.mrf.mxu1 }
 0x4a0   : > { %v5857_v34 = vpop.f32.mrf.mxu1 }
 0x4a1   : > { %v8019_v33 = vadd.f32 %v5857_v34, %v5856_v46  ;;  %v4969_v34 = vld [vmem:[#allocation4 + $0x9e] sm:$0x3f] }
 0x4a2   : > { %4096 = vrot.lane.b32.xlu0 %v4064_v38, %s6359_s15  ;;  %4895 = vrot.lane.b32.xlu1 %v3967_v40, %s6359_s15 }
 0x4a6   : > { %4001 = vrot.lane.b32.xlu0 %v3969_v62, %s6359_s15  ;;  %4098 = vrot.lane.b32.xlu1 %v4065_v31, %s6359_s15 }
 0x4aa   : > { %4992 = vrot.lane.b32.xlu0 %v4063_v60, %s6359_s15  ;;  %4003 = vrot.lane.b32.xlu1 %v3970_v35, %s6359_s15  ;;  %v3972_v60 = vld [vmem:[#allocation4 + $0x84] sm:$0xff] }
 0x4ac   : > { %v4343_v44 = vpop.permute.xlu0 %4342 }
 0x4ad   : > { %v4365_v45 = vadd.f32 %v4343_v44, %v4289_v53  ;;  %v4250_v53 = vpop.permute.xlu1 %4249 }
 0x4ae   : > { %4897 = vrot.lane.b32.xlu0 %v3968_v59, %s6359_s15  ;;  %4994 = vrot.lane.b32.xlu1 %v4064_v38, %s6359_s15  ;;  %v4068_v59 = vld [vmem:[#allocation4 + $0x8e] sm:$0xff] }
 0x4af   : > { %v4384_v10 = vpack.c.bf16 %v4365_v45, %v4364_v18  ;;  %v4196_v45 = vld [vmem:[#allocation4 + $0x8f] sm:$0xff] }
 0x4b1   : > { %4605 = vmatprep.mubr.bf16.mxu1 %v4384_v10  ;;  %v4291_v10 = vld [vmem:[#allocation4 + $0x91] sm:$0xff] }
 0x4b2   : > { %4100 = vrot.lane.b32.xlu0 %v4066_v0, %s6359_s15  ;;  %4899 = vrot.lane.b32.xlu1 %v3969_v62, %s6359_s15  ;;  %v5859_v5 = vpop.f32.mrf.mxu1 }
 0x4b3   : > { %4606 = vmatmul.mubr.bf16.gmra.mxu1 %v4383_v39 }
 0x4b4   : > { %v5860_v56 = vpop.f32.mrf.mxu1 }
 0x4b5   : > { %v8031_v9 = vadd.f32 %v5860_v56, %v5859_v5  ;;  %v4195_v56 = vld [vmem:[#allocation4 + $0x87] sm:$0xff] }
 0x4b6   : > { %4005 = vrot.lane.b32.xlu0 %v3971_v19, %s6359_s15  ;;  %4102 = vrot.lane.b32.xlu1 %v4067_v22, %s6359_s15  ;;  %v5862_v8 = vpop.f32.mrf.mxu1 }
 0x4b8   : > { %v5863_v25 = vpop.f32.mrf.mxu1 }
 0x4b9   : > { %v8035_v40 = vadd.f32 %v5863_v25, %v5862_v8  ;;  %v4271_v25 = vadd.f32 %v4250_v53, %v4195_v56 }
 0x4ba   : > { %4996 = vrot.lane.b32.xlu0 %v4065_v31, %s6359_s15  ;;  %4007 = vrot.lane.b32.xlu1 %v3972_v60, %s6359_s15  ;;  %v3974_v31 = vld [vmem:[#allocation4 + $0x94] sm:$0x3f] }
 0x4be   : > { %4901 = vrot.lane.b32.xlu0 %v3970_v35, %s6359_s15  ;;  %4998 = vrot.lane.b32.xlu1 %v4066_v0, %s6359_s15  ;;  %v4292_v0 = vld [vmem:[#allocation4 + $0x99] sm:$0x3f] }
 0x4c0   : > { %v4252_v58 = vpop.permute.xlu0 %4251 }
 0x4c1   : > { %v4272_v17 = vadd.f32 %v4252_v58, %v4196_v45 }
 0x4c2   : > { %4104 = vrot.lane.b32.xlu0 %v4068_v59, %s6359_s15  ;;  %4903 = vrot.lane.b32.xlu1 %v3971_v19, %s6359_s15 }
 0x4c6   : > { %4009 = vrot.lane.b32.xlu0 %v3973_v61, %s6359_s15  ;;  %4106 = vrot.lane.b32.xlu1 %v4069_v27, %s6359_s15 }
 0x4c8   : > { %v4345_v44 = vpop.permute.xlu1 %4344 }
 0x4c9   : > { %v4366_v19 = vadd.f32 %v4345_v44, %v4290_v13 }
 0x4ca   : > { %5000 = vrot.lane.b32.xlu0 %v4067_v22, %s6359_s15  ;;  %5002 = vrot.lane.b32.xlu1 %v4068_v59, %s6359_s15  ;;  %v4385_v59 = vpack.c.bf16 %v4272_v17, %v4271_v25  ;;  %v8068_v17 = vld [vmem:[#allocation4 + $0x45] sm:$0xff] }
 0x4cb   : > { %v4116_v1 = vadd.f32 %v7900_v26, %v8068_v17  ;;  %v6341_v26 = vld [vmem:[%s8314_s9 + $0x108] sm:$0xff]  }
 0x4cc   : > { %v8058_v18 = vpop.permute.xlu1 %3991 }
 0x4ce   : > { %4905 = vrot.lane.b32.xlu0 %v3972_v60, %s6359_s15  ;;  %4907 = vrot.lane.b32.xlu1 %v3973_v61, %s6359_s15  ;;  %v5865_v46 = vpop.f32.mrf.mxu1 }
 0x4d0   : > { %v5866_v38 = vpop.f32.mrf.mxu1 }
 0x4d1   : > { %v8049_v62 = vadd.f32 %v5866_v38, %v5865_v46 }
 0x4d2   : > { %4011 = vrot.lane.b32.xlu0 %v3974_v31, %s6359_s15  ;;  %5006 = vrot.lane.b32.xlu1 %v4969_v34, %s6359_s15  ;;  %v5868_v28 = vpop.f32.mrf.mxu1  ;;  %v6327_v31 = vld [vmem:[#allocation4 + $0xd] sm:$0xff] }
 0x4d4   : > { %v5869_v50 = vpop.f32.mrf.mxu1 }
 0x4d5   : > { %v8053_v35 = vadd.f32 %v5869_v50, %v5868_v28  ;;  %v4109_v28 = vadd.f32 %v6327_v31, %v7812_v29  ;;  %v4197_v50 = vld [vmem:[#allocation4 + $0x97] sm:$0x3f]  ;;  %v6328_v29 = vld [vmem:[#allocation4 + $0xb] sm:$0xff] }
 0x4d6   : > { %5004 = vrot.lane.b32.xlu0 %v4968_v4, %s6359_s15 }
 0x4da   : > { %4909 = vrot.lane.b32.xlu0 %v4873_v12, %s6359_s15 }
 0x4de   : > { %4911 = vrot.lane.b32.xlu0 %v4874_v14, %s6359_s15  ;;  %v4032_v14 = vld [vmem:[#allocation4 + $0x5] sm:$0xff] }
 0x4df   : > { %v4108_v44 = vadd.f32 %v7809_v7, %v4032_v14 }
 0x4e1   : > { %v4128_v45 = vpack.c.bf16 %v4109_v28, %v4108_v44 }
 0x4ec   : > { %v4347_v39 = vpop.permute.xlu0 %4346  ;;  %v4349_v5 = vpop.permute.xlu1 %4348 }
 0x4ed   : > { %v4367_v22 = vadd.f32 %v4347_v39, %v4291_v10  ;;  %v4368_v8 = vadd.f32 %v4349_v5, %v4292_v0  ;;  %v4014_v5 = vadd.f32 %v6328_v29, %v7816_v63  ;;  %v6333_v29 = vld [vmem:[%s8314_s9 + $0x128] sm:$0xff]  }
 0x4ef   : > { %v4386_v60 = vpack.c.bf16 %v4367_v22, %v4366_v19  ;;  %v4388_v46 = vpack.c.bf16 %v4368_v8, %v4368_v8  ;;  %v3937_v19 = vld [vmem:[#allocation4 + $0x3] sm:$0xff] }
 0x4f0   : > { %v8060_v61 = vpop.permute.xlu0 %4088  ;;  %v4983_v27 = vpop.permute.xlu1 %4982  ;;  %v8075_v22 = vld [vmem:[#allocation4 + $0x43] sm:$0xff]  ;;  %v4013_v25 = vadd.f32 %v7814_v43, %v3937_v19  ;;  %v3946_v19 = vld [vmem:[#allocation4 + $0x4b] sm:$0xff] }
 0x4f1   : > { %4613 = vmatprep.mubr.bf16.mxu1 %v4386_v60  ;;  %v5014_v39 = vadd.f32 %v4983_v27, %v7877_v52  ;;  %v6329_v43 = vld [vmem:[%s8314_s9 + $0x138] sm:$0xff]   ;;  %v4021_v24 = vadd.f32 %v8058_v18, %v8075_v22 }
 0x4f2   : > { %4614 = vmatmul.mubr.bf16.gmra.mxu1 %v4385_v59  ;;  %v4127_v27 = vpack.c.bf16 %v4014_v5, %v4013_v25 }
 0x4f3   : > { %4621 = vmatprep.mubr.bf16.mxu1 %v4388_v46 }
 0x4f4   : > { %v8062_v34 = vpop.permute.xlu0 %3993  ;;  %v4888_v38 = vpop.permute.xlu1 %4887 }
 0x4f5   : > { %v4919_v60 = vadd.f32 %v4888_v38, %v7889_v15  ;;  %v6330_v38 = vld [vmem:[%s8314_s9 + $0x170] sm:$0xff]  }
 0x4f8   : > { %v4254_v4 = vpop.permute.xlu0 %4253  ;;  %v8065_v12 = vpop.permute.xlu1 %4090 }
 0x4f9   : > { %v4273_v53 = vadd.f32 %v4254_v4, %v4197_v50 }
 0x4fb   : > { %v4387_v58 = vpack.c.bf16 %v4273_v53, %v4273_v53 }
 0x4fc   : > { %v4985_v13 = vpop.permute.xlu0 %4984  ;;  %v8070_v10 = vpop.permute.xlu1 %3995 }
 0x4fd   : > { %v5015_v0 = vadd.f32 %v4985_v13, %v8068_v17  ;;  %4622 = vmatmul.mubr.bf16.gmra.mxu1 %v4387_v58  ;;  %v6331_v58 = vld [vmem:[%s8314_s9 + $0x130] sm:$0xff]   ;;  %v4022_v17 = vadd.f32 %v8062_v34, %v3946_v19 }
 0x4fe   : > { %4757 = vmatprep.mubr.bf16.mxu1 %v4128_v45 }
 0x4ff   : > { %v5034_v56 = vpack.c.bf16 %v5015_v0, %v5014_v39 }
 0x500   : > { %v4890_v7 = vpop.permute.xlu0 %4889  ;;  %v4987_v8 = vpop.permute.xlu1 %4986 }
 0x501   : > { %v4920_v59 = vadd.f32 %v4890_v7, %v8075_v22  ;;  %5231 = vmatprep.mubr.bf16.mxu0 %v5034_v56  ;;  %v5016_v13 = vadd.f32 %v4987_v8, %v4041_v23  ;;  %v6334_v56 = vld [vmem:[%s8314_s9 + $0x160] sm:$0xff]   ;;  %v8122_v7 = vld [vmem:[#allocation4 + $0x53] sm:$0xff]  ;;  %v6336_v8 = vld [vmem:[%s8314_s9 + $0x158] sm:$0xff]  }
 0x502   : > { %v5871_v52 = vpop.f32.mrf.mxu1  ;;  %v4045_v22 = vld [vmem:[#allocation4 + $0x6d] sm:$0xff] }
 0x503   : > { %v5033_v46 = vpack.c.bf16 %v4920_v59, %v4919_v60  ;;  %v6337_v59 = vld [vmem:[%s8314_s9 + $0x118] sm:$0xff]  }
 0x504   : > { %v8080_v31 = vpop.permute.xlu0 %4092  ;;  %v5872_v28 = vpop.f32.mrf.mxu1 }
 0x505   : > { %v8082_v63 = vadd.f32 %v5872_v28, %v5871_v52  ;;  %v4892_v50 = vpop.permute.xlu1 %4891  ;;  %4758 = vmatmul.mubr.bf16.vlgmr.msra.gmra.mxu1 %v4127_v27  ;;  %5232 = vmatmul.mubr.bf16.gmra.mxu0 %v5033_v46  ;;  %v6338_v52 = vld [vmem:[%s8314_s9 + $0x150] sm:$0xff]   ;;  %v4117_v27 = vadd.f32 %v8060_v61, %v4041_v23  ;;  %v4044_v28 = vld [vmem:[#allocation4 + $0x65] sm:$0xff] }
 0x506   : > { %6145 = vmatpush3.bf16.msra.mxu1 %v6329_v43  ;;  %v5874_v15 = vpop.f32.mrf.mxu1  ;;  %4765 = vmatprep.mubr.bf16.mxu1 %v4130_v49  ;;  %v8105_v49 = vld [vmem:[#allocation4 + $0x55] sm:$0xff]  ;;  %v4921_v11 = vadd.f32 %v4892_v50, %v3946_v19  ;;  %v3949_v23 = vld [vmem:[#allocation4 + $0x63] sm:$0xff] }
 0x507   : > { %6138 = vmatprep.subr.bf16.mxu1 %v6330_v38  ;;  %v4136_v3 = vpack.c.bf16 %v4117_v27, %v4116_v1  ;;  %v4118_v34 = vadd.f32 %v8065_v12, %v8105_v49  ;;  %v4023_v12 = vadd.f32 %v8070_v10, %v8122_v7  ;;  %v3950_v27 = vld [vmem:[#allocation4 + $0x6b] sm:$0xff]  ;;  %v4047_v1 = vld [vmem:[#allocation4 + $0x7d] sm:$0xff] }
 0x508   : > { %v8093_v4 = vpop.permute.xlu0 %3997  ;;  %v5875_v14 = vpop.f32.mrf.mxu1 }
 0x509   : > { %v8095_v53 = vadd.f32 %v5875_v14, %v5874_v15  ;;  %v8097_v44 = vpop.permute.xlu1 %4094  ;;  %v6342_v14 = vld [vmem:[%s8314_s9 + $0x140] sm:$0xff]  }
 0x50a   : > { %6146 = vmatpush3.bf16.msra.mxu1 %v6331_v58 }
 0x50b   : > { %6139 = vmatprep.subr.bf16.mxu1 %v6332_v55  ;;  %v3948_v55 = vld [vmem:[#allocation4 + $0x5b] sm:$0xff] }
 0x50c   : > { %v4989_v45 = vpop.permute.xlu0 %4988  ;;  %v4024_v18 = vadd.f32 %v8093_v4, %v3948_v55 }
 0x50d   : > { %v5017_v39 = vadd.f32 %v4989_v45, %v8105_v49  ;;  %v8108_v0 = vpop.permute.xlu1 %3999  ;;  %4766 = vmatmul.mubr.bf16.gmra.mxu1 %v4129_v36 }
 0x50e   : > { %4773 = vmatprep.mubr.bf16.mxu1 %v4132_v48  ;;  %6147 = vmatpush3.bf16.msra.mxu1 %v6333_v29  ;;  %v4135_v29 = vpack.c.bf16 %v4022_v17, %v4021_v24  ;;  %v4025_v10 = vadd.f32 %v8108_v0, %v3949_v23 }
 0x50f   : > { %v5036_v5 = vpack.c.bf16 %v5017_v39, %v5016_v13  ;;  %6140 = vmatprep.subr.bf16.mxu1 %v6334_v56  ;;  %v6343_v39 = vld [vmem:[%s8314_s9 + $0x100] sm:$0xff]  }
 0x510   : > { %v4894_v16 = vpop.permute.xlu0 %4893 }
 0x511   : > { %v4922_v36 = vadd.f32 %v4894_v16, %v8122_v7  ;;  %v4991_v21 = vpop.permute.xlu1 %4990  ;;  %5239 = vmatprep.mubr.bf16.mxu0 %v5036_v5 }
 0x512   : > { %6148 = vmatpush3.bf16.msra.mxu1 %v6335_v51 }
 0x513   : > { %v5035_v48 = vpack.c.bf16 %v4922_v36, %v4921_v11  ;;  %6141 = vmatprep.subr.bf16.mxu1 %v6336_v8  ;;  %v4120_v36 = vadd.f32 %v8097_v44, %v4044_v28 }
 0x514   : > { %v4097_v25 = vpop.permute.xlu0 %4096 }
 0x515   : > { %v4896_v60 = vpop.permute.xlu1 %4895  ;;  %4774 = vmatmul.mubr.bf16.gmra.mxu1 %v4131_v54  ;;  %5240 = vmatmul.mubr.bf16.gmra.mxu0 %v5035_v48  ;;  %v6339_v54 = vld [vmem:[%s8314_s9 + $0x110] sm:$0xff]   ;;  %v4121_v16 = vadd.f32 %v4097_v25, %v4045_v22 }
 0x516   : > { %4781 = vmatprep.mubr.bf16.mxu1 %v4134_v20  ;;  %6149 = vmatpush3.bf16.msra.mxu1 %v6337_v59  ;;  %v4043_v20 = vld [vmem:[#allocation4 + $0x5d] sm:$0xff]  ;;  %v4046_v48 = vld [vmem:[#allocation4 + $0x75] sm:$0xff] }
 0x517   : > { %6142 = vmatprep.subr.bf16.mxu1 %v6338_v52  ;;  %v5018_v50 = vadd.f32 %v4991_v21, %v4043_v20  ;;  %v4119_v58 = vadd.f32 %v8080_v31, %v4043_v20  ;;  %v4137_v21 = vpack.c.bf16 %v4024_v18, %v4023_v12  ;;  %v4140_v51 = vpack.c.bf16 %v4121_v16, %v4120_v36  ;;  %v4050_v18 = vld [vmem:[#allocation4 + $0x95] sm:$0x3f]  ;;  %v3953_v16 = vld [vmem:[#allocation4 + $0x83] sm:$0xff] }
 0x518   : > { %v4002_v46 = vpop.permute.xlu0 %4001 }
 0x519   : > { %v8144_v32 = vpop.permute.xlu1 %4098  ;;  %v4138_v5 = vpack.c.bf16 %v4119_v58, %v4118_v34  ;;  %v4026_v4 = vadd.f32 %v4002_v46, %v3950_v27  ;;  %v3952_v46 = vld [vmem:[#allocation4 + $0x7b] sm:$0xff] }
 0x51a   : > { %6150 = vmatpush3.bf16.msra.mxu1 %v6339_v54  ;;  %v3951_v54 = vld [vmem:[#allocation4 + $0x73] sm:$0xff] }
 0x51b   : > { %6143 = vmatprep.subr.bf16.mxu1 %v6340_v42 }
 0x51c   : > { %v4993_v61 = vpop.permute.xlu0 %4992 }
 0x51d   : > { %v5019_v43 = vadd.f32 %v4993_v61, %v4044_v28  ;;  %v8154_v15 = vpop.permute.xlu1 %4003  ;;  %4782 = vmatmul.mubr.bf16.gmra.mxu1 %v4133_v30  ;;  %v4923_v30 = vadd.f32 %v4896_v60, %v3948_v55  ;;  %v4122_v28 = vadd.f32 %v8144_v32, %v4046_v48  ;;  %v4139_v61 = vpack.c.bf16 %v4026_v4, %v4025_v10 }
 0x51e   : > { %4789 = vmatprep.mubr.bf16.mxu1 %v4136_v3  ;;  %6151 = vmatpush3.bf16.msra.mxu1 %v6341_v26  ;;  %v4027_v0 = vadd.f32 %v8154_v15, %v3951_v54 }
 0x51f   : > { %v5038_v38 = vpack.c.bf16 %v5019_v43, %v5018_v50  ;;  %6144 = vmatprep.subr.bf16.mxu1 %v6342_v14  ;;  %v4049_v14 = vld [vmem:[#allocation4 + $0x8d] sm:$0xff] }
 0x520   : > { %v4898_v37 = vpop.permute.xlu0 %4897 }
 0x521   : > { %v4924_v45 = vadd.f32 %v4898_v37, %v3949_v23  ;;  %v4995_v13 = vpop.permute.xlu1 %4994  ;;  %5247 = vmatprep.mubr.bf16.mxu0 %v5038_v38  ;;  %v4048_v23 = vld [vmem:[#allocation4 + $0x85] sm:$0xff] }
 0x522   : > { %6152 = vmatpush3.bf16.msra.mxu1 %v6343_v39  ;;  %v5020_v60 = vadd.f32 %v4995_v13, %v4045_v22 }
 0x523   : > { %v5037_v31 = vpack.c.bf16 %v4924_v45, %v4923_v30 }
 0x524   : > { %v4101_v56 = vpop.permute.xlu0 %4100 }
 0x525   : > { %v4900_v19 = vpop.permute.xlu1 %4899  ;;  %4790 = vmatmul.mubr.bf16.gmra.mxu1 %v4135_v29  ;;  %5248 = vmatmul.mubr.bf16.gmra.mxu0 %v5037_v31  ;;  %v4123_v42 = vadd.f32 %v4101_v56, %v4047_v1 }
 0x526   : > { %4797 = vmatprep.mubr.bf16.mxu1 %v4138_v5  ;;  %v4925_v7 = vadd.f32 %v4900_v19, %v3950_v27  ;;  %v3954_v5 = vld [vmem:[#allocation4 + $0x8b] sm:$0xff] }
 0x527   : > { %v4142_v43 = vpack.c.bf16 %v4123_v42, %v4122_v28  ;;  %v4950_v42 = vld [vmem:[#allocation4 + $0x9d] sm:$0x3f] }
 0x528   : > { %v4006_v11 = vpop.permute.xlu0 %4005 }
 0x529   : > { %v4103_v49 = vpop.permute.xlu1 %4102  ;;  %v4028_v38 = vadd.f32 %v4006_v11, %v3952_v46 }
 0x52a   : > { %v4124_v24 = vadd.f32 %v4103_v49, %v4048_v23 }
 0x52b   : > { %v4141_v30 = vpack.c.bf16 %v4028_v38, %v4027_v0  ;;  %v4855_v38 = vld [vmem:[#allocation4 + $0x9b] sm:$0x3f] }
 0x52c   : > { %v4997_v8 = vpop.permute.xlu0 %4996 }
 0x52d   : > { %v5021_v59 = vadd.f32 %v4997_v8, %v4046_v48  ;;  %v4008_v52 = vpop.permute.xlu1 %4007  ;;  %4798 = vmatmul.mubr.bf16.gmra.mxu1 %v4137_v21 }
 0x52e   : > { %4805 = vmatprep.mubr.bf16.mxu1 %v4140_v51  ;;  %v4029_v49 = vadd.f32 %v4008_v52, %v3953_v16  ;;  %v4949_v52 = vld [vmem:[#allocation4 + $0x95] sm:$0xff] }
 0x52f   : > { %v5040_v25 = vpack.c.bf16 %v5021_v59, %v5020_v60 }
 0x530   : > { %v4902_v3 = vpop.permute.xlu0 %4901 }
 0x531   : > { %v4926_v44 = vadd.f32 %v4902_v3, %v3951_v54  ;;  %v4999_v20 = vpop.permute.xlu1 %4998  ;;  %5255 = vmatprep.mubr.bf16.mxu0 %v5040_v25  ;;  %v3955_v25 = vld [vmem:[#allocation4 + $0x93] sm:$0x3f] }
 0x532   : > { %v5022_v34 = vadd.f32 %v4999_v20, %v4047_v1 }
 0x533   : > { %v5039_v50 = vpack.c.bf16 %v4926_v44, %v4925_v7 }
 0x534   : > { %v4105_v26 = vpop.permute.xlu0 %4104 }
 0x535   : > { %v4904_v17 = vpop.permute.xlu1 %4903  ;;  %4806 = vmatmul.mubr.bf16.gmra.mxu1 %v4139_v61  ;;  %5256 = vmatmul.mubr.bf16.gmra.mxu0 %v5039_v50  ;;  %v4125_v58 = vadd.f32 %v4105_v26, %v4049_v14  ;;  %v4854_v50 = vld [vmem:[#allocation4 + $0x93] sm:$0xff] }
 0x536   : > { %4813 = vmatprep.mubr.bf16.mxu1 %v4142_v43  ;;  %v4927_v36 = vadd.f32 %v4904_v17, %v3952_v46 }
 0x537   : > { %v4144_v45 = vpack.c.bf16 %v4125_v58, %v4124_v24 }
 0x538   : > { %v4010_v55 = vpop.permute.xlu0 %4009 }
 0x539   : > { %v4107_v37 = vpop.permute.xlu1 %4106  ;;  %v4030_v19 = vadd.f32 %v4010_v55, %v3954_v5 }
 0x53a   : > { %v4126_v11 = vadd.f32 %v4107_v37, %v4050_v18 }
 0x53b   : > { %v5877_v32 = vpop.f32.mrf.mxu1  ;;  %v4143_v60 = vpack.c.bf16 %v4030_v19, %v4029_v49 }
 0x53c   : > { %v5001_v13 = vpop.permute.xlu0 %5000  ;;  %v4146_v27 = vpack.c.bf16 %v4126_v11, %v4126_v11 }
 0x53d   : > { %v5023_v39 = vadd.f32 %v5001_v13, %v4048_v23  ;;  %v5878_v29 = vpop.f32.mrf.mxu1  ;;  %v5003_v31 = vpop.permute.xlu1 %5002  ;;  %4814 = vmatmul.mubr.bf16.gmra.mxu1 %v4141_v30 }
 0x53e   : > { %v8181_v56 = vadd.f32 %v5878_v29, %v5877_v32  ;;  %4821 = vmatprep.mubr.bf16.mxu1 %v4144_v45  ;;  %v5024_v7 = vadd.f32 %v5003_v31, %v4049_v14  ;;  %v5993_v45 = vpop.f32.mrf.mxu0 }
 0x53f   : > { %v5042_v22 = vpack.c.bf16 %v5023_v39, %v5022_v34  ;;  %v5880_v15 = vpop.f32.mrf.mxu1 }
 0x540   : > { %v4906_v12 = vpop.permute.xlu0 %4905  ;;  %v5994_v13 = vpop.f32.mrf.mxu0 }
 0x541   : > { %v4928_v21 = vadd.f32 %v4906_v12, %v3953_v16  ;;  %v5881_v51 = vpop.f32.mrf.mxu1  ;;  %v4908_v48 = vpop.permute.xlu1 %4907  ;;  %5263 = vmatprep.mubr.bf16.mxu0 %v5042_v22 }
 0x542   : > { %v8183_v8 = vadd.f32 %v5881_v51, %v5880_v15  ;;  %v4929_v26 = vadd.f32 %v4908_v48, %v3954_v5  ;;  %v5996_v34 = vpop.f32.mrf.mxu0 }
 0x543   : > { %v5041_v59 = vpack.c.bf16 %v4928_v21, %v4927_v36 }
 0x544   : > { %v4012_v4 = vpop.permute.xlu0 %4011  ;;  %v5997_v39 = vpop.f32.mrf.mxu0 }
 0x545   : > { %v5007_v1 = vpop.permute.xlu1 %5006  ;;  %4822 = vmatmul.mubr.bf16.gmra.mxu1 %v4143_v60  ;;  %5264 = vmatmul.mubr.bf16.gmra.mxu0 %v5041_v59  ;;  %v4031_v54 = vadd.f32 %v4012_v4, %v3955_v25 }
 0x546   : > { %4829 = vmatprep.mubr.bf16.mxu1 %v4146_v27  ;;  %v5026_v3 = vadd.f32 %v5007_v1, %v4950_v42  ;;  %v5999_v29 = vpop.f32.mrf.mxu0 }
 0x547   : > { %v4145_v20 = vpack.c.bf16 %v4031_v54, %v4031_v54 }
 0x548   : > { %v5005_v10 = vpop.permute.xlu0 %5004  ;;  %v5046_v61 = vpack.c.bf16 %v5026_v3, %v5026_v3  ;;  %v6000_v5 = vpop.f32.mrf.mxu0  ;;  %v5995_v3 = vadd.f32 %v5994_v13, %v5993_v45 }
 0x549   : > { %v5025_v44 = vadd.f32 %v5005_v10, %v4949_v52 }
 0x54a   : > { %v6002_v15 = vpop.f32.mrf.mxu0 }
 0x54b   : > { %v5044_v28 = vpack.c.bf16 %v5025_v44, %v5024_v7  ;;  %v8201_v7 = vld [vmem:[%s8315_s10] ss:$0 sm:$0xff] }
 0x54c   : > { %v4910_v43 = vpop.permute.xlu0 %4909  ;;  %v6003_v12 = vpop.f32.mrf.mxu0 }
 0x54d   : > { %v4930_v17 = vadd.f32 %v4910_v43, %v4854_v50  ;;  %4830 = vmatmul.mubr.bf16.gmra.mxu1 %v4145_v20  ;;  %5271 = vmatprep.mubr.bf16.mxu0 %v5044_v28  ;;  %v5998_v50 = vadd.f32 %v5997_v39, %v5996_v34 }
 0x54e   : > { %5279 = vmatprep.mubr.bf16.mxu1 %v5046_v61  ;;  %v6005_v49 = vpop.f32.mrf.mxu0 }
 0x54f   : > { %v5043_v46 = vpack.c.bf16 %v4930_v17, %v4929_v26 }
 0x550   : > { %v4912_v58 = vpop.permute.xlu0 %4911  ;;  %v6006_v48 = vpop.f32.mrf.mxu0 }
 0x551   : > { %v4931_v55 = vadd.f32 %v4912_v58, %v4855_v38  ;;  %5272 = vmatmul.mubr.bf16.gmra.mxu0 %v5043_v46 }
 0x552   : > { %v6008_v27 = vpop.f32.mrf.mxu0 }
 0x553   : > { %v5045_v0 = vpack.c.bf16 %v4931_v55, %v4931_v55 }
 0x554   : > { %v6009_v54 = vpop.f32.mrf.mxu0 }
 0x555   : > { %5280 = vmatmul.mubr.bf16.vlgmr.msra.gmra.mxu1 %v5045_v0  ;;  %v8213_v0 = vld [vmem:[%s8317_s12] ss:$0 sm:$0xff] }
 0x573   : > { %v5883_v23 = vpop.f32.mrf.mxu1 }
 0x575   : > { %v5884_v14 = vpop.f32.mrf.mxu1 }
 0x576   : > { %v8185_v37 = vadd.f32 %v5884_v14, %v5883_v23  ;;  %v6001_v14 = vadd.f32 %v6000_v5, %v5999_v29 }
 0x577   : > { %v5886_v24 = vpop.f32.mrf.mxu1 }
 0x579   : > { %v5887_v30 = vpop.f32.mrf.mxu1 }
 0x57a   : > { %v8187_v32 = vadd.f32 %v5887_v30, %v5886_v24 }
 0x5b2   : > { %v5889_v31 = vpop.f32.mrf.mxu1 }
 0x5b4   : > { %v5890_v19 = vpop.f32.mrf.mxu1 }
 0x5b5   : > { %v8189_v18 = vadd.f32 %v5890_v19, %v5889_v31 }
 0x5b6   : > { %v5892_v22 = vpop.f32.mrf.mxu1 }
 0x5b8   : > { %v5893_v16 = vpop.f32.mrf.mxu1 }
 0x5b9   : > { %v8191_v11 = vadd.f32 %v5893_v16, %v5892_v22  ;;  %v6004_v16 = vadd.f32 %v6003_v12, %v6002_v15 }
 0x5bd   : > { %v5895_v36 = vpop.f32.mrf.mxu1 }
 0x5bf   : > { %v5896_v21 = vpop.f32.mrf.mxu1 }
 0x5c0   : > { %v8193_v51 = vadd.f32 %v5896_v21, %v5895_v36 }
 0x5c1   : > { %v5898_v60 = vpop.f32.mrf.mxu1 }
 0x5c3   : > { %v5899_v59 = vpop.f32.mrf.mxu1 }
 0x5c5   : > { %v5917_v4 = vpop.f32.mrf.mxu1  ;;  %v8196_v10 = vpop.f32.mrf.mxu0 }
 0x5c7   : > { %v5918_v1 = vpop.f32.mrf.mxu1  ;;  %v6012_v17 = vpop.f32.mrf.mxu0 }
 0x5c8   : > { %v5919_v25 = vadd.f32 %v5918_v1, %v5917_v4 }
 0x5c9   : > { %v5920_v42 = vpop.f32.mrf.mxu1  ;;  %v6014_v45 = vpop.f32.mrf.mxu0 }
 0x5ca   : > { %v4760_v52 = vadd.f32 %v5919_v25, %v7973_v6  ;;  %v8208_v6 = vld [vmem:[%s8316_s11] ss:$0 sm:$0xff] }
 0x5cb   : > { %v5921_v44 = vpop.f32.mrf.mxu1  ;;  %v6015_v21 = vpop.f32.mrf.mxu0 }
 0x5cc   : > { %v5287_v20 = vadd.f32 %v5995_v3, %v4760_v52  ;;  %v5922_v28 = vadd.f32 %v5921_v44, %v5920_v42  ;;  %v6007_v3 = vadd.f32 %v6006_v48, %v6005_v49 }
 0x5cd   : > { %v5923_v61 = vpop.f32.mrf.mxu1 }
 0x5ce   : > { %v5313_v43 = vadd.f32 %v8201_v7, %v5287_v20  ;;  %v4763_v26 = vadd.f32 %v5922_v28, %v7975_v41 }
 0x5cf   : > { %v5924_v46 = vpop.f32.mrf.mxu1 }
 0x5d0   : > { %v5332_v38 = vmax.f32 %v5313_v43, 0.0  ;;  %v5288_v58 = vadd.f32 %v5998_v50, %v4763_v26  ;;  %v5925_v55 = vadd.f32 %v5924_v46, %v5923_v61  ;;  %v6010_v26 = vadd.f32 %v6009_v54, %v6008_v27 }
 0x5d1   : > { %v5926_v23 = vpop.f32.mrf.mxu1 }
 0x5d2   : > { %v5358_v24 = vmul.f32 %v8208_v6, %v5332_v38  ;;  %v5314_v41 = vadd.f32 %v8201_v7, %v5288_v58  ;;  %v4768_v30 = vadd.f32 %v5925_v55, %v7998_v2 }
 0x5d3   : > { %v5927_v13 = vpop.f32.mrf.mxu1 }
 0x5d4   : > { %v5384_v34 = vadd.f32 %v8213_v0, %v5358_v24  ;;  %v5333_v39 = vmax.f32 %v5314_v41, 0.0  ;;  %v5289_v31 = vadd.f32 %v6001_v14, %v4768_v30  ;;  %v5928_v19 = vadd.f32 %v5927_v13, %v5926_v23 }
 0x5d5   : > { %v5929_v22 = vpop.f32.mrf.mxu1  ;;  %v6017_v25 = vpop.f32.mrf.mxu0  ;;  %v6013_v41 = vadd.f32 %v6012_v17, %v8196_v10 }
 0x5d6   : > { %5403 = vst [vmem:[#allocation2] sm:$0xff] %v5384_v34  ;;  %v5359_v36 = vmul.f32 %v8208_v6, %v5333_v39  ;;  %v5315_v29 = vadd.f32 %v8201_v7, %v5289_v31  ;;  %v4771_v5 = vadd.f32 %v5928_v19, %v8002_v57 }
 0x5d7   : > { %v5930_v60 = vpop.f32.mrf.mxu1  ;;  %v6018_v50 = vpop.f32.mrf.mxu0 }
 0x5d8   : > { %v5385_v2 = vadd.f32 %v8213_v0, %v5359_v36  ;;  %v5334_v59 = vmax.f32 %v5315_v29, 0.0  ;;  %v5290_v4 = vadd.f32 %v6004_v16, %v4771_v5  ;;  %v5931_v1 = vadd.f32 %v5930_v60, %v5929_v22 }
 0x5d9   : > { %v5932_v42 = vpop.f32.mrf.mxu1  ;;  %v6020_v14 = vpop.f32.mrf.mxu0  ;;  %v6016_v29 = vadd.f32 %v6015_v21, %v6014_v45 }
 0x5da   : > { %5404 = vst [vmem:[#allocation2 + $0x8] sm:$0xff] %v5385_v2  ;;  %v5360_v15 = vmul.f32 %v8208_v6, %v5334_v59  ;;  %v5316_v12 = vadd.f32 %v8201_v7, %v5290_v4  ;;  %v4776_v52 = vadd.f32 %v5931_v1, %v8015_v47 }
 0x5db   : > { %v5933_v44 = vpop.f32.mrf.mxu1  ;;  %v6021_v19 = vpop.f32.mrf.mxu0 }
 0x5dc   : > { %v5386_v57 = vadd.f32 %v8213_v0, %v5360_v15  ;;  %v5335_v20 = vmax.f32 %v5316_v12, 0.0  ;;  %v5291_v28 = vadd.f32 %v6007_v3, %v4776_v52  ;;  %v5934_v61 = vadd.f32 %v5933_v44, %v5932_v42 }
 0x5dd   : > { %v5935_v43 = vpop.f32.mrf.mxu1  ;;  %v6019_v12 = vadd.f32 %v6018_v50, %v6017_v25 }
 0x5de   : > { %5405 = vst [vmem:[#allocation2 + $0x10] sm:$0xff] %v5386_v57  ;;  %v5361_v46 = vmul.f32 %v8208_v6, %v5335_v20  ;;  %v5317_v49 = vadd.f32 %v8201_v7, %v5291_v28  ;;  %v4779_v48 = vadd.f32 %v5934_v61, %v8019_v33 }
 0x5df   : > { %v5936_v38 = vpop.f32.mrf.mxu1 }
 0x5e0   : > { %v5387_v58 = vadd.f32 %v8213_v0, %v5361_v46  ;;  %v5336_v47 = vmax.f32 %v5317_v49, 0.0  ;;  %v5292_v55 = vadd.f32 %v6010_v26, %v4779_v48  ;;  %v5937_v23 = vadd.f32 %v5936_v38, %v5935_v43 }
 0x5e1   : > { %v5938_v24 = vpop.f32.mrf.mxu1  ;;  %v5422_v16 = vld [vmem:[#allocation2] ss:$2 sm:$0xff]  ;;  %v5432_v36 = vld [vmem:[#allocation2 + $0x1] ss:$2 sm:$0xff]  ;;  %v6022_v49 = vadd.f32 %v6021_v19, %v6020_v14 }
 0x5e2   : > { %5406 = vst [vmem:[#allocation2 + $0x18] sm:$0xff] %v5387_v58  ;;  %v5362_v27 = vmul.f32 %v8208_v6, %v5336_v47  ;;  %v5318_v54 = vadd.f32 %v8201_v7, %v5292_v55  ;;  %v4784_v30 = vadd.f32 %v5937_v23, %v8031_v9  ;;  %v5442_v42 = vmax.f32 %v5422_v16, %v5432_v36 }
 0x5e3   : > { %v5939_v13 = vpop.f32.mrf.mxu1 }
 0x5e4   : > { %v5388_v33 = vadd.f32 %v8213_v0, %v5362_v27  ;;  %v5337_v34 = vmax.f32 %v5318_v54, 0.0  ;;  %v5293_v39 = vadd.f32 %v6013_v41, %v4784_v30  ;;  %v5940_v31 = vadd.f32 %v5939_v13, %v5938_v24 }
 0x5e5   : > { %v5941_v22 = vpop.f32.mrf.mxu1  ;;  %v6023_v9 = vpop.f32.mrf.mxu0 }
 0x5e6   : > { %5407 = vst [vmem:[#allocation2 + $0x20] sm:$0xff] %v5388_v33  ;;  %v5363_v10 = vmul.f32 %v8208_v6, %v5337_v34  ;;  %v5319_v17 = vadd.f32 %v8201_v7, %v5293_v39  ;;  %v4787_v5 = vadd.f32 %v5940_v31, %v8035_v40 }
 0x5e7   : > { %v5942_v60 = vpop.f32.mrf.mxu1  ;;  %v6024_v57 = vpop.f32.mrf.mxu0 }
 0x5e8   : > { %v5389_v2 = vadd.f32 %v8213_v0, %v5363_v10  ;;  %v5338_v59 = vmax.f32 %v5319_v17, 0.0  ;;  %v5294_v4 = vadd.f32 %v6016_v29, %v4787_v5  ;;  %v5943_v1 = vadd.f32 %v5942_v60, %v5941_v22 }
 0x5e9   : > { %v5423_v3 = vld [vmem:[#allocation2 + $0x10] ss:$2 sm:$0xff]  ;;  %v5433_v15 = vld [vmem:[#allocation2 + $0x11] ss:$2 sm:$0xff]  ;;  %v5944_v45 = vpop.f32.mrf.mxu1  ;;  %v6026_v48 = vpop.f32.mrf.mxu0  ;;  %v6025_v54 = vadd.f32 %v6024_v57, %v6023_v9 }
 0x5ea   : > { %v5443_v21 = vmax.f32 %v5423_v3, %v5433_v15  ;;  %5408 = vst [vmem:[#allocation2 + $0x28] sm:$0xff] %v5389_v2  ;;  %v5364_v52 = vmul.f32 %v8208_v6, %v5338_v59  ;;  %v5320_v44 = vadd.f32 %v8201_v7, %v5294_v4  ;;  %v4792_v40 = vadd.f32 %v5943_v1, %v8049_v62 }
 0x5eb   : > { %v5945_v20 = vpop.f32.mrf.mxu1  ;;  %v6027_v33 = vpop.f32.mrf.mxu0 }
 0x5ec   : > { %v5763_v28 = vpack.c.bf16 %v5443_v21, %v5442_v42  ;;  %v5390_v25 = vadd.f32 %v8213_v0, %v5364_v52  ;;  %v5339_v61 = vmax.f32 %v5320_v44, 0.0  ;;  %v5295_v50 = vadd.f32 %v6019_v12, %v4792_v40 }
 0x5ed   : > { %v5946_v43 = vadd.f32 %v5945_v20, %v5944_v45  ;;  %v5947_v26 = vpop.f32.mrf.mxu1  ;;  %v6028_v29 = vadd.f32 %v6027_v33, %v6026_v48 }
 0x5ee   : > { %5764 = vst [vmem:[%s8247_s14] sm:$0xff] %v5763_v28   ;;  %5409 = vst [vmem:[#allocation2 + $0x30] sm:$0xff] %v5390_v25  ;;  %v5365_v46 = vmul.f32 %v8208_v6, %v5339_v61  ;;  %v5321_v62 = vadd.f32 %v8201_v7, %v5295_v50 }
 0x5ef   : > { %v4795_v38 = vadd.f32 %v5946_v43, %v8053_v35  ;;  %v5948_v58 = vpop.f32.mrf.mxu1 }
 0x5f0   : > { %v5391_v47 = vadd.f32 %v8213_v0, %v5365_v46  ;;  %v5340_v55 = vmax.f32 %v5321_v62, 0.0  ;;  %v5949_v23 = vadd.f32 %v5948_v58, %v5947_v26 }
 0x5f1   : > { %v5296_v24 = vadd.f32 %v6022_v49, %v4795_v38  ;;  %v5950_v41 = vpop.f32.mrf.mxu1  ;;  %v5424_v16 = vld [vmem:[#allocation2 + $0x20] ss:$2 sm:$0xff]  ;;  %v5434_v36 = vld [vmem:[#allocation2 + $0x21] ss:$2 sm:$0xff] }
 0x5f2   : > { %5410 = vst [vmem:[#allocation2 + $0x38] sm:$0xff] %v5391_v47  ;;  %v5366_v27 = vmul.f32 %v8208_v6, %v5340_v55  ;;  %v4800_v30 = vadd.f32 %v5949_v23, %v8082_v63  ;;  %v5444_v4 = vmax.f32 %v5424_v16, %v5434_v36 }
 0x5f3   : > { %v5322_v13 = vadd.f32 %v8201_v7, %v5296_v24  ;;  %v5951_v14 = vpop.f32.mrf.mxu1 }
 0x5f4   : > { %v5392_v34 = vadd.f32 %v8213_v0, %v5366_v27  ;;  %v5297_v35 = vadd.f32 %v6025_v54, %v4800_v30  ;;  %v5952_v39 = vadd.f32 %v5951_v14, %v5950_v41 }
 0x5f5   : > { %v5341_v31 = vmax.f32 %v5322_v13, 0.0  ;;  %v5953_v19 = vpop.f32.mrf.mxu1  ;;  %v6029_v22 = vpop.f32.mrf.mxu0 }
 0x5f6   : > { %5411 = vst [vmem:[#allocation2 + $0x40] sm:$0xff] %v5392_v34  ;;  %v5323_v10 = vadd.f32 %v8201_v7, %v5297_v35  ;;  %v4803_v17 = vadd.f32 %v5952_v39, %v8095_v53 }
 0x5f7   : > { %v5367_v63 = vmul.f32 %v8208_v6, %v5341_v31  ;;  %v5954_v5 = vpop.f32.mrf.mxu1  ;;  %v6030_v9 = vpop.f32.mrf.mxu0 }
 0x5f8   : > { %v5342_v60 = vmax.f32 %v5323_v10, 0.0  ;;  %v5298_v2 = vadd.f32 %v6028_v29, %v4803_v17  ;;  %v5955_v59 = vadd.f32 %v5954_v5, %v5953_v19  ;;  %v6031_v15 = vadd.f32 %v6030_v9, %v6029_v22 }
 0x5f9   : > { %v5425_v1 = vld [vmem:[#allocation2 + $0x30] ss:$2 sm:$0xff]  ;;  %v5435_v42 = vld [vmem:[#allocation2 + $0x31] ss:$2 sm:$0xff]  ;;  %v5393_v3 = vadd.f32 %v8213_v0, %v5367_v63  ;;  %v5956_v12 = vpop.f32.mrf.mxu1  ;;  %v6032_v45 = vpop.f32.mrf.mxu0 }
 0x5fa   : > { %v5445_v21 = vmax.f32 %v5425_v1, %v5435_v42  ;;  %v5368_v52 = vmul.f32 %v8208_v6, %v5342_v60  ;;  %v5324_v53 = vadd.f32 %v8201_v7, %v5298_v2  ;;  %v4808_v44 = vadd.f32 %v5955_v59, %v8181_v56 }
 0x5fb   : > { %5412 = vst [vmem:[#allocation2 + $0x48] sm:$0xff] %v5393_v3  ;;  %v5957_v40 = vpop.f32.mrf.mxu1  ;;  %v6033_v61 = vpop.f32.mrf.mxu0 }
 0x5fc   : > { %v5768_v57 = vpack.c.bf16 %v5445_v21, %v5444_v4  ;;  %v5394_v20 = vadd.f32 %v8213_v0, %v5368_v52  ;;  %v5343_v28 = vmax.f32 %v5324_v53, 0.0  ;;  %v5299_v25 = vadd.f32 %v6031_v15, %v4808_v44 }
 0x5fd   : > { %v5958_v50 = vadd.f32 %v5957_v40, %v5956_v12  ;;  %v5959_v43 = vpop.f32.mrf.mxu1  ;;  %v6034_v49 = vadd.f32 %v6033_v61, %v6032_v45 }
 0x5fe   : > { %5780 = vst [vmem:[%s8247_s14 + $0x8] sm:$0xff] %v5768_v57   ;;  %5413 = vst [vmem:[#allocation2 + $0x50] sm:$0xff] %v5394_v20  ;;  %v5369_v26 = vmul.f32 %v8208_v6, %v5343_v28  ;;  %v5325_v46 = vadd.f32 %v8201_v7, %v5299_v25 }
 0x5ff   : > { %v4811_v62 = vadd.f32 %v5958_v50, %v8183_v8  ;;  %v5960_v56 = vpop.f32.mrf.mxu1 }
 0x600   : > { %v5395_v48 = vadd.f32 %v8213_v0, %v5369_v26  ;;  %v5344_v38 = vmax.f32 %v5325_v46, 0.0  ;;  %v5961_v27 = vadd.f32 %v5960_v56, %v5959_v43 }
 0x601   : > { %v5300_v58 = vadd.f32 %v6034_v49, %v4811_v62  ;;  %v5962_v47 = vpop.f32.mrf.mxu1 }
 0x602   : > { %5414 = vst [vmem:[#allocation2 + $0x58] sm:$0xff] %v5395_v48  ;;  %v5370_v55 = vmul.f32 %v8208_v6, %v5344_v38  ;;  %v5426_v8 = vld [vmem:[#allocation2 + $0x40] ss:$2 sm:$0xff]  ;;  %v5436_v33 = vld [vmem:[#allocation2 + $0x41] ss:$2 sm:$0xff]  ;;  %v4816_v39 = vadd.f32 %v5961_v27, %v8185_v37 }
 0x603   : > { %v5326_v23 = vadd.f32 %v8201_v7, %v5300_v58  ;;  %v5963_v24 = vpop.f32.mrf.mxu1  ;;  %v5446_v17 = vmax.f32 %v5426_v8, %v5436_v33 }
 0x604   : > { %v5396_v41 = vadd.f32 %v8213_v0, %v5370_v55  ;;  %v5964_v31 = vadd.f32 %v5963_v24, %v5962_v47 }
 0x605   : > { %v5345_v54 = vmax.f32 %v5326_v23, 0.0  ;;  %v5965_v30 = vpop.f32.mrf.mxu1  ;;  %v6035_v13 = vpop.f32.mrf.mxu0 }
 0x606   : > { %5415 = vst [vmem:[#allocation2 + $0x60] sm:$0xff] %v5396_v41  ;;  %v4819_v59 = vadd.f32 %v5964_v31, %v8187_v32 }
 0x607   : > { %v5371_v14 = vmul.f32 %v8208_v6, %v5345_v54  ;;  %v5966_v34 = vpop.f32.mrf.mxu1  ;;  %v6036_v35 = vpop.f32.mrf.mxu0 }
 0x608   : > { %v6037_v19 = vadd.f32 %v6036_v35, %v6035_v13  ;;  %v5967_v12 = vadd.f32 %v5966_v34, %v5965_v30 }
 0x609   : > { %v5427_v22 = vld [vmem:[#allocation2 + $0x50] ss:$2 sm:$0xff]  ;;  %v5437_v16 = vld [vmem:[#allocation2 + $0x51] ss:$2 sm:$0xff]  ;;  %v5397_v36 = vadd.f32 %v8213_v0, %v5371_v14  ;;  %v5968_v29 = vpop.f32.mrf.mxu1  ;;  %v6038_v10 = vpop.f32.mrf.mxu0 }
 0x60a   : > { %v5447_v63 = vmax.f32 %v5427_v22, %v5437_v16  ;;  %v5301_v5 = vadd.f32 %v6037_v19, %v4816_v39  ;;  %v4824_v28 = vadd.f32 %v5967_v12, %v8189_v18 }
 0x60b   : > { %5416 = vst [vmem:[#allocation2 + $0x68] sm:$0xff] %v5397_v36  ;;  %v5969_v9 = vpop.f32.mrf.mxu1  ;;  %v6039_v60 = vpop.f32.mrf.mxu0 }
 0x60c   : > { %v5773_v2 = vpack.c.bf16 %v5447_v63, %v5446_v17  ;;  %v5327_v37 = vadd.f32 %v8201_v7, %v5301_v5  ;;  %v6040_v4 = vadd.f32 %v6039_v60, %v6038_v10  ;;  %v5970_v57 = vadd.f32 %v5969_v9, %v5968_v29  ;;  %v5504_v60 = vld [vmem:[%s8247_s14 + $0x24] sm:$0x3] }
 0x60d   : > { %v5971_v1 = vpop.f32.mrf.mxu1 }
 0x60e   : > { %5781 = vst [vmem:[%s8247_s14 + $0x10] sm:$0xff] %v5773_v2   ;;  %v5346_v42 = vmax.f32 %v5327_v37, 0.0  ;;  %v5302_v3 = vadd.f32 %v6040_v4, %v4819_v59  ;;  %v4827_v49 = vadd.f32 %v5970_v57, %v8191_v11 }
 0x60f   : > { %v5972_v15 = vpop.f32.mrf.mxu1 }
 0x610   : > { %v5372_v45 = vmul.f32 %v8208_v6, %v5346_v42  ;;  %v5328_v21 = vadd.f32 %v8201_v7, %v5302_v3  ;;  %v5973_v61 = vadd.f32 %v5972_v15, %v5971_v1 }
 0x611   : > { %v5974_v52 = vpop.f32.mrf.mxu1  ;;  %v6041_v53 = vpop.f32.mrf.mxu0 }
 0x612   : > { %v5398_v44 = vadd.f32 %v8213_v0, %v5372_v45  ;;  %v5347_v40 = vmax.f32 %v5328_v21, 0.0  ;;  %v4832_v38 = vadd.f32 %v5973_v61, %v8193_v51  ;;  %v5428_v13 = vld [vmem:[#allocation2 + $0x60] ss:$2 sm:$0xff]  ;;  %v5438_v8 = vld [vmem:[#allocation2 + $0x61] ss:$2 sm:$0xff] }
 0x613   : > { %v5975_v32 = vpop.f32.mrf.mxu1  ;;  %v6042_v20 = vpop.f32.mrf.mxu0  ;;  %v5448_v39 = vmax.f32 %v5428_v13, %v5438_v8 }
 0x614   : > { %5417 = vst [vmem:[#allocation2 + $0x70] sm:$0xff] %v5398_v44  ;;  %v5373_v25 = vmul.f32 %v8208_v6, %v5347_v40  ;;  %v6043_v50 = vadd.f32 %v6042_v20, %v6041_v53 }
 0x615   : > { %v6044_v43 = vpop.f32.mrf.mxu0  ;;  %v6047_v26 = vpop.f32.mrf.mxu1 }
 0x616   : > { %v5399_v46 = vadd.f32 %v8213_v0, %v5373_v25  ;;  %v5303_v62 = vadd.f32 %v6043_v50, %v4824_v28 }
 0x617   : > { %v6045_v56 = vpop.f32.mrf.mxu0  ;;  %v6048_v48 = vpop.f32.mrf.mxu1 }
 0x618   : > { %5418 = vst [vmem:[#allocation2 + $0x78] sm:$0xff] %v5399_v46  ;;  %v5329_v58 = vadd.f32 %v8201_v7, %v5303_v62  ;;  %v6046_v18 = vadd.f32 %v6045_v56, %v6044_v43  ;;  %v6049_v47 = vadd.f32 %v6048_v48, %v6047_v26 }
 0x619   : > { %v6050_v55 = vpop.f32.mrf.mxu1 }
 0x61a   : > { %v5348_v23 = vmax.f32 %v5329_v58, 0.0  ;;  %v5304_v24 = vadd.f32 %v6046_v18, %v4827_v49  ;;  %v5305_v41 = vadd.f32 %v6049_v47, %v4832_v38 }
 0x61b   : > { %v6051_v27 = vpop.f32.mrf.mxu1 }
 0x61c   : > { %v5374_v54 = vmul.f32 %v8208_v6, %v5348_v23  ;;  %v5330_v30 = vadd.f32 %v8201_v7, %v5304_v24  ;;  %v5331_v11 = vadd.f32 %v8201_v7, %v5305_v41 }
 0x61e   : > { %v5400_v51 = vadd.f32 %v8213_v0, %v5374_v54  ;;  %v5349_v33 = vmax.f32 %v5330_v30, 0.0  ;;  %v5350_v14 = vmax.f32 %v5331_v11, 0.0 }
 0x61f   : > { %v5429_v34 = vld [vmem:[#allocation2 + $0x70] ss:$2 sm:$0xff]  ;;  %v5439_v35 = vld [vmem:[#allocation2 + $0x71] ss:$2 sm:$0xff] }
 0x620   : > { %v5449_v31 = vmax.f32 %v5429_v34, %v5439_v35  ;;  %5419 = vst [vmem:[#allocation2 + $0x80] sm:$0xff] %v5400_v51  ;;  %v5375_v19 = vmul.f32 %v8208_v6, %v5349_v33  ;;  %v5376_v22 = vmul.f32 %v8208_v6, %v5350_v14 }
 0x622   : > { %v5778_v16 = vpack.c.bf16 %v5449_v31, %v5448_v39  ;;  %v5401_v7 = vadd.f32 %v8213_v0, %v5375_v19  ;;  %v5402_v36 = vadd.f32 %v8213_v0, %v5376_v22 }
 0x624   : > { %5782 = vst [vmem:[%s8247_s14 + $0x18] sm:$0xff] %v5778_v16   ;;  %5420 = vst [vmem:[#allocation2 + $0x88] sm:$0xff] %v5401_v7 }
 0x625   : > { %5421 = vst [vmem:[#allocation2 + $0x90] sm:$0x3f] %v5402_v36 }
 0x62b   : > { %v5430_v29 = vld [vmem:[#allocation2 + $0x80] ss:$2 sm:$0xff]  ;;  %v5440_v10 = vld [vmem:[#allocation2 + $0x81] ss:$2 sm:$0xff] }
 0x62c   : > { %v5450_v17 = vmax.f32 %v5430_v29, %v5440_v10  ;;  %v5431_v63 = vld [vmem:[#allocation2 + $0x90] ss:$2 sm:$0x7]  ;;  %v5441_v5 = vld [vmem:[#allocation2 + $0x91] ss:$2 sm:$0x7] }
 0x62d   : > { %v5451_v9 = vmax.f32 %v5431_v63, %v5441_v5 }
 0x62e   : > { %v5758_v6 = vpack.c.bf16 %v5450_v17, %v5450_v17 }
 0x62f   : > { %v5759_v2 = vpack.c.bf16 %v5451_v9, %v5451_v9 }
 0x630   : > { %5500 = vst [vmem:[%s8247_s14 + $0x20] sm:$0xf] %v5758_v6 }
 0x631   : > { %v5505_v59 = vsel %vm5503_vm5, %v5759_v2, %v5504_v60 }
 0x632   : > { %5506 = vst [vmem:[%s8247_s14 + $0x24] sm:$0x3] %v5505_v59 }
 0x633 PF: > { %s23_s25 = sadd.s32 1, %s6352_s25  }
 0x634   : > { %p20_p4 = scmp.ge.s32.totalorder %s23_s25, 4  }
 0x636   :  { %22 = sbr.rel (!%p20_p4) target bundleno = 1 (0x1), region = 195 }

// kernel: cnn_net_forward.3
= control target key start
LH: loop header
LB: loop body
LE: loop exit
PB: predicated region body
PF: predicated region fallthrough
CT: control target
= control target key end

     0   :  { %s10388_s19 = smov 0   ;;  %s12130_s0 = inlined_call_operand.vmem [shape: bf16[2,9600], index: 0, kind: input, shape index: {}]   ;;  %s12131_s1 = inlined_call_operand.vmem [shape: bf16[9600,512], index: 1, kind: input, shape index: {}]   ;;  %s12132_s2 = inlined_call_operand.vmem [shape: f32[1,512], index: 2, kind: input, shape index: {}]   ;;  %s12133_s3 = inlined_call_operand.vmem [shape: f32[1,512], index: 3, kind: input, shape index: {}]   ;;  %s12134_s4 = inlined_call_operand.vmem [shape: f32[1,512], index: 4, kind: input, shape index: {}]   ;;  %s12135_s5 = inlined_call_operand.vmem [shape: bf16[512,512], index: 5, kind: input, shape index: {}]   ;;  %s12136_s6 = inlined_call_operand.vmem [shape: f32[1,512], index: 6, kind: input, shape index: {}]   ;;  %s12137_s7 = inlined_call_operand.vmem [shape: f32[1,512], index: 7, kind: input, shape index: {}]   ;;  %s12138_s8 = inlined_call_operand.vmem [shape: f32[1,512], index: 8, kind: input, shape index: {}]   ;;  %s12139_s9 = inlined_call_operand.vmem [shape: f32[512,1], index: 9, kind: input, shape index: {}]   ;;  %s12140_s10 = inlined_call_operand.<no memory space> [shape: f32[1,1], index: 10, kind: input, shape index: {}]   ;;  %s12141_s11 = inlined_call_operand.vmem [shape: f32[2,1], index: 11, kind: output, shape index: {}]  }
   0x1   :  { %v16_v0 = vstv %s12140_s10 }
   0x2   :  { %17 = vst [vmem:[#allocation3] sm:$0x1] %v16_v0 }
   0x3 LB: > { %s10394_s20 = sadd.s32 4294967295, %s10319_s19   ;;  %p7897_p0 = scmp.ge.s32.totalorder %s10319_s19, 1  ;;  %s10319_s19 = sphi %s10388_s19, %s23_s19  }
   0x4   : > { %p346_p1 = scmp.lt.s32.totalorder %s10319_s19, 4 }
   0x6   : > { %p347_p2 = pnand %p7897_p0, %p346_p1 }
   0x7   : > { %s386_s10 = smul.u32 (!%p347_p2), 25, %s10394_s20  ;;  %p7900_p5 = scmp.ne.s32.totalorder (!%p347_p2), %s10394_s20, 0 }
   0x8   : > { %350 = sbr.rel (%p347_p2) target bundleno = 1568 (0x620), region = 64 }
   0x9   : > { %s391_s21 = smul.u32 (!%p347_p2), 400, %s10394_s20  ;;  %p387_p3 = scmp.lt.s32.totalorder (!%p347_p2), %s386_s10, 74 }
   0xb   : > { %p392_p4 = scmp.lt.s32.totalorder (!%p347_p2), %s391_s21, 1199 }
   0xd   : > { %s12143_s10 = smov (!%p387_p3, %s386_s10), 74  ;;  %s12145_s21 = smov (!%p392_p4, %s391_s21), 1199 }
   0xe   : > { %s10403_s24 = scalar_lea.vmem %s12130_s0, %s12143_s10  ;;  %s8835_s25 = sshll.u32 %s12145_s21, 4 }
   0xf   : > { %s10408_s28 = scalar_lea.vmem %s12131_s1, %s8835_s25  ;;  %402 = sbr.rel (%p7900_p5) target bundleno = 22 (0x16), region = 68 }
  0x14   : > { %v10321_v1 = vmov 0.0  }
  0x15   : > { %403 = vst [vmem:[#allocation2] sm:$0xff] %v10321_v1 }
  0x16 PF: > { %v8918_v2 = vld [vmem:[%s10408_s28 + $0xe4] ss:$16 sps:$4 sm:$0xff]   ;;  %v8922_v4 = vld [vmem:[%s10408_s28 + $0xe0] ss:$16 sps:$4 sm:$0xff]   ;;  %v10322_v38 = vmov 1966171168   ;;  %v1217_v40 = vlaneseq }
  0x17   : > { %v8920_v3 = vld [vmem:[%s10408_s28 + $0x2e4] ss:$16 sps:$4 sm:$0xff]   ;;  %5399 = vmatprep.subr.bf16.mxu0 %v8918_v2  ;;  %v8923_v5 = vld [vmem:[%s10408_s28 + $0x2e0] ss:$16 sps:$4 sm:$0xff]   ;;  %v1215_v39 = vunpack.c.l.s4 %v10322_v38  ;;  %p8702_p6 = scmp.ne.s32.totalorder %s10394_s20, 2 }
  0x18   : > { %5440 = vmatprep.subr.bf16.mxu1 %v8920_v3  ;;  %v8924_v6 = vld [vmem:[%s10408_s28 + $0xc4] ss:$16 sps:$4 sm:$0xff]   ;;  %5400 = vmatpush1.bf16.msra.mxu0 %v8922_v4  ;;  %v8928_v8 = vld [vmem:[%s10408_s28 + $0xc0] ss:$16 sps:$4 sm:$0xff]   ;;  %v10450_v45 = vshrl.u32 %v1217_v40, 7 }
  0x19   : > { %5441 = vmatpush1.bf16.msra.mxu1 %v8923_v5  ;;  %v8926_v7 = vld [vmem:[%s10408_s28 + $0x2c4] ss:$16 sps:$4 sm:$0xff]   ;;  %5401 = vmatprep.subr.bf16.mxu0 %v8924_v6  ;;  %v8929_v9 = vld [vmem:[%s10408_s28 + $0x2c0] ss:$16 sps:$4 sm:$0xff]   ;;  %v1216_v44 = vunpack.c.0.s8 %v1215_v39 }
  0x1a   : > { %5442 = vmatprep.subr.bf16.mxu1 %v8926_v7  ;;  %v8930_v10 = vld [vmem:[%s10408_s28 + $0xa4] ss:$16 sps:$4 sm:$0xff]   ;;  %v8934_v12 = vld [vmem:[%s10408_s28 + $0xa0] ss:$16 sps:$4 sm:$0xff]  }
  0x1b   : > { %v8932_v11 = vld [vmem:[%s10408_s28 + $0x2a4] ss:$16 sps:$4 sm:$0xff]   ;;  %v8935_v13 = vld [vmem:[%s10408_s28 + $0x2a0] ss:$16 sps:$4 sm:$0xff]   ;;  %v10458_v51 = vsub.s32 %v1216_v44, %v10450_v45 }
  0x1c   : > { %5402 = vmatpush1.bf16.msra.mxu0 %v8928_v8  ;;  %v8936_v14 = vld [vmem:[%s10408_s28 + $0x84] ss:$16 sps:$4 sm:$0xff]   ;;  %v8940_v16 = vld [vmem:[%s10408_s28 + $0x80] ss:$16 sps:$4 sm:$0xff]  }
  0x1d   : > { %5443 = vmatpush1.bf16.msra.mxu1 %v8929_v9  ;;  %5403 = vmatprep.subr.bf16.mxu0 %v8930_v10  ;;  %v8938_v15 = vld [vmem:[%s10408_s28 + $0x284] ss:$16 sps:$4 sm:$0xff]   ;;  %v8941_v17 = vld [vmem:[%s10408_s28 + $0x280] ss:$16 sps:$4 sm:$0xff]  }
  0x1e   : > { %5444 = vmatprep.subr.bf16.mxu1 %v8932_v11  ;;  %v8942_v18 = vld [vmem:[%s10408_s28 + $0x64] ss:$16 sps:$4 sm:$0xff]   ;;  %v8946_v20 = vld [vmem:[%s10408_s28 + $0x60] ss:$16 sps:$4 sm:$0xff]  }
  0x1f   : > { %v8944_v19 = vld [vmem:[%s10408_s28 + $0x264] ss:$16 sps:$4 sm:$0xff]   ;;  %v8947_v21 = vld [vmem:[%s10408_s28 + $0x260] ss:$16 sps:$4 sm:$0xff]  }
  0x20   : > { %5404 = vmatpush1.bf16.msra.mxu0 %v8934_v12  ;;  %v8948_v22 = vld [vmem:[%s10408_s28 + $0x44] ss:$16 sps:$4 sm:$0xff]   ;;  %v8952_v24 = vld [vmem:[%s10408_s28 + $0x40] ss:$16 sps:$4 sm:$0xff]  }
  0x21   : > { %5445 = vmatpush1.bf16.msra.mxu1 %v8935_v13  ;;  %5405 = vmatprep.subr.bf16.mxu0 %v8936_v14  ;;  %v8950_v23 = vld [vmem:[%s10408_s28 + $0x244] ss:$16 sps:$4 sm:$0xff]   ;;  %v8953_v25 = vld [vmem:[%s10408_s28 + $0x240] ss:$16 sps:$4 sm:$0xff]  }
  0x22   : > { %5446 = vmatprep.subr.bf16.mxu1 %v8938_v15  ;;  %v8954_v26 = vld [vmem:[%s10408_s28 + $0x24] ss:$16 sps:$4 sm:$0xff]   ;;  %v8958_v28 = vld [vmem:[%s10408_s28 + $0x20] ss:$16 sps:$4 sm:$0xff]  }
  0x23   : > { %v8956_v27 = vld [vmem:[%s10408_s28 + $0x224] ss:$16 sps:$4 sm:$0xff]   ;;  %v8959_v29 = vld [vmem:[%s10408_s28 + $0x220] ss:$16 sps:$4 sm:$0xff]  }
  0x24   : > { %5406 = vmatpush1.bf16.msra.mxu0 %v8940_v16  ;;  %v8960_v30 = vld [vmem:[%s10408_s28 + $0x4] ss:$16 sps:$4 sm:$0xff]   ;;  %v8964_v32 = vld [vmem:[%s10408_s28] ss:$16 sps:$4 sm:$0xff]  }
  0x25   : > { %5447 = vmatpush1.bf16.msra.mxu1 %v8941_v17  ;;  %5407 = vmatprep.subr.bf16.mxu0 %v8942_v18  ;;  %v8962_v31 = vld [vmem:[%s10408_s28 + $0x204] ss:$16 sps:$4 sm:$0xff]   ;;  %v8965_v33 = vld [vmem:[%s10408_s28 + $0x200] ss:$16 sps:$4 sm:$0xff]  }
  0x26   : > { %5448 = vmatprep.subr.bf16.mxu1 %v8944_v19  ;;  %v8966_v34 = vld [vmem:[%s10408_s28 + $0x1e4] ss:$16 sps:$4 sm:$0xff]   ;;  %v8970_v36 = vld [vmem:[%s10408_s28 + $0x1e0] ss:$16 sps:$4 sm:$0xff]  }
  0x27   : > { %v8968_v35 = vld [vmem:[%s10408_s28 + $0x3e4] ss:$16 sps:$4 sm:$0xff]   ;;  %v8971_v37 = vld [vmem:[%s10408_s28 + $0x3e0] ss:$16 sps:$4 sm:$0xff]  }
  0x28   : > { %5408 = vmatpush1.bf16.msra.mxu0 %v8946_v20  ;;  %v8972_v41 = vld [vmem:[%s10408_s28 + $0x1c4] ss:$16 sps:$4 sm:$0xff]   ;;  %v8976_v43 = vld [vmem:[%s10408_s28 + $0x1c0] ss:$16 sps:$4 sm:$0xff]  }
  0x29   : > { %5449 = vmatpush1.bf16.msra.mxu1 %v8947_v21  ;;  %5409 = vmatprep.subr.bf16.mxu0 %v8948_v22  ;;  %v8974_v42 = vld [vmem:[%s10408_s28 + $0x3c4] ss:$16 sps:$4 sm:$0xff]   ;;  %v8977_v46 = vld [vmem:[%s10408_s28 + $0x3c0] ss:$16 sps:$4 sm:$0xff]  }
  0x2a   : > { %5450 = vmatprep.subr.bf16.mxu1 %v8950_v23  ;;  %v8978_v47 = vld [vmem:[%s10408_s28 + $0x1a4] ss:$16 sps:$4 sm:$0xff]   ;;  %v8982_v49 = vld [vmem:[%s10408_s28 + $0x1a0] ss:$16 sps:$4 sm:$0xff]  }
  0x2b   : > { %v8980_v48 = vld [vmem:[%s10408_s28 + $0x3a4] ss:$16 sps:$4 sm:$0xff]   ;;  %v8983_v50 = vld [vmem:[%s10408_s28 + $0x3a0] ss:$16 sps:$4 sm:$0xff]  }
  0x2c   : > { %5410 = vmatpush1.bf16.msra.mxu0 %v8952_v24  ;;  %v8984_v52 = vld [vmem:[%s10408_s28 + $0x184] ss:$16 sps:$4 sm:$0xff]   ;;  %v8988_v55 = vld [vmem:[%s10408_s28 + $0x180] ss:$16 sps:$4 sm:$0xff]  }
  0x2d   : > { %5451 = vmatpush1.bf16.msra.mxu1 %v8953_v25  ;;  %5411 = vmatprep.subr.bf16.mxu0 %v8954_v26  ;;  %v8986_v53 = vld [vmem:[%s10408_s28 + $0x384] ss:$16 sps:$4 sm:$0xff]   ;;  %v8989_v57 = vld [vmem:[%s10408_s28 + $0x380] ss:$16 sps:$4 sm:$0xff]  }
  0x2e   : > { %5452 = vmatprep.subr.bf16.mxu1 %v8956_v27  ;;  %v405_v54 = vld [vmem:[%s10403_s24] sm:$0xff] }
  0x2f   : > { %v1220_v56 = vrot.slane %v405_v54, %v10458_v51  ;;  %v8990_v58 = vld [vmem:[%s10408_s28 + $0x164] ss:$16 sps:$4 sm:$0xff]   ;;  %v8994_v61 = vld [vmem:[%s10408_s28 + $0x160] ss:$16 sps:$4 sm:$0xff]   ;;  %v1213_v3 = vcombine.high %v405_v54, %v405_v54 }
  0x30   : > { %5412 = vmatpush1.bf16.msra.mxu0 %v8958_v28  ;;  %v8992_v59 = vld [vmem:[%s10408_s28 + $0x364] ss:$16 sps:$4 sm:$0xff]   ;;  %v8995_v63 = vld [vmem:[%s10408_s28 + $0x360] ss:$16 sps:$4 sm:$0xff]  }
  0x31   : > { %5453 = vmatpush1.bf16.msra.mxu1 %v8959_v29  ;;  %5413 = vmatprep.subr.bf16.mxu0 %v8960_v30  ;;  %v1228_v60 = vcombine.high %v1220_v56, %v1220_v56  ;;  %v8996_v0 = vld [vmem:[%s10408_s28 + $0x144] ss:$16 sps:$4 sm:$0xff]   ;;  %v9000_v4 = vld [vmem:[%s10408_s28 + $0x140] ss:$16 sps:$4 sm:$0xff]   ;;  %v10486_v8 = vrot.slane %v1213_v3, %v10458_v51  ;;  %v10496_v15 = vrot.slane %v1220_v56, %v10458_v51 }
  0x32   : > { %5454 = vmatprep.subr.bf16.mxu1 %v8962_v31  ;;  %v8998_v1 = vld [vmem:[%s10408_s28 + $0x344] ss:$16 sps:$4 sm:$0xff]   ;;  %v9001_v5 = vld [vmem:[%s10408_s28 + $0x340] ss:$16 sps:$4 sm:$0xff]  }
  0x33   : > { %v10470_v62 = vrot.slane %v1228_v60, %v10458_v51  ;;  %v9002_v6 = vld [vmem:[%s10408_s28 + $0x124] ss:$16 sps:$4 sm:$0xff]   ;;  %v9006_v9 = vld [vmem:[%s10408_s28 + $0x120] ss:$16 sps:$4 sm:$0xff]   ;;  %v1229_v13 = vcombine.high %v10486_v8, %v10486_v8  ;;  %v10506_v20 = vcombine.high %v10496_v15, %v10496_v15 }
  0x34   : > { %5414 = vmatpush1.bf16.msra.mxu0 %v8964_v32  ;;  %v9004_v7 = vld [vmem:[%s10408_s28 + $0x324] ss:$16 sps:$4 sm:$0xff]   ;;  %v9007_v10 = vld [vmem:[%s10408_s28 + $0x320] ss:$16 sps:$4 sm:$0xff]  }
  0x35   : > { %5455 = vmatpush1.bf16.msra.mxu1 %v8965_v33  ;;  %5415 = vmatprep.subr.bf16.mxu0 %v8966_v34  ;;  %v10477_v2 = vcombine.high %v10470_v62, %v10470_v62  ;;  %v9008_v11 = vld [vmem:[%s10408_s28 + $0x104] ss:$16 sps:$4 sm:$0xff]   ;;  %v9012_v14 = vld [vmem:[%s10408_s28 + $0x100] ss:$16 sps:$4 sm:$0xff]   ;;  %v10502_v19 = vrot.slane %v1229_v13, %v10458_v51 }
  0x36   : > { %5456 = vmatprep.subr.bf16.mxu1 %v8968_v35  ;;  %5431 = vmatprep.mubr.bf16.mxu0 %v10470_v62  ;;  %v9010_v12 = vld [vmem:[%s10408_s28 + $0x304] ss:$16 sps:$4 sm:$0xff]   ;;  %v9013_v16 = vld [vmem:[%s10408_s28 + $0x300] ss:$16 sps:$4 sm:$0xff]  }
  0x37   : > { %5472 = vmatprep.mubr.bf16.mxu1 %v10477_v2  ;;  %v9016_v17 = vld [vmem:[%s10408_s28 + $0x4e4] ss:$16 sps:$4 sm:$0xff]   ;;  %v9014_v21 = vld [vmem:[%s10408_s28 + $0x4e0] ss:$16 sps:$4 sm:$0xff]   ;;  %v10514_v25 = vcombine.high %v10502_v19, %v10502_v19 }
  0x38   : > { %5416 = vmatpush2.bf16.msra.mxu0 %v8970_v36  ;;  %v9019_v18 = vld [vmem:[%s10408_s28 + $0x6e4] ss:$16 sps:$4 sm:$0xff]   ;;  %v9017_v22 = vld [vmem:[%s10408_s28 + $0x6e0] ss:$16 sps:$4 sm:$0xff]  }
  0x39   : > { %5457 = vmatpush2.bf16.msra.mxu1 %v8971_v37  ;;  %5417 = vmatprep.subr.bf16.mxu0 %v8972_v41  ;;  %v9022_v23 = vld [vmem:[%s10408_s28 + $0x4c4] ss:$16 sps:$4 sm:$0xff]   ;;  %v9020_v26 = vld [vmem:[%s10408_s28 + $0x4c0] ss:$16 sps:$4 sm:$0xff]  }
  0x3a   : > { %5458 = vmatprep.subr.bf16.mxu1 %v8974_v42  ;;  %v9025_v24 = vld [vmem:[%s10408_s28 + $0x6c4] ss:$16 sps:$4 sm:$0xff]   ;;  %v9023_v27 = vld [vmem:[%s10408_s28 + $0x6c0] ss:$16 sps:$4 sm:$0xff]  }
  0x3b   : > { %v9028_v28 = vld [vmem:[%s10408_s28 + $0x4a4] ss:$16 sps:$4 sm:$0xff]   ;;  %v9026_v30 = vld [vmem:[%s10408_s28 + $0x4a0] ss:$16 sps:$4 sm:$0xff]  }
  0x3c   : > { %5418 = vmatpush2.bf16.msra.mxu0 %v8976_v43  ;;  %v9031_v29 = vld [vmem:[%s10408_s28 + $0x6a4] ss:$16 sps:$4 sm:$0xff]   ;;  %v9029_v31 = vld [vmem:[%s10408_s28 + $0x6a0] ss:$16 sps:$4 sm:$0xff]  }
  0x3d   : > { %5459 = vmatpush2.bf16.msra.mxu1 %v8977_v46  ;;  %5419 = vmatprep.subr.bf16.mxu0 %v8978_v47  ;;  %v9034_v32 = vld [vmem:[%s10408_s28 + $0x484] ss:$16 sps:$4 sm:$0xff]   ;;  %v9032_v34 = vld [vmem:[%s10408_s28 + $0x480] ss:$16 sps:$4 sm:$0xff]  }
  0x3e   : > { %5460 = vmatprep.subr.bf16.mxu1 %v8980_v48  ;;  %v9037_v33 = vld [vmem:[%s10408_s28 + $0x684] ss:$16 sps:$4 sm:$0xff]   ;;  %v9035_v35 = vld [vmem:[%s10408_s28 + $0x680] ss:$16 sps:$4 sm:$0xff]  }
  0x3f   : > { %v9040_v36 = vld [vmem:[%s10408_s28 + $0x464] ss:$16 sps:$4 sm:$0xff]   ;;  %v9038_v38 = vld [vmem:[%s10408_s28 + $0x460] ss:$16 sps:$4 sm:$0xff]  }
  0x40   : > { %5420 = vmatpush2.bf16.msra.mxu0 %v8982_v49  ;;  %v9043_v37 = vld [vmem:[%s10408_s28 + $0x664] ss:$16 sps:$4 sm:$0xff]   ;;  %v9041_v39 = vld [vmem:[%s10408_s28 + $0x660] ss:$16 sps:$4 sm:$0xff]  }
  0x41   : > { %5461 = vmatpush2.bf16.msra.mxu1 %v8983_v50  ;;  %5421 = vmatprep.subr.bf16.mxu0 %v8984_v52  ;;  %v9046_v40 = vld [vmem:[%s10408_s28 + $0x444] ss:$16 sps:$4 sm:$0xff]   ;;  %v9044_v42 = vld [vmem:[%s10408_s28 + $0x440] ss:$16 sps:$4 sm:$0xff]  }
  0x42   : > { %5462 = vmatprep.subr.bf16.mxu1 %v8986_v53  ;;  %v9049_v41 = vld [vmem:[%s10408_s28 + $0x644] ss:$16 sps:$4 sm:$0xff]   ;;  %v9047_v43 = vld [vmem:[%s10408_s28 + $0x640] ss:$16 sps:$4 sm:$0xff]  }
  0x43   : > { %v9052_v44 = vld [vmem:[%s10408_s28 + $0x424] ss:$16 sps:$4 sm:$0xff]   ;;  %v9050_v47 = vld [vmem:[%s10408_s28 + $0x420] ss:$16 sps:$4 sm:$0xff]  }
  0x44   : > { %5422 = vmatpush2.bf16.msra.mxu0 %v8988_v55  ;;  %v9055_v46 = vld [vmem:[%s10408_s28 + $0x624] ss:$16 sps:$4 sm:$0xff]   ;;  %v9053_v48 = vld [vmem:[%s10408_s28 + $0x620] ss:$16 sps:$4 sm:$0xff]  }
  0x45   : > { %5463 = vmatpush2.bf16.msra.mxu1 %v8989_v57  ;;  %5423 = vmatprep.subr.bf16.mxu0 %v8990_v58  ;;  %v9058_v49 = vld [vmem:[%s10408_s28 + $0x404] ss:$16 sps:$4 sm:$0xff]   ;;  %v9056_v52 = vld [vmem:[%s10408_s28 + $0x400] ss:$16 sps:$4 sm:$0xff]  }
  0x46   : > { %5464 = vmatprep.subr.bf16.mxu1 %v8992_v59  ;;  %v9061_v50 = vld [vmem:[%s10408_s28 + $0x604] ss:$16 sps:$4 sm:$0xff]   ;;  %v9059_v53 = vld [vmem:[%s10408_s28 + $0x600] ss:$16 sps:$4 sm:$0xff]  }
  0x47   : > { %v9064_v54 = vld [vmem:[%s10408_s28 + $0x5e4] ss:$16 sps:$4 sm:$0xff]   ;;  %v9062_v56 = vld [vmem:[%s10408_s28 + $0x5e0] ss:$16 sps:$4 sm:$0xff]  }
  0x48   : > { %5424 = vmatpush2.bf16.msra.mxu0 %v8994_v61  ;;  %v9067_v55 = vld [vmem:[%s10408_s28 + $0x7e4] ss:$16 sps:$4 sm:$0xff]   ;;  %v9065_v57 = vld [vmem:[%s10408_s28 + $0x7e0] ss:$16 sps:$4 sm:$0xff]  }
  0x49   : > { %5465 = vmatpush2.bf16.msra.mxu1 %v8995_v63  ;;  %5425 = vmatprep.subr.bf16.mxu0 %v8996_v0  ;;  %v9070_v58 = vld [vmem:[%s10408_s28 + $0x5c4] ss:$16 sps:$4 sm:$0xff]   ;;  %v9068_v60 = vld [vmem:[%s10408_s28 + $0x5c0] ss:$16 sps:$4 sm:$0xff]  }
  0x4a   : > { %5466 = vmatprep.subr.bf16.mxu1 %v8998_v1  ;;  %v9073_v59 = vld [vmem:[%s10408_s28 + $0x7c4] ss:$16 sps:$4 sm:$0xff]   ;;  %v9071_v61 = vld [vmem:[%s10408_s28 + $0x7c0] ss:$16 sps:$4 sm:$0xff]  }
  0x4b   : > { %v9076_v63 = vld [vmem:[%s10408_s28 + $0x5a4] ss:$16 sps:$4 sm:$0xff]   ;;  %v9074_v1 = vld [vmem:[%s10408_s28 + $0x5a0] ss:$16 sps:$4 sm:$0xff]  }
  0x4c   : > { %5426 = vmatpush2.bf16.msra.mxu0 %v9000_v4  ;;  %v9079_v0 = vld [vmem:[%s10408_s28 + $0x7a4] ss:$16 sps:$4 sm:$0xff]   ;;  %v9077_v3 = vld [vmem:[%s10408_s28 + $0x7a0] ss:$16 sps:$4 sm:$0xff]  }
  0x4d   : > { %5467 = vmatpush2.bf16.msra.mxu1 %v9001_v5  ;;  %5427 = vmatprep.subr.bf16.mxu0 %v9002_v6  ;;  %v9082_v4 = vld [vmem:[%s10408_s28 + $0x584] ss:$16 sps:$4 sm:$0xff]   ;;  %v9080_v6 = vld [vmem:[%s10408_s28 + $0x580] ss:$16 sps:$4 sm:$0xff]  }
  0x4e   : > { %5468 = vmatprep.subr.bf16.mxu1 %v9004_v7  ;;  %v9085_v5 = vld [vmem:[%s10408_s28 + $0x784] ss:$16 sps:$4 sm:$0xff]   ;;  %v9083_v7 = vld [vmem:[%s10408_s28 + $0x780] ss:$16 sps:$4 sm:$0xff]  }
  0x4f   : > { %v9094_v13 = vld [vmem:[%s10408_s28 + $0x544] ss:$16 sps:$4 sm:$0xff]  }
  0x50   : > { %5428 = vmatpush2.bf16.msra.mxu0 %v9006_v9  ;;  %v9088_v9 = vld [vmem:[%s10408_s28 + $0x564] ss:$16 sps:$4 sm:$0xff]  }
  0x51   : > { %5469 = vmatpush2.bf16.msra.mxu1 %v9007_v10  ;;  %5429 = vmatprep.subr.bf16.mxu0 %v9008_v11  ;;  %v9091_v10 = vld [vmem:[%s10408_s28 + $0x764] ss:$16 sps:$4 sm:$0xff]   ;;  %v9086_v11 = vld [vmem:[%s10408_s28 + $0x560] ss:$16 sps:$4 sm:$0xff]  }
  0x52   : > { %5470 = vmatprep.subr.bf16.mxu1 %v9010_v12  ;;  %v9089_v12 = vld [vmem:[%s10408_s28 + $0x760] ss:$16 sps:$4 sm:$0xff]  }
  0x54   : > { %5430 = vmatpush2.bf16.msra.mxu0 %v9012_v14  ;;  %v9097_v14 = vld [vmem:[%s10408_s28 + $0x744] ss:$16 sps:$4 sm:$0xff]  }
  0x55   : > { %5471 = vmatpush2.bf16.msra.mxu1 %v9013_v16  ;;  %5481 = vmatprep.subr.bf16.mxu0 %v9016_v17  ;;  %v9092_v16 = vld [vmem:[%s10408_s28 + $0x540] ss:$16 sps:$4 sm:$0xff]  }
  0x56   : > { %5522 = vmatprep.subr.bf16.mxu1 %v9019_v18  ;;  %v9095_v17 = vld [vmem:[%s10408_s28 + $0x740] ss:$16 sps:$4 sm:$0xff]   ;;  %v9100_v18 = vld [vmem:[%s10408_s28 + $0x524] ss:$16 sps:$4 sm:$0xff]  }
  0x57   : > { %5432 = vmatmul.mubr.bf16.vlgmr.msra.gmra.mxu0 %v10496_v15 }
  0x58   : > { %5473 = vmatmul.mubr.bf16.vlgmr.msra.gmra.mxu1 %v10506_v20  ;;  %5482 = vmatpush1.bf16.msra.mxu0 %v9014_v21  ;;  %v9103_v21 = vld [vmem:[%s10408_s28 + $0x724] ss:$16 sps:$4 sm:$0xff]  }
  0x59   : > { %5523 = vmatpush1.bf16.msra.mxu1 %v9017_v22  ;;  %5483 = vmatprep.subr.bf16.mxu0 %v9022_v23  ;;  %v9098_v22 = vld [vmem:[%s10408_s28 + $0x520] ss:$16 sps:$4 sm:$0xff]  }
  0x5a   : > { %5524 = vmatprep.subr.bf16.mxu1 %v9025_v24  ;;  %5513 = vmatprep.mubr.bf16.mxu0 %v10502_v19  ;;  %v9101_v23 = vld [vmem:[%s10408_s28 + $0x720] ss:$16 sps:$4 sm:$0xff]   ;;  %v9106_v24 = vld [vmem:[%s10408_s28 + $0x504] ss:$16 sps:$4 sm:$0xff]  }
  0x5b   : > { %5554 = vmatprep.mubr.bf16.mxu1 %v10514_v25 }
  0x5c   : > { %5484 = vmatpush1.bf16.msra.mxu0 %v9020_v26  ;;  %v9109_v26 = vld [vmem:[%s10408_s28 + $0x704] ss:$16 sps:$4 sm:$0xff]  }
  0x5d   : > { %5525 = vmatpush1.bf16.msra.mxu1 %v9023_v27  ;;  %5485 = vmatprep.subr.bf16.mxu0 %v9028_v28  ;;  %v9104_v27 = vld [vmem:[%s10408_s28 + $0x500] ss:$16 sps:$4 sm:$0xff]   ;;  %v10579_v28 = vrot.slane %v10486_v8, %v10458_v51 }
  0x5e   : > { %5526 = vmatprep.subr.bf16.mxu1 %v9031_v29  ;;  %v9107_v29 = vld [vmem:[%s10408_s28 + $0x700] ss:$16 sps:$4 sm:$0xff]  }
  0x5f   : > { %v9114_v8 = vld [vmem:[%s10408_s28 + $0xae0] ss:$16 sps:$4 sm:$0xff]  }
  0x60   : > { %5486 = vmatpush1.bf16.msra.mxu0 %v9026_v30  ;;  %v9113_v30 = vld [vmem:[%s10408_s28 + $0x8e4] ss:$16 sps:$4 sm:$0xff]  }
  0x61   : > { %5527 = vmatpush1.bf16.msra.mxu1 %v9029_v31  ;;  %5487 = vmatprep.subr.bf16.mxu0 %v9034_v32  ;;  %v9116_v31 = vld [vmem:[%s10408_s28 + $0xae4] ss:$16 sps:$4 sm:$0xff]   ;;  %v10586_v32 = vcombine.high %v10579_v28, %v10579_v28 }
  0x62   : > { %5528 = vmatprep.subr.bf16.mxu1 %v9037_v33  ;;  %v9111_v33 = vld [vmem:[%s10408_s28 + $0x8e0] ss:$16 sps:$4 sm:$0xff]  }
  0x64   : > { %5488 = vmatpush1.bf16.msra.mxu0 %v9032_v34  ;;  %v10591_v34 = vld [vmem:[%s10403_s24 + $0x8] sm:$0xff] }
  0x65   : > { %5529 = vmatpush1.bf16.msra.mxu1 %v9035_v35  ;;  %5489 = vmatprep.subr.bf16.mxu0 %v9040_v36  ;;  %v9119_v35 = vld [vmem:[%s10408_s28 + $0x8c4] ss:$16 sps:$4 sm:$0xff]  }
  0x66   : > { %5530 = vmatprep.subr.bf16.mxu1 %v9043_v37  ;;  %v9122_v36 = vld [vmem:[%s10408_s28 + $0xac4] ss:$16 sps:$4 sm:$0xff]   ;;  %v10597_v37 = vrot.slane %v10591_v34, %v10458_v51 }
  0x68   : > { %5490 = vmatpush1.bf16.msra.mxu0 %v9038_v38  ;;  %v1277_v38 = vcombine.high %v10597_v37, %v10597_v37 }
  0x69   : > { %5531 = vmatpush1.bf16.msra.mxu1 %v9041_v39  ;;  %5491 = vmatprep.subr.bf16.mxu0 %v9046_v40  ;;  %v9117_v39 = vld [vmem:[%s10408_s28 + $0x8c0] ss:$16 sps:$4 sm:$0xff]  }
  0x6a   : > { %5532 = vmatprep.subr.bf16.mxu1 %v9049_v41  ;;  %v9120_v40 = vld [vmem:[%s10408_s28 + $0xac0] ss:$16 sps:$4 sm:$0xff]   ;;  %v9125_v41 = vld [vmem:[%s10408_s28 + $0x8a4] ss:$16 sps:$4 sm:$0xff]  }
  0x6c   : > { %5492 = vmatpush1.bf16.msra.mxu0 %v9044_v42  ;;  %v9128_v42 = vld [vmem:[%s10408_s28 + $0xaa4] ss:$16 sps:$4 sm:$0xff]  }
  0x6d   : > { %5533 = vmatpush1.bf16.msra.mxu1 %v9047_v43  ;;  %5493 = vmatprep.subr.bf16.mxu0 %v9052_v44  ;;  %v10608_v43 = vrot.slane %v1277_v38, %v10458_v51  ;;  %v9189_v38 = vld [vmem:[%s10408_s28 + $0x940] ss:$16 sps:$4 sm:$0xff]  }
  0x6e   : > { %5534 = vmatprep.subr.bf16.mxu1 %v9055_v46  ;;  %v9123_v46 = vld [vmem:[%s10408_s28 + $0x8a0] ss:$16 sps:$4 sm:$0xff]  }
  0x6f   : > { %v10613_v44 = vcombine.high %v10608_v43, %v10608_v43 }
  0x70   : > { %5494 = vmatpush1.bf16.msra.mxu0 %v9050_v47  ;;  %v9126_v47 = vld [vmem:[%s10408_s28 + $0xaa0] ss:$16 sps:$4 sm:$0xff]  }
  0x71   : > { %5535 = vmatpush1.bf16.msra.mxu1 %v9053_v48  ;;  %5495 = vmatprep.subr.bf16.mxu0 %v9058_v49  ;;  %v9131_v48 = vld [vmem:[%s10408_s28 + $0x884] ss:$16 sps:$4 sm:$0xff]  }
  0x72   : > { %5536 = vmatprep.subr.bf16.mxu1 %v9061_v50  ;;  %v9134_v49 = vld [vmem:[%s10408_s28 + $0xa84] ss:$16 sps:$4 sm:$0xff]   ;;  %v9129_v50 = vld [vmem:[%s10408_s28 + $0x880] ss:$16 sps:$4 sm:$0xff]  }
  0x74   : > { %5496 = vmatpush1.bf16.msra.mxu0 %v9056_v52  ;;  %v9132_v52 = vld [vmem:[%s10408_s28 + $0xa80] ss:$16 sps:$4 sm:$0xff]  }
  0x75   : > { %5537 = vmatpush1.bf16.msra.mxu1 %v9059_v53  ;;  %5497 = vmatprep.subr.bf16.mxu0 %v9064_v54  ;;  %v9137_v53 = vld [vmem:[%s10408_s28 + $0x864] ss:$16 sps:$4 sm:$0xff]  }
  0x76   : > { %5538 = vmatprep.subr.bf16.mxu1 %v9067_v55  ;;  %v9140_v54 = vld [vmem:[%s10408_s28 + $0xa64] ss:$16 sps:$4 sm:$0xff]   ;;  %v9135_v55 = vld [vmem:[%s10408_s28 + $0x860] ss:$16 sps:$4 sm:$0xff]  }
  0x78   : > { %5498 = vmatpush2.bf16.msra.mxu0 %v9062_v56  ;;  %v9138_v56 = vld [vmem:[%s10408_s28 + $0xa60] ss:$16 sps:$4 sm:$0xff]  }
  0x79   : > { %5539 = vmatpush2.bf16.msra.mxu1 %v9065_v57  ;;  %5499 = vmatprep.subr.bf16.mxu0 %v9070_v58  ;;  %v9143_v57 = vld [vmem:[%s10408_s28 + $0x844] ss:$16 sps:$4 sm:$0xff]  }
  0x7a   : > { %5540 = vmatprep.subr.bf16.mxu1 %v9073_v59  ;;  %v9146_v58 = vld [vmem:[%s10408_s28 + $0xa44] ss:$16 sps:$4 sm:$0xff]   ;;  %v9141_v59 = vld [vmem:[%s10408_s28 + $0x840] ss:$16 sps:$4 sm:$0xff]  }
  0x7c   : > { %5500 = vmatpush2.bf16.msra.mxu0 %v9068_v60  ;;  %v9144_v60 = vld [vmem:[%s10408_s28 + $0xa40] ss:$16 sps:$4 sm:$0xff]  }
  0x7d   : > { %5541 = vmatpush2.bf16.msra.mxu1 %v9071_v61  ;;  %5501 = vmatprep.subr.bf16.mxu0 %v9076_v63  ;;  %v9149_v61 = vld [vmem:[%s10408_s28 + $0x824] ss:$16 sps:$4 sm:$0xff]  }
  0x7e   : > { %5542 = vmatprep.subr.bf16.mxu1 %v9079_v0  ;;  %v9152_v63 = vld [vmem:[%s10408_s28 + $0xa24] ss:$16 sps:$4 sm:$0xff]   ;;  %v9147_v0 = vld [vmem:[%s10408_s28 + $0x820] ss:$16 sps:$4 sm:$0xff]  }
  0x80   : > { %5502 = vmatpush2.bf16.msra.mxu0 %v9074_v1  ;;  %v9150_v1 = vld [vmem:[%s10408_s28 + $0xa20] ss:$16 sps:$4 sm:$0xff]  }
  0x81   : > { %5543 = vmatpush2.bf16.msra.mxu1 %v9077_v3  ;;  %5503 = vmatprep.subr.bf16.mxu0 %v9082_v4  ;;  %v9155_v3 = vld [vmem:[%s10408_s28 + $0x804] ss:$16 sps:$4 sm:$0xff]  }
  0x82   : > { %5544 = vmatprep.subr.bf16.mxu1 %v9085_v5  ;;  %v9158_v4 = vld [vmem:[%s10408_s28 + $0xa04] ss:$16 sps:$4 sm:$0xff]   ;;  %v9153_v5 = vld [vmem:[%s10408_s28 + $0x800] ss:$16 sps:$4 sm:$0xff]  }
  0x84   : > { %5504 = vmatpush2.bf16.msra.mxu0 %v9080_v6  ;;  %v9156_v6 = vld [vmem:[%s10408_s28 + $0xa00] ss:$16 sps:$4 sm:$0xff]  }
  0x85   : > { %5545 = vmatpush2.bf16.msra.mxu1 %v9083_v7  ;;  %5505 = vmatprep.subr.bf16.mxu0 %v9088_v9  ;;  %v9161_v7 = vld [vmem:[%s10408_s28 + $0x9e4] ss:$16 sps:$4 sm:$0xff]  }
  0x86   : > { %5546 = vmatprep.subr.bf16.mxu1 %v9091_v10  ;;  %v9164_v9 = vld [vmem:[%s10408_s28 + $0xbe4] ss:$16 sps:$4 sm:$0xff]   ;;  %v9159_v10 = vld [vmem:[%s10408_s28 + $0x9e0] ss:$16 sps:$4 sm:$0xff]  }
  0x88   : > { %5506 = vmatpush2.bf16.msra.mxu0 %v9086_v11  ;;  %v9162_v11 = vld [vmem:[%s10408_s28 + $0xbe0] ss:$16 sps:$4 sm:$0xff]  }
  0x89   : > { %5547 = vmatpush2.bf16.msra.mxu1 %v9089_v12  ;;  %5507 = vmatprep.subr.bf16.mxu0 %v9094_v13  ;;  %v9167_v12 = vld [vmem:[%s10408_s28 + $0x9c4] ss:$16 sps:$4 sm:$0xff]  }
  0x8a   : > { %5548 = vmatprep.subr.bf16.mxu1 %v9097_v14  ;;  %v9170_v13 = vld [vmem:[%s10408_s28 + $0xbc4] ss:$16 sps:$4 sm:$0xff]   ;;  %v9165_v14 = vld [vmem:[%s10408_s28 + $0x9c0] ss:$16 sps:$4 sm:$0xff]  }
  0x8c   : > { %5508 = vmatpush2.bf16.msra.mxu0 %v9092_v16  ;;  %v9168_v16 = vld [vmem:[%s10408_s28 + $0xbc0] ss:$16 sps:$4 sm:$0xff]  }
  0x8d   : > { %5549 = vmatpush2.bf16.msra.mxu1 %v9095_v17  ;;  %5509 = vmatprep.subr.bf16.mxu0 %v9100_v18  ;;  %v9173_v17 = vld [vmem:[%s10408_s28 + $0x9a4] ss:$16 sps:$4 sm:$0xff]  }
  0x8e   : > { %5550 = vmatprep.subr.bf16.mxu1 %v9103_v21  ;;  %v9176_v18 = vld [vmem:[%s10408_s28 + $0xba4] ss:$16 sps:$4 sm:$0xff]   ;;  %v9171_v21 = vld [vmem:[%s10408_s28 + $0x9a0] ss:$16 sps:$4 sm:$0xff]  }
  0x90   : > { %5510 = vmatpush2.bf16.msra.mxu0 %v9098_v22  ;;  %v9174_v22 = vld [vmem:[%s10408_s28 + $0xba0] ss:$16 sps:$4 sm:$0xff]  }
  0x91   : > { %5551 = vmatpush2.bf16.msra.mxu1 %v9101_v23  ;;  %5511 = vmatprep.subr.bf16.mxu0 %v9106_v24  ;;  %v9179_v23 = vld [vmem:[%s10408_s28 + $0x984] ss:$16 sps:$4 sm:$0xff]  }
  0x92   : > { %5552 = vmatprep.subr.bf16.mxu1 %v9109_v26  ;;  %v9182_v24 = vld [vmem:[%s10408_s28 + $0xb84] ss:$16 sps:$4 sm:$0xff]   ;;  %v9177_v26 = vld [vmem:[%s10408_s28 + $0x980] ss:$16 sps:$4 sm:$0xff]  }
  0x94   : > { %5512 = vmatpush2.bf16.msra.mxu0 %v9104_v27  ;;  %v9180_v27 = vld [vmem:[%s10408_s28 + $0xb80] ss:$16 sps:$4 sm:$0xff]  }
  0x95   : > { %5553 = vmatpush2.bf16.msra.mxu1 %v9107_v29  ;;  %5563 = vmatprep.subr.bf16.mxu0 %v9113_v30  ;;  %v9185_v29 = vld [vmem:[%s10408_s28 + $0x964] ss:$16 sps:$4 sm:$0xff]  }
  0x96   : > { %5604 = vmatprep.subr.bf16.mxu1 %v9116_v31  ;;  %v9188_v30 = vld [vmem:[%s10408_s28 + $0xb64] ss:$16 sps:$4 sm:$0xff]   ;;  %v9183_v31 = vld [vmem:[%s10408_s28 + $0x960] ss:$16 sps:$4 sm:$0xff]  }
  0x97   : > { %5514 = vmatmul.mubr.bf16.vlgmr.msra.gmra.mxu0 %v10579_v28 }
  0x98   : > { %5555 = vmatmul.mubr.bf16.vlgmr.msra.gmra.mxu1 %v10586_v32  ;;  %5564 = vmatpush1.bf16.msra.mxu0 %v9111_v33  ;;  %v9186_v33 = vld [vmem:[%s10408_s28 + $0xb60] ss:$16 sps:$4 sm:$0xff]  }
  0x99   : > { %5605 = vmatpush1.bf16.msra.mxu1 %v9114_v8  ;;  %5565 = vmatprep.subr.bf16.mxu0 %v9119_v35  ;;  %v9191_v8 = vld [vmem:[%s10408_s28 + $0x944] ss:$16 sps:$4 sm:$0xff]  }
  0x9a   : > { %5606 = vmatprep.subr.bf16.mxu1 %v9122_v36  ;;  %5595 = vmatprep.mubr.bf16.mxu0 %v10608_v43  ;;  %v9194_v35 = vld [vmem:[%s10408_s28 + $0xb44] ss:$16 sps:$4 sm:$0xff]   ;;  %v1262_v36 = vcombine.high %v10591_v34, %v10591_v34  ;;  %v9195_v34 = vld [vmem:[%s10408_s28 + $0x920] ss:$16 sps:$4 sm:$0xff]  }
  0x9b   : > { %5636 = vmatprep.mubr.bf16.mxu1 %v10613_v44 }
  0x9c   : > { %5566 = vmatpush1.bf16.msra.mxu0 %v9117_v39  ;;  %v9192_v39 = vld [vmem:[%s10408_s28 + $0xb40] ss:$16 sps:$4 sm:$0xff]  }
  0x9d   : > { %5607 = vmatpush1.bf16.msra.mxu1 %v9120_v40  ;;  %5567 = vmatprep.subr.bf16.mxu0 %v9125_v41  ;;  %v9197_v40 = vld [vmem:[%s10408_s28 + $0x924] ss:$16 sps:$4 sm:$0xff]  }
  0x9e   : > { %5608 = vmatprep.subr.bf16.mxu1 %v9128_v42  ;;  %v9200_v41 = vld [vmem:[%s10408_s28 + $0xb24] ss:$16 sps:$4 sm:$0xff]   ;;  %v10667_v42 = vrot.slane %v1262_v36, %v10458_v51  ;;  %v9258_v36 = vld [vmem:[%s10408_s28 + $0xfe0] ss:$16 sps:$4 sm:$0xff]  }
  0xa0   : > { %5568 = vmatpush1.bf16.msra.mxu0 %v9123_v46  ;;  %v9198_v46 = vld [vmem:[%s10408_s28 + $0xb20] ss:$16 sps:$4 sm:$0xff]  }
  0xa1   : > { %5609 = vmatpush1.bf16.msra.mxu1 %v9126_v47  ;;  %5569 = vmatprep.subr.bf16.mxu0 %v9131_v48  ;;  %v9203_v47 = vld [vmem:[%s10408_s28 + $0x904] ss:$16 sps:$4 sm:$0xff]  }
  0xa2   : > { %5610 = vmatprep.subr.bf16.mxu1 %v9134_v49  ;;  %v9206_v48 = vld [vmem:[%s10408_s28 + $0xb04] ss:$16 sps:$4 sm:$0xff]   ;;  %v1278_v49 = vcombine.high %v10667_v42, %v10667_v42 }
  0xa4   : > { %5570 = vmatpush1.bf16.msra.mxu0 %v9129_v50  ;;  %v10677_v50 = vrot.slane %v10597_v37, %v10458_v51  ;;  %v9207_v37 = vld [vmem:[%s10408_s28 + $0xce0] ss:$16 sps:$4 sm:$0xff]  }
  0xa5   : > { %5611 = vmatpush1.bf16.msra.mxu1 %v9132_v52  ;;  %5571 = vmatprep.subr.bf16.mxu0 %v9137_v53  ;;  %v9201_v52 = vld [vmem:[%s10408_s28 + $0x900] ss:$16 sps:$4 sm:$0xff]  }
  0xa6   : > { %5612 = vmatprep.subr.bf16.mxu1 %v9140_v54  ;;  %v9204_v53 = vld [vmem:[%s10408_s28 + $0xb00] ss:$16 sps:$4 sm:$0xff]   ;;  %v9209_v54 = vld [vmem:[%s10408_s28 + $0xce4] ss:$16 sps:$4 sm:$0xff]  }
  0xa8   : > { %5572 = vmatpush1.bf16.msra.mxu0 %v9135_v55  ;;  %v9212_v55 = vld [vmem:[%s10408_s28 + $0xee4] ss:$16 sps:$4 sm:$0xff]  }
  0xa9   : > { %5613 = vmatpush1.bf16.msra.mxu1 %v9138_v56  ;;  %5573 = vmatprep.subr.bf16.mxu0 %v9143_v57  ;;  %v10684_v56 = vrot.slane %v1278_v49, %v10458_v51  ;;  %v10688_v57 = vcombine.high %v10677_v50, %v10677_v50  ;;  %v9275_v49 = vld [vmem:[%s10408_s28 + $0xd84] ss:$16 sps:$4 sm:$0xff]  }
  0xaa   : > { %5614 = vmatprep.subr.bf16.mxu1 %v9146_v58  ;;  %v9210_v58 = vld [vmem:[%s10408_s28 + $0xee0] ss:$16 sps:$4 sm:$0xff]  }
  0xac   : > { %5574 = vmatpush1.bf16.msra.mxu0 %v9141_v59  ;;  %v9215_v59 = vld [vmem:[%s10408_s28 + $0xcc4] ss:$16 sps:$4 sm:$0xff]  }
  0xad   : > { %5615 = vmatpush1.bf16.msra.mxu1 %v9144_v60  ;;  %5575 = vmatprep.subr.bf16.mxu0 %v9149_v61  ;;  %v9218_v60 = vld [vmem:[%s10408_s28 + $0xec4] ss:$16 sps:$4 sm:$0xff]   ;;  %v10696_v61 = vcombine.high %v10684_v56, %v10684_v56 }
  0xae   : > { %5616 = vmatprep.subr.bf16.mxu1 %v9152_v63  ;;  %v9213_v63 = vld [vmem:[%s10408_s28 + $0xcc0] ss:$16 sps:$4 sm:$0xff]  }
  0xb0   : > { %5576 = vmatpush1.bf16.msra.mxu0 %v9147_v0  ;;  %v9216_v0 = vld [vmem:[%s10408_s28 + $0xec0] ss:$16 sps:$4 sm:$0xff]  }
  0xb1   : > { %5617 = vmatpush1.bf16.msra.mxu1 %v9150_v1  ;;  %5577 = vmatprep.subr.bf16.mxu0 %v9155_v3  ;;  %v9221_v1 = vld [vmem:[%s10408_s28 + $0xca4] ss:$16 sps:$4 sm:$0xff]  }
  0xb2   : > { %5618 = vmatprep.subr.bf16.mxu1 %v9158_v4  ;;  %v9224_v3 = vld [vmem:[%s10408_s28 + $0xea4] ss:$16 sps:$4 sm:$0xff]   ;;  %v9219_v4 = vld [vmem:[%s10408_s28 + $0xca0] ss:$16 sps:$4 sm:$0xff]  }
  0xb4   : > { %5578 = vmatpush1.bf16.msra.mxu0 %v9153_v5  ;;  %v9222_v5 = vld [vmem:[%s10408_s28 + $0xea0] ss:$16 sps:$4 sm:$0xff]  }
  0xb5   : > { %5619 = vmatpush1.bf16.msra.mxu1 %v9156_v6  ;;  %5579 = vmatprep.subr.bf16.mxu0 %v9161_v7  ;;  %v9227_v6 = vld [vmem:[%s10408_s28 + $0xc84] ss:$16 sps:$4 sm:$0xff]  }
  0xb6   : > { %5620 = vmatprep.subr.bf16.mxu1 %v9164_v9  ;;  %v9230_v7 = vld [vmem:[%s10408_s28 + $0xe84] ss:$16 sps:$4 sm:$0xff]   ;;  %v9225_v9 = vld [vmem:[%s10408_s28 + $0xc80] ss:$16 sps:$4 sm:$0xff]  }
  0xb8   : > { %5580 = vmatpush2.bf16.msra.mxu0 %v9159_v10  ;;  %v9228_v10 = vld [vmem:[%s10408_s28 + $0xe80] ss:$16 sps:$4 sm:$0xff]  }
  0xb9   : > { %5621 = vmatpush2.bf16.msra.mxu1 %v9162_v11  ;;  %5581 = vmatprep.subr.bf16.mxu0 %v9167_v12  ;;  %v9233_v11 = vld [vmem:[%s10408_s28 + $0xc64] ss:$16 sps:$4 sm:$0xff]  }
  0xba   : > { %5622 = vmatprep.subr.bf16.mxu1 %v9170_v13  ;;  %v9236_v12 = vld [vmem:[%s10408_s28 + $0xe64] ss:$16 sps:$4 sm:$0xff]   ;;  %v9231_v13 = vld [vmem:[%s10408_s28 + $0xc60] ss:$16 sps:$4 sm:$0xff]  }
  0xbc   : > { %5582 = vmatpush2.bf16.msra.mxu0 %v9165_v14  ;;  %v9234_v14 = vld [vmem:[%s10408_s28 + $0xe60] ss:$16 sps:$4 sm:$0xff]  }
  0xbd   : > { %5623 = vmatpush2.bf16.msra.mxu1 %v9168_v16  ;;  %5583 = vmatprep.subr.bf16.mxu0 %v9173_v17  ;;  %v9239_v16 = vld [vmem:[%s10408_s28 + $0xc44] ss:$16 sps:$4 sm:$0xff]  }
  0xbe   : > { %5624 = vmatprep.subr.bf16.mxu1 %v9176_v18  ;;  %v9242_v17 = vld [vmem:[%s10408_s28 + $0xe44] ss:$16 sps:$4 sm:$0xff]   ;;  %v9237_v18 = vld [vmem:[%s10408_s28 + $0xc40] ss:$16 sps:$4 sm:$0xff]  }
  0xc0   : > { %5584 = vmatpush2.bf16.msra.mxu0 %v9171_v21  ;;  %v9240_v21 = vld [vmem:[%s10408_s28 + $0xe40] ss:$16 sps:$4 sm:$0xff]  }
  0xc1   : > { %5625 = vmatpush2.bf16.msra.mxu1 %v9174_v22  ;;  %5585 = vmatprep.subr.bf16.mxu0 %v9179_v23  ;;  %v9245_v22 = vld [vmem:[%s10408_s28 + $0xc24] ss:$16 sps:$4 sm:$0xff]  }
  0xc2   : > { %5626 = vmatprep.subr.bf16.mxu1 %v9182_v24  ;;  %v9248_v23 = vld [vmem:[%s10408_s28 + $0xe24] ss:$16 sps:$4 sm:$0xff]   ;;  %v9243_v24 = vld [vmem:[%s10408_s28 + $0xc20] ss:$16 sps:$4 sm:$0xff]  }
  0xc4   : > { %5586 = vmatpush2.bf16.msra.mxu0 %v9177_v26  ;;  %v9246_v26 = vld [vmem:[%s10408_s28 + $0xe20] ss:$16 sps:$4 sm:$0xff]  }
  0xc5   : > { %5627 = vmatpush2.bf16.msra.mxu1 %v9180_v27  ;;  %5587 = vmatprep.subr.bf16.mxu0 %v9185_v29  ;;  %v9251_v27 = vld [vmem:[%s10408_s28 + $0xc04] ss:$16 sps:$4 sm:$0xff]  }
  0xc6   : > { %5628 = vmatprep.subr.bf16.mxu1 %v9188_v30  ;;  %v9254_v29 = vld [vmem:[%s10408_s28 + $0xe04] ss:$16 sps:$4 sm:$0xff]   ;;  %v9249_v30 = vld [vmem:[%s10408_s28 + $0xc00] ss:$16 sps:$4 sm:$0xff]  }
  0xc8   : > { %5588 = vmatpush2.bf16.msra.mxu0 %v9183_v31  ;;  %v9252_v31 = vld [vmem:[%s10408_s28 + $0xe00] ss:$16 sps:$4 sm:$0xff]  }
  0xc9   : > { %5629 = vmatpush2.bf16.msra.mxu1 %v9186_v33  ;;  %5589 = vmatprep.subr.bf16.mxu0 %v9191_v8  ;;  %v9257_v33 = vld [vmem:[%s10408_s28 + $0xde4] ss:$16 sps:$4 sm:$0xff]  }
  0xca   : > { %5630 = vmatprep.subr.bf16.mxu1 %v9194_v35  ;;  %v9260_v8 = vld [vmem:[%s10408_s28 + $0xfe4] ss:$16 sps:$4 sm:$0xff]   ;;  %v9255_v35 = vld [vmem:[%s10408_s28 + $0xde0] ss:$16 sps:$4 sm:$0xff]  }
  0xcc   : > { %5590 = vmatpush2.bf16.msra.mxu0 %v9189_v38  ;;  %v9263_v38 = vld [vmem:[%s10408_s28 + $0xdc4] ss:$16 sps:$4 sm:$0xff]  }
  0xcd   : > { %5631 = vmatpush2.bf16.msra.mxu1 %v9192_v39  ;;  %5591 = vmatprep.subr.bf16.mxu0 %v9197_v40  ;;  %v9266_v39 = vld [vmem:[%s10408_s28 + $0xfc4] ss:$16 sps:$4 sm:$0xff]   ;;  %v9261_v40 = vld [vmem:[%s10408_s28 + $0xdc0] ss:$16 sps:$4 sm:$0xff]  }
  0xce   : > { %5632 = vmatprep.subr.bf16.mxu1 %v9200_v41  ;;  %v9264_v41 = vld [vmem:[%s10408_s28 + $0xfc0] ss:$16 sps:$4 sm:$0xff]  }
  0xd0   : > { %5592 = vmatpush2.bf16.msra.mxu0 %v9195_v34  ;;  %v9269_v34 = vld [vmem:[%s10408_s28 + $0xda4] ss:$16 sps:$4 sm:$0xff]  }
  0xd1   : > { %5633 = vmatpush2.bf16.msra.mxu1 %v9198_v46  ;;  %5593 = vmatprep.subr.bf16.mxu0 %v9203_v47  ;;  %v9272_v46 = vld [vmem:[%s10408_s28 + $0xfa4] ss:$16 sps:$4 sm:$0xff]   ;;  %v9267_v47 = vld [vmem:[%s10408_s28 + $0xda0] ss:$16 sps:$4 sm:$0xff]  }
  0xd2   : > { %5634 = vmatprep.subr.bf16.mxu1 %v9206_v48  ;;  %v9270_v48 = vld [vmem:[%s10408_s28 + $0xfa0] ss:$16 sps:$4 sm:$0xff]  }
  0xd4   : > { %5594 = vmatpush2.bf16.msra.mxu0 %v9201_v52  ;;  %v9278_v52 = vld [vmem:[%s10408_s28 + $0xf84] ss:$16 sps:$4 sm:$0xff]  }
  0xd5   : > { %5635 = vmatpush2.bf16.msra.mxu1 %v9204_v53  ;;  %5645 = vmatprep.subr.bf16.mxu0 %v9209_v54  ;;  %v9273_v53 = vld [vmem:[%s10408_s28 + $0xd80] ss:$16 sps:$4 sm:$0xff]  }
  0xd6   : > { %5686 = vmatprep.subr.bf16.mxu1 %v9212_v55  ;;  %v9276_v54 = vld [vmem:[%s10408_s28 + $0xf80] ss:$16 sps:$4 sm:$0xff]   ;;  %v9281_v55 = vld [vmem:[%s10408_s28 + $0xd64] ss:$16 sps:$4 sm:$0xff]  }
  0xd7   : > { %5596 = vmatmul.mubr.bf16.vlgmr.msra.gmra.mxu0 %v10677_v50 }
  0xd8   : > { %5637 = vmatmul.mubr.bf16.vlgmr.msra.gmra.mxu1 %v10688_v57  ;;  %5646 = vmatpush1.bf16.msra.mxu0 %v9207_v37  ;;  %v9284_v37 = vld [vmem:[%s10408_s28 + $0xf64] ss:$16 sps:$4 sm:$0xff]  }
  0xd9   : > { %5687 = vmatpush1.bf16.msra.mxu1 %v9210_v58  ;;  %5647 = vmatprep.subr.bf16.mxu0 %v9215_v59  ;;  %v9279_v58 = vld [vmem:[%s10408_s28 + $0xd60] ss:$16 sps:$4 sm:$0xff]  }
  0xda   : > { %5688 = vmatprep.subr.bf16.mxu1 %v9218_v60  ;;  %5677 = vmatprep.mubr.bf16.mxu0 %v10684_v56  ;;  %v9282_v59 = vld [vmem:[%s10408_s28 + $0xf60] ss:$16 sps:$4 sm:$0xff]   ;;  %v9287_v60 = vld [vmem:[%s10408_s28 + $0xd44] ss:$16 sps:$4 sm:$0xff]  }
  0xdb   : > { %5718 = vmatprep.mubr.bf16.mxu1 %v10696_v61 }
  0xdc   : > { %5648 = vmatpush1.bf16.msra.mxu0 %v9213_v63  ;;  %v9290_v63 = vld [vmem:[%s10408_s28 + $0xf44] ss:$16 sps:$4 sm:$0xff]  }
  0xdd   : > { %5689 = vmatpush1.bf16.msra.mxu1 %v9216_v0  ;;  %5649 = vmatprep.subr.bf16.mxu0 %v9221_v1  ;;  %v9285_v0 = vld [vmem:[%s10408_s28 + $0xd40] ss:$16 sps:$4 sm:$0xff]  }
  0xde   : > { %5690 = vmatprep.subr.bf16.mxu1 %v9224_v3  ;;  %v10752_v1 = vld [vmem:[%s10403_s24 + $0x10] sm:$0xff] }
  0xdf   : > { %v9288_v3 = vld [vmem:[%s10408_s28 + $0xf40] ss:$16 sps:$4 sm:$0xff]  }
  0xe0   : > { %5650 = vmatpush1.bf16.msra.mxu0 %v9219_v4  ;;  %v9293_v4 = vld [vmem:[%s10408_s28 + $0xd24] ss:$16 sps:$4 sm:$0xff]  }
  0xe1   : > { %5691 = vmatpush1.bf16.msra.mxu1 %v9222_v5  ;;  %5651 = vmatprep.subr.bf16.mxu0 %v9227_v6  ;;  %v9296_v5 = vld [vmem:[%s10408_s28 + $0xf24] ss:$16 sps:$4 sm:$0xff]   ;;  %v10759_v6 = vrot.slane %v10752_v1, %v10458_v51 }
  0xe2   : > { %5692 = vmatprep.subr.bf16.mxu1 %v9230_v7  ;;  %v9291_v7 = vld [vmem:[%s10408_s28 + $0xd20] ss:$16 sps:$4 sm:$0xff]  }
  0xe4   : > { %5652 = vmatpush1.bf16.msra.mxu0 %v9225_v9  ;;  %v9294_v9 = vld [vmem:[%s10408_s28 + $0xf20] ss:$16 sps:$4 sm:$0xff]  }
  0xe5   : > { %5693 = vmatpush1.bf16.msra.mxu1 %v9228_v10  ;;  %5653 = vmatprep.subr.bf16.mxu0 %v9233_v11  ;;  %v9299_v10 = vld [vmem:[%s10408_s28 + $0xd04] ss:$16 sps:$4 sm:$0xff]  }
  0xe6   : > { %5694 = vmatprep.subr.bf16.mxu1 %v9236_v12  ;;  %v9302_v11 = vld [vmem:[%s10408_s28 + $0xf04] ss:$16 sps:$4 sm:$0xff]   ;;  %v1326_v12 = vcombine.high %v10759_v6, %v10759_v6 }
  0xe8   : > { %5654 = vmatpush1.bf16.msra.mxu0 %v9231_v13  ;;  %v9297_v13 = vld [vmem:[%s10408_s28 + $0xd00] ss:$16 sps:$4 sm:$0xff]  }
  0xe9   : > { %5695 = vmatpush1.bf16.msra.mxu1 %v9234_v14  ;;  %5655 = vmatprep.subr.bf16.mxu0 %v9239_v16  ;;  %v10770_v14 = vrot.slane %v10667_v42, %v10458_v51  ;;  %v9300_v16 = vld [vmem:[%s10408_s28 + $0xf00] ss:$16 sps:$4 sm:$0xff]  }
  0xea   : > { %5696 = vmatprep.subr.bf16.mxu1 %v9242_v17  ;;  %v9306_v17 = vld [vmem:[%s10408_s28 + $0x10e4] ss:$16 sps:$4 sm:$0xff]   ;;  %v9307_v42 = vld [vmem:[%s10408_s28 + $0x12e0] ss:$16 sps:$4 sm:$0xff]  }
  0xec   : > { %5656 = vmatpush1.bf16.msra.mxu0 %v9237_v18  ;;  %v9309_v18 = vld [vmem:[%s10408_s28 + $0x12e4] ss:$16 sps:$4 sm:$0xff]  }
  0xed   : > { %5697 = vmatpush1.bf16.msra.mxu1 %v9240_v21  ;;  %5657 = vmatprep.subr.bf16.mxu0 %v9245_v22  ;;  %v10776_v21 = vrot.slane %v1326_v12, %v10458_v51  ;;  %v10780_v22 = vcombine.high %v10770_v14, %v10770_v14  ;;  %v9351_v12 = vld [vmem:[%s10408_s28 + $0x1204] ss:$16 sps:$4 sm:$0xff]  }
  0xee   : > { %5698 = vmatprep.subr.bf16.mxu1 %v9248_v23  ;;  %v9304_v23 = vld [vmem:[%s10408_s28 + $0x10e0] ss:$16 sps:$4 sm:$0xff]  }
  0xf0   : > { %5658 = vmatpush1.bf16.msra.mxu0 %v9243_v24  ;;  %v9312_v24 = vld [vmem:[%s10408_s28 + $0x10c4] ss:$16 sps:$4 sm:$0xff]  }
  0xf1   : > { %5699 = vmatpush1.bf16.msra.mxu1 %v9246_v26  ;;  %5659 = vmatprep.subr.bf16.mxu0 %v9251_v27  ;;  %v9315_v26 = vld [vmem:[%s10408_s28 + $0x12c4] ss:$16 sps:$4 sm:$0xff]   ;;  %v10788_v27 = vcombine.high %v10776_v21, %v10776_v21 }
  0xf2   : > { %5700 = vmatprep.subr.bf16.mxu1 %v9254_v29 }
  0xf4   : > { %5660 = vmatpush1.bf16.msra.mxu0 %v9249_v30 }
  0xf5   : > { %5701 = vmatpush1.bf16.msra.mxu1 %v9252_v31  ;;  %5661 = vmatprep.subr.bf16.mxu0 %v9257_v33  ;;  %v9310_v31 = vld [vmem:[%s10408_s28 + $0x10c0] ss:$16 sps:$4 sm:$0xff]  }
  0xf6   : > { %5702 = vmatprep.subr.bf16.mxu1 %v9260_v8  ;;  %v9313_v33 = vld [vmem:[%s10408_s28 + $0x12c0] ss:$16 sps:$4 sm:$0xff]  }
  0xf8   : > { %5662 = vmatpush2.bf16.msra.mxu0 %v9255_v35 }
  0xf9   : > { %5703 = vmatpush2.bf16.msra.mxu1 %v9258_v36  ;;  %5663 = vmatprep.subr.bf16.mxu0 %v9263_v38  ;;  %v9318_v38 = vld [vmem:[%s10408_s28 + $0x10a4] ss:$16 sps:$4 sm:$0xff]  }
  0xfa   : > { %5704 = vmatprep.subr.bf16.mxu1 %v9266_v39  ;;  %v9321_v39 = vld [vmem:[%s10408_s28 + $0x12a4] ss:$16 sps:$4 sm:$0xff]  }
  0xfc   : > { %5664 = vmatpush2.bf16.msra.mxu0 %v9261_v40 }
  0xfd   : > { %5705 = vmatpush2.bf16.msra.mxu1 %v9264_v41  ;;  %5665 = vmatprep.subr.bf16.mxu0 %v9269_v34  ;;  %v9316_v41 = vld [vmem:[%s10408_s28 + $0x10a0] ss:$16 sps:$4 sm:$0xff]  }
  0xfe   : > { %5706 = vmatprep.subr.bf16.mxu1 %v9272_v46  ;;  %v9319_v34 = vld [vmem:[%s10408_s28 + $0x12a0] ss:$16 sps:$4 sm:$0xff]  }
 0x100   : > { %5666 = vmatpush2.bf16.msra.mxu0 %v9267_v47 }
 0x101   : > { %5707 = vmatpush2.bf16.msra.mxu1 %v9270_v48  ;;  %5667 = vmatprep.subr.bf16.mxu0 %v9275_v49 }
 0x102   : > { %5708 = vmatprep.subr.bf16.mxu1 %v9278_v52  ;;  %v9324_v52 = vld [vmem:[%s10408_s28 + $0x1084] ss:$16 sps:$4 sm:$0xff]  }
 0x104   : > { %5668 = vmatpush2.bf16.msra.mxu0 %v9273_v53  ;;  %v9327_v53 = vld [vmem:[%s10408_s28 + $0x1284] ss:$16 sps:$4 sm:$0xff]  }
 0x105   : > { %5709 = vmatpush2.bf16.msra.mxu1 %v9276_v54  ;;  %5669 = vmatprep.subr.bf16.mxu0 %v9281_v55  ;;  %v9322_v54 = vld [vmem:[%s10408_s28 + $0x1080] ss:$16 sps:$4 sm:$0xff]  }
 0x106   : > { %5710 = vmatprep.subr.bf16.mxu1 %v9284_v37  ;;  %v9325_v55 = vld [vmem:[%s10408_s28 + $0x1280] ss:$16 sps:$4 sm:$0xff]   ;;  %v9330_v37 = vld [vmem:[%s10408_s28 + $0x1064] ss:$16 sps:$4 sm:$0xff]  }
 0x108   : > { %5670 = vmatpush2.bf16.msra.mxu0 %v9279_v58  ;;  %v9333_v58 = vld [vmem:[%s10408_s28 + $0x1264] ss:$16 sps:$4 sm:$0xff]  }
 0x109   : > { %5711 = vmatpush2.bf16.msra.mxu1 %v9282_v59  ;;  %5671 = vmatprep.subr.bf16.mxu0 %v9287_v60  ;;  %v9328_v59 = vld [vmem:[%s10408_s28 + $0x1060] ss:$16 sps:$4 sm:$0xff]  }
 0x10a   : > { %5712 = vmatprep.subr.bf16.mxu1 %v9290_v63  ;;  %v9331_v60 = vld [vmem:[%s10408_s28 + $0x1260] ss:$16 sps:$4 sm:$0xff]   ;;  %v9336_v63 = vld [vmem:[%s10408_s28 + $0x1044] ss:$16 sps:$4 sm:$0xff]  }
 0x10c   : > { %5672 = vmatpush2.bf16.msra.mxu0 %v9285_v0  ;;  %v9339_v0 = vld [vmem:[%s10408_s28 + $0x1244] ss:$16 sps:$4 sm:$0xff]  }
 0x10d   : > { %5713 = vmatpush2.bf16.msra.mxu1 %v9288_v3  ;;  %5673 = vmatprep.subr.bf16.mxu0 %v9293_v4  ;;  %v9334_v3 = vld [vmem:[%s10408_s28 + $0x1040] ss:$16 sps:$4 sm:$0xff]  }
 0x10e   : > { %5714 = vmatprep.subr.bf16.mxu1 %v9296_v5  ;;  %v9337_v4 = vld [vmem:[%s10408_s28 + $0x1240] ss:$16 sps:$4 sm:$0xff]   ;;  %v9342_v5 = vld [vmem:[%s10408_s28 + $0x1024] ss:$16 sps:$4 sm:$0xff]  }
 0x110   : > { %5674 = vmatpush2.bf16.msra.mxu0 %v9291_v7  ;;  %v9345_v7 = vld [vmem:[%s10408_s28 + $0x1224] ss:$16 sps:$4 sm:$0xff]  }
 0x111   : > { %5715 = vmatpush2.bf16.msra.mxu1 %v9294_v9  ;;  %5675 = vmatprep.subr.bf16.mxu0 %v9299_v10  ;;  %v9340_v9 = vld [vmem:[%s10408_s28 + $0x1020] ss:$16 sps:$4 sm:$0xff]  }
 0x112   : > { %5716 = vmatprep.subr.bf16.mxu1 %v9302_v11  ;;  %v9343_v10 = vld [vmem:[%s10408_s28 + $0x1220] ss:$16 sps:$4 sm:$0xff]   ;;  %v9348_v11 = vld [vmem:[%s10408_s28 + $0x1004] ss:$16 sps:$4 sm:$0xff]  }
 0x114   : > { %5676 = vmatpush2.bf16.msra.mxu0 %v9297_v13  ;;  %v9346_v13 = vld [vmem:[%s10408_s28 + $0x1000] ss:$16 sps:$4 sm:$0xff]  }
 0x115   : > { %5717 = vmatpush2.bf16.msra.mxu1 %v9300_v16  ;;  %5727 = vmatprep.subr.bf16.mxu0 %v9306_v17  ;;  %v9349_v16 = vld [vmem:[%s10408_s28 + $0x1200] ss:$16 sps:$4 sm:$0xff]   ;;  %v9354_v17 = vld [vmem:[%s10408_s28 + $0x11e4] ss:$16 sps:$4 sm:$0xff]  }
 0x116   : > { %5768 = vmatprep.subr.bf16.mxu1 %v9309_v18  ;;  %v9357_v18 = vld [vmem:[%s10408_s28 + $0x13e4] ss:$16 sps:$4 sm:$0xff]  }
 0x117   : > { %v5433_v29 = vpop.f32.mrf.mxu0  ;;  %5678 = vmatmul.mubr.bf16.vlgmr.msra.gmra.mxu0 %v10770_v14 }
 0x118   : > { %v5474_v30 = vpop.f32.mrf.mxu1  ;;  %5719 = vmatmul.mubr.bf16.vlgmr.msra.gmra.mxu1 %v10780_v22  ;;  %5728 = vmatpush1.bf16.msra.mxu0 %v9304_v23  ;;  %v9352_v23 = vld [vmem:[%s10408_s28 + $0x11e0] ss:$16 sps:$4 sm:$0xff]  }
 0x119   : > { %v10794_v8 = vadd.f32 %v5474_v30, %v5433_v29  ;;  %5769 = vmatpush1.bf16.msra.mxu1 %v9307_v42  ;;  %v5435_v35 = vpop.f32.mrf.mxu0  ;;  %5729 = vmatprep.subr.bf16.mxu0 %v9312_v24  ;;  %v9355_v42 = vld [vmem:[%s10408_s28 + $0x13e0] ss:$16 sps:$4 sm:$0xff]   ;;  %v9360_v24 = vld [vmem:[%s10408_s28 + $0x11c4] ss:$16 sps:$4 sm:$0xff]  }
 0x11a   : > { %v5476_v36 = vpop.f32.mrf.mxu1  ;;  %5770 = vmatprep.subr.bf16.mxu1 %v9315_v26  ;;  %5759 = vmatprep.mubr.bf16.mxu0 %v10776_v21  ;;  %v9363_v26 = vld [vmem:[%s10408_s28 + $0x13c4] ss:$16 sps:$4 sm:$0xff]   ;;  %v9358_v29 = vld [vmem:[%s10408_s28 + $0x11c0] ss:$16 sps:$4 sm:$0xff]  }
 0x11b   : > { %v10798_v40 = vadd.f32 %v5476_v36, %v5435_v35  ;;  %5800 = vmatprep.mubr.bf16.mxu1 %v10788_v27  ;;  %v5437_v46 = vpop.f32.mrf.mxu0  ;;  %v9361_v30 = vld [vmem:[%s10408_s28 + $0x13c0] ss:$16 sps:$4 sm:$0xff]  }
 0x11c   : > { %v5478_v47 = vpop.f32.mrf.mxu1  ;;  %5730 = vmatpush1.bf16.msra.mxu0 %v9310_v31  ;;  %v9366_v31 = vld [vmem:[%s10408_s28 + $0x11a4] ss:$16 sps:$4 sm:$0xff]   ;;  %v9364_v35 = vld [vmem:[%s10408_s28 + $0x11a0] ss:$16 sps:$4 sm:$0xff]  }
 0x11d   : > { %5771 = vmatpush1.bf16.msra.mxu1 %v9313_v33  ;;  %v5438_v48 = vpop.f32.mrf.mxu0  ;;  %5731 = vmatprep.subr.bf16.mxu0 %v9318_v38  ;;  %v9369_v33 = vld [vmem:[%s10408_s28 + $0x13a4] ss:$16 sps:$4 sm:$0xff]   ;;  %v9367_v36 = vld [vmem:[%s10408_s28 + $0x13a0] ss:$16 sps:$4 sm:$0xff]  }
 0x11e   : > { %v5479_v49 = vpop.f32.mrf.mxu1  ;;  %5772 = vmatprep.subr.bf16.mxu1 %v9321_v39  ;;  %v9372_v38 = vld [vmem:[%s10408_s28 + $0x1184] ss:$16 sps:$4 sm:$0xff]   ;;  %v9376_v48 = vld [vmem:[%s10408_s28 + $0x1160] ss:$16 sps:$4 sm:$0xff]  }
 0x11f   : > { %v9375_v39 = vld [vmem:[%s10408_s28 + $0x1384] ss:$16 sps:$4 sm:$0xff]   ;;  %v9379_v49 = vld [vmem:[%s10408_s28 + $0x1360] ss:$16 sps:$4 sm:$0xff]  }
 0x120   : > { %5732 = vmatpush1.bf16.msra.mxu0 %v9316_v41  ;;  %v9370_v41 = vld [vmem:[%s10408_s28 + $0x1180] ss:$16 sps:$4 sm:$0xff]   ;;  %v9378_v46 = vld [vmem:[%s10408_s28 + $0x1164] ss:$16 sps:$4 sm:$0xff]  }
 0x121   : > { %5773 = vmatpush1.bf16.msra.mxu1 %v9319_v34  ;;  %5733 = vmatprep.subr.bf16.mxu0 %v9324_v52  ;;  %v9373_v34 = vld [vmem:[%s10408_s28 + $0x1380] ss:$16 sps:$4 sm:$0xff]   ;;  %v9381_v47 = vld [vmem:[%s10408_s28 + $0x1364] ss:$16 sps:$4 sm:$0xff]  }
 0x122   : > { %5774 = vmatprep.subr.bf16.mxu1 %v9327_v53  ;;  %v9384_v52 = vld [vmem:[%s10408_s28 + $0x1144] ss:$16 sps:$4 sm:$0xff]  }
 0x123   : > { %v9387_v53 = vld [vmem:[%s10408_s28 + $0x1344] ss:$16 sps:$4 sm:$0xff]  }
 0x124   : > { %5734 = vmatpush1.bf16.msra.mxu0 %v9322_v54  ;;  %v1311_v54 = vcombine.high %v10752_v1, %v10752_v1  ;;  %v9388_v1 = vld [vmem:[%s10408_s28 + $0x1120] ss:$16 sps:$4 sm:$0xff]  }
 0x125   : > { %5775 = vmatpush1.bf16.msra.mxu1 %v9325_v55  ;;  %5735 = vmatprep.subr.bf16.mxu0 %v9330_v37  ;;  %v9382_v55 = vld [vmem:[%s10408_s28 + $0x1140] ss:$16 sps:$4 sm:$0xff]  }
 0x126   : > { %5776 = vmatprep.subr.bf16.mxu1 %v9333_v58  ;;  %v9385_v37 = vld [vmem:[%s10408_s28 + $0x1340] ss:$16 sps:$4 sm:$0xff]   ;;  %v9390_v58 = vld [vmem:[%s10408_s28 + $0x1124] ss:$16 sps:$4 sm:$0xff]  }
 0x128   : > { %5736 = vmatpush1.bf16.msra.mxu0 %v9328_v59  ;;  %v9393_v59 = vld [vmem:[%s10408_s28 + $0x1324] ss:$16 sps:$4 sm:$0xff]  }
 0x129   : > { %5777 = vmatpush1.bf16.msra.mxu1 %v9331_v60  ;;  %5737 = vmatprep.subr.bf16.mxu0 %v9336_v63  ;;  %v10853_v60 = vrot.slane %v1311_v54, %v10458_v51  ;;  %v9391_v63 = vld [vmem:[%s10408_s28 + $0x1320] ss:$16 sps:$4 sm:$0xff]  }
 0x12a   : > { %5778 = vmatprep.subr.bf16.mxu1 %v9339_v0  ;;  %v9396_v0 = vld [vmem:[%s10408_s28 + $0x1104] ss:$16 sps:$4 sm:$0xff]   ;;  %v9421_v54 = vld [vmem:[%s10408_s28 + $0x1680] ss:$16 sps:$4 sm:$0xff]  }
 0x12c   : > { %5738 = vmatpush1.bf16.msra.mxu0 %v9334_v3  ;;  %v9399_v3 = vld [vmem:[%s10408_s28 + $0x1304] ss:$16 sps:$4 sm:$0xff]  }
 0x12d   : > { %5779 = vmatpush1.bf16.msra.mxu1 %v9337_v4  ;;  %5739 = vmatprep.subr.bf16.mxu0 %v9342_v5  ;;  %v1327_v4 = vcombine.high %v10853_v60, %v10853_v60  ;;  %v10863_v5 = vrot.slane %v10759_v6, %v10458_v51 }
 0x12e   : > { %5780 = vmatprep.subr.bf16.mxu1 %v9345_v7  ;;  %v9394_v7 = vld [vmem:[%s10408_s28 + $0x1100] ss:$16 sps:$4 sm:$0xff]  }
 0x12f   : > { %v10876_v6 = vcombine.high %v10863_v5, %v10863_v5 }
 0x130   : > { %5740 = vmatpush1.bf16.msra.mxu0 %v9340_v9  ;;  %v9397_v9 = vld [vmem:[%s10408_s28 + $0x1300] ss:$16 sps:$4 sm:$0xff]  }
 0x131   : > { %5781 = vmatpush1.bf16.msra.mxu1 %v9343_v10  ;;  %5741 = vmatprep.subr.bf16.mxu0 %v9348_v11  ;;  %v9402_v10 = vld [vmem:[%s10408_s28 + $0x14e4] ss:$16 sps:$4 sm:$0xff]  }
 0x132   : > { %5782 = vmatprep.subr.bf16.mxu1 %v9351_v12  ;;  %v9405_v11 = vld [vmem:[%s10408_s28 + $0x16e4] ss:$16 sps:$4 sm:$0xff]   ;;  %v9400_v12 = vld [vmem:[%s10408_s28 + $0x14e0] ss:$16 sps:$4 sm:$0xff]  }
 0x134   : > { %5742 = vmatpush1.bf16.msra.mxu0 %v9346_v13  ;;  %v9403_v13 = vld [vmem:[%s10408_s28 + $0x16e0] ss:$16 sps:$4 sm:$0xff]  }
 0x135   : > { %5783 = vmatpush1.bf16.msra.mxu1 %v9349_v16  ;;  %5743 = vmatprep.subr.bf16.mxu0 %v9354_v17  ;;  %v10872_v16 = vrot.slane %v1327_v4, %v10458_v51  ;;  %v9408_v17 = vld [vmem:[%s10408_s28 + $0x14c4] ss:$16 sps:$4 sm:$0xff]  }
 0x136   : > { %5784 = vmatprep.subr.bf16.mxu1 %v9357_v18  ;;  %v9411_v18 = vld [vmem:[%s10408_s28 + $0x16c4] ss:$16 sps:$4 sm:$0xff]  }
 0x137   : > { %v9438_v4 = vld [vmem:[%s10408_s28 + $0x1424] ss:$16 sps:$4 sm:$0xff]  }
 0x138   : > { %5744 = vmatpush2.bf16.msra.mxu0 %v9352_v23  ;;  %v9406_v23 = vld [vmem:[%s10408_s28 + $0x14c0] ss:$16 sps:$4 sm:$0xff]  }
 0x139   : > { %5785 = vmatpush2.bf16.msra.mxu1 %v9355_v42  ;;  %5745 = vmatprep.subr.bf16.mxu0 %v9360_v24  ;;  %v9409_v42 = vld [vmem:[%s10408_s28 + $0x16c0] ss:$16 sps:$4 sm:$0xff]   ;;  %v10884_v24 = vcombine.high %v10872_v16, %v10872_v16 }
 0x13a   : > { %5786 = vmatprep.subr.bf16.mxu1 %v9363_v26 }
 0x13c   : > { %5746 = vmatpush2.bf16.msra.mxu0 %v9358_v29 }
 0x13d   : > { %5787 = vmatpush2.bf16.msra.mxu1 %v9361_v30  ;;  %5747 = vmatprep.subr.bf16.mxu0 %v9366_v31 }
 0x13e   : > { %5788 = vmatprep.subr.bf16.mxu1 %v9369_v33 }
 0x140   : > { %5748 = vmatpush2.bf16.msra.mxu0 %v9364_v35  ;;  %v9414_v35 = vld [vmem:[%s10408_s28 + $0x14a4] ss:$16 sps:$4 sm:$0xff]  }
 0x141   : > { %5789 = vmatpush2.bf16.msra.mxu1 %v9367_v36  ;;  %5749 = vmatprep.subr.bf16.mxu0 %v9372_v38  ;;  %v9417_v36 = vld [vmem:[%s10408_s28 + $0x16a4] ss:$16 sps:$4 sm:$0xff]  }
 0x142   : > { %5790 = vmatprep.subr.bf16.mxu1 %v9375_v39 }
 0x144   : > { %5750 = vmatpush2.bf16.msra.mxu0 %v9370_v41  ;;  %v9412_v41 = vld [vmem:[%s10408_s28 + $0x14a0] ss:$16 sps:$4 sm:$0xff]  }
 0x145   : > { %5791 = vmatpush2.bf16.msra.mxu1 %v9373_v34  ;;  %5751 = vmatprep.subr.bf16.mxu0 %v9378_v46  ;;  %v9415_v34 = vld [vmem:[%s10408_s28 + $0x16a0] ss:$16 sps:$4 sm:$0xff]  }
 0x146   : > { %5792 = vmatprep.subr.bf16.mxu1 %v9381_v47 }
 0x148   : > { %5752 = vmatpush2.bf16.msra.mxu0 %v9376_v48 }
 0x149   : > { %5793 = vmatpush2.bf16.msra.mxu1 %v9379_v49  ;;  %5753 = vmatprep.subr.bf16.mxu0 %v9384_v52  ;;  %v9423_v52 = vld [vmem:[%s10408_s28 + $0x1684] ss:$16 sps:$4 sm:$0xff]  }
 0x14a   : > { %5794 = vmatprep.subr.bf16.mxu1 %v9387_v53  ;;  %v9418_v53 = vld [vmem:[%s10408_s28 + $0x1480] ss:$16 sps:$4 sm:$0xff]  }
 0x14c   : > { %5754 = vmatpush2.bf16.msra.mxu0 %v9382_v55  ;;  %v9426_v55 = vld [vmem:[%s10408_s28 + $0x1464] ss:$16 sps:$4 sm:$0xff]  }
 0x14d   : > { %5795 = vmatpush2.bf16.msra.mxu1 %v9385_v37  ;;  %5755 = vmatprep.subr.bf16.mxu0 %v9390_v58  ;;  %v9429_v37 = vld [vmem:[%s10408_s28 + $0x1664] ss:$16 sps:$4 sm:$0xff]   ;;  %v9424_v58 = vld [vmem:[%s10408_s28 + $0x1460] ss:$16 sps:$4 sm:$0xff]  }
 0x14e   : > { %5796 = vmatprep.subr.bf16.mxu1 %v9393_v59  ;;  %v9427_v59 = vld [vmem:[%s10408_s28 + $0x1660] ss:$16 sps:$4 sm:$0xff]  }
 0x150   : > { %5756 = vmatpush2.bf16.msra.mxu0 %v9388_v1  ;;  %v9432_v1 = vld [vmem:[%s10408_s28 + $0x1444] ss:$16 sps:$4 sm:$0xff]  }
 0x151   : > { %5797 = vmatpush2.bf16.msra.mxu1 %v9391_v63  ;;  %5757 = vmatprep.subr.bf16.mxu0 %v9396_v0  ;;  %v9435_v63 = vld [vmem:[%s10408_s28 + $0x1644] ss:$16 sps:$4 sm:$0xff]   ;;  %v9430_v0 = vld [vmem:[%s10408_s28 + $0x1440] ss:$16 sps:$4 sm:$0xff]  }
 0x152   : > { %5798 = vmatprep.subr.bf16.mxu1 %v9399_v3  ;;  %v9433_v3 = vld [vmem:[%s10408_s28 + $0x1640] ss:$16 sps:$4 sm:$0xff]  }
 0x154   : > { %5758 = vmatpush2.bf16.msra.mxu0 %v9394_v7  ;;  %v9441_v7 = vld [vmem:[%s10408_s28 + $0x1624] ss:$16 sps:$4 sm:$0xff]  }
 0x155   : > { %5799 = vmatpush2.bf16.msra.mxu1 %v9397_v9  ;;  %5809 = vmatprep.subr.bf16.mxu0 %v9402_v10  ;;  %v9436_v9 = vld [vmem:[%s10408_s28 + $0x1420] ss:$16 sps:$4 sm:$0xff]  }
 0x156   : > { %5850 = vmatprep.subr.bf16.mxu1 %v9405_v11  ;;  %v9439_v10 = vld [vmem:[%s10408_s28 + $0x1620] ss:$16 sps:$4 sm:$0xff]   ;;  %v9444_v11 = vld [vmem:[%s10408_s28 + $0x1404] ss:$16 sps:$4 sm:$0xff]  }
 0x157   : > { %v5515_v26 = vpop.f32.mrf.mxu0  ;;  %5760 = vmatmul.mubr.bf16.vlgmr.msra.gmra.mxu0 %v10863_v5 }
 0x158   : > { %v5556_v29 = vpop.f32.mrf.mxu1  ;;  %5801 = vmatmul.mubr.bf16.vlgmr.msra.gmra.mxu1 %v10876_v6  ;;  %v5516_v30 = vadd.f32 %v5515_v26, %v10794_v8  ;;  %5810 = vmatpush1.bf16.msra.mxu0 %v9400_v12  ;;  %v9447_v12 = vld [vmem:[%s10408_s28 + $0x1604] ss:$16 sps:$4 sm:$0xff]   ;;  %v9451_v26 = vld [vmem:[%s10408_s28 + $0x17e0] ss:$16 sps:$4 sm:$0xff]  }
 0x159   : > { %5851 = vmatpush1.bf16.msra.mxu1 %v9403_v13  ;;  %v5517_v31 = vpop.f32.mrf.mxu0  ;;  %5811 = vmatprep.subr.bf16.mxu0 %v9408_v17  ;;  %v9442_v13 = vld [vmem:[%s10408_s28 + $0x1400] ss:$16 sps:$4 sm:$0xff]  }
 0x15a   : > { %v5558_v33 = vpop.f32.mrf.mxu1  ;;  %5852 = vmatprep.subr.bf16.mxu1 %v9411_v18  ;;  %v10891_v38 = vadd.f32 %v5556_v29, %v5516_v30  ;;  %v5518_v39 = vadd.f32 %v5517_v31, %v10798_v40  ;;  %5841 = vmatprep.mubr.bf16.mxu0 %v10872_v16  ;;  %v9420_v40 = vld [vmem:[%s10408_s28 + $0x1484] ss:$16 sps:$4 sm:$0xff]   ;;  %v9445_v17 = vld [vmem:[%s10408_s28 + $0x1600] ss:$16 sps:$4 sm:$0xff]  }
 0x15b   : > { %5882 = vmatprep.mubr.bf16.mxu1 %v10884_v24  ;;  %v5519_v8 = vpop.f32.mrf.mxu0  ;;  %v9450_v18 = vld [vmem:[%s10408_s28 + $0x15e4] ss:$16 sps:$4 sm:$0xff]   ;;  %v9454_v31 = vld [vmem:[%s10408_s28 + $0x15c0] ss:$16 sps:$4 sm:$0xff]  }
 0x15c   : > { %v5560_v46 = vpop.f32.mrf.mxu1  ;;  %v10898_v47 = vadd.f32 %v5558_v33, %v5518_v39  ;;  %5812 = vmatpush1.bf16.msra.mxu0 %v9406_v23  ;;  %v9453_v23 = vld [vmem:[%s10408_s28 + $0x17e4] ss:$16 sps:$4 sm:$0xff]   ;;  %v9457_v33 = vld [vmem:[%s10408_s28 + $0x17c0] ss:$16 sps:$4 sm:$0xff]  }
 0x15d   : > { %5853 = vmatpush1.bf16.msra.mxu1 %v9409_v42  ;;  %v5520_v48 = vpop.f32.mrf.mxu0  ;;  %5813 = vmatprep.subr.bf16.mxu0 %v9414_v35  ;;  %v9448_v42 = vld [vmem:[%s10408_s28 + $0x15e0] ss:$16 sps:$4 sm:$0xff]   ;;  %v9456_v29 = vld [vmem:[%s10408_s28 + $0x15c4] ss:$16 sps:$4 sm:$0xff]  }
 0x15e   : > { %v5561_v49 = vpop.f32.mrf.mxu1  ;;  %5854 = vmatprep.subr.bf16.mxu1 %v9417_v36  ;;  %v9459_v30 = vld [vmem:[%s10408_s28 + $0x17c4] ss:$16 sps:$4 sm:$0xff]   ;;  %v9460_v39 = vld [vmem:[%s10408_s28 + $0x15a0] ss:$16 sps:$4 sm:$0xff]  }
 0x15f   : > { %v9462_v35 = vld [vmem:[%s10408_s28 + $0x15a4] ss:$16 sps:$4 sm:$0xff]   ;;  %v9466_v46 = vld [vmem:[%s10408_s28 + $0x1580] ss:$16 sps:$4 sm:$0xff]  }
 0x160   : > { %5814 = vmatpush1.bf16.msra.mxu0 %v9412_v41  ;;  %v9465_v36 = vld [vmem:[%s10408_s28 + $0x17a4] ss:$16 sps:$4 sm:$0xff]   ;;  %v9463_v41 = vld [vmem:[%s10408_s28 + $0x17a0] ss:$16 sps:$4 sm:$0xff]  }
 0x161   : > { %5855 = vmatpush1.bf16.msra.mxu1 %v9415_v34  ;;  %5815 = vmatprep.subr.bf16.mxu0 %v9420_v40  ;;  %v9468_v34 = vld [vmem:[%s10408_s28 + $0x1584] ss:$16 sps:$4 sm:$0xff]   ;;  %v9469_v48 = vld [vmem:[%s10408_s28 + $0x1780] ss:$16 sps:$4 sm:$0xff]  }
 0x162   : > { %5856 = vmatprep.subr.bf16.mxu1 %v9423_v52  ;;  %v9471_v8 = vld [vmem:[%s10408_s28 + $0x1784] ss:$16 sps:$4 sm:$0xff]   ;;  %v9472_v52 = vld [vmem:[%s10408_s28 + $0x1560] ss:$16 sps:$4 sm:$0xff]  }
 0x163   : > { %v9474_v49 = vld [vmem:[%s10408_s28 + $0x1564] ss:$16 sps:$4 sm:$0xff]  }
 0x164   : > { %5816 = vmatpush1.bf16.msra.mxu0 %v9418_v53  ;;  %v9477_v40 = vld [vmem:[%s10408_s28 + $0x1764] ss:$16 sps:$4 sm:$0xff]   ;;  %v9475_v53 = vld [vmem:[%s10408_s28 + $0x1760] ss:$16 sps:$4 sm:$0xff]  }
 0x165   : > { %5857 = vmatpush1.bf16.msra.mxu1 %v9421_v54  ;;  %5817 = vmatprep.subr.bf16.mxu0 %v9426_v55  ;;  %v9480_v54 = vld [vmem:[%s10408_s28 + $0x1544] ss:$16 sps:$4 sm:$0xff]  }
 0x166   : > { %5858 = vmatprep.subr.bf16.mxu1 %v9429_v37  ;;  %v9483_v55 = vld [vmem:[%s10408_s28 + $0x1744] ss:$16 sps:$4 sm:$0xff]   ;;  %v9478_v37 = vld [vmem:[%s10408_s28 + $0x1540] ss:$16 sps:$4 sm:$0xff]  }
 0x168   : > { %5818 = vmatpush1.bf16.msra.mxu0 %v9424_v58  ;;  %v9481_v58 = vld [vmem:[%s10408_s28 + $0x1740] ss:$16 sps:$4 sm:$0xff]  }
 0x169   : > { %5859 = vmatpush1.bf16.msra.mxu1 %v9427_v59  ;;  %5819 = vmatprep.subr.bf16.mxu0 %v9432_v1  ;;  %v9486_v59 = vld [vmem:[%s10408_s28 + $0x1524] ss:$16 sps:$4 sm:$0xff]  }
 0x16a   : > { %5860 = vmatprep.subr.bf16.mxu1 %v9435_v63  ;;  %v9489_v1 = vld [vmem:[%s10408_s28 + $0x1724] ss:$16 sps:$4 sm:$0xff]   ;;  %v9484_v63 = vld [vmem:[%s10408_s28 + $0x1520] ss:$16 sps:$4 sm:$0xff]  }
 0x16c   : > { %5820 = vmatpush1.bf16.msra.mxu0 %v9430_v0  ;;  %v9487_v0 = vld [vmem:[%s10408_s28 + $0x1720] ss:$16 sps:$4 sm:$0xff]  }
 0x16d   : > { %5861 = vmatpush1.bf16.msra.mxu1 %v9433_v3  ;;  %5821 = vmatprep.subr.bf16.mxu0 %v9438_v4  ;;  %v9492_v3 = vld [vmem:[%s10408_s28 + $0x1504] ss:$16 sps:$4 sm:$0xff]  }
 0x16e   : > { %5862 = vmatprep.subr.bf16.mxu1 %v9441_v7  ;;  %v9495_v4 = vld [vmem:[%s10408_s28 + $0x1704] ss:$16 sps:$4 sm:$0xff]   ;;  %v10952_v7 = vrot.slane %v10853_v60, %v10458_v51 }
 0x16f   : > { %v9505_v60 = vld [vmem:[%s10408_s28 + $0x18c4] ss:$16 sps:$4 sm:$0xff]  }
 0x170   : > { %5822 = vmatpush1.bf16.msra.mxu0 %v9436_v9  ;;  %v9490_v9 = vld [vmem:[%s10408_s28 + $0x1500] ss:$16 sps:$4 sm:$0xff]  }
 0x171   : > { %5863 = vmatpush1.bf16.msra.mxu1 %v9439_v10  ;;  %5823 = vmatprep.subr.bf16.mxu0 %v9444_v11  ;;  %v9493_v10 = vld [vmem:[%s10408_s28 + $0x1700] ss:$16 sps:$4 sm:$0xff]   ;;  %v9499_v11 = vld [vmem:[%s10408_s28 + $0x18e4] ss:$16 sps:$4 sm:$0xff]  }
 0x172   : > { %5864 = vmatprep.subr.bf16.mxu1 %v9447_v12  ;;  %v9502_v12 = vld [vmem:[%s10408_s28 + $0xec] ss:$16 sps:$4 sm:$0xff]  }
 0x174   : > { %5824 = vmatpush1.bf16.msra.mxu0 %v9442_v13  ;;  %v9497_v13 = vld [vmem:[%s10408_s28 + $0x18e0] ss:$16 sps:$4 sm:$0xff]  }
 0x175   : > { %5865 = vmatpush1.bf16.msra.mxu1 %v9445_v17  ;;  %5825 = vmatprep.subr.bf16.mxu0 %v9450_v18  ;;  %v9500_v17 = vld [vmem:[%s10408_s28 + $0xe8] ss:$16 sps:$4 sm:$0xff]   ;;  %v10962_v18 = vcombine.high %v10952_v7, %v10952_v7 }
 0x176   : > { %5866 = vmatprep.subr.bf16.mxu1 %v9453_v23  ;;  %v9508_v23 = vld [vmem:[%s10408_s28 + $0xcc] ss:$16 sps:$4 sm:$0xff]  }
 0x178   : > { %5826 = vmatpush2.bf16.msra.mxu0 %v9448_v42  ;;  %v9503_v42 = vld [vmem:[%s10408_s28 + $0x18c0] ss:$16 sps:$4 sm:$0xff]  }
 0x179   : > { %5867 = vmatpush2.bf16.msra.mxu1 %v9451_v26  ;;  %5827 = vmatprep.subr.bf16.mxu0 %v9456_v29  ;;  %v9506_v26 = vld [vmem:[%s10408_s28 + $0xc8] ss:$16 sps:$4 sm:$0xff]  }
 0x17a   : > { %5868 = vmatprep.subr.bf16.mxu1 %v9459_v30 }
 0x17c   : > { %5828 = vmatpush2.bf16.msra.mxu0 %v9454_v31 }
 0x17d   : > { %5869 = vmatpush2.bf16.msra.mxu1 %v9457_v33  ;;  %5829 = vmatprep.subr.bf16.mxu0 %v9462_v35 }
 0x17e   : > { %5870 = vmatprep.subr.bf16.mxu1 %v9465_v36  ;;  %v9511_v36 = vld [vmem:[%s10408_s28 + $0x18a4] ss:$16 sps:$4 sm:$0xff]  }
 0x180   : > { %5830 = vmatpush2.bf16.msra.mxu0 %v9460_v39  ;;  %v9514_v39 = vld [vmem:[%s10408_s28 + $0xac] ss:$16 sps:$4 sm:$0xff]  }
 0x181   : > { %5871 = vmatpush2.bf16.msra.mxu1 %v9463_v41  ;;  %5831 = vmatprep.subr.bf16.mxu0 %v9468_v34 }
 0x182   : > { %5872 = vmatprep.subr.bf16.mxu1 %v9471_v8  ;;  %v9509_v8 = vld [vmem:[%s10408_s28 + $0x18a0] ss:$16 sps:$4 sm:$0xff]  }
 0x184   : > { %5832 = vmatpush2.bf16.msra.mxu0 %v9466_v46  ;;  %v9512_v46 = vld [vmem:[%s10408_s28 + $0xa8] ss:$16 sps:$4 sm:$0xff]  }
 0x185   : > { %5873 = vmatpush2.bf16.msra.mxu1 %v9469_v48  ;;  %5833 = vmatprep.subr.bf16.mxu0 %v9474_v49  ;;  %v10323_v48 = vmov 0  }
 0x186   : > { %5874 = vmatprep.subr.bf16.mxu1 %v9477_v40 }
 0x188   : > { %5834 = vmatpush2.bf16.msra.mxu0 %v9472_v52 }
 0x189   : > { %5875 = vmatpush2.bf16.msra.mxu1 %v9475_v53  ;;  %5835 = vmatprep.subr.bf16.mxu0 %v9480_v54  ;;  %v9517_v53 = vld [vmem:[%s10408_s28 + $0x1884] ss:$16 sps:$4 sm:$0xff]   ;;  %v9520_v54 = vld [vmem:[%s10408_s28 + $0x8c] ss:$16 sps:$4 sm:$0xff]  }
 0x18a   : > { %5876 = vmatprep.subr.bf16.mxu1 %v9483_v55  ;;  %v9518_v55 = vld [vmem:[%s10408_s28 + $0x88] ss:$16 sps:$4 sm:$0xff]  }
 0x18c   : > { %5836 = vmatpush2.bf16.msra.mxu0 %v9478_v37  ;;  %v9523_v37 = vld [vmem:[%s10408_s28 + $0x1864] ss:$16 sps:$4 sm:$0xff]  }
 0x18d   : > { %5877 = vmatpush2.bf16.msra.mxu1 %v9481_v58  ;;  %5837 = vmatprep.subr.bf16.mxu0 %v9486_v59  ;;  %v9526_v58 = vld [vmem:[%s10408_s28 + $0x6c] ss:$16 sps:$4 sm:$0xff]   ;;  %v9521_v59 = vld [vmem:[%s10408_s28 + $0x1860] ss:$16 sps:$4 sm:$0xff]  }
 0x18e   : > { %5878 = vmatprep.subr.bf16.mxu1 %v9489_v1  ;;  %v9524_v1 = vld [vmem:[%s10408_s28 + $0x68] ss:$16 sps:$4 sm:$0xff]  }
 0x190   : > { %5838 = vmatpush2.bf16.msra.mxu0 %v9484_v63  ;;  %v9529_v63 = vld [vmem:[%s10408_s28 + $0x1844] ss:$16 sps:$4 sm:$0xff]  }
 0x191   : > { %5879 = vmatpush2.bf16.msra.mxu1 %v9487_v0  ;;  %5839 = vmatprep.subr.bf16.mxu0 %v9492_v3  ;;  %v9532_v0 = vld [vmem:[%s10408_s28 + $0x4c] ss:$16 sps:$4 sm:$0xff]   ;;  %v9527_v3 = vld [vmem:[%s10408_s28 + $0x1840] ss:$16 sps:$4 sm:$0xff]  }
 0x192   : > { %5880 = vmatprep.subr.bf16.mxu1 %v9495_v4  ;;  %v9530_v4 = vld [vmem:[%s10408_s28 + $0x48] ss:$16 sps:$4 sm:$0xff]  }
 0x194   : > { %5840 = vmatpush2.bf16.msra.mxu0 %v9490_v9  ;;  %v9535_v9 = vld [vmem:[%s10408_s28 + $0x1824] ss:$16 sps:$4 sm:$0xff]  }
 0x195   : > { %5881 = vmatpush2.bf16.msra.mxu1 %v9493_v10  ;;  %5891 = vmatprep.subr.bf16.mxu0 %v9499_v11  ;;  %v9538_v10 = vld [vmem:[%s10408_s28 + $0x2c] ss:$16 sps:$4 sm:$0xff]   ;;  %v9533_v11 = vld [vmem:[%s10408_s28 + $0x1820] ss:$16 sps:$4 sm:$0xff]  }
 0x196   : > { %5932 = vmatprep.subr.bf16.mxu1 %v9502_v12  ;;  %v9536_v12 = vld [vmem:[%s10408_s28 + $0x28] ss:$16 sps:$4 sm:$0xff]  }
 0x197   : > { %v5597_v29 = vpop.f32.mrf.mxu0  ;;  %5842 = vmatmul.mubr.bf16.vlgmr.msra.gmra.mxu0 %v10952_v7 }
 0x198   : > { %v5638_v30 = vpop.f32.mrf.mxu1  ;;  %5883 = vmatmul.mubr.bf16.vlgmr.msra.gmra.mxu1 %v10962_v18  ;;  %v5598_v31 = vadd.f32 %v5597_v29, %v10891_v38  ;;  %5892 = vmatpush1.bf16.msra.mxu0 %v9497_v13  ;;  %v9541_v13 = vld [vmem:[%s10408_s28 + $0x1804] ss:$16 sps:$4 sm:$0xff]   ;;  %v9550_v29 = vld [vmem:[%s10408_s28 + $0x2ec] ss:$16 sps:$4 sm:$0xff]  }
 0x199   : > { %5933 = vmatpush1.bf16.msra.mxu1 %v9500_v17  ;;  %v5599_v33 = vpop.f32.mrf.mxu0  ;;  %5893 = vmatprep.subr.bf16.mxu0 %v9505_v60  ;;  %v9544_v17 = vld [vmem:[%s10408_s28 + $0xc] ss:$16 sps:$4 sm:$0xff]   ;;  %v9539_v60 = vld [vmem:[%s10408_s28 + $0x1800] ss:$16 sps:$4 sm:$0xff]  }
 0x19a   : > { %v5640_v35 = vpop.f32.mrf.mxu1  ;;  %5934 = vmatprep.subr.bf16.mxu1 %v9508_v23  ;;  %v10973_v41 = vadd.f32 %v5638_v30, %v5598_v31  ;;  %v5600_v34 = vadd.f32 %v5599_v33, %v10898_v47  ;;  %5923 = vmatprep.mubr.bf16.mxu0 %v10323_v48  ;;  %v9542_v23 = vld [vmem:[%s10408_s28 + $0x8] ss:$16 sps:$4 sm:$0xff]  }
 0x19b   : > { %5964 = vmatprep.mubr.bf16.mxu1 %v10470_v62  ;;  %v5601_v38 = vpop.f32.mrf.mxu0  ;;  %v9515_v62 = vld [vmem:[%s10408_s28 + $0x1880] ss:$16 sps:$4 sm:$0xff]   ;;  %v9545_v30 = vld [vmem:[%s10408_s28 + $0x1e8] ss:$16 sps:$4 sm:$0xff]  }
 0x19c   : > { %v5642_v49 = vpop.f32.mrf.mxu1  ;;  %v10980_v40 = vadd.f32 %v5640_v35, %v5600_v34  ;;  %5894 = vmatpush1.bf16.msra.mxu0 %v9503_v42  ;;  %v7901_v42 = vld.sshfl [vmem:[%s10403_s24 + $0x18] sm:$0x1 pattern:$0x75316420]  ;;  %v9553_v35 = vld [vmem:[%s10408_s28 + $0x1cc] ss:$16 sps:$4 sm:$0xff]  }
 0x19d   : > { %5935 = vmatpush1.bf16.msra.mxu1 %v9506_v26  ;;  %v5602_v52 = vpop.f32.mrf.mxu0  ;;  %5895 = vmatprep.subr.bf16.mxu0 %v9511_v36  ;;  %v9547_v26 = vld [vmem:[%s10408_s28 + $0x1ec] ss:$16 sps:$4 sm:$0xff]   ;;  %v9548_v31 = vld [vmem:[%s10408_s28 + $0x2e8] ss:$16 sps:$4 sm:$0xff]   ;;  %v11008_v33 = vrot.slane %v7901_v42, %v10458_v51 }
 0x19e   : > { %v5643_v47 = vpop.f32.mrf.mxu1  ;;  %5936 = vmatprep.subr.bf16.mxu1 %v9514_v39  ;;  %v9556_v36 = vld [vmem:[%s10408_s28 + $0x2cc] ss:$16 sps:$4 sm:$0xff]   ;;  %v9551_v39 = vld [vmem:[%s10408_s28 + $0x1c8] ss:$16 sps:$4 sm:$0xff]  }
 0x19f   : > { %v9554_v34 = vld [vmem:[%s10408_s28 + $0x2c8] ss:$16 sps:$4 sm:$0xff]   ;;  %v9559_v51 = vld [vmem:[%s10408_s28 + $0x1ac] ss:$16 sps:$4 sm:$0xff]  }
 0x1a0   : > { %5896 = vmatpush1.bf16.msra.mxu0 %v9509_v8  ;;  %v9562_v8 = vld [vmem:[%s10408_s28 + $0x2ac] ss:$16 sps:$4 sm:$0xff]   ;;  %v9560_v38 = vld [vmem:[%s10408_s28 + $0x2a8] ss:$16 sps:$4 sm:$0xff]  }
 0x1a1   : > { %5937 = vmatpush1.bf16.msra.mxu1 %v9512_v46  ;;  %5897 = vmatprep.subr.bf16.mxu0 %v9517_v53  ;;  %v9557_v46 = vld [vmem:[%s10408_s28 + $0x1a8] ss:$16 sps:$4 sm:$0xff]   ;;  %v9565_v49 = vld [vmem:[%s10408_s28 + $0x18c] ss:$16 sps:$4 sm:$0xff]  }
 0x1a2   : > { %5938 = vmatprep.subr.bf16.mxu1 %v9520_v54  ;;  %v9568_v52 = vld [vmem:[%s10408_s28 + $0x28c] ss:$16 sps:$4 sm:$0xff]   ;;  %v9563_v47 = vld [vmem:[%s10408_s28 + $0x188] ss:$16 sps:$4 sm:$0xff]  }
 0x1a3   : > { %v9566_v53 = vld [vmem:[%s10408_s28 + $0x288] ss:$16 sps:$4 sm:$0xff]   ;;  %v9574_v54 = vld [vmem:[%s10408_s28 + $0x26c] ss:$16 sps:$4 sm:$0xff]  }
 0x1a4   : > { %5898 = vmatpush1.bf16.msra.mxu0 %v9515_v62  ;;  %v9569_v62 = vld [vmem:[%s10408_s28 + $0x168] ss:$16 sps:$4 sm:$0xff]   ;;  %v9601_v42 = vld [vmem:[%s10408_s28 + $0x3cc] ss:$16 sps:$4 sm:$0xff]  }
 0x1a5   : > { %5939 = vmatpush1.bf16.msra.mxu1 %v9518_v55  ;;  %5899 = vmatprep.subr.bf16.mxu0 %v9523_v37  ;;  %v9572_v55 = vld [vmem:[%s10408_s28 + $0x268] ss:$16 sps:$4 sm:$0xff]   ;;  %v9577_v37 = vld [vmem:[%s10408_s28 + $0x14c] ss:$16 sps:$4 sm:$0xff]  }
 0x1a6   : > { %5940 = vmatprep.subr.bf16.mxu1 %v9526_v58  ;;  %v9580_v58 = vld [vmem:[%s10408_s28 + $0x24c] ss:$16 sps:$4 sm:$0xff]  }
 0x1a8   : > { %5900 = vmatpush1.bf16.msra.mxu0 %v9521_v59  ;;  %v9575_v59 = vld [vmem:[%s10408_s28 + $0x148] ss:$16 sps:$4 sm:$0xff]  }
 0x1a9   : > { %5941 = vmatpush1.bf16.msra.mxu1 %v9524_v1  ;;  %5901 = vmatprep.subr.bf16.mxu0 %v9529_v63  ;;  %v9578_v1 = vld [vmem:[%s10408_s28 + $0x248] ss:$16 sps:$4 sm:$0xff]   ;;  %v9583_v63 = vld [vmem:[%s10408_s28 + $0x12c] ss:$16 sps:$4 sm:$0xff]  }
 0x1aa   : > { %5942 = vmatprep.subr.bf16.mxu1 %v9532_v0  ;;  %v9586_v0 = vld [vmem:[%s10408_s28 + $0x22c] ss:$16 sps:$4 sm:$0xff]  }
 0x1ac   : > { %5902 = vmatpush1.bf16.msra.mxu0 %v9527_v3  ;;  %v9581_v3 = vld [vmem:[%s10408_s28 + $0x128] ss:$16 sps:$4 sm:$0xff]  }
 0x1ad   : > { %5943 = vmatpush1.bf16.msra.mxu1 %v9530_v4  ;;  %5903 = vmatprep.subr.bf16.mxu0 %v9535_v9  ;;  %v9584_v4 = vld [vmem:[%s10408_s28 + $0x228] ss:$16 sps:$4 sm:$0xff]   ;;  %v9589_v9 = vld [vmem:[%s10408_s28 + $0x10c] ss:$16 sps:$4 sm:$0xff]  }
 0x1ae   : > { %5944 = vmatprep.subr.bf16.mxu1 %v9538_v10  ;;  %v9592_v10 = vld [vmem:[%s10408_s28 + $0x20c] ss:$16 sps:$4 sm:$0xff]  }
 0x1b0   : > { %5904 = vmatpush1.bf16.msra.mxu0 %v9533_v11  ;;  %v9587_v11 = vld [vmem:[%s10408_s28 + $0x108] ss:$16 sps:$4 sm:$0xff]  }
 0x1b1   : > { %5945 = vmatpush1.bf16.msra.mxu1 %v9536_v12  ;;  %5905 = vmatprep.subr.bf16.mxu0 %v9541_v13  ;;  %v9590_v12 = vld [vmem:[%s10408_s28 + $0x208] ss:$16 sps:$4 sm:$0xff]   ;;  %v9595_v13 = vld [vmem:[%s10408_s28 + $0x3ec] ss:$16 sps:$4 sm:$0xff]  }
 0x1b2   : > { %5946 = vmatprep.subr.bf16.mxu1 %v9544_v17  ;;  %v9598_v17 = vld [vmem:[%s10408_s28 + $0x4ec] ss:$16 sps:$4 sm:$0xff]  }
 0x1b4   : > { %5906 = vmatpush1.bf16.msra.mxu0 %v9539_v60  ;;  %v9593_v60 = vld [vmem:[%s10408_s28 + $0x3e8] ss:$16 sps:$4 sm:$0xff]  }
 0x1b5   : > { %5947 = vmatpush1.bf16.msra.mxu1 %v9542_v23  ;;  %5973 = vmatprep.subr.bf16.mxu0 %v9550_v29  ;;  %v9596_v23 = vld [vmem:[%s10408_s28 + $0x4e8] ss:$16 sps:$4 sm:$0xff]  }
 0x1b6   : > { %5948 = vmatprep.subr.bf16.mxu1 %v9547_v26  ;;  %v9604_v26 = vld [vmem:[%s10408_s28 + $0x4cc] ss:$16 sps:$4 sm:$0xff]   ;;  %v9599_v29 = vld [vmem:[%s10408_s28 + $0x3c8] ss:$16 sps:$4 sm:$0xff]  }
 0x1b7   : > { %5924 = vmatmul.mubr.bf16.vlgmr.msra.gmra.mxu0 %v11008_v33 }
 0x1b8   : > { %5974 = vmatpush1.bf16.msra.mxu0 %v9548_v31  ;;  %6005 = vmatprep.mubr.bf16.mxu0 %v10477_v2  ;;  %v9571_v2 = vld [vmem:[%s10408_s28 + $0x16c] ss:$16 sps:$4 sm:$0xff]  }
 0x1b9   : > { %5949 = vmatpush2.bf16.msra.mxu1 %v9545_v30  ;;  %5975 = vmatprep.subr.bf16.mxu0 %v9556_v36  ;;  %v9602_v30 = vld [vmem:[%s10408_s28 + $0x4c8] ss:$16 sps:$4 sm:$0xff]  }
 0x1ba   : > { %5950 = vmatprep.subr.bf16.mxu1 %v9553_v35 }
 0x1bc   : > { %5976 = vmatpush1.bf16.msra.mxu0 %v9554_v34 }
 0x1bd   : > { %5951 = vmatpush2.bf16.msra.mxu1 %v9551_v39  ;;  %5977 = vmatprep.subr.bf16.mxu0 %v9562_v8  ;;  %v9610_v8 = vld [vmem:[%s10408_s28 + $0x4ac] ss:$16 sps:$4 sm:$0xff]  }
 0x1be   : > { %5952 = vmatprep.subr.bf16.mxu1 %v9559_v51  ;;  %v9607_v51 = vld [vmem:[%s10408_s28 + $0x3ac] ss:$16 sps:$4 sm:$0xff]  }
 0x1c0   : > { %5978 = vmatpush1.bf16.msra.mxu0 %v9560_v38 }
 0x1c1   : > { %5953 = vmatpush2.bf16.msra.mxu1 %v9557_v46  ;;  %5979 = vmatprep.subr.bf16.mxu0 %v9568_v52  ;;  %v9608_v52 = vld [vmem:[%s10408_s28 + $0x4a8] ss:$16 sps:$4 sm:$0xff]  }
 0x1c2   : > { %5954 = vmatprep.subr.bf16.mxu1 %v9565_v49  ;;  %v9605_v49 = vld [vmem:[%s10408_s28 + $0x3a8] ss:$16 sps:$4 sm:$0xff]  }
 0x1c4   : > { %5980 = vmatpush1.bf16.msra.mxu0 %v9566_v53 }
 0x1c5   : > { %5955 = vmatpush2.bf16.msra.mxu1 %v9563_v47  ;;  %5981 = vmatprep.subr.bf16.mxu0 %v9574_v54  ;;  %v9616_v54 = vld [vmem:[%s10408_s28 + $0x48c] ss:$16 sps:$4 sm:$0xff]  }
 0x1c6   : > { %5956 = vmatprep.subr.bf16.mxu1 %v9571_v2 }
 0x1c8   : > { %5982 = vmatpush1.bf16.msra.mxu0 %v9572_v55  ;;  %v9619_v55 = vld [vmem:[%s10408_s28 + $0x36c] ss:$16 sps:$4 sm:$0xff]  }
 0x1c9   : > { %5957 = vmatpush2.bf16.msra.mxu1 %v9569_v62  ;;  %5983 = vmatprep.subr.bf16.mxu0 %v9580_v58  ;;  %v9614_v62 = vld [vmem:[%s10408_s28 + $0x488] ss:$16 sps:$4 sm:$0xff]  }
 0x1ca   : > { %5958 = vmatprep.subr.bf16.mxu1 %v9577_v37  ;;  %v9622_v37 = vld [vmem:[%s10408_s28 + $0x46c] ss:$16 sps:$4 sm:$0xff]   ;;  %v9617_v58 = vld [vmem:[%s10408_s28 + $0x368] ss:$16 sps:$4 sm:$0xff]  }
 0x1cc   : > { %5984 = vmatpush1.bf16.msra.mxu0 %v9578_v1  ;;  %v9625_v1 = vld [vmem:[%s10408_s28 + $0x34c] ss:$16 sps:$4 sm:$0xff]  }
 0x1cd   : > { %5959 = vmatpush2.bf16.msra.mxu1 %v9575_v59  ;;  %5985 = vmatprep.subr.bf16.mxu0 %v9586_v0  ;;  %v9620_v59 = vld [vmem:[%s10408_s28 + $0x468] ss:$16 sps:$4 sm:$0xff]  }
 0x1ce   : > { %5960 = vmatprep.subr.bf16.mxu1 %v9583_v63  ;;  %v9628_v63 = vld [vmem:[%s10408_s28 + $0x44c] ss:$16 sps:$4 sm:$0xff]   ;;  %v9623_v0 = vld [vmem:[%s10408_s28 + $0x348] ss:$16 sps:$4 sm:$0xff]  }
 0x1d0   : > { %5986 = vmatpush1.bf16.msra.mxu0 %v9584_v4  ;;  %v9631_v4 = vld [vmem:[%s10408_s28 + $0x32c] ss:$16 sps:$4 sm:$0xff]  }
 0x1d1   : > { %5961 = vmatpush2.bf16.msra.mxu1 %v9581_v3  ;;  %5987 = vmatprep.subr.bf16.mxu0 %v9592_v10  ;;  %v9626_v3 = vld [vmem:[%s10408_s28 + $0x448] ss:$16 sps:$4 sm:$0xff]  }
 0x1d2   : > { %5962 = vmatprep.subr.bf16.mxu1 %v9589_v9  ;;  %v9634_v9 = vld [vmem:[%s10408_s28 + $0x42c] ss:$16 sps:$4 sm:$0xff]   ;;  %v9629_v10 = vld [vmem:[%s10408_s28 + $0x328] ss:$16 sps:$4 sm:$0xff]  }
 0x1d4   : > { %5988 = vmatpush1.bf16.msra.mxu0 %v9590_v12  ;;  %v9637_v12 = vld [vmem:[%s10408_s28 + $0x30c] ss:$16 sps:$4 sm:$0xff]  }
 0x1d5   : > { %5963 = vmatpush2.bf16.msra.mxu1 %v9587_v11  ;;  %5989 = vmatprep.subr.bf16.mxu0 %v9595_v13  ;;  %v9632_v11 = vld [vmem:[%s10408_s28 + $0x428] ss:$16 sps:$4 sm:$0xff]   ;;  %v9640_v13 = vld [vmem:[%s10408_s28 + $0x40c] ss:$16 sps:$4 sm:$0xff]  }
 0x1d6   : > { %6014 = vmatprep.subr.bf16.mxu1 %v9598_v17  ;;  %v9635_v17 = vld [vmem:[%s10408_s28 + $0x308] ss:$16 sps:$4 sm:$0xff]  }
 0x1d7   : > { %v5679_v31 = vpop.f32.mrf.mxu0 }
 0x1d8   : > { %v5720_v35 = vpop.f32.mrf.mxu1  ;;  %5965 = vmatmul.mubr.bf16.vlgmr.msra.gmra.mxu1 %v10496_v15  ;;  %v5680_v36 = vadd.f32 %v5679_v31, %v10973_v41  ;;  %5990 = vmatpush2.bf16.msra.mxu0 %v9593_v60  ;;  %v9638_v60 = vld [vmem:[%s10408_s28 + $0x408] ss:$16 sps:$4 sm:$0xff]   ;;  %v9652_v31 = vld [vmem:[%s10408_s28 + $0x6cc] ss:$16 sps:$4 sm:$0xff]  }
 0x1d9   : > { %6015 = vmatpush1.bf16.msra.mxu1 %v9596_v23  ;;  %v5681_v39 = vpop.f32.mrf.mxu0  ;;  %5991 = vmatprep.subr.bf16.mxu0 %v9601_v42  ;;  %v9643_v23 = vld [vmem:[%s10408_s28 + $0x5ec] ss:$16 sps:$4 sm:$0xff]  }
 0x1da   : > { %v5722_v34 = vpop.f32.mrf.mxu1  ;;  %6016 = vmatprep.subr.bf16.mxu1 %v9604_v26  ;;  %v11052_v46 = vadd.f32 %v5720_v35, %v5680_v36  ;;  %v5682_v38 = vadd.f32 %v5681_v39, %v10980_v40  ;;  %6046 = vmatprep.mubr.bf16.mxu1 %v10502_v19  ;;  %v9613_v40 = vld [vmem:[%s10408_s28 + $0x38c] ss:$16 sps:$4 sm:$0xff]   ;;  %v9611_v19 = vld [vmem:[%s10408_s28 + $0x388] ss:$16 sps:$4 sm:$0xff]  }
 0x1db   : > { %v5683_v15 = vpop.f32.mrf.mxu0  ;;  %v9646_v42 = vld [vmem:[%s10408_s28 + $0x6ec] ss:$16 sps:$4 sm:$0xff]   ;;  %v9641_v26 = vld [vmem:[%s10408_s28 + $0x5e8] ss:$16 sps:$4 sm:$0xff]  }
 0x1dc   : > { %v5724_v41 = vpop.f32.mrf.mxu1  ;;  %v11058_v47 = vadd.f32 %v5722_v34, %v5682_v38  ;;  %5992 = vmatpush2.bf16.msra.mxu0 %v9599_v29  ;;  %v9644_v29 = vld [vmem:[%s10408_s28 + $0x6e8] ss:$16 sps:$4 sm:$0xff]   ;;  %v9655_v39 = vld [vmem:[%s10408_s28 + $0x5ac] ss:$16 sps:$4 sm:$0xff]  }
 0x1dd   : > { %6017 = vmatpush1.bf16.msra.mxu1 %v9602_v30  ;;  %v5684_v53 = vpop.f32.mrf.mxu0  ;;  %5993 = vmatprep.subr.bf16.mxu0 %v9607_v51  ;;  %v9649_v30 = vld [vmem:[%s10408_s28 + $0x5cc] ss:$16 sps:$4 sm:$0xff]   ;;  %v9647_v35 = vld [vmem:[%s10408_s28 + $0x5c8] ss:$16 sps:$4 sm:$0xff]  }
 0x1de   : > { %v5725_v2 = vpop.f32.mrf.mxu1  ;;  %6018 = vmatprep.subr.bf16.mxu1 %v9610_v8  ;;  %v9650_v36 = vld [vmem:[%s10408_s28 + $0x6c8] ss:$16 sps:$4 sm:$0xff]   ;;  %v9658_v34 = vld [vmem:[%s10408_s28 + $0x6ac] ss:$16 sps:$4 sm:$0xff]  }
 0x1df   : > { %v9653_v51 = vld [vmem:[%s10408_s28 + $0x5a8] ss:$16 sps:$4 sm:$0xff]   ;;  %v9661_v8 = vld [vmem:[%s10408_s28 + $0x58c] ss:$16 sps:$4 sm:$0xff]  }
 0x1e0   : > { %5994 = vmatpush2.bf16.msra.mxu0 %v9605_v49  ;;  %v9664_v38 = vld [vmem:[%s10408_s28 + $0x68c] ss:$16 sps:$4 sm:$0xff]   ;;  %v9659_v49 = vld [vmem:[%s10408_s28 + $0x588] ss:$16 sps:$4 sm:$0xff]  }
 0x1e1   : > { %6019 = vmatpush1.bf16.msra.mxu1 %v9608_v52  ;;  %5995 = vmatprep.subr.bf16.mxu0 %v9613_v40  ;;  %v9662_v52 = vld [vmem:[%s10408_s28 + $0x688] ss:$16 sps:$4 sm:$0xff]   ;;  %v9670_v15 = vld [vmem:[%s10408_s28 + $0x66c] ss:$16 sps:$4 sm:$0xff]  }
 0x1e2   : > { %6020 = vmatprep.subr.bf16.mxu1 %v9616_v54  ;;  %v9665_v41 = vld [vmem:[%s10408_s28 + $0x568] ss:$16 sps:$4 sm:$0xff]   ;;  %v9673_v2 = vld [vmem:[%s10408_s28 + $0x54c] ss:$16 sps:$4 sm:$0xff]  }
 0x1e3   : > { %v9668_v53 = vld [vmem:[%s10408_s28 + $0x668] ss:$16 sps:$4 sm:$0xff]   ;;  %v9676_v40 = vld [vmem:[%s10408_s28 + $0x64c] ss:$16 sps:$4 sm:$0xff]  }
 0x1e4   : > { %5996 = vmatpush2.bf16.msra.mxu0 %v9611_v19  ;;  %v9671_v54 = vld [vmem:[%s10408_s28 + $0x548] ss:$16 sps:$4 sm:$0xff]  }
 0x1e5   : > { %6021 = vmatpush1.bf16.msra.mxu1 %v9614_v62  ;;  %5997 = vmatprep.subr.bf16.mxu0 %v9619_v55  ;;  %v9674_v19 = vld [vmem:[%s10408_s28 + $0x648] ss:$16 sps:$4 sm:$0xff]   ;;  %v9679_v62 = vld [vmem:[%s10408_s28 + $0x52c] ss:$16 sps:$4 sm:$0xff]  }
 0x1e6   : > { %6022 = vmatprep.subr.bf16.mxu1 %v9622_v37  ;;  %v9682_v55 = vld [vmem:[%s10408_s28 + $0x62c] ss:$16 sps:$4 sm:$0xff]   ;;  %v9677_v37 = vld [vmem:[%s10408_s28 + $0x528] ss:$16 sps:$4 sm:$0xff]  }
 0x1e8   : > { %5998 = vmatpush2.bf16.msra.mxu0 %v9617_v58  ;;  %v9680_v58 = vld [vmem:[%s10408_s28 + $0x628] ss:$16 sps:$4 sm:$0xff]  }
 0x1e9   : > { %6023 = vmatpush1.bf16.msra.mxu1 %v9620_v59  ;;  %5999 = vmatprep.subr.bf16.mxu0 %v9625_v1  ;;  %v9685_v59 = vld [vmem:[%s10408_s28 + $0x50c] ss:$16 sps:$4 sm:$0xff]  }
 0x1ea   : > { %6024 = vmatprep.subr.bf16.mxu1 %v9628_v63  ;;  %v9688_v1 = vld [vmem:[%s10408_s28 + $0x60c] ss:$16 sps:$4 sm:$0xff]   ;;  %v9683_v63 = vld [vmem:[%s10408_s28 + $0x508] ss:$16 sps:$4 sm:$0xff]  }
 0x1ec   : > { %6000 = vmatpush2.bf16.msra.mxu0 %v9623_v0  ;;  %v9686_v0 = vld [vmem:[%s10408_s28 + $0x608] ss:$16 sps:$4 sm:$0xff]  }
 0x1ed   : > { %6025 = vmatpush1.bf16.msra.mxu1 %v9626_v3  ;;  %6001 = vmatprep.subr.bf16.mxu0 %v9631_v4  ;;  %v9691_v3 = vld [vmem:[%s10408_s28 + $0x7ec] ss:$16 sps:$4 sm:$0xff]  }
 0x1ee   : > { %6026 = vmatprep.subr.bf16.mxu1 %v9634_v9  ;;  %v9694_v4 = vld [vmem:[%s10408_s28 + $0x8ec] ss:$16 sps:$4 sm:$0xff]   ;;  %v9689_v9 = vld [vmem:[%s10408_s28 + $0x7e8] ss:$16 sps:$4 sm:$0xff]  }
 0x1f0   : > { %6002 = vmatpush2.bf16.msra.mxu0 %v9629_v10  ;;  %v9692_v10 = vld [vmem:[%s10408_s28 + $0x8e8] ss:$16 sps:$4 sm:$0xff]  }
 0x1f1   : > { %6027 = vmatpush1.bf16.msra.mxu1 %v9632_v11  ;;  %6003 = vmatprep.subr.bf16.mxu0 %v9637_v12  ;;  %v9697_v11 = vld [vmem:[%s10408_s28 + $0x7cc] ss:$16 sps:$4 sm:$0xff]  }
 0x1f2   : > { %6028 = vmatprep.subr.bf16.mxu1 %v9640_v13  ;;  %v9700_v12 = vld [vmem:[%s10408_s28 + $0x8cc] ss:$16 sps:$4 sm:$0xff]  }
 0x1f4   : > { %6004 = vmatpush2.bf16.msra.mxu0 %v9635_v17 }
 0x1f5   : > { %6029 = vmatpush1.bf16.msra.mxu1 %v9638_v60  ;;  %6055 = vmatprep.subr.bf16.mxu0 %v9646_v42  ;;  %v9698_v42 = vld [vmem:[%s10408_s28 + $0x8c8] ss:$16 sps:$4 sm:$0xff]  }
 0x1f6   : > { %6030 = vmatprep.subr.bf16.mxu1 %v9643_v23  ;;  %v9695_v23 = vld [vmem:[%s10408_s28 + $0x7c8] ss:$16 sps:$4 sm:$0xff]  }
 0x1f7   : > { %6006 = vmatmul.mubr.bf16.vlgmr.msra.gmra.mxu0 %v10506_v20  ;;  %v9656_v20 = vld [vmem:[%s10408_s28 + $0x6a8] ss:$16 sps:$4 sm:$0xff]  }
 0x1f8   : > { %6056 = vmatpush1.bf16.msra.mxu0 %v9644_v29  ;;  %6087 = vmatprep.mubr.bf16.mxu0 %v10514_v25  ;;  %v9667_v25 = vld [vmem:[%s10408_s28 + $0x56c] ss:$16 sps:$4 sm:$0xff]  }
 0x1f9   : > { %6031 = vmatpush2.bf16.msra.mxu1 %v9641_v26  ;;  %6057 = vmatprep.subr.bf16.mxu0 %v9652_v31  ;;  %v9706_v31 = vld [vmem:[%s10408_s28 + $0x8ac] ss:$16 sps:$4 sm:$0xff]  }
 0x1fa   : > { %6032 = vmatprep.subr.bf16.mxu1 %v9649_v30  ;;  %v9703_v30 = vld [vmem:[%s10408_s28 + $0x7ac] ss:$16 sps:$4 sm:$0xff]  }
 0x1fc   : > { %6058 = vmatpush1.bf16.msra.mxu0 %v9650_v36 }
 0x1fd   : > { %6033 = vmatpush2.bf16.msra.mxu1 %v9647_v35  ;;  %6059 = vmatprep.subr.bf16.mxu0 %v9658_v34  ;;  %v9701_v34 = vld [vmem:[%s10408_s28 + $0x7a8] ss:$16 sps:$4 sm:$0xff]  }
 0x1fe   : > { %6034 = vmatprep.subr.bf16.mxu1 %v9655_v39 }
 0x200   : > { %6060 = vmatpush1.bf16.msra.mxu0 %v9656_v20 }
 0x201   : > { %6035 = vmatpush2.bf16.msra.mxu1 %v9653_v51  ;;  %6061 = vmatprep.subr.bf16.mxu0 %v9664_v38  ;;  %v9704_v51 = vld [vmem:[%s10408_s28 + $0x8a8] ss:$16 sps:$4 sm:$0xff]  }
 0x202   : > { %6036 = vmatprep.subr.bf16.mxu1 %v9661_v8  ;;  %v9707_v38 = vld [vmem:[%s10408_s28 + $0x788] ss:$16 sps:$4 sm:$0xff]  }
 0x204   : > { %6062 = vmatpush1.bf16.msra.mxu0 %v9662_v52  ;;  %v9715_v52 = vld [vmem:[%s10408_s28 + $0x76c] ss:$16 sps:$4 sm:$0xff]  }
 0x205   : > { %6037 = vmatpush2.bf16.msra.mxu1 %v9659_v49  ;;  %6063 = vmatprep.subr.bf16.mxu0 %v9670_v15  ;;  %v9710_v49 = vld [vmem:[%s10408_s28 + $0x888] ss:$16 sps:$4 sm:$0xff]  }
 0x206   : > { %6038 = vmatprep.subr.bf16.mxu1 %v9667_v25  ;;  %v9718_v25 = vld [vmem:[%s10408_s28 + $0x86c] ss:$16 sps:$4 sm:$0xff]   ;;  %v9713_v15 = vld [vmem:[%s10408_s28 + $0x768] ss:$16 sps:$4 sm:$0xff]  }
 0x208   : > { %6064 = vmatpush1.bf16.msra.mxu0 %v9668_v53  ;;  %v9721_v53 = vld [vmem:[%s10408_s28 + $0x74c] ss:$16 sps:$4 sm:$0xff]  }
 0x209   : > { %6039 = vmatpush2.bf16.msra.mxu1 %v9665_v41  ;;  %6065 = vmatprep.subr.bf16.mxu0 %v9676_v40  ;;  %v9716_v41 = vld [vmem:[%s10408_s28 + $0x868] ss:$16 sps:$4 sm:$0xff]  }
 0x20a   : > { %6040 = vmatprep.subr.bf16.mxu1 %v9673_v2  ;;  %v9724_v2 = vld [vmem:[%s10408_s28 + $0x84c] ss:$16 sps:$4 sm:$0xff]   ;;  %v9719_v40 = vld [vmem:[%s10408_s28 + $0x748] ss:$16 sps:$4 sm:$0xff]  }
 0x20c   : > { %6066 = vmatpush1.bf16.msra.mxu0 %v9674_v19  ;;  %v9727_v19 = vld [vmem:[%s10408_s28 + $0x72c] ss:$16 sps:$4 sm:$0xff]  }
 0x20d   : > { %6041 = vmatpush2.bf16.msra.mxu1 %v9671_v54  ;;  %6067 = vmatprep.subr.bf16.mxu0 %v9682_v55  ;;  %v9722_v54 = vld [vmem:[%s10408_s28 + $0x848] ss:$16 sps:$4 sm:$0xff]  }
 0x20e   : > { %6042 = vmatprep.subr.bf16.mxu1 %v9679_v62  ;;  %v9730_v62 = vld [vmem:[%s10408_s28 + $0x82c] ss:$16 sps:$4 sm:$0xff]   ;;  %v9725_v55 = vld [vmem:[%s10408_s28 + $0x728] ss:$16 sps:$4 sm:$0xff]  }
 0x210   : > { %6068 = vmatpush1.bf16.msra.mxu0 %v9680_v58  ;;  %v9733_v58 = vld [vmem:[%s10408_s28 + $0x70c] ss:$16 sps:$4 sm:$0xff]  }
 0x211   : > { %6043 = vmatpush2.bf16.msra.mxu1 %v9677_v37  ;;  %6069 = vmatprep.subr.bf16.mxu0 %v9688_v1  ;;  %v9728_v37 = vld [vmem:[%s10408_s28 + $0x828] ss:$16 sps:$4 sm:$0xff]  }
 0x212   : > { %6044 = vmatprep.subr.bf16.mxu1 %v9685_v59  ;;  %v9736_v59 = vld [vmem:[%s10408_s28 + $0x80c] ss:$16 sps:$4 sm:$0xff]   ;;  %v9731_v1 = vld [vmem:[%s10408_s28 + $0x708] ss:$16 sps:$4 sm:$0xff]  }
 0x214   : > { %6070 = vmatpush1.bf16.msra.mxu0 %v9686_v0  ;;  %v9739_v0 = vld [vmem:[%s10408_s28 + $0x9ec] ss:$16 sps:$4 sm:$0xff]  }
 0x215   : > { %6045 = vmatpush2.bf16.msra.mxu1 %v9683_v63  ;;  %6071 = vmatprep.subr.bf16.mxu0 %v9691_v3  ;;  %v9734_v63 = vld [vmem:[%s10408_s28 + $0x808] ss:$16 sps:$4 sm:$0xff]   ;;  %v9742_v3 = vld [vmem:[%s10408_s28 + $0xaec] ss:$16 sps:$4 sm:$0xff]  }
 0x216   : > { %6096 = vmatprep.subr.bf16.mxu1 %v9694_v4  ;;  %v9737_v4 = vld [vmem:[%s10408_s28 + $0x9e8] ss:$16 sps:$4 sm:$0xff]  }
 0x217   : > { %v5761_v13 = vpop.f32.mrf.mxu0 }
 0x218   : > { %v5802_v17 = vpop.f32.mrf.mxu1  ;;  %6047 = vmatmul.mubr.bf16.vlgmr.msra.gmra.mxu1 %v10579_v28  ;;  %v5762_v60 = vadd.f32 %v5761_v13, %v11052_v46  ;;  %6072 = vmatpush2.bf16.msra.mxu0 %v9689_v9  ;;  %v9740_v9 = vld [vmem:[%s10408_s28 + $0xae8] ss:$16 sps:$4 sm:$0xff]  }
 0x219   : > { %6097 = vmatpush1.bf16.msra.mxu1 %v9692_v10  ;;  %v5763_v26 = vpop.f32.mrf.mxu0  ;;  %6073 = vmatprep.subr.bf16.mxu0 %v9697_v11  ;;  %v9745_v10 = vld [vmem:[%s10408_s28 + $0x9cc] ss:$16 sps:$4 sm:$0xff]   ;;  %v9746_v13 = vld [vmem:[%s10408_s28 + $0xac8] ss:$16 sps:$4 sm:$0xff]  }
 0x21a   : > { %v5804_v29 = vpop.f32.mrf.mxu1  ;;  %6098 = vmatprep.subr.bf16.mxu1 %v9700_v12  ;;  %v11126_v35 = vadd.f32 %v5802_v17, %v5762_v60  ;;  %v5764_v28 = vadd.f32 %v5763_v26, %v11058_v47  ;;  %6128 = vmatprep.mubr.bf16.mxu1 %v10608_v43  ;;  %v9709_v47 = vld [vmem:[%s10408_s28 + $0x78c] ss:$16 sps:$4 sm:$0xff]   ;;  %v9743_v12 = vld [vmem:[%s10408_s28 + $0x9c8] ss:$16 sps:$4 sm:$0xff]  }
 0x21b   : > { %v5765_v46 = vpop.f32.mrf.mxu0  ;;  %v9712_v43 = vld [vmem:[%s10408_s28 + $0x88c] ss:$16 sps:$4 sm:$0xff]  }
 0x21c   : > { %v5806_v36 = vpop.f32.mrf.mxu1  ;;  %v11130_v39 = vadd.f32 %v5804_v29, %v5764_v28  ;;  %6074 = vmatpush2.bf16.msra.mxu0 %v9695_v23  ;;  %v9748_v11 = vld [vmem:[%s10408_s28 + $0xacc] ss:$16 sps:$4 sm:$0xff]   ;;  %v9749_v23 = vld [vmem:[%s10408_s28 + $0x9a8] ss:$16 sps:$4 sm:$0xff]  }
 0x21d   : > { %6099 = vmatpush1.bf16.msra.mxu1 %v9698_v42  ;;  %v5766_v20 = vpop.f32.mrf.mxu0  ;;  %6075 = vmatprep.subr.bf16.mxu0 %v9703_v30  ;;  %v9751_v17 = vld [vmem:[%s10408_s28 + $0x9ac] ss:$16 sps:$4 sm:$0xff]   ;;  %v9755_v29 = vld [vmem:[%s10408_s28 + $0x988] ss:$16 sps:$4 sm:$0xff]  }
 0x21e   : > { %v5807_v8 = vpop.f32.mrf.mxu1  ;;  %6100 = vmatprep.subr.bf16.mxu1 %v9706_v31  ;;  %v9754_v60 = vld [vmem:[%s10408_s28 + $0xaac] ss:$16 sps:$4 sm:$0xff]   ;;  %v9758_v30 = vld [vmem:[%s10408_s28 + $0xa88] ss:$16 sps:$4 sm:$0xff]  }
 0x21f   : > { %v9757_v42 = vld [vmem:[%s10408_s28 + $0x98c] ss:$16 sps:$4 sm:$0xff]   ;;  %v9761_v28 = vld [vmem:[%s10408_s28 + $0x968] ss:$16 sps:$4 sm:$0xff]  }
 0x220   : > { %6076 = vmatpush2.bf16.msra.mxu0 %v9701_v34  ;;  %v9760_v26 = vld [vmem:[%s10408_s28 + $0xa8c] ss:$16 sps:$4 sm:$0xff]   ;;  %v9764_v46 = vld [vmem:[%s10408_s28 + $0xa68] ss:$16 sps:$4 sm:$0xff]  }
 0x221   : > { %6101 = vmatpush1.bf16.msra.mxu1 %v9704_v51  ;;  %6077 = vmatprep.subr.bf16.mxu0 %v9709_v47  ;;  %v9766_v31 = vld [vmem:[%s10408_s28 + $0xa6c] ss:$16 sps:$4 sm:$0xff]   ;;  %v9767_v51 = vld [vmem:[%s10408_s28 + $0x948] ss:$16 sps:$4 sm:$0xff]  }
 0x222   : > { %6102 = vmatprep.subr.bf16.mxu1 %v9712_v43  ;;  %v9769_v36 = vld [vmem:[%s10408_s28 + $0x94c] ss:$16 sps:$4 sm:$0xff]   ;;  %v9770_v20 = vld [vmem:[%s10408_s28 + $0xa48] ss:$16 sps:$4 sm:$0xff]  }
 0x223   : > { %v9772_v34 = vld [vmem:[%s10408_s28 + $0xa4c] ss:$16 sps:$4 sm:$0xff]   ;;  %v9773_v43 = vld [vmem:[%s10408_s28 + $0x928] ss:$16 sps:$4 sm:$0xff]  }
 0x224   : > { %6078 = vmatpush2.bf16.msra.mxu0 %v9707_v38  ;;  %v9775_v8 = vld [vmem:[%s10408_s28 + $0x92c] ss:$16 sps:$4 sm:$0xff]   ;;  %v9776_v38 = vld [vmem:[%s10408_s28 + $0xa28] ss:$16 sps:$4 sm:$0xff]  }
 0x225   : > { %6103 = vmatpush1.bf16.msra.mxu1 %v9710_v49  ;;  %6079 = vmatprep.subr.bf16.mxu0 %v9715_v52  ;;  %v9778_v47 = vld [vmem:[%s10408_s28 + $0xa2c] ss:$16 sps:$4 sm:$0xff]  }
 0x226   : > { %6104 = vmatprep.subr.bf16.mxu1 %v9718_v25  ;;  %v9781_v49 = vld [vmem:[%s10408_s28 + $0x90c] ss:$16 sps:$4 sm:$0xff]   ;;  %v9779_v25 = vld [vmem:[%s10408_s28 + $0x908] ss:$16 sps:$4 sm:$0xff]  }
 0x227   : > { %v9784_v52 = vld [vmem:[%s10408_s28 + $0xa0c] ss:$16 sps:$4 sm:$0xff]  }
 0x228   : > { %6080 = vmatpush2.bf16.msra.mxu0 %v9713_v15  ;;  %v9782_v15 = vld [vmem:[%s10408_s28 + $0xa08] ss:$16 sps:$4 sm:$0xff]  }
 0x229   : > { %6105 = vmatpush1.bf16.msra.mxu1 %v9716_v41  ;;  %6081 = vmatprep.subr.bf16.mxu0 %v9721_v53  ;;  %v9787_v41 = vld [vmem:[%s10408_s28 + $0xbec] ss:$16 sps:$4 sm:$0xff]  }
 0x22a   : > { %6106 = vmatprep.subr.bf16.mxu1 %v9724_v2  ;;  %v9790_v53 = vld [vmem:[%s10408_s28 + $0xcec] ss:$16 sps:$4 sm:$0xff]   ;;  %v9785_v2 = vld [vmem:[%s10408_s28 + $0xbe8] ss:$16 sps:$4 sm:$0xff]  }
 0x22c   : > { %6082 = vmatpush2.bf16.msra.mxu0 %v9719_v40  ;;  %v9788_v40 = vld [vmem:[%s10408_s28 + $0xce8] ss:$16 sps:$4 sm:$0xff]  }
 0x22d   : > { %6107 = vmatpush1.bf16.msra.mxu1 %v9722_v54  ;;  %6083 = vmatprep.subr.bf16.mxu0 %v9727_v19  ;;  %v9793_v54 = vld [vmem:[%s10408_s28 + $0xbcc] ss:$16 sps:$4 sm:$0xff]  }
 0x22e   : > { %6108 = vmatprep.subr.bf16.mxu1 %v9730_v62  ;;  %v9796_v19 = vld [vmem:[%s10408_s28 + $0xccc] ss:$16 sps:$4 sm:$0xff]  }
 0x230   : > { %6084 = vmatpush2.bf16.msra.mxu0 %v9725_v55 }
 0x231   : > { %6109 = vmatpush1.bf16.msra.mxu1 %v9728_v37  ;;  %6085 = vmatprep.subr.bf16.mxu0 %v9733_v58  ;;  %v9791_v58 = vld [vmem:[%s10408_s28 + $0xbc8] ss:$16 sps:$4 sm:$0xff]  }
 0x232   : > { %6110 = vmatprep.subr.bf16.mxu1 %v9736_v59  ;;  %v9794_v59 = vld [vmem:[%s10408_s28 + $0xcc8] ss:$16 sps:$4 sm:$0xff]  }
 0x234   : > { %6086 = vmatpush2.bf16.msra.mxu0 %v9731_v1 }
 0x235   : > { %6111 = vmatpush1.bf16.msra.mxu1 %v9734_v63  ;;  %6137 = vmatprep.subr.bf16.mxu0 %v9742_v3  ;;  %v9802_v3 = vld [vmem:[%s10408_s28 + $0xcac] ss:$16 sps:$4 sm:$0xff]  }
 0x236   : > { %6112 = vmatprep.subr.bf16.mxu1 %v9739_v0  ;;  %v9799_v0 = vld [vmem:[%s10408_s28 + $0xbac] ss:$16 sps:$4 sm:$0xff]  }
 0x237   : > { %6088 = vmatmul.mubr.bf16.vlgmr.msra.gmra.mxu0 %v10586_v32  ;;  %v9752_v32 = vld [vmem:[%s10408_s28 + $0xaa8] ss:$16 sps:$4 sm:$0xff]  }
 0x238   : > { %6138 = vmatpush1.bf16.msra.mxu0 %v9740_v9  ;;  %6169 = vmatprep.mubr.bf16.mxu0 %v10613_v44  ;;  %v9763_v44 = vld [vmem:[%s10408_s28 + $0x96c] ss:$16 sps:$4 sm:$0xff]  }
 0x239   : > { %6113 = vmatpush2.bf16.msra.mxu1 %v9737_v4  ;;  %6139 = vmatprep.subr.bf16.mxu0 %v9748_v11  ;;  %v9797_v11 = vld [vmem:[%s10408_s28 + $0xba8] ss:$16 sps:$4 sm:$0xff]  }
 0x23a   : > { %6114 = vmatprep.subr.bf16.mxu1 %v9745_v10 }
 0x23c   : > { %6140 = vmatpush1.bf16.msra.mxu0 %v9746_v13 }
 0x23d   : > { %6115 = vmatpush2.bf16.msra.mxu1 %v9743_v12  ;;  %6141 = vmatprep.subr.bf16.mxu0 %v9754_v60  ;;  %v9800_v12 = vld [vmem:[%s10408_s28 + $0xca8] ss:$16 sps:$4 sm:$0xff]  }
 0x23e   : > { %6116 = vmatprep.subr.bf16.mxu1 %v9751_v17  ;;  %v9803_v60 = vld [vmem:[%s10408_s28 + $0xb88] ss:$16 sps:$4 sm:$0xff]  }
 0x240   : > { %6142 = vmatpush1.bf16.msra.mxu0 %v9752_v32  ;;  %v9811_v32 = vld [vmem:[%s10408_s28 + $0xb6c] ss:$16 sps:$4 sm:$0xff]  }
 0x241   : > { %6117 = vmatpush2.bf16.msra.mxu1 %v9749_v23  ;;  %6143 = vmatprep.subr.bf16.mxu0 %v9760_v26  ;;  %v9806_v23 = vld [vmem:[%s10408_s28 + $0xc88] ss:$16 sps:$4 sm:$0xff]  }
 0x242   : > { %6118 = vmatprep.subr.bf16.mxu1 %v9757_v42  ;;  %v9814_v42 = vld [vmem:[%s10408_s28 + $0xc6c] ss:$16 sps:$4 sm:$0xff]   ;;  %v9809_v26 = vld [vmem:[%s10408_s28 + $0xb68] ss:$16 sps:$4 sm:$0xff]  }
 0x244   : > { %6144 = vmatpush1.bf16.msra.mxu0 %v9758_v30  ;;  %v9817_v30 = vld [vmem:[%s10408_s28 + $0xb4c] ss:$16 sps:$4 sm:$0xff]  }
 0x245   : > { %6119 = vmatpush2.bf16.msra.mxu1 %v9755_v29  ;;  %6145 = vmatprep.subr.bf16.mxu0 %v9766_v31  ;;  %v9812_v29 = vld [vmem:[%s10408_s28 + $0xc68] ss:$16 sps:$4 sm:$0xff]  }
 0x246   : > { %6120 = vmatprep.subr.bf16.mxu1 %v9763_v44  ;;  %v9820_v44 = vld [vmem:[%s10408_s28 + $0xc4c] ss:$16 sps:$4 sm:$0xff]   ;;  %v9815_v31 = vld [vmem:[%s10408_s28 + $0xb48] ss:$16 sps:$4 sm:$0xff]  }
 0x248   : > { %6146 = vmatpush1.bf16.msra.mxu0 %v9764_v46  ;;  %v9823_v46 = vld [vmem:[%s10408_s28 + $0xb2c] ss:$16 sps:$4 sm:$0xff]  }
 0x249   : > { %6121 = vmatpush2.bf16.msra.mxu1 %v9761_v28  ;;  %6147 = vmatprep.subr.bf16.mxu0 %v9772_v34  ;;  %v9818_v28 = vld [vmem:[%s10408_s28 + $0xc48] ss:$16 sps:$4 sm:$0xff]  }
 0x24a   : > { %6122 = vmatprep.subr.bf16.mxu1 %v9769_v36  ;;  %v9826_v36 = vld [vmem:[%s10408_s28 + $0xc2c] ss:$16 sps:$4 sm:$0xff]   ;;  %v9821_v34 = vld [vmem:[%s10408_s28 + $0xb28] ss:$16 sps:$4 sm:$0xff]  }
 0x24c   : > { %6148 = vmatpush1.bf16.msra.mxu0 %v9770_v20  ;;  %v9829_v20 = vld [vmem:[%s10408_s28 + $0xb0c] ss:$16 sps:$4 sm:$0xff]  }
 0x24d   : > { %6123 = vmatpush2.bf16.msra.mxu1 %v9767_v51  ;;  %6149 = vmatprep.subr.bf16.mxu0 %v9778_v47  ;;  %v9824_v51 = vld [vmem:[%s10408_s28 + $0xc28] ss:$16 sps:$4 sm:$0xff]  }
 0x24e   : > { %6124 = vmatprep.subr.bf16.mxu1 %v9775_v8  ;;  %v9832_v8 = vld [vmem:[%s10408_s28 + $0xc0c] ss:$16 sps:$4 sm:$0xff]   ;;  %v9827_v47 = vld [vmem:[%s10408_s28 + $0xb08] ss:$16 sps:$4 sm:$0xff]  }
 0x250   : > { %6150 = vmatpush1.bf16.msra.mxu0 %v9776_v38  ;;  %v9835_v38 = vld [vmem:[%s10408_s28 + $0xdec] ss:$16 sps:$4 sm:$0xff]  }
 0x251   : > { %6125 = vmatpush2.bf16.msra.mxu1 %v9773_v43  ;;  %6151 = vmatprep.subr.bf16.mxu0 %v9784_v52  ;;  %v9830_v43 = vld [vmem:[%s10408_s28 + $0xc08] ss:$16 sps:$4 sm:$0xff]  }
 0x252   : > { %6126 = vmatprep.subr.bf16.mxu1 %v9781_v49  ;;  %v9838_v49 = vld [vmem:[%s10408_s28 + $0xeec] ss:$16 sps:$4 sm:$0xff]   ;;  %v9833_v52 = vld [vmem:[%s10408_s28 + $0xde8] ss:$16 sps:$4 sm:$0xff]  }
 0x254   : > { %6152 = vmatpush1.bf16.msra.mxu0 %v9782_v15  ;;  %v9841_v15 = vld [vmem:[%s10408_s28 + $0xdcc] ss:$16 sps:$4 sm:$0xff]  }
 0x255   : > { %6127 = vmatpush2.bf16.msra.mxu1 %v9779_v25  ;;  %6153 = vmatprep.subr.bf16.mxu0 %v9787_v41  ;;  %v9836_v25 = vld [vmem:[%s10408_s28 + $0xee8] ss:$16 sps:$4 sm:$0xff]   ;;  %v9844_v41 = vld [vmem:[%s10408_s28 + $0xecc] ss:$16 sps:$4 sm:$0xff]  }
 0x256   : > { %6178 = vmatprep.subr.bf16.mxu1 %v9790_v53 }
 0x257   : > { %v5843_v62 = vpop.f32.mrf.mxu0 }
 0x258   : > { %v5884_v55 = vpop.f32.mrf.mxu1  ;;  %6129 = vmatmul.mubr.bf16.vlgmr.msra.gmra.mxu1 %v10677_v50  ;;  %v5844_v37 = vadd.f32 %v5843_v62, %v11126_v35  ;;  %6154 = vmatpush2.bf16.msra.mxu0 %v9785_v2  ;;  %v9847_v62 = vld [vmem:[%s10408_s28 + $0xdac] ss:$16 sps:$4 sm:$0xff]  }
 0x259   : > { %6179 = vmatpush1.bf16.msra.mxu1 %v9788_v40  ;;  %v5845_v1 = vpop.f32.mrf.mxu0  ;;  %6155 = vmatprep.subr.bf16.mxu0 %v9793_v54  ;;  %v9839_v40 = vld [vmem:[%s10408_s28 + $0xdc8] ss:$16 sps:$4 sm:$0xff]  }
 0x25a   : > { %v5886_v63 = vpop.f32.mrf.mxu1  ;;  %6180 = vmatprep.subr.bf16.mxu1 %v9796_v19  ;;  %v11200_v4 = vadd.f32 %v5884_v55, %v5844_v37  ;;  %v5846_v50 = vadd.f32 %v5845_v1, %v11130_v39  ;;  %6210 = vmatprep.mubr.bf16.mxu1 %v10684_v56  ;;  %v9805_v39 = vld [vmem:[%s10408_s28 + $0xb8c] ss:$16 sps:$4 sm:$0xff]   ;;  %v9842_v54 = vld [vmem:[%s10408_s28 + $0xec8] ss:$16 sps:$4 sm:$0xff]  }
 0x25b   : > { %v5847_v35 = vpop.f32.mrf.mxu0  ;;  %v9808_v56 = vld [vmem:[%s10408_s28 + $0xc8c] ss:$16 sps:$4 sm:$0xff]   ;;  %v9848_v1 = vld [vmem:[%s10408_s28 + $0xea8] ss:$16 sps:$4 sm:$0xff]  }
 0x25c   : > { %v5888_v9 = vpop.f32.mrf.mxu1  ;;  %v11204_v10 = vadd.f32 %v5886_v63, %v5846_v50  ;;  %6156 = vmatpush2.bf16.msra.mxu0 %v9791_v58  ;;  %v9850_v55 = vld [vmem:[%s10408_s28 + $0xeac] ss:$16 sps:$4 sm:$0xff]  }
 0x25d   : > { %6181 = vmatpush1.bf16.msra.mxu1 %v9794_v59  ;;  %v5848_v13 = vpop.f32.mrf.mxu0  ;;  %6157 = vmatprep.subr.bf16.mxu0 %v9799_v0  ;;  %v9845_v59 = vld [vmem:[%s10408_s28 + $0xda8] ss:$16 sps:$4 sm:$0xff]   ;;  %v9853_v0 = vld [vmem:[%s10408_s28 + $0xd8c] ss:$16 sps:$4 sm:$0xff]  }
 0x25e   : > { %v5889_v17 = vpop.f32.mrf.mxu1  ;;  %6182 = vmatprep.subr.bf16.mxu1 %v9802_v3  ;;  %v9856_v3 = vld [vmem:[%s10408_s28 + $0xe8c] ss:$16 sps:$4 sm:$0xff]   ;;  %v9857_v9 = vld [vmem:[%s10408_s28 + $0xd68] ss:$16 sps:$4 sm:$0xff]  }
 0x25f   : > { %v9859_v50 = vld [vmem:[%s10408_s28 + $0xd6c] ss:$16 sps:$4 sm:$0xff]   ;;  %v9863_v13 = vld [vmem:[%s10408_s28 + $0xd48] ss:$16 sps:$4 sm:$0xff]  }
 0x260   : > { %6158 = vmatpush2.bf16.msra.mxu0 %v9797_v11  ;;  %v9862_v35 = vld [vmem:[%s10408_s28 + $0xe6c] ss:$16 sps:$4 sm:$0xff]   ;;  %v9866_v17 = vld [vmem:[%s10408_s28 + $0xe48] ss:$16 sps:$4 sm:$0xff]  }
 0x261   : > { %6183 = vmatpush1.bf16.msra.mxu1 %v9800_v12  ;;  %6159 = vmatprep.subr.bf16.mxu0 %v9805_v39  ;;  %v9865_v11 = vld [vmem:[%s10408_s28 + $0xd4c] ss:$16 sps:$4 sm:$0xff]  }
 0x262   : > { %6184 = vmatprep.subr.bf16.mxu1 %v9808_v56  ;;  %v9868_v12 = vld [vmem:[%s10408_s28 + $0xe4c] ss:$16 sps:$4 sm:$0xff]  }
 0x263   : > { %v9871_v39 = vld [vmem:[%s10408_s28 + $0xd2c] ss:$16 sps:$4 sm:$0xff]  }
 0x264   : > { %6160 = vmatpush2.bf16.msra.mxu0 %v9803_v60  ;;  %v9874_v56 = vld [vmem:[%s10408_s28 + $0xe2c] ss:$16 sps:$4 sm:$0xff]   ;;  %v9869_v60 = vld [vmem:[%s10408_s28 + $0xd28] ss:$16 sps:$4 sm:$0xff]  }
 0x265   : > { %6185 = vmatpush1.bf16.msra.mxu1 %v9806_v23  ;;  %6161 = vmatprep.subr.bf16.mxu0 %v9811_v32  ;;  %v9872_v23 = vld [vmem:[%s10408_s28 + $0xe28] ss:$16 sps:$4 sm:$0xff]   ;;  %v9877_v32 = vld [vmem:[%s10408_s28 + $0xd0c] ss:$16 sps:$4 sm:$0xff]  }
 0x266   : > { %6186 = vmatprep.subr.bf16.mxu1 %v9814_v42  ;;  %v9880_v42 = vld [vmem:[%s10408_s28 + $0xe0c] ss:$16 sps:$4 sm:$0xff]  }
 0x268   : > { %6162 = vmatpush2.bf16.msra.mxu0 %v9809_v26  ;;  %v9875_v26 = vld [vmem:[%s10408_s28 + $0xd08] ss:$16 sps:$4 sm:$0xff]  }
 0x269   : > { %6187 = vmatpush1.bf16.msra.mxu1 %v9812_v29  ;;  %6163 = vmatprep.subr.bf16.mxu0 %v9817_v30  ;;  %v9878_v29 = vld [vmem:[%s10408_s28 + $0xe08] ss:$16 sps:$4 sm:$0xff]   ;;  %v9883_v30 = vld [vmem:[%s10408_s28 + $0xfec] ss:$16 sps:$4 sm:$0xff]  }
 0x26a   : > { %6188 = vmatprep.subr.bf16.mxu1 %v9820_v44  ;;  %v9886_v44 = vld [vmem:[%s10408_s28 + $0x10ec] ss:$16 sps:$4 sm:$0xff]  }
 0x26c   : > { %6164 = vmatpush2.bf16.msra.mxu0 %v9815_v31  ;;  %v9881_v31 = vld [vmem:[%s10408_s28 + $0xfe8] ss:$16 sps:$4 sm:$0xff]  }
 0x26d   : > { %6189 = vmatpush1.bf16.msra.mxu1 %v9818_v28  ;;  %6165 = vmatprep.subr.bf16.mxu0 %v9823_v46  ;;  %v9884_v28 = vld [vmem:[%s10408_s28 + $0x10e8] ss:$16 sps:$4 sm:$0xff]   ;;  %v9889_v46 = vld [vmem:[%s10408_s28 + $0xfcc] ss:$16 sps:$4 sm:$0xff]  }
 0x26e   : > { %6190 = vmatprep.subr.bf16.mxu1 %v9826_v36  ;;  %v9892_v36 = vld [vmem:[%s10408_s28 + $0x10cc] ss:$16 sps:$4 sm:$0xff]  }
 0x270   : > { %6166 = vmatpush2.bf16.msra.mxu0 %v9821_v34 }
 0x271   : > { %6191 = vmatpush1.bf16.msra.mxu1 %v9824_v51  ;;  %6167 = vmatprep.subr.bf16.mxu0 %v9829_v20  ;;  %v9887_v51 = vld [vmem:[%s10408_s28 + $0xfc8] ss:$16 sps:$4 sm:$0xff]  }
 0x272   : > { %6192 = vmatprep.subr.bf16.mxu1 %v9832_v8  ;;  %v9890_v20 = vld [vmem:[%s10408_s28 + $0x10c8] ss:$16 sps:$4 sm:$0xff]  }
 0x274   : > { %6168 = vmatpush2.bf16.msra.mxu0 %v9827_v47  ;;  %v9895_v47 = vld [vmem:[%s10408_s28 + $0xfac] ss:$16 sps:$4 sm:$0xff]  }
 0x275   : > { %6193 = vmatpush1.bf16.msra.mxu1 %v9830_v43  ;;  %6219 = vmatprep.subr.bf16.mxu0 %v9838_v49  ;;  %v9898_v43 = vld [vmem:[%s10408_s28 + $0x10ac] ss:$16 sps:$4 sm:$0xff]   ;;  %v9896_v49 = vld [vmem:[%s10408_s28 + $0x10a8] ss:$16 sps:$4 sm:$0xff]  }
 0x276   : > { %6194 = vmatprep.subr.bf16.mxu1 %v9835_v38 }
 0x277   : > { %v5925_v53 = vpop.f32.mrf.mxu0  ;;  %6170 = vmatmul.mubr.bf16.vlgmr.msra.gmra.mxu0 %v10688_v57 }
 0x278   : > { %v11236_v2 = vadd.f32 %v5925_v53, %v11200_v4  ;;  %6220 = vmatpush1.bf16.msra.mxu0 %v9836_v25  ;;  %6251 = vmatprep.mubr.bf16.mxu0 %v10696_v61  ;;  %v9851_v61 = vld [vmem:[%s10408_s28 + $0xd88] ss:$16 sps:$4 sm:$0xff]   ;;  %v9901_v25 = vld [vmem:[%s10408_s28 + $0xf8c] ss:$16 sps:$4 sm:$0xff]  }
 0x279   : > { %6195 = vmatpush2.bf16.msra.mxu1 %v9833_v52  ;;  %v5927_v19 = vpop.f32.mrf.mxu0  ;;  %6221 = vmatprep.subr.bf16.mxu0 %v9844_v41  ;;  %v9854_v4 = vld [vmem:[%s10408_s28 + $0xe88] ss:$16 sps:$4 sm:$0xff]   ;;  %v9907_v53 = vld [vmem:[%s10408_s28 + $0xf6c] ss:$16 sps:$4 sm:$0xff]  }
 0x27a   : > { %6196 = vmatprep.subr.bf16.mxu1 %v9841_v15  ;;  %v11243_v37 = vadd.f32 %v5927_v19, %v11204_v10  ;;  %v9860_v10 = vld [vmem:[%s10408_s28 + $0xe68] ss:$16 sps:$4 sm:$0xff]   ;;  %v9904_v15 = vld [vmem:[%s10408_s28 + $0x108c] ss:$16 sps:$4 sm:$0xff]  }
 0x27b   : > { %v5929_v57 = vpop.f32.mrf.mxu0  ;;  %v9899_v41 = vld [vmem:[%s10408_s28 + $0xf88] ss:$16 sps:$4 sm:$0xff]  }
 0x27c   : > { %v6469_v58 = vcombine.low %v11236_v2, %v11243_v37  ;;  %6222 = vmatpush1.bf16.msra.mxu0 %v9842_v54  ;;  %v9905_v54 = vld [vmem:[%s10408_s28 + $0xf68] ss:$16 sps:$4 sm:$0xff]  }
 0x27d   : > { %6197 = vmatpush2.bf16.msra.mxu1 %v9839_v40  ;;  %v5930_v63 = vpop.f32.mrf.mxu0  ;;  %6223 = vmatprep.subr.bf16.mxu0 %v9850_v55  ;;  %v9910_v40 = vld [vmem:[%s10408_s28 + $0x106c] ss:$16 sps:$4 sm:$0xff]   ;;  %v9908_v19 = vld [vmem:[%s10408_s28 + $0x1068] ss:$16 sps:$4 sm:$0xff]  }
 0x27e   : > { %6198 = vmatprep.subr.bf16.mxu1 %v9847_v62  ;;  %v9913_v62 = vld [vmem:[%s10408_s28 + $0xf4c] ss:$16 sps:$4 sm:$0xff]   ;;  %v9911_v57 = vld [vmem:[%s10408_s28 + $0xf48] ss:$16 sps:$4 sm:$0xff]  }
 0x27f   : > { %v9916_v55 = vld [vmem:[%s10408_s28 + $0x104c] ss:$16 sps:$4 sm:$0xff]  }
 0x280   : > { %6224 = vmatpush1.bf16.msra.mxu0 %v9848_v1  ;;  %v9919_v1 = vld [vmem:[%s10408_s28 + $0xf2c] ss:$16 sps:$4 sm:$0xff]  }
 0x281   : > { %6199 = vmatpush2.bf16.msra.mxu1 %v9845_v59  ;;  %6225 = vmatprep.subr.bf16.mxu0 %v9856_v3  ;;  %v9914_v59 = vld [vmem:[%s10408_s28 + $0x1048] ss:$16 sps:$4 sm:$0xff]   ;;  %v9922_v63 = vld [vmem:[%s10408_s28 + $0x102c] ss:$16 sps:$4 sm:$0xff]  }
 0x282   : > { %6200 = vmatprep.subr.bf16.mxu1 %v9853_v0  ;;  %v9917_v0 = vld [vmem:[%s10408_s28 + $0xf28] ss:$16 sps:$4 sm:$0xff]  }
 0x283   : > { %v9920_v3 = vld [vmem:[%s10408_s28 + $0x1028] ss:$16 sps:$4 sm:$0xff]  }
 0x284   : > { %6226 = vmatpush1.bf16.msra.mxu0 %v9854_v4  ;;  %v9928_v4 = vld [vmem:[%s10408_s28 + $0x100c] ss:$16 sps:$4 sm:$0xff]  }
 0x285   : > { %6201 = vmatpush2.bf16.msra.mxu1 %v9851_v61  ;;  %6227 = vmatprep.subr.bf16.mxu0 %v9862_v35  ;;  %v9925_v61 = vld [vmem:[%s10408_s28 + $0xf0c] ss:$16 sps:$4 sm:$0xff]   ;;  %v9926_v35 = vld [vmem:[%s10408_s28 + $0x1008] ss:$16 sps:$4 sm:$0xff]  }
 0x286   : > { %6202 = vmatprep.subr.bf16.mxu1 %v9859_v50  ;;  %v9923_v50 = vld [vmem:[%s10408_s28 + $0xf08] ss:$16 sps:$4 sm:$0xff]  }
 0x288   : > { %6228 = vmatpush1.bf16.msra.mxu0 %v9860_v10  ;;  %v9934_v10 = vld [vmem:[%s10408_s28 + $0x12ec] ss:$16 sps:$4 sm:$0xff]  }
 0x289   : > { %6203 = vmatpush2.bf16.msra.mxu1 %v9857_v9  ;;  %6229 = vmatprep.subr.bf16.mxu0 %v9868_v12  ;;  %v9931_v9 = vld [vmem:[%s10408_s28 + $0x11ec] ss:$16 sps:$4 sm:$0xff]   ;;  %v9932_v12 = vld [vmem:[%s10408_s28 + $0x12e8] ss:$16 sps:$4 sm:$0xff]  }
 0x28a   : > { %6204 = vmatprep.subr.bf16.mxu1 %v9865_v11  ;;  %v9929_v11 = vld [vmem:[%s10408_s28 + $0x11e8] ss:$16 sps:$4 sm:$0xff]  }
 0x28c   : > { %6230 = vmatpush1.bf16.msra.mxu0 %v9866_v17  ;;  %v9940_v17 = vld [vmem:[%s10408_s28 + $0x12cc] ss:$16 sps:$4 sm:$0xff]  }
 0x28d   : > { %6205 = vmatpush2.bf16.msra.mxu1 %v9863_v13  ;;  %6231 = vmatprep.subr.bf16.mxu0 %v9874_v56  ;;  %v9937_v13 = vld [vmem:[%s10408_s28 + $0x11cc] ss:$16 sps:$4 sm:$0xff]  }
 0x28e   : > { %6206 = vmatprep.subr.bf16.mxu1 %v9871_v39 }
 0x290   : > { %6232 = vmatpush1.bf16.msra.mxu0 %v9872_v23  ;;  %v9938_v23 = vld [vmem:[%s10408_s28 + $0x12c8] ss:$16 sps:$4 sm:$0xff]  }
 0x291   : > { %6207 = vmatpush2.bf16.msra.mxu1 %v9869_v60  ;;  %6233 = vmatprep.subr.bf16.mxu0 %v9880_v42  ;;  %v9935_v60 = vld [vmem:[%s10408_s28 + $0x11c8] ss:$16 sps:$4 sm:$0xff]   ;;  %v9943_v42 = vld [vmem:[%s10408_s28 + $0x11ac] ss:$16 sps:$4 sm:$0xff]  }
 0x292   : > { %6208 = vmatprep.subr.bf16.mxu1 %v9877_v32 }
 0x294   : > { %6234 = vmatpush1.bf16.msra.mxu0 %v9878_v29 }
 0x295   : > { %6209 = vmatpush2.bf16.msra.mxu1 %v9875_v26  ;;  %6235 = vmatprep.subr.bf16.mxu0 %v9883_v30  ;;  %v9946_v26 = vld [vmem:[%s10408_s28 + $0x12ac] ss:$16 sps:$4 sm:$0xff]   ;;  %v9941_v30 = vld [vmem:[%s10408_s28 + $0x11a8] ss:$16 sps:$4 sm:$0xff]  }
 0x296   : > { %6260 = vmatprep.subr.bf16.mxu1 %v9886_v44  ;;  %v9944_v44 = vld [vmem:[%s10408_s28 + $0x12a8] ss:$16 sps:$4 sm:$0xff]  }
 0x298   : > { %v11276_v34 = vpop.f32.mrf.mxu1  ;;  %6211 = vmatmul.mubr.bf16.vlgmr.msra.gmra.mxu1 %v10770_v14  ;;  %6236 = vmatpush2.bf16.msra.mxu0 %v9881_v31  ;;  %v9893_v14 = vld [vmem:[%s10408_s28 + $0xfa8] ss:$16 sps:$4 sm:$0xff]  }
 0x299   : > { %6261 = vmatpush1.bf16.msra.mxu1 %v9884_v28  ;;  %6237 = vmatprep.subr.bf16.mxu0 %v9889_v46  ;;  %v9949_v28 = vld [vmem:[%s10408_s28 + $0x118c] ss:$16 sps:$4 sm:$0xff]  }
 0x29a   : > { %v11281_v8 = vpop.f32.mrf.mxu1  ;;  %6262 = vmatprep.subr.bf16.mxu1 %v9892_v36  ;;  %6292 = vmatprep.mubr.bf16.mxu1 %v10776_v21  ;;  %v9902_v21 = vld [vmem:[%s10408_s28 + $0x1088] ss:$16 sps:$4 sm:$0xff]   ;;  %v9952_v46 = vld [vmem:[%s10408_s28 + $0x128c] ss:$16 sps:$4 sm:$0xff]  }
 0x29b   : > { %v9947_v36 = vld [vmem:[%s10408_s28 + $0x1188] ss:$16 sps:$4 sm:$0xff]  }
 0x29c   : > { %v5970_v38 = vpop.f32.mrf.mxu1  ;;  %6238 = vmatpush2.bf16.msra.mxu0 %v9887_v51  ;;  %v9958_v51 = vld [vmem:[%s10408_s28 + $0x126c] ss:$16 sps:$4 sm:$0xff]  }
 0x29d   : > { %6263 = vmatpush1.bf16.msra.mxu1 %v9890_v20  ;;  %6239 = vmatprep.subr.bf16.mxu0 %v9895_v47  ;;  %v9953_v20 = vld [vmem:[%s10408_s28 + $0x1168] ss:$16 sps:$4 sm:$0xff]   ;;  %v9961_v47 = vld [vmem:[%s10408_s28 + $0x114c] ss:$16 sps:$4 sm:$0xff]  }
 0x29e   : > { %v5971_v52 = vpop.f32.mrf.mxu1  ;;  %6264 = vmatprep.subr.bf16.mxu1 %v9898_v43  ;;  %v9964_v43 = vld [vmem:[%s10408_s28 + $0x124c] ss:$16 sps:$4 sm:$0xff]   ;;  %v9959_v38 = vld [vmem:[%s10408_s28 + $0x1148] ss:$16 sps:$4 sm:$0xff]  }
 0x29f   : > { %v9970_v52 = vld [vmem:[%s10408_s28 + $0x122c] ss:$16 sps:$4 sm:$0xff]  }
 0x2a0   : > { %6240 = vmatpush2.bf16.msra.mxu0 %v9893_v14  ;;  %v9962_v14 = vld [vmem:[%s10408_s28 + $0x1248] ss:$16 sps:$4 sm:$0xff]  }
 0x2a1   : > { %6265 = vmatpush1.bf16.msra.mxu1 %v9896_v49  ;;  %6241 = vmatprep.subr.bf16.mxu0 %v9901_v25  ;;  %v9967_v49 = vld [vmem:[%s10408_s28 + $0x112c] ss:$16 sps:$4 sm:$0xff]   ;;  %v9965_v25 = vld [vmem:[%s10408_s28 + $0x1128] ss:$16 sps:$4 sm:$0xff]  }
 0x2a2   : > { %6266 = vmatprep.subr.bf16.mxu1 %v9904_v15  ;;  %v9968_v15 = vld [vmem:[%s10408_s28 + $0x1228] ss:$16 sps:$4 sm:$0xff]  }
 0x2a4   : > { %6242 = vmatpush2.bf16.msra.mxu0 %v9899_v41  ;;  %v9973_v41 = vld [vmem:[%s10408_s28 + $0x110c] ss:$16 sps:$4 sm:$0xff]  }
 0x2a5   : > { %6267 = vmatpush1.bf16.msra.mxu1 %v9902_v21  ;;  %6243 = vmatprep.subr.bf16.mxu0 %v9907_v53  ;;  %v9976_v21 = vld [vmem:[%s10408_s28 + $0x120c] ss:$16 sps:$4 sm:$0xff]   ;;  %v9971_v53 = vld [vmem:[%s10408_s28 + $0x1108] ss:$16 sps:$4 sm:$0xff]  }
 0x2a6   : > { %6268 = vmatprep.subr.bf16.mxu1 %v9910_v40  ;;  %v9974_v40 = vld [vmem:[%s10408_s28 + $0x1208] ss:$16 sps:$4 sm:$0xff]  }
 0x2a8   : > { %6244 = vmatpush2.bf16.msra.mxu0 %v9905_v54  ;;  %v9979_v54 = vld [vmem:[%s10408_s28 + $0x13ec] ss:$16 sps:$4 sm:$0xff]  }
 0x2a9   : > { %6269 = vmatpush1.bf16.msra.mxu1 %v9908_v19  ;;  %6245 = vmatprep.subr.bf16.mxu0 %v9913_v62  ;;  %v9982_v19 = vld [vmem:[%s10408_s28 + $0x14ec] ss:$16 sps:$4 sm:$0xff]   ;;  %v9977_v62 = vld [vmem:[%s10408_s28 + $0x13e8] ss:$16 sps:$4 sm:$0xff]  }
 0x2aa   : > { %6270 = vmatprep.subr.bf16.mxu1 %v9916_v55  ;;  %v9980_v55 = vld [vmem:[%s10408_s28 + $0x14e8] ss:$16 sps:$4 sm:$0xff]  }
 0x2ac   : > { %6246 = vmatpush2.bf16.msra.mxu0 %v9911_v57  ;;  %v9985_v57 = vld [vmem:[%s10408_s28 + $0x13cc] ss:$16 sps:$4 sm:$0xff]  }
 0x2ad   : > { %6271 = vmatpush1.bf16.msra.mxu1 %v9914_v59  ;;  %6247 = vmatprep.subr.bf16.mxu0 %v9919_v1  ;;  %v9988_v59 = vld [vmem:[%s10408_s28 + $0x14cc] ss:$16 sps:$4 sm:$0xff]  }
 0x2ae   : > { %6272 = vmatprep.subr.bf16.mxu1 %v9922_v63 }
 0x2b0   : > { %6248 = vmatpush2.bf16.msra.mxu0 %v9917_v0  ;;  %v9983_v0 = vld [vmem:[%s10408_s28 + $0x13c8] ss:$16 sps:$4 sm:$0xff]  }
 0x2b1   : > { %6273 = vmatpush1.bf16.msra.mxu1 %v9920_v3  ;;  %6249 = vmatprep.subr.bf16.mxu0 %v9925_v61  ;;  %v9986_v3 = vld [vmem:[%s10408_s28 + $0x14c8] ss:$16 sps:$4 sm:$0xff]  }
 0x2b2   : > { %6274 = vmatprep.subr.bf16.mxu1 %v9928_v4  ;;  %v9991_v4 = vld [vmem:[%s10408_s28 + $0x13ac] ss:$16 sps:$4 sm:$0xff]  }
 0x2b4   : > { %6250 = vmatpush2.bf16.msra.mxu0 %v9923_v50  ;;  %v9994_v50 = vld [vmem:[%s10408_s28 + $0x14ac] ss:$16 sps:$4 sm:$0xff]  }
 0x2b5   : > { %6275 = vmatpush1.bf16.msra.mxu1 %v9926_v35  ;;  %6301 = vmatprep.subr.bf16.mxu0 %v9934_v10  ;;  %v9992_v10 = vld [vmem:[%s10408_s28 + $0x14a8] ss:$16 sps:$4 sm:$0xff]  }
 0x2b6   : > { %6276 = vmatprep.subr.bf16.mxu1 %v9931_v9  ;;  %v9989_v9 = vld [vmem:[%s10408_s28 + $0x13a8] ss:$16 sps:$4 sm:$0xff]  }
 0x2b7   : > { %v6007_v39 = vpop.f32.mrf.mxu0  ;;  %6252 = vmatmul.mubr.bf16.vlgmr.msra.gmra.mxu0 %v10780_v22 }
 0x2b8   : > { %v11316_v56 = vadd.f32 %v6007_v39, %v11276_v34  ;;  %6302 = vmatpush1.bf16.msra.mxu0 %v9932_v12  ;;  %6333 = vmatprep.mubr.bf16.mxu0 %v10788_v27  ;;  %v9950_v27 = vld [vmem:[%s10408_s28 + $0x1288] ss:$16 sps:$4 sm:$0xff]   ;;  %v9955_v34 = vld [vmem:[%s10408_s28 + $0x116c] ss:$16 sps:$4 sm:$0xff]  }
 0x2b9   : > { %6277 = vmatpush2.bf16.msra.mxu1 %v9929_v11  ;;  %v6009_v32 = vpop.f32.mrf.mxu0  ;;  %6303 = vmatprep.subr.bf16.mxu0 %v9940_v17  ;;  %v9997_v12 = vld [vmem:[%s10408_s28 + $0x138c] ss:$16 sps:$4 sm:$0xff]   ;;  %v9995_v17 = vld [vmem:[%s10408_s28 + $0x1388] ss:$16 sps:$4 sm:$0xff]  }
 0x2ba   : > { %6278 = vmatprep.subr.bf16.mxu1 %v9937_v13  ;;  %v11323_v22 = vadd.f32 %v6009_v32, %v11281_v8  ;;  %v9956_v8 = vld [vmem:[%s10408_s28 + $0x1268] ss:$16 sps:$4 sm:$0xff]   ;;  %v10000_v13 = vld [vmem:[%s10408_s28 + $0x148c] ss:$16 sps:$4 sm:$0xff]  }
 0x2bb   : > { %v6011_v29 = vpop.f32.mrf.mxu0  ;;  %v10003_v39 = vld [vmem:[%s10408_s28 + $0x136c] ss:$16 sps:$4 sm:$0xff]  }
 0x2bc   : > { %6304 = vmatpush1.bf16.msra.mxu0 %v9938_v23  ;;  %v10004_v23 = vld [vmem:[%s10408_s28 + $0x1468] ss:$16 sps:$4 sm:$0xff]   ;;  %v10009_v32 = vld [vmem:[%s10408_s28 + $0x134c] ss:$16 sps:$4 sm:$0xff]  }
 0x2bd   : > { %6279 = vmatpush2.bf16.msra.mxu1 %v9935_v60  ;;  %v6012_v31 = vpop.f32.mrf.mxu0  ;;  %6305 = vmatprep.subr.bf16.mxu0 %v9946_v26  ;;  %v10001_v60 = vld [vmem:[%s10408_s28 + $0x1368] ss:$16 sps:$4 sm:$0xff]   ;;  %v10015_v29 = vld [vmem:[%s10408_s28 + $0x132c] ss:$16 sps:$4 sm:$0xff]  }
 0x2be   : > { %6280 = vmatprep.subr.bf16.mxu1 %v9943_v42  ;;  %v10012_v42 = vld [vmem:[%s10408_s28 + $0x144c] ss:$16 sps:$4 sm:$0xff]   ;;  %v10007_v26 = vld [vmem:[%s10408_s28 + $0x1348] ss:$16 sps:$4 sm:$0xff]  }
 0x2bf   : > { %v10016_v31 = vld [vmem:[%s10408_s28 + $0x1428] ss:$16 sps:$4 sm:$0xff]  }
 0x2c0   : > { %6306 = vmatpush1.bf16.msra.mxu0 %v9944_v44  ;;  %v10013_v44 = vld [vmem:[%s10408_s28 + $0x1328] ss:$16 sps:$4 sm:$0xff]  }
 0x2c1   : > { %6281 = vmatpush2.bf16.msra.mxu1 %v9941_v30  ;;  %6307 = vmatprep.subr.bf16.mxu0 %v9952_v46  ;;  %v10018_v30 = vld [vmem:[%s10408_s28 + $0x142c] ss:$16 sps:$4 sm:$0xff]  }
 0x2c2   : > { %6282 = vmatprep.subr.bf16.mxu1 %v9949_v28  ;;  %v10021_v28 = vld [vmem:[%s10408_s28 + $0x130c] ss:$16 sps:$4 sm:$0xff]  }
 0x2c3   : > { %v10024_v46 = vld [vmem:[%s10408_s28 + $0x140c] ss:$16 sps:$4 sm:$0xff]  }
 0x2c4   : > { %6308 = vmatpush1.bf16.msra.mxu0 %v9950_v27  ;;  %v10022_v27 = vld [vmem:[%s10408_s28 + $0x1408] ss:$16 sps:$4 sm:$0xff]  }
 0x2c5   : > { %6283 = vmatpush2.bf16.msra.mxu1 %v9947_v36  ;;  %6309 = vmatprep.subr.bf16.mxu0 %v9958_v51  ;;  %v10019_v36 = vld [vmem:[%s10408_s28 + $0x1308] ss:$16 sps:$4 sm:$0xff]   ;;  %v10030_v51 = vld [vmem:[%s10408_s28 + $0x16ec] ss:$16 sps:$4 sm:$0xff]  }
 0x2c6   : > { %6284 = vmatprep.subr.bf16.mxu1 %v9955_v34  ;;  %v10027_v34 = vld [vmem:[%s10408_s28 + $0x15ec] ss:$16 sps:$4 sm:$0xff]  }
 0x2c8   : > { %6310 = vmatpush1.bf16.msra.mxu0 %v9956_v8  ;;  %v10028_v8 = vld [vmem:[%s10408_s28 + $0x16e8] ss:$16 sps:$4 sm:$0xff]  }
 0x2c9   : > { %6285 = vmatpush2.bf16.msra.mxu1 %v9953_v20  ;;  %6311 = vmatprep.subr.bf16.mxu0 %v9964_v43  ;;  %v10025_v20 = vld [vmem:[%s10408_s28 + $0x15e8] ss:$16 sps:$4 sm:$0xff]   ;;  %v10036_v43 = vld [vmem:[%s10408_s28 + $0x16cc] ss:$16 sps:$4 sm:$0xff]  }
 0x2ca   : > { %6286 = vmatprep.subr.bf16.mxu1 %v9961_v47  ;;  %v10033_v47 = vld [vmem:[%s10408_s28 + $0x15cc] ss:$16 sps:$4 sm:$0xff]  }
 0x2cc   : > { %6312 = vmatpush1.bf16.msra.mxu0 %v9962_v14 }
 0x2cd   : > { %6287 = vmatpush2.bf16.msra.mxu1 %v9959_v38  ;;  %6313 = vmatprep.subr.bf16.mxu0 %v9970_v52  ;;  %v10034_v52 = vld [vmem:[%s10408_s28 + $0x16c8] ss:$16 sps:$4 sm:$0xff]  }
 0x2ce   : > { %6288 = vmatprep.subr.bf16.mxu1 %v9967_v49  ;;  %v10031_v49 = vld [vmem:[%s10408_s28 + $0x15c8] ss:$16 sps:$4 sm:$0xff]  }
 0x2d0   : > { %6314 = vmatpush1.bf16.msra.mxu0 %v9968_v15  ;;  %v10039_v15 = vld [vmem:[%s10408_s28 + $0x15ac] ss:$16 sps:$4 sm:$0xff]  }
 0x2d1   : > { %6289 = vmatpush2.bf16.msra.mxu1 %v9965_v25  ;;  %6315 = vmatprep.subr.bf16.mxu0 %v9976_v21 }
 0x2d2   : > { %6290 = vmatprep.subr.bf16.mxu1 %v9973_v41  ;;  %v10042_v41 = vld [vmem:[%s10408_s28 + $0x16ac] ss:$16 sps:$4 sm:$0xff]  }
 0x2d4   : > { %6316 = vmatpush1.bf16.msra.mxu0 %v9974_v40  ;;  %v10040_v40 = vld [vmem:[%s10408_s28 + $0x16a8] ss:$16 sps:$4 sm:$0xff]  }
 0x2d5   : > { %6291 = vmatpush2.bf16.msra.mxu1 %v9971_v53  ;;  %6317 = vmatprep.subr.bf16.mxu0 %v9979_v54  ;;  %v10037_v53 = vld [vmem:[%s10408_s28 + $0x15a8] ss:$16 sps:$4 sm:$0xff]  }
 0x2d6   : > { %6342 = vmatprep.subr.bf16.mxu1 %v9982_v19  ;;  %v10045_v19 = vld [vmem:[%s10408_s28 + $0x158c] ss:$16 sps:$4 sm:$0xff]  }
 0x2d8   : > { %v6048_v1 = vpop.f32.mrf.mxu1  ;;  %6293 = vmatmul.mubr.bf16.vlgmr.msra.gmra.mxu1 %v10863_v5  ;;  %6318 = vmatpush2.bf16.msra.mxu0 %v9977_v62  ;;  %v10048_v62 = vld [vmem:[%s10408_s28 + $0x168c] ss:$16 sps:$4 sm:$0xff]  }
 0x2d9   : > { %v11356_v63 = vadd.f32 %v6048_v1, %v11316_v56  ;;  %6343 = vmatpush1.bf16.msra.mxu1 %v9980_v55  ;;  %6319 = vmatprep.subr.bf16.mxu0 %v9985_v57  ;;  %v10006_v56 = vld [vmem:[%s10408_s28 + $0x146c] ss:$16 sps:$4 sm:$0xff]   ;;  %v10043_v55 = vld [vmem:[%s10408_s28 + $0x1588] ss:$16 sps:$4 sm:$0xff]  }
 0x2da   : > { %v6050_v61 = vpop.f32.mrf.mxu1  ;;  %6344 = vmatprep.subr.bf16.mxu1 %v9988_v59  ;;  %6374 = vmatprep.mubr.bf16.mxu1 %v10872_v16  ;;  %v9998_v16 = vld [vmem:[%s10408_s28 + $0x1488] ss:$16 sps:$4 sm:$0xff]   ;;  %v10051_v57 = vld [vmem:[%s10408_s28 + $0x156c] ss:$16 sps:$4 sm:$0xff]  }
 0x2db   : > { %v11363_v5 = vadd.f32 %v6050_v61, %v11323_v22  ;;  %v10010_v22 = vld [vmem:[%s10408_s28 + $0x1448] ss:$16 sps:$4 sm:$0xff]   ;;  %v10054_v59 = vld [vmem:[%s10408_s28 + $0x166c] ss:$16 sps:$4 sm:$0xff]  }
 0x2dc   : > { %v6052_v35 = vpop.f32.mrf.mxu1  ;;  %6320 = vmatpush2.bf16.msra.mxu0 %v9983_v0  ;;  %v10049_v1 = vld [vmem:[%s10408_s28 + $0x1568] ss:$16 sps:$4 sm:$0xff]   ;;  %v10057_v0 = vld [vmem:[%s10408_s28 + $0x154c] ss:$16 sps:$4 sm:$0xff]  }
 0x2dd   : > { %6345 = vmatpush1.bf16.msra.mxu1 %v9986_v3  ;;  %6321 = vmatprep.subr.bf16.mxu0 %v9991_v4  ;;  %v10060_v3 = vld [vmem:[%s10408_s28 + $0x164c] ss:$16 sps:$4 sm:$0xff]   ;;  %v10055_v61 = vld [vmem:[%s10408_s28 + $0x1548] ss:$16 sps:$4 sm:$0xff]  }
 0x2de   : > { %v6053_v11 = vpop.f32.mrf.mxu1  ;;  %6346 = vmatprep.subr.bf16.mxu1 %v9994_v50  ;;  %v10058_v4 = vld [vmem:[%s10408_s28 + $0x1648] ss:$16 sps:$4 sm:$0xff]   ;;  %v10063_v50 = vld [vmem:[%s10408_s28 + $0x152c] ss:$16 sps:$4 sm:$0xff]  }
 0x2df   : > { %v10061_v35 = vld [vmem:[%s10408_s28 + $0x1528] ss:$16 sps:$4 sm:$0xff]   ;;  %v10072_v11 = vld [vmem:[%s10408_s28 + $0x160c] ss:$16 sps:$4 sm:$0xff]  }
 0x2e0   : > { %6322 = vmatpush2.bf16.msra.mxu0 %v9989_v9  ;;  %v10064_v9 = vld [vmem:[%s10408_s28 + $0x1628] ss:$16 sps:$4 sm:$0xff]  }
 0x2e1   : > { %6347 = vmatpush1.bf16.msra.mxu1 %v9992_v10  ;;  %6323 = vmatprep.subr.bf16.mxu0 %v9997_v12  ;;  %v10069_v10 = vld [vmem:[%s10408_s28 + $0x150c] ss:$16 sps:$4 sm:$0xff]   ;;  %v10067_v12 = vld [vmem:[%s10408_s28 + $0x1508] ss:$16 sps:$4 sm:$0xff]  }
 0x2e2   : > { %6348 = vmatprep.subr.bf16.mxu1 %v10000_v13  ;;  %v10070_v13 = vld [vmem:[%s10408_s28 + $0x1608] ss:$16 sps:$4 sm:$0xff]  }
 0x2e4   : > { %6324 = vmatpush2.bf16.msra.mxu0 %v9995_v17  ;;  %v10075_v17 = vld [vmem:[%s10408_s28 + $0x17ec] ss:$16 sps:$4 sm:$0xff]  }
 0x2e5   : > { %6349 = vmatpush1.bf16.msra.mxu1 %v9998_v16  ;;  %6325 = vmatprep.subr.bf16.mxu0 %v10003_v39  ;;  %v10078_v16 = vld [vmem:[%s10408_s28 + $0x18ec] ss:$16 sps:$4 sm:$0xff]   ;;  %v10073_v39 = vld [vmem:[%s10408_s28 + $0x17e8] ss:$16 sps:$4 sm:$0xff]  }
 0x2e6   : > { %6350 = vmatprep.subr.bf16.mxu1 %v10006_v56  ;;  %v10076_v56 = vld [vmem:[%s10408_s28 + $0x18e8] ss:$16 sps:$4 sm:$0xff]  }
 0x2e8   : > { %6326 = vmatpush2.bf16.msra.mxu0 %v10001_v60  ;;  %v10081_v60 = vld [vmem:[%s10408_s28 + $0x17cc] ss:$16 sps:$4 sm:$0xff]  }
 0x2e9   : > { %6351 = vmatpush1.bf16.msra.mxu1 %v10004_v23  ;;  %6327 = vmatprep.subr.bf16.mxu0 %v10009_v32  ;;  %v10084_v23 = vld [vmem:[%s10408_s28 + $0x18cc] ss:$16 sps:$4 sm:$0xff]  }
 0x2ea   : > { %6352 = vmatprep.subr.bf16.mxu1 %v10012_v42 }
 0x2ec   : > { %6328 = vmatpush2.bf16.msra.mxu0 %v10007_v26  ;;  %v10079_v26 = vld [vmem:[%s10408_s28 + $0x17c8] ss:$16 sps:$4 sm:$0xff]  }
 0x2ed   : > { %6353 = vmatpush1.bf16.msra.mxu1 %v10010_v22  ;;  %6329 = vmatprep.subr.bf16.mxu0 %v10015_v29  ;;  %v10082_v22 = vld [vmem:[%s10408_s28 + $0x18c8] ss:$16 sps:$4 sm:$0xff]  }
 0x2ee   : > { %6354 = vmatprep.subr.bf16.mxu1 %v10018_v30  ;;  %v10087_v30 = vld [vmem:[%s10408_s28 + $0x17ac] ss:$16 sps:$4 sm:$0xff]  }
 0x2f0   : > { %6330 = vmatpush2.bf16.msra.mxu0 %v10013_v44  ;;  %v10090_v44 = vld [vmem:[%s10408_s28 + $0x18ac] ss:$16 sps:$4 sm:$0xff]  }
 0x2f1   : > { %6355 = vmatpush1.bf16.msra.mxu1 %v10016_v31  ;;  %6331 = vmatprep.subr.bf16.mxu0 %v10021_v28  ;;  %v10085_v28 = vld [vmem:[%s10408_s28 + $0x17a8] ss:$16 sps:$4 sm:$0xff]  }
 0x2f2   : > { %6356 = vmatprep.subr.bf16.mxu1 %v10024_v46  ;;  %v10088_v46 = vld [vmem:[%s10408_s28 + $0x18a8] ss:$16 sps:$4 sm:$0xff]  }
 0x2f4   : > { %6332 = vmatpush2.bf16.msra.mxu0 %v10019_v36 }
 0x2f5   : > { %6357 = vmatpush1.bf16.msra.mxu1 %v10022_v27  ;;  %6383 = vmatprep.subr.bf16.mxu0 %v10030_v51  ;;  %v10093_v27 = vld [vmem:[%s10408_s28 + $0x178c] ss:$16 sps:$4 sm:$0xff]   ;;  %v10091_v51 = vld [vmem:[%s10408_s28 + $0x1788] ss:$16 sps:$4 sm:$0xff]  }
 0x2f6   : > { %6358 = vmatprep.subr.bf16.mxu1 %v10027_v34  ;;  %v10096_v34 = vld [vmem:[%s10408_s28 + $0x188c] ss:$16 sps:$4 sm:$0xff]  }
 0x2f7   : > { %v6089_v38 = vpop.f32.mrf.mxu0  ;;  %6334 = vmatmul.mubr.bf16.vlgmr.msra.gmra.mxu0 %v10876_v6 }
 0x2f8   : > { %v11396_v14 = vadd.f32 %v6089_v38, %v11356_v63  ;;  %6384 = vmatpush1.bf16.msra.mxu0 %v10028_v8  ;;  %6415 = vmatprep.mubr.bf16.mxu0 %v10884_v24  ;;  %v10046_v24 = vld [vmem:[%s10408_s28 + $0x1688] ss:$16 sps:$4 sm:$0xff]   ;;  %v10102_v8 = vld [vmem:[%s10408_s28 + $0x186c] ss:$16 sps:$4 sm:$0xff]  }
 0x2f9   : > { %6359 = vmatpush2.bf16.msra.mxu1 %v10025_v20  ;;  %v6091_v25 = vpop.f32.mrf.mxu0  ;;  %6385 = vmatprep.subr.bf16.mxu0 %v10036_v43  ;;  %v10052_v63 = vld [vmem:[%s10408_s28 + $0x1668] ss:$16 sps:$4 sm:$0xff]   ;;  %v10099_v20 = vld [vmem:[%s10408_s28 + $0x176c] ss:$16 sps:$4 sm:$0xff]  }
 0x2fa   : > { %6360 = vmatprep.subr.bf16.mxu1 %v10033_v47  ;;  %v11403_v6 = vadd.f32 %v6091_v25, %v11363_v5  ;;  %v10066_v5 = vld [vmem:[%s10408_s28 + $0x162c] ss:$16 sps:$4 sm:$0xff]   ;;  %v10097_v47 = vld [vmem:[%s10408_s28 + $0x1768] ss:$16 sps:$4 sm:$0xff]  }
 0x2fb   : > { %v6093_v21 = vpop.f32.mrf.mxu0  ;;  %v10100_v43 = vld [vmem:[%s10408_s28 + $0x1868] ss:$16 sps:$4 sm:$0xff]   ;;  %v10105_v38 = vld [vmem:[%s10408_s28 + $0x174c] ss:$16 sps:$4 sm:$0xff]  }
 0x2fc   : > { %6386 = vmatpush1.bf16.msra.mxu0 %v10034_v52  ;;  %v10106_v52 = vld [vmem:[%s10408_s28 + $0x1848] ss:$16 sps:$4 sm:$0xff]   ;;  %v10111_v25 = vld [vmem:[%s10408_s28 + $0x172c] ss:$16 sps:$4 sm:$0xff]  }
 0x2fd   : > { %6361 = vmatpush2.bf16.msra.mxu1 %v10031_v49  ;;  %v6094_v54 = vpop.f32.mrf.mxu0  ;;  %6387 = vmatprep.subr.bf16.mxu0 %v10042_v41  ;;  %v10103_v49 = vld [vmem:[%s10408_s28 + $0x1748] ss:$16 sps:$4 sm:$0xff]   ;;  %v10117_v21 = vld [vmem:[%s10408_s28 + $0x170c] ss:$16 sps:$4 sm:$0xff]  }
 0x2fe   : > { %6362 = vmatprep.subr.bf16.mxu1 %v10039_v15  ;;  %v10114_v15 = vld [vmem:[%s10408_s28 + $0x182c] ss:$16 sps:$4 sm:$0xff]   ;;  %v10109_v41 = vld [vmem:[%s10408_s28 + $0x1728] ss:$16 sps:$4 sm:$0xff]  }
 0x2ff   : > { %v10118_v54 = vld [vmem:[%s10408_s28 + $0x1808] ss:$16 sps:$4 sm:$0xff]  }
 0x300   : > { %6388 = vmatpush1.bf16.msra.mxu0 %v10040_v40  ;;  %v10115_v40 = vld [vmem:[%s10408_s28 + $0x1708] ss:$16 sps:$4 sm:$0xff]  }
 0x301   : > { %6363 = vmatpush2.bf16.msra.mxu1 %v10037_v53  ;;  %6389 = vmatprep.subr.bf16.mxu0 %v10048_v62  ;;  %v10120_v53 = vld [vmem:[%s10408_s28 + $0x180c] ss:$16 sps:$4 sm:$0xff]  }
 0x302   : > { %6364 = vmatprep.subr.bf16.mxu1 %v10045_v19 }
 0x304   : > { %6390 = vmatpush1.bf16.msra.mxu0 %v10046_v24 }
 0x305   : > { %6365 = vmatpush2.bf16.msra.mxu1 %v10043_v55  ;;  %6391 = vmatprep.subr.bf16.mxu0 %v10054_v59 }
 0x306   : > { %6366 = vmatprep.subr.bf16.mxu1 %v10051_v57 }
 0x308   : > { %6392 = vmatpush1.bf16.msra.mxu0 %v10052_v63 }
 0x309   : > { %6367 = vmatpush2.bf16.msra.mxu1 %v10049_v1  ;;  %6393 = vmatprep.subr.bf16.mxu0 %v10060_v3 }
 0x30a   : > { %6368 = vmatprep.subr.bf16.mxu1 %v10057_v0 }
 0x30c   : > { %6394 = vmatpush1.bf16.msra.mxu0 %v10058_v4 }
 0x30d   : > { %6369 = vmatpush2.bf16.msra.mxu1 %v10055_v61  ;;  %6395 = vmatprep.subr.bf16.mxu0 %v10066_v5 }
 0x30e   : > { %6370 = vmatprep.subr.bf16.mxu1 %v10063_v50 }
 0x310   : > { %6396 = vmatpush1.bf16.msra.mxu0 %v10064_v9 }
 0x311   : > { %6371 = vmatpush2.bf16.msra.mxu1 %v10061_v35  ;;  %6397 = vmatprep.subr.bf16.mxu0 %v10072_v11 }
 0x312   : > { %6372 = vmatprep.subr.bf16.mxu1 %v10069_v10 }
 0x314   : > { %6398 = vmatpush1.bf16.msra.mxu0 %v10070_v13 }
 0x315   : > { %6373 = vmatpush2.bf16.msra.mxu1 %v10067_v12  ;;  %6399 = vmatprep.subr.bf16.mxu0 %v10075_v17 }
 0x316   : > { %6424 = vmatprep.subr.bf16.mxu1 %v10078_v16 }
 0x318   : > { %v6130_v32 = vpop.f32.mrf.mxu1  ;;  %6375 = vmatmul.mubr.bf16.vlgmr.msra.gmra.mxu1 %v10952_v7  ;;  %6400 = vmatpush2.bf16.msra.mxu0 %v10073_v39 }
 0x319   : > { %v11436_v42 = vadd.f32 %v6130_v32, %v11396_v14  ;;  %6425 = vmatpush1.bf16.msra.mxu1 %v10076_v56  ;;  %6401 = vmatprep.subr.bf16.mxu0 %v10081_v60  ;;  %v10108_v14 = vld [vmem:[%s10408_s28 + $0x184c] ss:$16 sps:$4 sm:$0xff]  }
 0x31a   : > { %v6132_v29 = vpop.f32.mrf.mxu1  ;;  %6426 = vmatprep.subr.bf16.mxu1 %v10084_v23  ;;  %6456 = vmatprep.mubr.bf16.mxu1 %v10323_v48  ;;  %v10094_v48 = vld [vmem:[%s10408_s28 + $0x1888] ss:$16 sps:$4 sm:$0xff]  }
 0x31b   : > { %v6133_v7 = vadd.f32 %v6132_v29, %v11403_v6  ;;  %v10112_v6 = vld [vmem:[%s10408_s28 + $0x1828] ss:$16 sps:$4 sm:$0xff]   ;;  %v10324_v29 = vmov 1983009808  }
 0x31c   : > { %v6134_v31 = vpop.f32.mrf.mxu1  ;;  %6402 = vmatpush2.bf16.msra.mxu0 %v10079_v26 }
 0x31d   : > { %6427 = vmatpush1.bf16.msra.mxu1 %v10082_v22  ;;  %6403 = vmatprep.subr.bf16.mxu0 %v10087_v30  ;;  %v6472_v30 = vunpack.c.l.s4 %v10324_v29 }
 0x31e   : > { %v6135_v36 = vpop.f32.mrf.mxu1  ;;  %6428 = vmatprep.subr.bf16.mxu1 %v10090_v44 }
 0x31f   : > { %v6473_v36 = vunpack.c.0.s8 %v6472_v30 }
 0x320   : > { %6404 = vmatpush2.bf16.msra.mxu0 %v10085_v28 }
 0x321   : > { %6429 = vmatpush1.bf16.msra.mxu1 %v10088_v46  ;;  %6405 = vmatprep.subr.bf16.mxu0 %v10093_v27 }
 0x322   : > { %6430 = vmatprep.subr.bf16.mxu1 %v10096_v34 }
 0x324   : > { %6406 = vmatpush2.bf16.msra.mxu0 %v10091_v51 }
 0x325   : > { %6431 = vmatpush1.bf16.msra.mxu1 %v10094_v48  ;;  %6407 = vmatprep.subr.bf16.mxu0 %v10099_v20 }
 0x326   : > { %6432 = vmatprep.subr.bf16.mxu1 %v10102_v8 }
 0x328   : > { %6408 = vmatpush2.bf16.msra.mxu0 %v10097_v47 }
 0x329   : > { %6433 = vmatpush1.bf16.msra.mxu1 %v10100_v43  ;;  %6409 = vmatprep.subr.bf16.mxu0 %v10105_v38  ;;  %v11470_v43 = vsub.s32 %v6473_v36, %v10450_v45 }
 0x32a   : > { %6434 = vmatprep.subr.bf16.mxu1 %v10108_v14 }
 0x32c   : > { %6410 = vmatpush2.bf16.msra.mxu0 %v10103_v49 }
 0x32d   : > { %6435 = vmatpush1.bf16.msra.mxu1 %v10106_v52  ;;  %6411 = vmatprep.subr.bf16.mxu0 %v10111_v25 }
 0x32e   : > { %6436 = vmatprep.subr.bf16.mxu1 %v10114_v15  ;;  %v6477_v15 = vrot.slane %v6469_v58, %v11470_v43 }
 0x330   : > { %6412 = vmatpush2.bf16.msra.mxu0 %v10109_v41 }
 0x331   : > { %6437 = vmatpush1.bf16.msra.mxu1 %v10112_v6  ;;  %6413 = vmatprep.subr.bf16.mxu0 %v10117_v21  ;;  %v404_v6 = vld [vmem:[#allocation2] sm:$0xff] }
 0x332   : > { %6438 = vmatprep.subr.bf16.mxu1 %v10120_v53 }
 0x334   : > { %6414 = vmatpush2.bf16.msra.mxu0 %v10115_v40 }
 0x335   : > { %6439 = vmatpush1.bf16.msra.mxu1 %v10118_v54 }
 0x337   : > { %v6171_v19 = vpop.f32.mrf.mxu0  ;;  %6416 = vmatmul.mubr.bf16.vlgmr.msra.gmra.mxu0 %v10962_v18 }
 0x338   : > { %6457 = vmatmul.mubr.bf16.vlgmr.msra.gmra.mxu1 %v11008_v33  ;;  %v6172_v62 = vadd.f32 %v6171_v19, %v11436_v42 }
 0x339   : > { %v6173_v55 = vpop.f32.mrf.mxu0 }
 0x33a   : > { %v6174_v24 = vadd.f32 %v6173_v55, %v6133_v7 }
 0x33b   : > { %v6175_v57 = vpop.f32.mrf.mxu0 }
 0x33d   : > { %v6176_v59 = vpop.f32.mrf.mxu0 }
 0x358   : > { %v6212_v1 = vpop.f32.mrf.mxu1 }
 0x359   : > { %v6213_v63 = vadd.f32 %v6212_v1, %v6172_v62 }
 0x35a   : > { %v6214_v0 = vpop.f32.mrf.mxu1 }
 0x35b   : > { %v6215_v3 = vadd.f32 %v6214_v0, %v6174_v24 }
 0x35c   : > { %v6216_v61 = vpop.f32.mrf.mxu1 }
 0x35e   : > { %v6217_v4 = vpop.f32.mrf.mxu1 }
 0x377   : > { %v6253_v50 = vpop.f32.mrf.mxu0 }
 0x378   : > { %v6254_v5 = vadd.f32 %v6253_v50, %v6213_v63 }
 0x379   : > { %v6255_v35 = vpop.f32.mrf.mxu0 }
 0x37a   : > { %v6256_v9 = vadd.f32 %v6255_v35, %v6215_v3 }
 0x37b   : > { %v6257_v10 = vpop.f32.mrf.mxu0 }
 0x37d   : > { %v6258_v18 = vpop.f32.mrf.mxu0 }
 0x398   : > { %v6294_v11 = vpop.f32.mrf.mxu1 }
 0x399   : > { %v6295_v33 = vadd.f32 %v6294_v11, %v6254_v5 }
 0x39a   : > { %v6296_v12 = vpop.f32.mrf.mxu1 }
 0x39b   : > { %v6297_v13 = vadd.f32 %v6296_v12, %v6256_v9 }
 0x39c   : > { %v6298_v17 = vpop.f32.mrf.mxu1 }
 0x39e   : > { %v6299_v16 = vpop.f32.mrf.mxu1 }
 0x3b7   : > { %v6335_v39 = vpop.f32.mrf.mxu0 }
 0x3b8   : > { %v6336_v44 = vadd.f32 %v6335_v39, %v6295_v33 }
 0x3b9   : > { %v6337_v56 = vpop.f32.mrf.mxu0 }
 0x3ba   : > { %v6338_v7 = vadd.f32 %v6337_v56, %v6297_v13 }
 0x3bb   : > { %v6339_v60 = vpop.f32.mrf.mxu0 }
 0x3bd   : > { %v6340_v23 = vpop.f32.mrf.mxu0 }
 0x3d8   : > { %v6376_v32 = vpop.f32.mrf.mxu1 }
 0x3d9   : > { %v6377_v31 = vadd.f32 %v6376_v32, %v6336_v44 }
 0x3da   : > { %v6378_v42 = vpop.f32.mrf.mxu1 }
 0x3db   : > { %v6379_v27 = vadd.f32 %v6378_v42, %v6338_v7 }
 0x3dc   : > { %v6380_v26 = vpop.f32.mrf.mxu1 }
 0x3de   : > { %v6381_v22 = vpop.f32.mrf.mxu1 }
 0x3f7   : > { %v6417_v28 = vpop.f32.mrf.mxu0 }
 0x3f8   : > { %v6458_v46 = vpop.f32.mrf.mxu1  ;;  %v6418_v34 = vadd.f32 %v6417_v28, %v6377_v31 }
 0x3f9   : > { %v6419_v51 = vpop.f32.mrf.mxu0 }
 0x3fa   : > { %v6460_v48 = vpop.f32.mrf.mxu1  ;;  %v6420_v20 = vadd.f32 %v6419_v51, %v6379_v27  ;;  %v6459_v38 = vadd.f32 %v6458_v46, %v6418_v34 }
 0x3fb   : > { %v6421_v8 = vpop.f32.mrf.mxu0 }
 0x3fc   : > { %v6462_v47 = vpop.f32.mrf.mxu1  ;;  %v6461_v14 = vadd.f32 %v6460_v48, %v6420_v20 }
 0x3fd   : > { %v6422_v49 = vpop.f32.mrf.mxu0 }
 0x3fe   : > { %v6463_v52 = vpop.f32.mrf.mxu1  ;;  %v6470_v25 = vcombine.low %v6459_v38, %v6461_v14 }
 0x400   : > { %v6484_v41 = vrot.slane %v6470_v25, %v11470_v43 }
 0x402   : > { %v6485_v21 = vcombine.low %v6477_v15, %v6484_v41  ;;  %6492 = sbr.rel (%p8702_p6) target bundleno = 1568 (0x620), region = 72 }
 0x404   : > { %v6487_v53 = vadd.f32 %v6485_v21, %v404_v6 }
 0x406   : > { %6488 = vst [vmem:[#allocation2] sm:$0xff] %v6487_v53 }
 0x407   : > { %v10121_v40 = vld [vmem:[%s12135_s5 + $0xe4] ss:$16 sps:$4 sm:$0xff]   ;;  %v10125_v2 = vld [vmem:[%s12135_s5 + $0xe0] ss:$16 sps:$4 sm:$0xff]   ;;  %v11611_v36 = vsub.s32 0, %v10450_v45  ;;  %v11617_v34 = vsub.s32 1, %v10450_v45 }
 0x408   : > { %v10123_v54 = vld [vmem:[%s12135_s5 + $0x2e4] ss:$16 sps:$4 sm:$0xff]   ;;  %7422 = vmatprep.subr.bf16.mxu0 %v10121_v40  ;;  %v10126_v37 = vld [vmem:[%s12135_s5 + $0x2e0] ss:$16 sps:$4 sm:$0xff]   ;;  %v11620_v51 = vsub.s32 2, %v10450_v45  ;;  %v11626_v20 = vsub.s32 3, %v10450_v45 }
 0x409   : > { %7463 = vmatprep.subr.bf16.mxu1 %v10123_v54  ;;  %v10127_v58 = vld [vmem:[%s12135_s5 + $0xc4] ss:$16 sps:$4 sm:$0xff]   ;;  %7423 = vmatpush1.bf16.msra.mxu0 %v10125_v2  ;;  %v10131_v62 = vld [vmem:[%s12135_s5 + $0xc0] ss:$16 sps:$4 sm:$0xff]   ;;  %vm7855_vm0 = vcmask 1024  }
 0x40a   : > { %7464 = vmatpush1.bf16.msra.mxu1 %v10126_v37  ;;  %v10129_v19 = vld [vmem:[%s12135_s5 + $0x2c4] ss:$16 sps:$4 sm:$0xff]   ;;  %7424 = vmatprep.subr.bf16.mxu0 %v10127_v58  ;;  %v10132_v55 = vld [vmem:[%s12135_s5 + $0x2c0] ss:$16 sps:$4 sm:$0xff]  }
 0x40b   : > { %7465 = vmatprep.subr.bf16.mxu1 %v10129_v19  ;;  %v10133_v24 = vld [vmem:[%s12135_s5 + $0xa4] ss:$16 sps:$4 sm:$0xff]   ;;  %v10137_v59 = vld [vmem:[%s12135_s5 + $0xa0] ss:$16 sps:$4 sm:$0xff]  }
 0x40c   : > { %v10135_v57 = vld [vmem:[%s12135_s5 + $0x2a4] ss:$16 sps:$4 sm:$0xff]   ;;  %v10138_v1 = vld [vmem:[%s12135_s5 + $0x2a0] ss:$16 sps:$4 sm:$0xff]  }
 0x40d   : > { %7425 = vmatpush1.bf16.msra.mxu0 %v10131_v62  ;;  %v10139_v63 = vld [vmem:[%s12135_s5 + $0x84] ss:$16 sps:$4 sm:$0xff]   ;;  %v10143_v3 = vld [vmem:[%s12135_s5 + $0x80] ss:$16 sps:$4 sm:$0xff]  }
 0x40e   : > { %7466 = vmatpush1.bf16.msra.mxu1 %v10132_v55  ;;  %7426 = vmatprep.subr.bf16.mxu0 %v10133_v24  ;;  %v10141_v0 = vld [vmem:[%s12135_s5 + $0x284] ss:$16 sps:$4 sm:$0xff]   ;;  %v10144_v61 = vld [vmem:[%s12135_s5 + $0x280] ss:$16 sps:$4 sm:$0xff]  }
 0x40f   : > { %7467 = vmatprep.subr.bf16.mxu1 %v10135_v57  ;;  %v10145_v4 = vld [vmem:[%s12135_s5 + $0x64] ss:$16 sps:$4 sm:$0xff]   ;;  %v10149_v5 = vld [vmem:[%s12135_s5 + $0x60] ss:$16 sps:$4 sm:$0xff]  }
 0x410   : > { %v10147_v50 = vld [vmem:[%s12135_s5 + $0x264] ss:$16 sps:$4 sm:$0xff]   ;;  %v10150_v35 = vld [vmem:[%s12135_s5 + $0x260] ss:$16 sps:$4 sm:$0xff]  }
 0x411   : > { %7427 = vmatpush1.bf16.msra.mxu0 %v10137_v59  ;;  %v10151_v9 = vld [vmem:[%s12135_s5 + $0x44] ss:$16 sps:$4 sm:$0xff]   ;;  %v10155_v18 = vld [vmem:[%s12135_s5 + $0x40] ss:$16 sps:$4 sm:$0xff]  }
 0x412   : > { %7468 = vmatpush1.bf16.msra.mxu1 %v10138_v1  ;;  %7428 = vmatprep.subr.bf16.mxu0 %v10139_v63  ;;  %v10153_v10 = vld [vmem:[%s12135_s5 + $0x244] ss:$16 sps:$4 sm:$0xff]   ;;  %v10156_v11 = vld [vmem:[%s12135_s5 + $0x240] ss:$16 sps:$4 sm:$0xff]  }
 0x413   : > { %7469 = vmatprep.subr.bf16.mxu1 %v10141_v0  ;;  %v10157_v33 = vld [vmem:[%s12135_s5 + $0x24] ss:$16 sps:$4 sm:$0xff]   ;;  %v10161_v13 = vld [vmem:[%s12135_s5 + $0x20] ss:$16 sps:$4 sm:$0xff]  }
 0x414   : > { %v10159_v12 = vld [vmem:[%s12135_s5 + $0x224] ss:$16 sps:$4 sm:$0xff]   ;;  %v10162_v17 = vld [vmem:[%s12135_s5 + $0x220] ss:$16 sps:$4 sm:$0xff]  }
 0x415   : > { %7429 = vmatpush1.bf16.msra.mxu0 %v10143_v3  ;;  %v10163_v16 = vld [vmem:[%s12135_s5 + $0x4] ss:$16 sps:$4 sm:$0xff]   ;;  %v10167_v56 = vld [vmem:[%s12135_s5] ss:$16 sps:$4 sm:$0xff]  }
 0x416   : > { %7470 = vmatpush1.bf16.msra.mxu1 %v10144_v61  ;;  %7430 = vmatprep.subr.bf16.mxu0 %v10145_v4  ;;  %v10165_v39 = vld [vmem:[%s12135_s5 + $0x204] ss:$16 sps:$4 sm:$0xff]   ;;  %v10168_v60 = vld [vmem:[%s12135_s5 + $0x200] ss:$16 sps:$4 sm:$0xff]  }
 0x417   : > { %7471 = vmatprep.subr.bf16.mxu1 %v10147_v50  ;;  %v10169_v23 = vld [vmem:[%s12135_s5 + $0x1e4] ss:$16 sps:$4 sm:$0xff]   ;;  %v10173_v42 = vld [vmem:[%s12135_s5 + $0x1e0] ss:$16 sps:$4 sm:$0xff]  }
 0x418   : > { %v10171_v32 = vld [vmem:[%s12135_s5 + $0x3e4] ss:$16 sps:$4 sm:$0xff]   ;;  %v10174_v26 = vld [vmem:[%s12135_s5 + $0x3e0] ss:$16 sps:$4 sm:$0xff]  }
 0x419   : > { %7431 = vmatpush1.bf16.msra.mxu0 %v10149_v5  ;;  %v10175_v22 = vld [vmem:[%s12135_s5 + $0x1c4] ss:$16 sps:$4 sm:$0xff]   ;;  %v10179_v30 = vld [vmem:[%s12135_s5 + $0x1c0] ss:$16 sps:$4 sm:$0xff]  }
 0x41a   : > { %7472 = vmatpush1.bf16.msra.mxu1 %v10150_v35  ;;  %7432 = vmatprep.subr.bf16.mxu0 %v10151_v9  ;;  %v10177_v29 = vld [vmem:[%s12135_s5 + $0x3c4] ss:$16 sps:$4 sm:$0xff]   ;;  %v10180_v44 = vld [vmem:[%s12135_s5 + $0x3c0] ss:$16 sps:$4 sm:$0xff]  }
 0x41b   : > { %7473 = vmatprep.subr.bf16.mxu1 %v10153_v10  ;;  %v10181_v7 = vld [vmem:[%s12135_s5 + $0x1a4] ss:$16 sps:$4 sm:$0xff]   ;;  %v10185_v28 = vld [vmem:[%s12135_s5 + $0x1a0] ss:$16 sps:$4 sm:$0xff]  }
 0x41c   : > { %v10183_v31 = vld [vmem:[%s12135_s5 + $0x3a4] ss:$16 sps:$4 sm:$0xff]   ;;  %v10186_v46 = vld [vmem:[%s12135_s5 + $0x3a0] ss:$16 sps:$4 sm:$0xff]  }
 0x41d   : > { %7433 = vmatpush1.bf16.msra.mxu0 %v10155_v18  ;;  %v10187_v27 = vld [vmem:[%s12135_s5 + $0x184] ss:$16 sps:$4 sm:$0xff]   ;;  %v10191_v8 = vld [vmem:[%s12135_s5 + $0x180] ss:$16 sps:$4 sm:$0xff]  }
 0x41e   : > { %7474 = vmatpush1.bf16.msra.mxu1 %v10156_v11  ;;  %7434 = vmatprep.subr.bf16.mxu0 %v10157_v33  ;;  %v10189_v48 = vld [vmem:[%s12135_s5 + $0x384] ss:$16 sps:$4 sm:$0xff]   ;;  %v10192_v47 = vld [vmem:[%s12135_s5 + $0x380] ss:$16 sps:$4 sm:$0xff]  }
 0x41f   : > { %7475 = vmatprep.subr.bf16.mxu1 %v10159_v12  ;;  %v6494_v38 = vld [vmem:[%s12132_s2] sm:$0xf]  ;;  %v10193_v49 = vld [vmem:[%s12135_s5 + $0x164] ss:$16 sps:$4 sm:$0xff]  }
 0x420   : > { %v6532_v14 = vld [vmem:[%s12133_s3] sm:$0xf]  ;;  %v6499_v52 = vrot.slane %v6494_v38, %v11611_v36  ;;  %v6503_v25 = vrot.slane %v6494_v38, %v11617_v34  ;;  %v6507_v15 = vrot.slane %v6494_v38, %v11620_v51  ;;  %v10195_v41 = vld [vmem:[%s12135_s5 + $0x364] ss:$16 sps:$4 sm:$0xff]   ;;  %v6511_v6 = vrot.slane %v6494_v38, %v11626_v20 }
 0x421   : > { %7435 = vmatpush1.bf16.msra.mxu0 %v10161_v13  ;;  %v6569_v45 = vld [vmem:[%s12134_s4] sm:$0xf]  ;;  %v6537_v21 = vrot.slane %v6532_v14, %v11611_v36  ;;  %v6541_v53 = vrot.slane %v6532_v14, %v11617_v34  ;;  %v6545_v54 = vrot.slane %v6532_v14, %v11620_v51  ;;  %v6549_v2 = vrot.slane %v6532_v14, %v11626_v20  ;;  %v10199_v59 = vld [vmem:[%s12135_s5 + $0x144] ss:$16 sps:$4 sm:$0xff]   ;;  %v10217_v14 = vld [vmem:[%s12135_s5 + $0xe8] ss:$16 sps:$4 sm:$0xff]  }
 0x422   : > { %7476 = vmatpush1.bf16.msra.mxu1 %v10162_v17  ;;  %7436 = vmatprep.subr.bf16.mxu0 %v10163_v16  ;;  %v6512_v40 = vcombine.low %v6499_v52, %v6503_v25  ;;  %v6574_v37 = vrot.slane %v6569_v45, %v11611_v36  ;;  %v10197_v58 = vld [vmem:[%s12135_s5 + $0x160] ss:$16 sps:$4 sm:$0xff]   ;;  %v6513_v62 = vcombine.low %v6507_v15, %v6511_v6  ;;  %v10201_v3 = vld [vmem:[%s12135_s5 + $0x344] ss:$16 sps:$4 sm:$0xff]   ;;  %v10220_v52 = vld [vmem:[%s12135_s5 + $0x2e8] ss:$16 sps:$4 sm:$0xff]  }
 0x423   : > { %7477 = vmatprep.subr.bf16.mxu1 %v10165_v39  ;;  %v10198_v19 = vld [vmem:[%s12135_s5 + $0x360] ss:$16 sps:$4 sm:$0xff]   ;;  %v6550_v55 = vcombine.low %v6537_v21, %v6541_v53  ;;  %v6578_v24 = vrot.slane %v6569_v45, %v11617_v34  ;;  %v6582_v57 = vrot.slane %v6569_v45, %v11620_v51  ;;  %v6551_v63 = vcombine.low %v6545_v54, %v6549_v2  ;;  %v10205_v12 = vld [vmem:[%s12135_s5 + $0x124] ss:$16 sps:$4 sm:$0xff]   ;;  %v10228_v25 = vld [vmem:[%s12135_s5 + $0x2cc] ss:$16 sps:$4 sm:$0xff]  }
 0x424   : > { %v6520_v1 = vrot.slane %v6512_v40, %v11470_v43  ;;  %v6586_v0 = vrot.slane %v6569_v45, %v11626_v20  ;;  %v6527_v61 = vrot.slane %v6513_v62, %v11470_v43  ;;  %v6493_v5 = vld [vmem:[#allocation2] sm:$0xff]  ;;  %v10223_v15 = vld [vmem:[%s12135_s5 + $0xc8] ss:$16 sps:$4 sm:$0xff]   ;;  %v10234_v21 = vld [vmem:[%s12135_s5 + $0x2ac] ss:$16 sps:$4 sm:$0xff]  }
 0x425   : > { %7437 = vmatpush1.bf16.msra.mxu0 %v10167_v56  ;;  %v6558_v4 = vrot.slane %v6550_v55, %v11470_v43  ;;  %v6587_v50 = vcombine.low %v6574_v37, %v6578_v24  ;;  %v6565_v35 = vrot.slane %v6551_v63, %v11470_v43  ;;  %v10203_v10 = vld [vmem:[%s12135_s5 + $0x140] ss:$16 sps:$4 sm:$0xff]   ;;  %v10207_v17 = vld [vmem:[%s12135_s5 + $0x324] ss:$16 sps:$4 sm:$0xff]   ;;  %v10226_v6 = vld [vmem:[%s12135_s5 + $0x2c8] ss:$16 sps:$4 sm:$0xff]  }
 0x426   : > { %7478 = vmatpush1.bf16.msra.mxu1 %v10168_v60  ;;  %7438 = vmatprep.subr.bf16.mxu0 %v10169_v23  ;;  %v6588_v9 = vcombine.low %v6582_v57, %v6586_v0  ;;  %v10204_v18 = vld [vmem:[%s12135_s5 + $0x340] ss:$16 sps:$4 sm:$0xff]   ;;  %v6528_v11 = vcombine.low %v6520_v1, %v6527_v61  ;;  %v10229_v53 = vld [vmem:[%s12135_s5 + $0xa8] ss:$16 sps:$4 sm:$0xff]   ;;  %v10237_v40 = vld [vmem:[%s12135_s5 + $0x8c] ss:$16 sps:$4 sm:$0xff]  }
 0x427   : > { %7479 = vmatprep.subr.bf16.mxu1 %v10171_v32  ;;  %v6595_v33 = vrot.slane %v6587_v50, %v11470_v43  ;;  %v6566_v39 = vcombine.low %v6558_v4, %v6565_v35  ;;  %v10209_v56 = vld [vmem:[%s12135_s5 + $0x120] ss:$16 sps:$4 sm:$0xff]   ;;  %v10232_v54 = vld [vmem:[%s12135_s5 + $0x2a8] ss:$16 sps:$4 sm:$0xff]   ;;  %v10240_v2 = vld [vmem:[%s12135_s5 + $0x28c] ss:$16 sps:$4 sm:$0xff]  }
 0x428   : > { %v6602_v13 = vrot.slane %v6588_v9, %v11470_v43  ;;  %v6530_v16 = vadd.f32 %v6528_v11, %v6493_v5  ;;  %v10210_v60 = vld [vmem:[%s12135_s5 + $0x320] ss:$16 sps:$4 sm:$0xff]   ;;  %v10235_v37 = vld [vmem:[%s12135_s5 + $0x88] ss:$16 sps:$4 sm:$0xff]   ;;  %v10246_v62 = vld [vmem:[%s12135_s5 + $0x26c] ss:$16 sps:$4 sm:$0xff]  }
 0x429   : > { %7439 = vmatpush2.bf16.msra.mxu0 %v10173_v42  ;;  %v10211_v42 = vld [vmem:[%s12135_s5 + $0x104] ss:$16 sps:$4 sm:$0xff]   ;;  %v10241_v55 = vld [vmem:[%s12135_s5 + $0x68] ss:$16 sps:$4 sm:$0xff]   ;;  %v10249_v24 = vld [vmem:[%s12135_s5 + $0x4c] ss:$16 sps:$4 sm:$0xff]  }
 0x42a   : > { %7480 = vmatpush2.bf16.msra.mxu1 %v10174_v26  ;;  %7440 = vmatprep.subr.bf16.mxu0 %v10175_v22  ;;  %v6531_v23 = vmax.f32 %v6530_v16, 0.0  ;;  %v6603_v32 = vcombine.low %v6595_v33, %v6602_v13  ;;  %v10213_v26 = vld [vmem:[%s12135_s5 + $0x304] ss:$16 sps:$4 sm:$0xff]   ;;  %v10244_v57 = vld [vmem:[%s12135_s5 + $0x268] ss:$16 sps:$4 sm:$0xff]  }
 0x42b   : > { %7481 = vmatprep.subr.bf16.mxu1 %v10177_v29  ;;  %v10215_v29 = vld [vmem:[%s12135_s5 + $0x100] ss:$16 sps:$4 sm:$0xff]   ;;  %v10247_v1 = vld [vmem:[%s12135_s5 + $0x48] ss:$16 sps:$4 sm:$0xff]   ;;  %v10255_v63 = vld [vmem:[%s12135_s5 + $0x2c] ss:$16 sps:$4 sm:$0xff]  }
 0x42c   : > { %v6568_v22 = vmul.f32 %v6566_v39, %v6531_v23  ;;  %v10250_v0 = vld [vmem:[%s12135_s5 + $0x248] ss:$16 sps:$4 sm:$0xff]   ;;  %v10261_v4 = vld [vmem:[%s12135_s5 + $0xc] ss:$16 sps:$4 sm:$0xff]  }
 0x42d   : > { %7441 = vmatpush2.bf16.msra.mxu0 %v10179_v30  ;;  %v10216_v30 = vld [vmem:[%s12135_s5 + $0x300] ss:$16 sps:$4 sm:$0xff]   ;;  %v10253_v61 = vld [vmem:[%s12135_s5 + $0x28] ss:$16 sps:$4 sm:$0xff]   ;;  %v10264_v5 = vld [vmem:[%s12135_s5 + $0x20c] ss:$16 sps:$4 sm:$0xff]  }
 0x42e   : > { %7482 = vmatpush2.bf16.msra.mxu1 %v10180_v44  ;;  %7442 = vmatprep.subr.bf16.mxu0 %v10181_v7  ;;  %v6605_v44 = vadd.f32 %v6603_v32, %v6568_v22  ;;  %v10219_v7 = vld [vmem:[%s12135_s5 + $0xec] ss:$16 sps:$4 sm:$0xff]   ;;  %v10256_v50 = vld [vmem:[%s12135_s5 + $0x228] ss:$16 sps:$4 sm:$0xff]  }
 0x42f   : > { %7483 = vmatprep.subr.bf16.mxu1 %v10183_v31  ;;  %v10259_v35 = vld [vmem:[%s12135_s5 + $0x8] ss:$16 sps:$4 sm:$0xff]   ;;  %v10267_v9 = vld [vmem:[%s12135_s5 + $0x1ec] ss:$16 sps:$4 sm:$0xff]  }
 0x430   : > { %v6614_v31 = vrot.slane %v6605_v44, %v11470_v43  ;;  %v10265_v11 = vld [vmem:[%s12135_s5 + $0x1e8] ss:$16 sps:$4 sm:$0xff]   ;;  %v10273_v33 = vld [vmem:[%s12135_s5 + $0x1cc] ss:$16 sps:$4 sm:$0xff]  }
 0x431   : > { %7443 = vmatpush2.bf16.msra.mxu0 %v10185_v28  ;;  %v6607_v28 = vcombine.high %v6605_v44, %v6605_v44  ;;  %v10276_v13 = vld [vmem:[%s12135_s5 + $0x3cc] ss:$16 sps:$4 sm:$0xff]   ;;  %v10274_v39 = vld [vmem:[%s12135_s5 + $0x3c8] ss:$16 sps:$4 sm:$0xff]  }
 0x432   : > { %7484 = vmatpush2.bf16.msra.mxu1 %v10186_v46  ;;  %7444 = vmatprep.subr.bf16.mxu0 %v10187_v27  ;;  %v10222_v46 = vld [vmem:[%s12135_s5 + $0x2ec] ss:$16 sps:$4 sm:$0xff]   ;;  %v6622_v27 = vcombine.high %v6614_v31, %v6614_v31  ;;  %v10280_v32 = vld [vmem:[%s12135_s5 + $0x3a8] ss:$16 sps:$4 sm:$0xff]  }
 0x433   : > { %7485 = vmatprep.subr.bf16.mxu1 %v10189_v48  ;;  %v6621_v48 = vrot.slane %v6607_v28, %v11470_v43  ;;  %v10279_v16 = vld [vmem:[%s12135_s5 + $0x1ac] ss:$16 sps:$4 sm:$0xff]   ;;  %v10289_v44 = vld [vmem:[%s12135_s5 + $0x168] ss:$16 sps:$4 sm:$0xff]  }
 0x434   : > { %v10285_v23 = vld [vmem:[%s12135_s5 + $0x18c] ss:$16 sps:$4 sm:$0xff]  }
 0x435   : > { %7445 = vmatpush2.bf16.msra.mxu0 %v10191_v8  ;;  %v11717_v8 = vpack.c.bf16 %v6614_v31, %v6614_v31  ;;  %v6623_v38 = vcombine.high %v6621_v48, %v6621_v48  ;;  %v11722_v45 = vpack.c.bf16 %v6621_v48, %v6621_v48  ;;  %v10291_v22 = vld [vmem:[%s12135_s5 + $0x16c] ss:$16 sps:$4 sm:$0xff]   ;;  %v10292_v31 = vld [vmem:[%s12135_s5 + $0x368] ss:$16 sps:$4 sm:$0xff]  }
 0x436   : > { %7486 = vmatpush2.bf16.msra.mxu1 %v10192_v47  ;;  %7446 = vmatprep.subr.bf16.mxu0 %v10193_v49  ;;  %v6629_v47 = vpack.c.bf16 %v6622_v27, %v6622_v27  ;;  %v10225_v49 = vld [vmem:[%s12135_s5 + $0xcc] ss:$16 sps:$4 sm:$0xff]   ;;  %v10298_v48 = vld [vmem:[%s12135_s5 + $0x348] ss:$16 sps:$4 sm:$0xff]  }
 0x437   : > { %7487 = vmatprep.subr.bf16.mxu1 %v10195_v41  ;;  %v6631_v43 = vpack.c.bf16 %v6623_v38, %v6623_v38  ;;  %v10231_v41 = vld [vmem:[%s12135_s5 + $0xac] ss:$16 sps:$4 sm:$0xff]   ;;  %v10301_v38 = vld [vmem:[%s12135_s5 + $0x128] ss:$16 sps:$4 sm:$0xff]  }
 0x438   : > { %7454 = vmatprep.mubr.bf16.mxu0 %v6629_v47  ;;  %v10300_v28 = vld [vmem:[%s12135_s5 + $0x34c] ss:$16 sps:$4 sm:$0xff]  }
 0x439   : > { %7447 = vmatpush2.bf16.msra.mxu0 %v10197_v58  ;;  %7495 = vmatprep.mubr.bf16.mxu1 %v6631_v43  ;;  %v10243_v58 = vld [vmem:[%s12135_s5 + $0x6c] ss:$16 sps:$4 sm:$0xff]  }
 0x43a   : > { %7488 = vmatpush2.bf16.msra.mxu1 %v10198_v19  ;;  %7448 = vmatprep.subr.bf16.mxu0 %v10199_v59  ;;  %v10238_v19 = vld [vmem:[%s12135_s5 + $0x288] ss:$16 sps:$4 sm:$0xff]   ;;  %v10252_v59 = vld [vmem:[%s12135_s5 + $0x24c] ss:$16 sps:$4 sm:$0xff]  }
 0x43b   : > { %7489 = vmatprep.subr.bf16.mxu1 %v10201_v3  ;;  %v10258_v3 = vld [vmem:[%s12135_s5 + $0x22c] ss:$16 sps:$4 sm:$0xff]  }
 0x43c   : > { %v10303_v27 = vld [vmem:[%s12135_s5 + $0x12c] ss:$16 sps:$4 sm:$0xff]  }
 0x43d   : > { %7449 = vmatpush2.bf16.msra.mxu0 %v10203_v10  ;;  %v10262_v10 = vld [vmem:[%s12135_s5 + $0x208] ss:$16 sps:$4 sm:$0xff]  }
 0x43e   : > { %7490 = vmatpush2.bf16.msra.mxu1 %v10204_v18  ;;  %7450 = vmatprep.subr.bf16.mxu0 %v10205_v12  ;;  %v10270_v18 = vld [vmem:[%s12135_s5 + $0x3ec] ss:$16 sps:$4 sm:$0xff]   ;;  %v10268_v12 = vld [vmem:[%s12135_s5 + $0x3e8] ss:$16 sps:$4 sm:$0xff]  }
 0x43f   : > { %7491 = vmatprep.subr.bf16.mxu1 %v10207_v17  ;;  %v10271_v17 = vld [vmem:[%s12135_s5 + $0x1c8] ss:$16 sps:$4 sm:$0xff]  }
 0x441   : > { %7451 = vmatpush2.bf16.msra.mxu0 %v10209_v56  ;;  %v10282_v56 = vld [vmem:[%s12135_s5 + $0x3ac] ss:$16 sps:$4 sm:$0xff]  }
 0x442   : > { %7492 = vmatpush2.bf16.msra.mxu1 %v10210_v60  ;;  %7452 = vmatprep.subr.bf16.mxu0 %v10211_v42  ;;  %v10277_v60 = vld [vmem:[%s12135_s5 + $0x1a8] ss:$16 sps:$4 sm:$0xff]   ;;  %v10288_v42 = vld [vmem:[%s12135_s5 + $0x38c] ss:$16 sps:$4 sm:$0xff]  }
 0x443   : > { %7493 = vmatprep.subr.bf16.mxu1 %v10213_v26  ;;  %v10283_v26 = vld [vmem:[%s12135_s5 + $0x188] ss:$16 sps:$4 sm:$0xff]  }
 0x445   : > { %7453 = vmatpush2.bf16.msra.mxu0 %v10215_v29  ;;  %v10286_v29 = vld [vmem:[%s12135_s5 + $0x388] ss:$16 sps:$4 sm:$0xff]  }
 0x446   : > { %7494 = vmatpush2.bf16.msra.mxu1 %v10216_v30  ;;  %7504 = vmatprep.subr.bf16.mxu0 %v10219_v7  ;;  %v10294_v30 = vld [vmem:[%s12135_s5 + $0x36c] ss:$16 sps:$4 sm:$0xff]  }
 0x447   : > { %7545 = vmatprep.subr.bf16.mxu1 %v10222_v46  ;;  %v10297_v7 = vld [vmem:[%s12135_s5 + $0x14c] ss:$16 sps:$4 sm:$0xff]   ;;  %v10295_v46 = vld [vmem:[%s12135_s5 + $0x148] ss:$16 sps:$4 sm:$0xff]  }
 0x448   : > { %7455 = vmatmul.mubr.bf16.vlgmr.msra.gmra.mxu0 %v11717_v8 }
 0x449   : > { %7505 = vmatpush1.bf16.msra.mxu0 %v10217_v14  ;;  %7496 = vmatmul.mubr.bf16.vlgmr.msra.gmra.mxu1 %v11722_v45  ;;  %v10309_v14 = vld [vmem:[%s12135_s5 + $0x10c] ss:$16 sps:$4 sm:$0xff]  }
 0x44a   : > { %7506 = vmatprep.subr.bf16.mxu0 %v10225_v49  ;;  %7546 = vmatpush1.bf16.msra.mxu1 %v10220_v52  ;;  %v10304_v49 = vld [vmem:[%s12135_s5 + $0x328] ss:$16 sps:$4 sm:$0xff]  }
 0x44b   : > { %7536 = vmatprep.mubr.bf16.mxu0 %v6629_v47  ;;  %7547 = vmatprep.subr.bf16.mxu1 %v10228_v25  ;;  %v10306_v47 = vld [vmem:[%s12135_s5 + $0x32c] ss:$16 sps:$4 sm:$0xff]   ;;  %v10307_v52 = vld [vmem:[%s12135_s5 + $0x108] ss:$16 sps:$4 sm:$0xff]  }
 0x44c   : > { %7577 = vmatprep.mubr.bf16.mxu1 %v6631_v43  ;;  %v10312_v43 = vld [vmem:[%s12135_s5 + $0x30c] ss:$16 sps:$4 sm:$0xff]   ;;  %v10310_v25 = vld [vmem:[%s12135_s5 + $0x308] ss:$16 sps:$4 sm:$0xff]  }
 0x44d   : > { %7507 = vmatpush1.bf16.msra.mxu0 %v10223_v15  ;;  %v7673_v15 = vld [vmem:[%s12139_s9 + $0xf8] sm:$0xff] }
 0x44e   : > { %7508 = vmatprep.subr.bf16.mxu0 %v10231_v41  ;;  %7548 = vmatpush1.bf16.msra.mxu1 %v10226_v6  ;;  %v7657_v41 = vld [vmem:[%s12139_s9 + $0x78] sm:$0xff]  ;;  %v7672_v6 = vld [vmem:[%s12139_s9 + $0xf0] sm:$0xff] }
 0x44f   : > { %7549 = vmatprep.subr.bf16.mxu1 %v10234_v21  ;;  %v7656_v21 = vld [vmem:[%s12139_s9 + $0x70] sm:$0xff] }
 0x451   : > { %7509 = vmatpush1.bf16.msra.mxu0 %v10229_v53  ;;  %v7671_v53 = vld [vmem:[%s12139_s9 + $0xe8] sm:$0xff] }
 0x452   : > { %7510 = vmatprep.subr.bf16.mxu0 %v10237_v40  ;;  %7550 = vmatpush1.bf16.msra.mxu1 %v10232_v54  ;;  %v7655_v40 = vld [vmem:[%s12139_s9 + $0x68] sm:$0xff]  ;;  %v7654_v54 = vld [vmem:[%s12139_s9 + $0x60] sm:$0xff] }
 0x453   : > { %7551 = vmatprep.subr.bf16.mxu1 %v10240_v2  ;;  %v7653_v2 = vld [vmem:[%s12139_s9 + $0x58] sm:$0xff] }
 0x455   : > { %7511 = vmatpush1.bf16.msra.mxu0 %v10235_v37  ;;  %v7668_v37 = vld [vmem:[%s12139_s9 + $0xd0] sm:$0xff] }
 0x456   : > { %7512 = vmatprep.subr.bf16.mxu0 %v10243_v58  ;;  %7552 = vmatpush1.bf16.msra.mxu1 %v10238_v19  ;;  %v7652_v58 = vld [vmem:[%s12139_s9 + $0x50] sm:$0xff]  ;;  %v7667_v19 = vld [vmem:[%s12139_s9 + $0xc8] sm:$0xff] }
 0x457   : > { %7553 = vmatprep.subr.bf16.mxu1 %v10246_v62  ;;  %v7651_v62 = vld [vmem:[%s12139_s9 + $0x48] sm:$0xff] }
 0x459   : > { %7513 = vmatpush1.bf16.msra.mxu0 %v10241_v55  ;;  %v7666_v55 = vld [vmem:[%s12139_s9 + $0xc0] sm:$0xff] }
 0x45a   : > { %7514 = vmatprep.subr.bf16.mxu0 %v10249_v24  ;;  %7554 = vmatpush1.bf16.msra.mxu1 %v10244_v57  ;;  %v7650_v24 = vld [vmem:[%s12139_s9 + $0x40] sm:$0xff]  ;;  %v7665_v57 = vld [vmem:[%s12139_s9 + $0xb8] sm:$0xff] }
 0x45b   : > { %7555 = vmatprep.subr.bf16.mxu1 %v10252_v59  ;;  %v7649_v59 = vld [vmem:[%s12139_s9 + $0x38] sm:$0xff] }
 0x45d   : > { %7515 = vmatpush1.bf16.msra.mxu0 %v10247_v1  ;;  %v7705_v1 = vld [vmem:[%s12139_s9 + $0x1f8] sm:$0xff] }
 0x45e   : > { %7516 = vmatprep.subr.bf16.mxu0 %v10255_v63  ;;  %7556 = vmatpush1.bf16.msra.mxu1 %v10250_v0  ;;  %v7689_v63 = vld [vmem:[%s12139_s9 + $0x178] sm:$0xff]  ;;  %v7704_v0 = vld [vmem:[%s12139_s9 + $0x1f0] sm:$0xff] }
 0x45f   : > { %7557 = vmatprep.subr.bf16.mxu1 %v10258_v3  ;;  %v7664_v3 = vld [vmem:[%s12139_s9 + $0xb0] sm:$0xff] }
 0x461   : > { %7517 = vmatpush1.bf16.msra.mxu0 %v10253_v61  ;;  %v7688_v61 = vld [vmem:[%s12139_s9 + $0x170] sm:$0xff] }
 0x462   : > { %7518 = vmatprep.subr.bf16.mxu0 %v10261_v4  ;;  %7558 = vmatpush1.bf16.msra.mxu1 %v10256_v50  ;;  %v7648_v4 = vld [vmem:[%s12139_s9 + $0x30] sm:$0xff]  ;;  %v7703_v50 = vld [vmem:[%s12139_s9 + $0x1e8] sm:$0xff] }
 0x463   : > { %7559 = vmatprep.subr.bf16.mxu1 %v10264_v5  ;;  %v7663_v5 = vld [vmem:[%s12139_s9 + $0xa8] sm:$0xff] }
 0x465   : > { %7519 = vmatpush1.bf16.msra.mxu0 %v10259_v35  ;;  %v7687_v35 = vld [vmem:[%s12139_s9 + $0x168] sm:$0xff] }
 0x466   : > { %7520 = vmatprep.subr.bf16.mxu0 %v10267_v9  ;;  %7560 = vmatpush1.bf16.msra.mxu1 %v10262_v10  ;;  %v7647_v9 = vld [vmem:[%s12139_s9 + $0x28] sm:$0xff]  ;;  %v7702_v10 = vld [vmem:[%s12139_s9 + $0x1e0] sm:$0xff] }
 0x467   : > { %7561 = vmatprep.subr.bf16.mxu1 %v10270_v18  ;;  %v7662_v18 = vld [vmem:[%s12139_s9 + $0xa0] sm:$0xff] }
 0x469   : > { %7521 = vmatpush2.bf16.msra.mxu0 %v10265_v11  ;;  %v7686_v11 = vld [vmem:[%s12139_s9 + $0x160] sm:$0xff] }
 0x46a   : > { %7522 = vmatprep.subr.bf16.mxu0 %v10273_v33  ;;  %7562 = vmatpush2.bf16.msra.mxu1 %v10268_v12  ;;  %v7646_v33 = vld [vmem:[%s12139_s9 + $0x20] sm:$0xff]  ;;  %v7701_v12 = vld [vmem:[%s12139_s9 + $0x1d8] sm:$0xff] }
 0x46b   : > { %7563 = vmatprep.subr.bf16.mxu1 %v10276_v13  ;;  %v7661_v13 = vld [vmem:[%s12139_s9 + $0x98] sm:$0xff] }
 0x46d   : > { %7523 = vmatpush2.bf16.msra.mxu0 %v10271_v17  ;;  %v7685_v17 = vld [vmem:[%s12139_s9 + $0x158] sm:$0xff] }
 0x46e   : > { %7524 = vmatprep.subr.bf16.mxu0 %v10279_v16  ;;  %7564 = vmatpush2.bf16.msra.mxu1 %v10274_v39  ;;  %v7645_v16 = vld [vmem:[%s12139_s9 + $0x18] sm:$0xff]  ;;  %v7700_v39 = vld [vmem:[%s12139_s9 + $0x1d0] sm:$0xff] }
 0x46f   : > { %7565 = vmatprep.subr.bf16.mxu1 %v10282_v56  ;;  %v7660_v56 = vld [vmem:[%s12139_s9 + $0x90] sm:$0xff] }
 0x471   : > { %7525 = vmatpush2.bf16.msra.mxu0 %v10277_v60  ;;  %v7684_v60 = vld [vmem:[%s12139_s9 + $0x150] sm:$0xff] }
 0x472   : > { %7526 = vmatprep.subr.bf16.mxu0 %v10285_v23  ;;  %7566 = vmatpush2.bf16.msra.mxu1 %v10280_v32  ;;  %v7644_v23 = vld [vmem:[%s12139_s9 + $0x10] sm:$0xff]  ;;  %v7699_v32 = vld [vmem:[%s12139_s9 + $0x1c8] sm:$0xff] }
 0x473   : > { %7567 = vmatprep.subr.bf16.mxu1 %v10288_v42  ;;  %v7659_v42 = vld [vmem:[%s12139_s9 + $0x88] sm:$0xff] }
 0x475   : > { %7527 = vmatpush2.bf16.msra.mxu0 %v10283_v26  ;;  %v7683_v26 = vld [vmem:[%s12139_s9 + $0x148] sm:$0xff] }
 0x476   : > { %7528 = vmatprep.subr.bf16.mxu0 %v10291_v22  ;;  %7568 = vmatpush2.bf16.msra.mxu1 %v10286_v29  ;;  %v7643_v22 = vld [vmem:[%s12139_s9 + $0x8] sm:$0xff]  ;;  %v7698_v29 = vld [vmem:[%s12139_s9 + $0x1c0] sm:$0xff] }
 0x477   : > { %7569 = vmatprep.subr.bf16.mxu1 %v10294_v30  ;;  %v7658_v30 = vld [vmem:[%s12139_s9 + $0x80] sm:$0xff] }
 0x479   : > { %7529 = vmatpush2.bf16.msra.mxu0 %v10289_v44  ;;  %v7682_v44 = vld [vmem:[%s12139_s9 + $0x140] sm:$0xff] }
 0x47a   : > { %7530 = vmatprep.subr.bf16.mxu0 %v10297_v7  ;;  %7570 = vmatpush2.bf16.msra.mxu1 %v10292_v31  ;;  %v7642_v7 = vld [vmem:[%s12139_s9] sm:$0xff]  ;;  %v7697_v31 = vld [vmem:[%s12139_s9 + $0x1b8] sm:$0xff] }
 0x47b   : > { %7571 = vmatprep.subr.bf16.mxu1 %v10300_v28  ;;  %v7681_v28 = vld [vmem:[%s12139_s9 + $0x138] sm:$0xff] }
 0x47d   : > { %7531 = vmatpush2.bf16.msra.mxu0 %v10295_v46  ;;  %v7696_v46 = vld [vmem:[%s12139_s9 + $0x1b0] sm:$0xff] }
 0x47e   : > { %7532 = vmatprep.subr.bf16.mxu0 %v10303_v27  ;;  %7572 = vmatpush2.bf16.msra.mxu1 %v10298_v48  ;;  %v7680_v27 = vld [vmem:[%s12139_s9 + $0x130] sm:$0xff]  ;;  %v7695_v48 = vld [vmem:[%s12139_s9 + $0x1a8] sm:$0xff] }
 0x47f   : > { %7573 = vmatprep.subr.bf16.mxu1 %v10306_v47  ;;  %v7679_v47 = vld [vmem:[%s12139_s9 + $0x128] sm:$0xff] }
 0x481   : > { %7533 = vmatpush2.bf16.msra.mxu0 %v10301_v38  ;;  %v7694_v38 = vld [vmem:[%s12139_s9 + $0x1a0] sm:$0xff] }
 0x482   : > { %7534 = vmatprep.subr.bf16.mxu0 %v10309_v14  ;;  %7574 = vmatpush2.bf16.msra.mxu1 %v10304_v49  ;;  %v7678_v14 = vld [vmem:[%s12139_s9 + $0x120] sm:$0xff]  ;;  %v7693_v49 = vld [vmem:[%s12139_s9 + $0x198] sm:$0xff] }
 0x483   : > { %7575 = vmatprep.subr.bf16.mxu1 %v10312_v43  ;;  %v7677_v43 = vld [vmem:[%s12139_s9 + $0x118] sm:$0xff] }
 0x485   : > { %7535 = vmatpush2.bf16.msra.mxu0 %v10307_v52  ;;  %v7692_v52 = vld [vmem:[%s12139_s9 + $0x190] sm:$0xff] }
 0x486   : > { %8836 = vmatprep.subr.mxu0 %v7673_v15  ;;  %7576 = vmatpush2.bf16.msra.mxu1 %v10310_v25  ;;  %v7676_v25 = vld [vmem:[%s12139_s9 + $0x110] sm:$0xff]  ;;  %v7691_v15 = vld [vmem:[%s12139_s9 + $0x188] sm:$0xff] }
 0x487   : > { %8871 = vmatprep.subr.mxu1 %v7705_v1 }
 0x488   : > { %7537 = vmatmul.mubr.bf16.vlgmr.msra.gmra.mxu0 %v11717_v8  ;;  %v7670_v8 = vld [vmem:[%s12139_s9 + $0xe0] sm:$0xff] }
 0x489   : > { %8837 = vmatpush3.msra.mxu0 %v7657_v41  ;;  %7578 = vmatmul.mubr.bf16.vlgmr.msra.gmra.mxu1 %v11722_v45  ;;  %v7669_v45 = vld [vmem:[%s12139_s9 + $0xd8] sm:$0xff]  ;;  %v7675_v41 = vld [vmem:[%s12139_s9 + $0x108] sm:$0xff] }
 0x48a   : > { %8838 = vmatprep.subr.mxu0 %v7672_v6  ;;  %8872 = vmatpush3.msra.mxu1 %v7689_v63  ;;  %v7690_v6 = vld [vmem:[%s12139_s9 + $0x180] sm:$0xff] }
 0x48b   : > { %8839 = vmatpush3.msra.mxu0 %v7656_v21  ;;  %8873 = vmatprep.subr.mxu1 %v7704_v0  ;;  %v7674_v21 = vld [vmem:[%s12139_s9 + $0x100] sm:$0xff] }
 0x48c   : > { %8840 = vmatprep.subr.mxu0 %v7671_v53  ;;  %8874 = vmatpush3.msra.mxu1 %v7688_v61  ;;  %v6760_v53 = vld [vmem:[%s12136_s6] sm:$0xf] }
 0x48d   : > { %8841 = vmatpush3.msra.mxu0 %v7655_v40  ;;  %8875 = vmatprep.subr.mxu1 %v7703_v50  ;;  %v6765_v40 = vrot.slane %v6760_v53, %v11611_v36 }
 0x48e   : > { %8842 = vmatprep.subr.mxu0 %v7670_v8  ;;  %8876 = vmatpush3.msra.mxu1 %v7687_v35  ;;  %v6769_v8 = vrot.slane %v6760_v53, %v11617_v34 }
 0x48f   : > { %8843 = vmatpush3.msra.mxu0 %v7654_v54  ;;  %8877 = vmatprep.subr.mxu1 %v7702_v10 }
 0x490   : > { %8844 = vmatprep.subr.mxu0 %v7669_v45  ;;  %8878 = vmatpush3.msra.mxu1 %v7686_v11 }
 0x491   : > { %8845 = vmatpush3.msra.mxu0 %v7653_v2  ;;  %8879 = vmatprep.subr.mxu1 %v7701_v12  ;;  %v7590_v2 = vld [vmem:[%s12137_s7] sm:$0xf]  ;;  %v6777_v12 = vrot.slane %v6760_v53, %v11626_v20 }
 0x492   : > { %8846 = vmatprep.subr.mxu0 %v7668_v37  ;;  %8880 = vmatpush3.msra.mxu1 %v7685_v17  ;;  %v7599_v0 = vrot.slane %v7590_v2, %v11617_v34 }
 0x493   : > { %8847 = vmatpush3.msra.mxu0 %v7652_v58  ;;  %8881 = vmatprep.subr.mxu1 %v7700_v39 }
 0x494   : > { %8848 = vmatprep.subr.mxu0 %v7667_v19  ;;  %8882 = vmatpush3.msra.mxu1 %v7684_v60 }
 0x495   : > { %8849 = vmatpush3.msra.mxu0 %v7651_v62  ;;  %8883 = vmatprep.subr.mxu1 %v7699_v32 }
 0x496   : > { %8850 = vmatprep.subr.mxu0 %v7666_v55  ;;  %8884 = vmatpush3.msra.mxu1 %v7683_v26  ;;  %v7595_v55 = vrot.slane %v7590_v2, %v11611_v36  ;;  %v7607_v26 = vrot.slane %v7590_v2, %v11626_v20 }
 0x497   : > { %8851 = vmatpush3.msra.mxu0 %v7650_v24  ;;  %8885 = vmatprep.subr.mxu1 %v7698_v29  ;;  %v7616_v24 = vld [vmem:[%s12138_s8] sm:$0xf] }
 0x498   : > { %8852 = vmatprep.subr.mxu0 %v7665_v57  ;;  %8886 = vmatpush3.msra.mxu1 %v7682_v44  ;;  %v7625_v50 = vrot.slane %v7616_v24, %v11617_v34  ;;  %v7621_v35 = vrot.slane %v7616_v24, %v11611_v36  ;;  %v7603_v34 = vrot.slane %v7590_v2, %v11620_v51 }
 0x499   : > { %8853 = vmatpush3.msra.mxu0 %v7649_v59  ;;  %8887 = vmatprep.subr.mxu1 %v7697_v31  ;;  %v7633_v44 = vrot.slane %v7616_v24, %v11626_v20  ;;  %v7629_v31 = vrot.slane %v7616_v24, %v11620_v51 }
 0x49a   : > { %8854 = vmatprep.subr.mxu0 %v7664_v3  ;;  %8888 = vmatpush3.msra.mxu1 %v7681_v28 }
 0x49b   : > { %8855 = vmatpush3.msra.mxu0 %v7648_v4  ;;  %8889 = vmatprep.subr.mxu1 %v7696_v46 }
 0x49c   : > { %8856 = vmatprep.subr.mxu0 %v7663_v5  ;;  %8890 = vmatpush3.msra.mxu1 %v7680_v27 }
 0x49d   : > { %8857 = vmatpush3.msra.mxu0 %v7647_v9  ;;  %8891 = vmatprep.subr.mxu1 %v7695_v48 }
 0x49e   : > { %8858 = vmatprep.subr.mxu0 %v7662_v18  ;;  %8892 = vmatpush3.msra.mxu1 %v7679_v47 }
 0x49f   : > { %8859 = vmatpush3.msra.mxu0 %v7646_v33  ;;  %8893 = vmatprep.subr.mxu1 %v7694_v38  ;;  %v6773_v33 = vrot.slane %v6760_v53, %v11620_v51 }
 0x4a0   : > { %8860 = vmatprep.subr.mxu0 %v7661_v13  ;;  %8894 = vmatpush3.msra.mxu1 %v7678_v14 }
 0x4a1   : > { %8861 = vmatpush3.msra.mxu0 %v7645_v16  ;;  %8895 = vmatprep.subr.mxu1 %v7693_v49  ;;  %v8831_v49 = vld [vmem:[#allocation3] ss:$0 sm:$0xff] }
 0x4a2   : > { %8862 = vmatprep.subr.mxu0 %v7660_v56  ;;  %8896 = vmatpush3.msra.mxu1 %v7677_v43 }
 0x4a3   : > { %8863 = vmatpush3.msra.mxu0 %v7644_v23  ;;  %8897 = vmatprep.subr.mxu1 %v7692_v52 }
 0x4a4   : > { %8864 = vmatprep.subr.mxu0 %v7659_v42  ;;  %8898 = vmatpush3.msra.mxu1 %v7676_v25 }
 0x4a5   : > { %8865 = vmatpush3.msra.mxu0 %v7643_v22  ;;  %8899 = vmatprep.subr.mxu1 %v7691_v15 }
 0x4a6   : > { %8866 = vmatprep.subr.mxu0 %v7658_v30  ;;  %8900 = vmatpush3.msra.mxu1 %v7675_v41 }
 0x4a7   : > { %8867 = vmatpush3.msra.mxu0 %v7642_v7  ;;  %8901 = vmatprep.subr.mxu1 %v7690_v6 }
 0x4a8   : > { %8902 = vmatpush3.msra.mxu1 %v7674_v21 }
 0x508   : > { %v7456_v54 = vpop.f32.mrf.mxu0 }
 0x509   : > { %v7457_v45 = vadd.f32 %v7456_v54, %v6765_v40  ;;  %v7497_v37 = vpop.f32.mrf.mxu1 }
 0x50a   : > { %v7458_v58 = vpop.f32.mrf.mxu0 }
 0x50b   : > { %v7498_v19 = vadd.f32 %v7497_v37, %v7457_v45  ;;  %v7459_v62 = vadd.f32 %v7458_v58, %v6769_v8  ;;  %v7499_v57 = vpop.f32.mrf.mxu1 }
 0x50c   : > { %v7460_v59 = vpop.f32.mrf.mxu0 }
 0x50d   : > { %v7586_v1 = vmax.f32 %v7498_v19, 0.0  ;;  %v7500_v63 = vadd.f32 %v7499_v57, %v7459_v62  ;;  %v7501_v3 = vpop.f32.mrf.mxu1 }
 0x50e   : > { %v7461_v61 = vpop.f32.mrf.mxu0 }
 0x50f   : > { %v7587_v4 = vmax.f32 %v7500_v63, 0.0  ;;  %v7612_v5 = vmul.f32 %v7595_v55, %v7586_v1  ;;  %v7502_v9 = vpop.f32.mrf.mxu1 }
 0x511   : > { %v7613_v10 = vmul.f32 %v7599_v0, %v7587_v4  ;;  %v7638_v11 = vadd.f32 %v7621_v35, %v7612_v5 }
 0x513   : > { %v7639_v18 = vadd.f32 %v7625_v50, %v7613_v10 }
 0x515   : > { %7777 = vmatprep.mubr.f32.mxu0 %v7639_v18 }
 0x516   : > { %7778 = vmatmul.mubr.f32.vlgmr.msra.gmra.mxu0 %v7638_v11 }
 0x548   : > { %v7538_v13 = vpop.f32.mrf.mxu0 }
 0x549   : > { %v7539_v17 = vadd.f32 %v7538_v13, %v6773_v33  ;;  %v7579_v16 = vpop.f32.mrf.mxu1 }
 0x54a   : > { %v7540_v39 = vpop.f32.mrf.mxu0 }
 0x54b   : > { %v7580_v56 = vadd.f32 %v7579_v16, %v7539_v17  ;;  %v7541_v60 = vadd.f32 %v7540_v39, %v6777_v12  ;;  %v7581_v23 = vpop.f32.mrf.mxu1 }
 0x54c   : > { %v7542_v36 = vpop.f32.mrf.mxu0 }
 0x54d   : > { %v7588_v32 = vmax.f32 %v7580_v56, 0.0  ;;  %v7582_v42 = vadd.f32 %v7581_v23, %v7541_v60  ;;  %v7583_v22 = vpop.f32.mrf.mxu1 }
 0x54e   : > { %v7543_v29 = vpop.f32.mrf.mxu0 }
 0x54f   : > { %v7589_v30 = vmax.f32 %v7582_v42, 0.0  ;;  %v7614_v7 = vmul.f32 %v7603_v34, %v7588_v32  ;;  %v7584_v28 = vpop.f32.mrf.mxu1 }
 0x551   : > { %v7615_v46 = vmul.f32 %v7607_v26, %v7589_v30  ;;  %v7640_v48 = vadd.f32 %v7629_v31, %v7614_v7 }
 0x553   : > { %v7641_v27 = vadd.f32 %v7633_v44, %v7615_v46 }
 0x555   : > { %7847 = vmatprep.mubr.f32.mxu1 %v7641_v27 }
 0x556   : > { %7848 = vmatmul.mubr.f32.vlgmr.msra.gmra.mxu1 %v7640_v48 }
 0x5d6   : > { %v8868_v47 = vpop.f32.mrf.mxu0 }
 0x5d8   : > { %v8869_v38 = vpop.f32.mrf.mxu0 }
 0x5d9   : > { %v8870_v14 = vadd.f32 %v8869_v38, %v8868_v47 }
 0x5db   : > { %v7780_v25 = vadd.f32 %v8870_v14, %v8831_v49 }
 0x616   : > { %v8903_v43 = vpop.f32.mrf.mxu1 }
 0x618   : > { %v8904_v52 = vpop.f32.mrf.mxu1 }
 0x619   : > { %v8905_v15 = vadd.f32 %v8904_v52, %v8903_v43 }
 0x61b   : > { %v7850_v41 = vadd.f32 %v8905_v15, %v7780_v25 }
 0x61d   : > { %v8832_v20 = vclamps-f32 %v7850_v41, 0.75 }
 0x61f   : > { %7856 = vst.msk [vmem:[%s12141_s11] sm:$0x3] %vm7855_vm0, %v8832_v20 }
 0x620 PF: > { %s23_s19 = sadd.s32 1, %s10319_s19  }
 0x621   : > { %p20_p7 = scmp.ge.s32.totalorder %s23_s19, 5  }
 0x623   :  { %22 = sbr.rel (!%p20_p7) target bundleno = 3 (0x3), region = 101 }

</bundles_post_ra>
